<compile_context>
chip_gen: v6e
topology: v6e:2x2x1
jax: 0.10.0
libtpu: 0.0.40
codegen_flags: <defaults>
</compile_context>

<pallas_src>
import functools

import jax
import jax.numpy as jnp
import numpy as np
from jax.experimental import pallas as pl
from jax.experimental.pallas import tpu as pltpu


BLOCK_CFGS = [  # (ks, kt, ss, st, ps, pt) — matches Generator_G4.__init__
    (4, 4, 1, 1, 0, 0),
    (4, 4, 2, 2, 1, 1),
    (4, 4, 2, 2, 1, 1),
    (4, 1, 2, 1, 1, 0),
    (4, 1, 2, 1, 1, 0),
]


def _block_channels(c_a, c_m, ch):
    return [
        (c_a, c_a + c_m, c_m, ch * 8),
        (ch * 8, ch * 8 * 2, ch * 8, ch * 8),
        (ch * 8, ch * 8 * 2, ch * 8, ch * 4),
        (ch * 4, ch * 4 * 2, ch * 4, ch * 2),
        (ch * 2, ch * 2 * 2, ch * 2, ch),
    ]


# ---------------------------------------------------------------------------
# Static per-dimension convolution plans (phase / sub-pixel decomposition).
#
# For a 1-D (transposed) conv the plan gives, per output phase o_start:
#     out[o_start + m*s] = sum_taps w[kk] * x_padded[i0 + m]
# i.e. every (phase, tap) is a *contiguous* stride-1 window of the zero-padded
# input — no zero-dilation, no wasted taps.
# ---------------------------------------------------------------------------
def _dim_plan(in_size, k, s, p, transposed):
    if transposed:
        out_size = (in_size - 1) * s - 2 * p + k
        raw = []
        for o_start in range(min(s, out_size)):
            r = (o_start + p) % s
            taps = [kk for kk in range(k) if kk % s == r]
            length = (out_size - o_start + s - 1) // s
            raw.append((o_start, length,
                        [(kk, (o_start + p - kk) // s) for kk in taps]))
    else:
        assert s == 1
        out_size = in_size + 2 * p - k + 1
        raw = [(0, out_size, [(kk, kk - p) for kk in range(k)])]
    i_lo = min(i0 for (_, _, taps) in raw for (_, i0) in taps)
    i_hi = max(i0 + ln - 1 for (_, ln, taps) in raw for (_, i0) in taps)
    pad_lo = max(0, -i_lo)
    pad_hi = max(0, i_hi - (in_size - 1))
    phases = [(o_start, ln, [(kk, i0 + pad_lo) for (kk, i0) in taps])
              for (o_start, ln, taps) in raw]
    if len(phases) > 1:
        assert all(ln == phases[0][1] for (_, ln, _) in phases)
    return out_size, pad_lo, pad_hi, phases


# ---------------------------------------------------------------------------
# Pallas kernel: fused im2col conv.  One program = one (stream, batch, frame).
#   x_ref : (1, 1, Tblk, Cin, Hp, Wp)   padded input window (bf16/f32)
#   w_ref : (1, kt*kh*kw, Cout, Cin)
#   b_ref : (1, Cout, 1)                f32 (BN already folded)
#   [app_ref (1, P, Cout//2, L), mot_ref (1, 1, Cout//2, 1)]  optional fusion
#   out_refs[p] : (1, 1, 1, Cout, L)    one per spatial phase, lane-dense
# ---------------------------------------------------------------------------
def _conv_kernel(x_ref, w_ref, b_ref, *rest, meta):
    fuse = meta["fuse"]
    if fuse:
        app_ref, mot_ref = rest[0], rest[1]
        out_refs = rest[2:]
    else:
        out_refs = rest
    cin, cout = meta["cin"], meta["cout"]
    kh, kw = meta["kh"], meta["kw"]
    act = meta["act"]
    t_base = 0 if meta["per_frame_t"] else pl.program_id(2)

    ph_idx = 0
    for (_, Lh, h_taps) in meta["h_phases"]:
        for (_, Lw, w_taps) in meta["w_phases"]:
            acc = jnp.zeros((cout, Lh * Lw), jnp.float32)
            for (kkt, t0) in meta["t_taps"]:
                for (kkh, h0) in h_taps:
                    for (kkw, w0) in w_taps:
                        tap = (kkt * kh + kkh) * kw + kkw
                        win = x_ref[0, 0, pl.ds(t_base + t0, 1), :,
                                    pl.ds(h0, Lh), pl.ds(w0, Lw)]
                        win = win.reshape(cin, Lh * Lw)
                        acc = acc + jnp.dot(
                            w_ref[0, tap], win,
                            preferred_element_type=jnp.float32)
            res = acc + b_ref[0]
            if act == "relu":
                res = jnp.maximum(res, 0.0)
            elif act == "tanh":
                res = jnp.tanh(res)
            if fuse:
                chalf = cout // 2
                app_part = app_ref[0, ph_idx].astype(jnp.float32)   # (chalf, L)
                mot_col = mot_ref[0, 0].astype(jnp.float32)         # (chalf, 1)
                add = jnp.concatenate(
                    [app_part, jnp.broadcast_to(mot_col, (chalf, Lh * Lw))],
                    axis=0)
                res = res + add
            out_refs[ph_idx][0, 0, 0, :, :] = res.astype(out_refs[ph_idx].dtype)
            ph_idx += 1


# ---------------------------------------------------------------------------
# Wrapper: general (transposed) 3-D convolution.
#   x : (S, N, T, Cin, H, W)
#   w : (S, Cin, Cout, kt, kh, kw)  if transposed else (S, Cout, Cin, kt, kh, kw)
#   b : (S, Cout)
#   fuse_app : (N, Cout//2, Ho, Wo)  added (broadcast over T) to channels [:C/2]
#   fuse_mot : (N, Cout//2, To)      added (broadcast over H,W) to channels [C/2:]
# Returns (S, N, To, Cout, Ho, Wo).
# ---------------------------------------------------------------------------
def conv3d_general(x, w, b, *, kernel, stride, padding, transposed,
                   act="none", fuse_app=None, fuse_mot=None,
                   compute_dtype=jnp.bfloat16, out_dtype=None):
    S, N, T, Cin, H, W = x.shape
    kt, kh, kw = kernel
    st, sh, sw = stride
    pt, ph, pw = padding
    if transposed:
        Cout = w.shape[2]
    else:
        assert stride == (1, 1, 1)
        Cout = w.shape[1]
    out_dtype = compute_dtype if out_dtype is None else out_dtype

    x = x.astype(compute_dtype)

    # Temporal stride: zero-dilate (only the tiny early blocks are strided in T)
    # so the in-kernel T plan is always stride-1.
    if transposed and st > 1:
        Td = (T - 1) * st + 1
        zeros = jnp.zeros((S, N, T, st - 1, Cin, H, W), x.dtype)
        x = jnp.concatenate([x[:, :, :, None], zeros], axis=3)
        x = x.reshape(S, N, T * st, Cin, H, W)[:, :, :Td]
        T_eff = Td
    else:
        T_eff = T

    To, tlo, thi, t_phases = _dim_plan(T_eff, kt, 1, pt, transposed)
    Ho, hlo, hhi, h_phases = _dim_plan(H, kh, sh, ph, transposed)
    Wo, wlo, whi, w_phases = _dim_plan(W, kw, sw, pw, transposed)
    (_, Lt, t_taps), = t_phases
    Lh, Lw = h_phases[0][1], w_phases[0][1]
    nh, nw = len(h_phases), len(w_phases)
    P = nh * nw
    assert Lh * nh == Ho and Lw * nw == Wo and Lt == To

    xp = jnp.pad(x, ((0, 0), (0, 0), (tlo, thi), (0, 0), (hlo, hhi), (wlo, whi)))
    Tp, Hp, Wp = T_eff + tlo + thi, H + hlo + hhi, W + wlo + whi

    per_frame_t = (len(t_taps) == 1 and t_taps[0][1] == 0 and Tp == To)
    Tblk = 1 if per_frame_t else Tp

    if transposed:
        wt = jnp.transpose(w, (0, 3, 4, 5, 2, 1))
    else:
        wt = jnp.transpose(w, (0, 3, 4, 5, 1, 2))
    wt = wt.reshape(S, kt * kh * kw, Cout, Cin).astype(compute_dtype)
    bt = b.reshape(S, Cout, 1).astype(jnp.float32)

    def x_imap(s, n, t):
        return (s, n, t if per_frame_t else 0, 0, 0, 0)

    in_specs = [
        pl.BlockSpec((1, 1, Tblk, Cin, Hp, Wp), x_imap),
        pl.BlockSpec((1, kt * kh * kw, Cout, Cin), lambda s, n, t: (s, 0, 0, 0)),
        pl.BlockSpec((1, Cout, 1), lambda s, n, t: (s, 0, 0)),
    ]
    inputs = [xp, wt, bt]

    fuse = fuse_app is not None
    if fuse:
        assert fuse_mot is not None
        chalf = Cout // 2
        parts = []
        for (h0s, _, _) in h_phases:
            for (w0s, _, _) in w_phases:
                parts.append(
                    fuse_app[:, :, h0s::sh, w0s::sw].reshape(N, chalf, Lh * Lw))
        app_stack = jnp.stack(parts, axis=1).astype(compute_dtype)  # (N,P,chalf,L)
        mot = jnp.transpose(fuse_mot, (0, 2, 1))[..., None]         # (N,To,chalf,1)
        mot = mot.astype(compute_dtype)
        in_specs += [
            pl.BlockSpec((1, P, chalf, Lh * Lw), lambda s, n, t: (n, 0, 0, 0)),
            pl.BlockSpec((1, 1, chalf, 1), lambda s, n, t: (n, t, 0, 0)),
        ]
        inputs += [app_stack, mot]

    out_shape = tuple(jax.ShapeDtypeStruct((S, N, To, Cout, Lh * Lw), out_dtype)
                      for _ in range(P))
    out_specs = [pl.BlockSpec((1, 1, 1, Cout, Lh * Lw),
                              lambda s, n, t: (s, n, t, 0, 0))
                 for _ in range(P)]

    meta = dict(
        act=act, fuse=fuse, cin=Cin, cout=Cout, kh=kh, kw=kw,
        per_frame_t=per_frame_t,
        t_taps=tuple(t_taps),
        h_phases=tuple((o, ln, tuple(tp)) for (o, ln, tp) in h_phases),
        w_phases=tuple((o, ln, tuple(tp)) for (o, ln, tp) in w_phases))

    outs = pl.pallas_call(
        functools.partial(_conv_kernel, meta=meta),
        out_shape=out_shape,
        grid_spec=pltpu.PrefetchScalarGridSpec(
            num_scalar_prefetch=0,
            grid=(S, N, To),
            in_specs=in_specs,
            out_specs=out_specs),
        compiler_params=pltpu.CompilerParams(
            dimension_semantics=("parallel", "parallel", "parallel"),
            vmem_limit_bytes=32 * 1024 * 1024),
    )(*inputs)

    parts = [o.reshape(S, N, To, Cout, Lh, Lw) for o in outs]
    if P == 1:
        out = parts[0]
    else:  # interleave H/W phases (one cheap XLA reshape pass)
        mat = [[parts[i * nw + j] for j in range(nw)] for i in range(nh)]
        stacked = jnp.stack([jnp.stack(mat[i], axis=-1) for i in range(nh)],
                            axis=-3)                       # (S,N,To,C,Lh,nh,Lw,nw)
        out = stacked.reshape(S, N, To, Cout, Ho, Wo)
    return out


# ---------------------------------------------------------------------------
# Parameters (deterministic synthetic init; eval-mode BatchNorm folded in).
# ---------------------------------------------------------------------------
def _init_convT_bn(key, cin, cout, kshape):
    kw_, kb_, kg_ = jax.random.split(key, 3)
    w = 0.02 * jax.random.normal(kw_, (cin, cout) + kshape, jnp.float32)
    bias = 0.02 * jax.random.normal(kb_, (cout,), jnp.float32)
    gamma = 1.0 + 0.02 * jax.random.normal(kg_, (cout,), jnp.float32)
    beta = jnp.zeros((cout,), jnp.float32)
    scale = gamma / jnp.sqrt(1.0 + 1e-5)   # eval-mode BN folded in
    return w * scale[None, :, None, None, None], bias * scale + beta


def init_generator_params(key, c_a, c_m, ch):
    blocks = []
    keys = jax.random.split(key, len(BLOCK_CFGS) + 1)
    for bkey, cfg, chans in zip(keys[:-1], BLOCK_CFGS,
                                _block_channels(c_a, c_m, ch)):
        ks, kt, _, _, _, _ = cfg
        c_fg, c_v, c_mm, c_out = chans
        kfg, kbg, kt_, ktm, kv = jax.random.split(bkey, 5)
        wf, bf = _init_convT_bn(kfg, c_fg, c_out, (1, ks, ks))
        wb, bb = _init_convT_bn(kbg, c_fg, c_out, (1, ks, ks))
        wt, btt = _init_convT_bn(kt_, c_mm, c_out, (kt, 1, 1))
        wtm, btm = _init_convT_bn(ktm, c_mm, c_out, (kt, 1, 1))
        wv, bv = _init_convT_bn(kv, c_v, 2 * c_out, (kt, ks, ks))
        blocks.append({
            "fgbg": {"w": jnp.stack([wf, wb]), "b": jnp.stack([bf, bb])},
            "ttm": {"w": jnp.stack([wt, wtm]), "b": jnp.stack([btt, btm])},
            "v": {"w": wv[None], "b": bv[None]},
        })
    krw, krb = jax.random.split(keys[-1])
    rgb_w = 0.02 * jax.random.normal(krw, (3, ch * 2, 1, 3, 3), jnp.float32)
    rgb_b = 0.02 * jax.random.normal(krb, (3,), jnp.float32)
    return {"blocks": blocks, "rgb": {"w": rgb_w[None], "b": rgb_b[None]}}


# ---------------------------------------------------------------------------
# G4 block + Generator_G4 forward.  Internal activation layout: (S, N, T, C, H, W).
# ---------------------------------------------------------------------------
def g4_block(p, hfgbg, hv, httm, cfg, dt):
    ks, kt, ss, st, ps, pt = cfg
    vfgbg = conv3d_general(hfgbg, p["fgbg"]["w"], p["fgbg"]["b"],
                           kernel=(1, ks, ks), stride=(1, ss, ss),
                           padding=(0, ps, ps), transposed=True, act="relu",
                           compute_dtype=dt, out_dtype=dt)
    vttm = conv3d_general(httm, p["ttm"]["w"], p["ttm"]["b"],
                          kernel=(kt, 1, 1), stride=(st, 1, 1),
                          padding=(pt, 0, 0), transposed=True, act="relu",
                          compute_dtype=dt, out_dtype=dt)
    # TODO(synk): exact G4 stream-fusion unknown (class not provided); G3AN-style
    # fusion: appearance broadcast over T, motion over (H,W), concat added to the
    # video stream — fused into the v-conv epilogue below.
    app = 0.5 * (vfgbg[0, :, 0] + vfgbg[1, :, 0])            # (N, C, Ho, Wo)
    mot = 0.5 * (vttm[0, :, :, :, 0, 0] + vttm[1, :, :, :, 0, 0])  # (N, To, C)
    mot = jnp.transpose(mot, (0, 2, 1))                      # (N, C, To)
    hv_new = conv3d_general(hv, p["v"]["w"], p["v"]["b"],
                            kernel=(kt, ks, ks), stride=(st, ss, ss),
                            padding=(pt, ps, ps), transposed=True, act="relu",
                            fuse_app=app, fuse_mot=mot,
                            compute_dtype=dt, out_dtype=dt)
    return vfgbg, hv_new, vttm


def generator_g4_forward(params, zfg, zbg, zm):
    to_l = lambda z: jnp.transpose(z, (0, 2, 1, 3, 4))       # NCDHW -> (N,T,C,H,W)
    zfg_l, zbg_l, zm_l = to_l(zfg), to_l(zbg), to_l(zm)
    T0 = zm_l.shape[1]
    zv_l = jnp.concatenate([jnp.repeat(zfg_l, T0, axis=1), zm_l], axis=2)

    hfgbg = jnp.stack([zfg_l, zbg_l], axis=0)                # (2,N,1,c_a,1,1)
    httm = jnp.stack([zm_l, zm_l], axis=0)                   # (2,N,1,c_m,1,1)
    hv = zv_l[None]                                          # (1,N,1,c_a+c_m,1,1)

    dt = jnp.bfloat16
    for bp, cfg in zip(params["blocks"], BLOCK_CFGS):
        hfgbg, hv, httm = g4_block(bp, hfgbg, hv, httm, cfg, dt)

    rgb = conv3d_general(hv, params["rgb"]["w"], params["rgb"]["b"],
                         kernel=(1, 3, 3), stride=(1, 1, 1), padding=(0, 1, 1),
                         transposed=False, act="tanh",
                         compute_dtype=dt, out_dtype=jnp.float32)
    return jnp.transpose(rgb[0], (0, 2, 1, 3, 4))            # -> NCDHW


# ---------------------------------------------------------------------------
# Self-check of the Pallas conv against lax references (f32 path).
# ---------------------------------------------------------------------------
def _convT_ref(x, w, b, stride, padding):
    kt, kh, kw = w.shape[2:]
    pt, ph, pw = padding
    wf = jnp.flip(w, (2, 3, 4)).transpose(1, 0, 2, 3, 4)
    out = jax.lax.conv_general_dilated(
        x, wf, window_strides=(1, 1, 1),
        padding=[(kt - 1 - pt,) * 2, (kh - 1 - ph,) * 2, (kw - 1 - pw,) * 2],
        lhs_dilation=stride,
        dimension_numbers=("NCDHW", "OIDHW", "NCDHW"))
    return out + b[None, :, None, None, None]


def _conv_ref(x, w, b, padding):
    out = jax.lax.conv_general_dilated(
        x, w, window_strides=(1, 1, 1),
        padding=[(padding[0],) * 2, (padding[1],) * 2, (padding[2],) * 2],
        dimension_numbers=("NCDHW", "OIDHW", "NCDHW"))
    return out + b[None, :, None, None, None]


def _self_check():
    def run(x, w, b, kernel, stride, padding, transposed, fuse=None):
        xl = jnp.transpose(x, (0, 2, 1, 3, 4))[None]
        fa, fm = (fuse if fuse is not None else (None, None))
        out = conv3d_general(xl, w[None], b[None], kernel=kernel, stride=stride,
                             padding=padding, transposed=transposed, act="none",
                             fuse_app=fa, fuse_mot=fm,
                             compute_dtype=jnp.float32, out_dtype=jnp.float32)
        return np.asarray(jnp.transpose(out[0], (0, 2, 1, 3, 4)))

    ks = jax.random.split(jax.random.PRNGKey(42), 12)
    tol = dict(rtol=5e-2, atol=5e-2)

    # 1) joint 3-D transposed conv, stride 2 (T dilation + H/W phases)
    x = jax.random.normal(ks[0], (2, 5, 3, 4, 4), jnp.float32)
    w = jax.random.normal(ks[1], (5, 7, 4, 4, 4), jnp.float32) * 0.1
    b = jax.random.normal(ks[2], (7,), jnp.float32) * 0.1
    np.testing.assert_allclose(run(x, w, b, (4, 4, 4), (2, 2, 2), (1, 1, 1), True),
                               np.asarray(_convT_ref(x, w, b, (2, 2, 2), (1, 1, 1))), **tol)

    # 2) spatial transposed conv with fused app/mot epilogue (block-4/5 style)
    x = jax.random.normal(ks[3], (2, 6, 3, 4, 4), jnp.float32)
    w = jax.random.normal(ks[4], (6, 8, 1, 4, 4), jnp.float32) * 0.1
    b = jax.random.normal(ks[5], (8,), jnp.float32) * 0.1
    app = jax.random.normal(ks[6], (2, 4, 8, 8), jnp.float32)
    mot = jax.random.normal(ks[7], (2, 4, 3), jnp.float32)
    got = run(x, w, b, (1, 4, 4), (1, 2, 2), (0, 1, 1), True, fuse=(app, mot))
    want = _convT_ref(x, w, b, (1, 2, 2), (0, 1, 1))
    want = want + jnp.concatenate(
        [jnp.broadcast_to(app[:, :, None], (2, 4, 3, 8, 8)),
         jnp.broadcast_to(mot[:, :, :, None, None], (2, 4, 3, 8, 8))], axis=1)
    np.testing.assert_allclose(got, np.asarray(want), **tol)

    # 3) regular conv (to_rgb style)
    x = jax.random.normal(ks[8], (2, 6, 3, 9, 9), jnp.float32)
    w = jax.random.normal(ks[9], (4, 6, 1, 3, 3), jnp.float32) * 0.1
    b = jax.random.normal(ks[10], (4,), jnp.float32) * 0.1
    np.testing.assert_allclose(run(x, w, b, (1, 3, 3), (1, 1, 1), (0, 1, 1), False),
                               np.asarray(_conv_ref(x, w, b, (0, 1, 1))), **tol)

    # 4) stride-1 transposed conv from a 1x1x1 latent (block-1 style)
    x = jax.random.normal(ks[11], (2, 5, 1, 1, 1), jnp.float32)
    w = jax.random.normal(ks[0], (5, 6, 4, 4, 4), jnp.float32) * 0.1
    b = jnp.zeros((6,), jnp.float32)
    np.testing.assert_allclose(run(x, w, b, (4, 4, 4), (1, 1, 1), (0, 0, 0), True),
                               np.asarray(_convT_ref(x, w, b, (1, 1, 1), (0, 0, 0))), **tol)


if __name__ == "__main__":
    _self_check()

    # Small shapes consistent with the module (c_a, c_m, ch are ctor params).
    c_a, c_m, ch, n = 8, 4, 4, 2
    key = jax.random.PRNGKey(0)
    k_in, k_par = jax.random.split(key)
    k1, k2, k3 = jax.random.split(k_in, 3)
    zfg = jax.random.normal(k1, (n, c_a, 1, 1, 1), jnp.float32)
    zbg = jax.random.normal(k2, (n, c_a, 1, 1, 1), jnp.float32)
    zm = jax.random.normal(k3, (n, c_m, 1, 1, 1), jnp.float32)

    params = init_generator_params(k_par, c_a, c_m, ch)

    out = jax.jit(generator_g4_forward)(params, zfg, zbg, zm)
    jax.block_until_ready(out)
    assert out.shape == (n, 3, 16, 64, 64), out.shape
    assert bool(jnp.all(jnp.isfinite(out)))
    print("KERNEL_OK")
</pallas_src>

<mosaic_0001>
module attributes {stable_mosaic.version = 11 : i64} {
  func.func @_conv_kernel(%arg0: i32, %arg1: i32, %arg2: i32, %arg3: memref<1x1x9x5x6x6xf32, #tpu.memory_space<vmem>>, %arg4: memref<1x64x7x5xf32, #tpu.memory_space<vmem>>, %arg5: memref<1x7x1xf32, #tpu.memory_space<vmem>>, %arg6: memref<1x1x1x7x16xf32, #tpu.memory_space<vmem>>, %arg7: memref<1x1x1x7x16xf32, #tpu.memory_space<vmem>>, %arg8: memref<1x1x1x7x16xf32, #tpu.memory_space<vmem>>, %arg9: memref<1x1x1x7x16xf32, #tpu.memory_space<vmem>>) attributes {dimension_semantics = [#tpu.dimension_semantics<parallel>, #tpu.dimension_semantics<parallel>, #tpu.dimension_semantics<parallel>], iteration_bounds = array<i64: 1, 2, 6>, scalar_prefetch = 0 : i64, scratch_operands = 0 : i64, tpu.core_type = #tpu.core_type<tc>, window_params = [{transform_indices = @transform_0, window_bounds = array<i64: 1, 1, 9, 5, 6, 6>}, {transform_indices = @transform_1, window_bounds = array<i64: 1, 64, 7, 5>}, {transform_indices = @transform_2, window_bounds = array<i64: 1, 7, 1>}, {transform_indices = @transform_3, window_bounds = array<i64: 1, 1, 1, 7, 16>}, {transform_indices = @transform_4, window_bounds = array<i64: 1, 1, 1, 7, 16>}, {transform_indices = @transform_5, window_bounds = array<i64: 1, 1, 1, 7, 16>}, {transform_indices = @transform_6, window_bounds = array<i64: 1, 1, 1, 7, 16>}]} {
    %cst = arith.constant 0.000000e+00 : f32
    %0 = vector.broadcast %cst : f32 to vector<7x16xf32>
    %c3_i32 = arith.constant 3 : i32
    %1 = arith.addi %arg2, %c3_i32 : i32
    %c0 = arith.constant 0 : index
    %c0_0 = arith.constant 0 : index
    %2 = arith.index_cast %1 : i32 to index
    %c0_1 = arith.constant 0 : index
    %c1 = arith.constant 1 : index
    %c1_2 = arith.constant 1 : index
    %3 = vector.load %arg3[%c0, %c0_0, %2, %c0_1, %c1, %c1_2] : memref<1x1x9x5x6x6xf32, #tpu.memory_space<vmem>>, vector<1x1x1x5x4x4xf32>
    %4 = vector.shape_cast %3 : vector<1x1x1x5x4x4xf32> to vector<1x5x4x4xf32>
    %5 = vector.shape_cast %4 : vector<1x5x4x4xf32> to vector<5x16xf32>
    %c0_3 = arith.constant 0 : index
    %c5 = arith.constant 5 : index
    %c0_4 = arith.constant 0 : index
    %c0_5 = arith.constant 0 : index
    %6 = vector.load %arg4[%c0_3, %c5, %c0_4, %c0_5] : memref<1x64x7x5xf32, #tpu.memory_space<vmem>>, vector<1x1x7x5xf32>
    %7 = vector.shape_cast %6 : vector<1x1x7x5xf32> to vector<7x5xf32>
    %cst_6 = arith.constant dense<0.000000e+00> : vector<7x16xf32>
    %8 = tpu.matmul %7, %5, %cst_6 {dimension_numbers = #tpu.dot_dimension_numbers<[1], [0], [0], [1], [0, 0, 1, 1], [], []>} : vector<7x5xf32>, vector<5x16xf32>, vector<7x16xf32> -> vector<7x16xf32>
    %9 = arith.addf %0, %8 : vector<7x16xf32>
    %c3_i32_7 = arith.constant 3 : i32
    %10 = arith.addi %arg2, %c3_i32_7 : i32
    %c0_8 = arith.constant 0 : index
    %c0_9 = arith.constant 0 : index
    %11 = arith.index_cast %10 : i32 to index
    %c0_10 = arith.constant 0 : index
    %c1_11 = arith.constant 1 : index
    %c0_12 = arith.constant 0 : index
    %12 = vector.load %arg3[%c0_8, %c0_9, %11, %c0_10, %c1_11, %c0_12] : memref<1x1x9x5x6x6xf32, #tpu.memory_space<vmem>>, vector<1x1x1x5x4x4xf32>
    %13 = vector.shape_cast %12 : vector<1x1x1x5x4x4xf32> to vector<1x5x4x4xf32>
    %14 = vector.shape_cast %13 : vector<1x5x4x4xf32> to vector<5x16xf32>
    %c0_13 = arith.constant 0 : index
    %c7 = arith.constant 7 : index
    %c0_14 = arith.constant 0 : index
    %c0_15 = arith.constant 0 : index
    %15 = vector.load %arg4[%c0_13, %c7, %c0_14, %c0_15] : memref<1x64x7x5xf32, #tpu.memory_space<vmem>>, vector<1x1x7x5xf32>
    %16 = vector.shape_cast %15 : vector<1x1x7x5xf32> to vector<7x5xf32>
    %cst_16 = arith.constant dense<0.000000e+00> : vector<7x16xf32>
    %17 = tpu.matmul %16, %14, %cst_16 {dimension_numbers = #tpu.dot_dimension_numbers<[1], [0], [0], [1], [0, 0, 1, 1], [], []>} : vector<7x5xf32>, vector<5x16xf32>, vector<7x16xf32> -> vector<7x16xf32>
    %18 = arith.addf %9, %17 : vector<7x16xf32>
    %c3_i32_17 = arith.constant 3 : i32
    %19 = arith.addi %arg2, %c3_i32_17 : i32
    %c0_18 = arith.constant 0 : index
    %c0_19 = arith.constant 0 : index
    %20 = arith.index_cast %19 : i32 to index
    %c0_20 = arith.constant 0 : index
    %c0_21 = arith.constant 0 : index
    %c1_22 = arith.constant 1 : index
    %21 = vector.load %arg3[%c0_18, %c0_19, %20, %c0_20, %c0_21, %c1_22] : memref<1x1x9x5x6x6xf32, #tpu.memory_space<vmem>>, vector<1x1x1x5x4x4xf32>
    %22 = vector.shape_cast %21 : vector<1x1x1x5x4x4xf32> to vector<1x5x4x4xf32>
    %23 = vector.shape_cast %22 : vector<1x5x4x4xf32> to vector<5x16xf32>
    %c0_23 = arith.constant 0 : index
    %c13 = arith.constant 13 : index
    %c0_24 = arith.constant 0 : index
    %c0_25 = arith.constant 0 : index
    %24 = vector.load %arg4[%c0_23, %c13, %c0_24, %c0_25] : memref<1x64x7x5xf32, #tpu.memory_space<vmem>>, vector<1x1x7x5xf32>
    %25 = vector.shape_cast %24 : vector<1x1x7x5xf32> to vector<7x5xf32>
    %cst_26 = arith.constant dense<0.000000e+00> : vector<7x16xf32>
    %26 = tpu.matmul %25, %23, %cst_26 {dimension_numbers = #tpu.dot_dimension_numbers<[1], [0], [0], [1], [0, 0, 1, 1], [], []>} : vector<7x5xf32>, vector<5x16xf32>, vector<7x16xf32> -> vector<7x16xf32>
    %27 = arith.addf %18, %26 : vector<7x16xf32>
    %c3_i32_27 = arith.constant 3 : i32
    %28 = arith.addi %arg2, %c3_i32_27 : i32
    %c0_28 = arith.constant 0 : index
    %c0_29 = arith.constant 0 : index
    %29 = arith.index_cast %28 : i32 to index
    %c0_30 = arith.constant 0 : index
    %c0_31 = arith.constant 0 : index
    %c0_32 = arith.constant 0 : index
    %30 = vector.load %arg3[%c0_28, %c0_29, %29, %c0_30, %c0_31, %c0_32] : memref<1x1x9x5x6x6xf32, #tpu.memory_space<vmem>>, vector<1x1x1x5x4x4xf32>
    %31 = vector.shape_cast %30 : vector<1x1x1x5x4x4xf32> to vector<1x5x4x4xf32>
    %32 = vector.shape_cast %31 : vector<1x5x4x4xf32> to vector<5x16xf32>
    %c0_33 = arith.constant 0 : index
    %c15 = arith.constant 15 : index
    %c0_34 = arith.constant 0 : index
    %c0_35 = arith.constant 0 : index
    %33 = vector.load %arg4[%c0_33, %c15, %c0_34, %c0_35] : memref<1x64x7x5xf32, #tpu.memory_space<vmem>>, vector<1x1x7x5xf32>
    %34 = vector.shape_cast %33 : vector<1x1x7x5xf32> to vector<7x5xf32>
    %cst_36 = arith.constant dense<0.000000e+00> : vector<7x16xf32>
    %35 = tpu.matmul %34, %32, %cst_36 {dimension_numbers = #tpu.dot_dimension_numbers<[1], [0], [0], [1], [0, 0, 1, 1], [], []>} : vector<7x5xf32>, vector<5x16xf32>, vector<7x16xf32> -> vector<7x16xf32>
    %36 = arith.addf %27, %35 : vector<7x16xf32>
    %c2_i32 = arith.constant 2 : i32
    %37 = arith.addi %arg2, %c2_i32 : i32
    %c0_37 = arith.constant 0 : index
    %c0_38 = arith.constant 0 : index
    %38 = arith.index_cast %37 : i32 to index
    %c0_39 = arith.constant 0 : index
    %c1_40 = arith.constant 1 : index
    %c1_41 = arith.constant 1 : index
    %39 = vector.load %arg3[%c0_37, %c0_38, %38, %c0_39, %c1_40, %c1_41] : memref<1x1x9x5x6x6xf32, #tpu.memory_space<vmem>>, vector<1x1x1x5x4x4xf32>
    %40 = vector.shape_cast %39 : vector<1x1x1x5x4x4xf32> to vector<1x5x4x4xf32>
    %41 = vector.shape_cast %40 : vector<1x5x4x4xf32> to vector<5x16xf32>
    %c0_42 = arith.constant 0 : index
    %c21 = arith.constant 21 : index
    %c0_43 = arith.constant 0 : index
    %c0_44 = arith.constant 0 : index
    %42 = vector.load %arg4[%c0_42, %c21, %c0_43, %c0_44] : memref<1x64x7x5xf32, #tpu.memory_space<vmem>>, vector<1x1x7x5xf32>
    %43 = vector.shape_cast %42 : vector<1x1x7x5xf32> to vector<7x5xf32>
    %cst_45 = arith.constant dense<0.000000e+00> : vector<7x16xf32>
    %44 = tpu.matmul %43, %41, %cst_45 {dimension_numbers = #tpu.dot_dimension_numbers<[1], [0], [0], [1], [0, 0, 1, 1], [], []>} : vector<7x5xf32>, vector<5x16xf32>, vector<7x16xf32> -> vector<7x16xf32>
    %45 = arith.addf %36, %44 : vector<7x16xf32>
    %c2_i32_46 = arith.constant 2 : i32
    %46 = arith.addi %arg2, %c2_i32_46 : i32
    %c0_47 = arith.constant 0 : index
    %c0_48 = arith.constant 0 : index
    %47 = arith.index_cast %46 : i32 to index
    %c0_49 = arith.constant 0 : index
    %c1_50 = arith.constant 1 : index
    %c0_51 = arith.constant 0 : index
    %48 = vector.load %arg3[%c0_47, %c0_48, %47, %c0_49, %c1_50, %c0_51] : memref<1x1x9x5x6x6xf32, #tpu.memory_space<vmem>>, vector<1x1x1x5x4x4xf32>
    %49 = vector.shape_cast %48 : vector<1x1x1x5x4x4xf32> to vector<1x5x4x4xf32>
    %50 = vector.shape_cast %49 : vector<1x5x4x4xf32> to vector<5x16xf32>
    %c0_52 = arith.constant 0 : index
    %c23 = arith.constant 23 : index
    %c0_53 = arith.constant 0 : index
    %c0_54 = arith.constant 0 : index
    %51 = vector.load %arg4[%c0_52, %c23, %c0_53, %c0_54] : memref<1x64x7x5xf32, #tpu.memory_space<vmem>>, vector<1x1x7x5xf32>
    %52 = vector.shape_cast %51 : vector<1x1x7x5xf32> to vector<7x5xf32>
    %cst_55 = arith.constant dense<0.000000e+00> : vector<7x16xf32>
    %53 = tpu.matmul %52, %50, %cst_55 {dimension_numbers = #tpu.dot_dimension_numbers<[1], [0], [0], [1], [0, 0, 1, 1], [], []>} : vector<7x5xf32>, vector<5x16xf32>, vector<7x16xf32> -> vector<7x16xf32>
    %54 = arith.addf %45, %53 : vector<7x16xf32>
    %c2_i32_56 = arith.constant 2 : i32
    %55 = arith.addi %arg2, %c2_i32_56 : i32
    %c0_57 = arith.constant 0 : index
    %c0_58 = arith.constant 0 : index
    %56 = arith.index_cast %55 : i32 to index
    %c0_59 = arith.constant 0 : index
    %c0_60 = arith.constant 0 : index
    %c1_61 = arith.constant 1 : index
    %57 = vector.load %arg3[%c0_57, %c0_58, %56, %c0_59, %c0_60, %c1_61] : memref<1x1x9x5x6x6xf32, #tpu.memory_space<vmem>>, vector<1x1x1x5x4x4xf32>
    %58 = vector.shape_cast %57 : vector<1x1x1x5x4x4xf32> to vector<1x5x4x4xf32>
    %59 = vector.shape_cast %58 : vector<1x5x4x4xf32> to vector<5x16xf32>
    %c0_62 = arith.constant 0 : index
    %c29 = arith.constant 29 : index
    %c0_63 = arith.constant 0 : index
    %c0_64 = arith.constant 0 : index
    %60 = vector.load %arg4[%c0_62, %c29, %c0_63, %c0_64] : memref<1x64x7x5xf32, #tpu.memory_space<vmem>>, vector<1x1x7x5xf32>
    %61 = vector.shape_cast %60 : vector<1x1x7x5xf32> to vector<7x5xf32>
    %cst_65 = arith.constant dense<0.000000e+00> : vector<7x16xf32>
    %62 = tpu.matmul %61, %59, %cst_65 {dimension_numbers = #tpu.dot_dimension_numbers<[1], [0], [0], [1], [0, 0, 1, 1], [], []>} : vector<7x5xf32>, vector<5x16xf32>, vector<7x16xf32> -> vector<7x16xf32>
    %63 = arith.addf %54, %62 : vector<7x16xf32>
    %c2_i32_66 = arith.constant 2 : i32
    %64 = arith.addi %arg2, %c2_i32_66 : i32
    %c0_67 = arith.constant 0 : index
    %c0_68 = arith.constant 0 : index
    %65 = arith.index_cast %64 : i32 to index
    %c0_69 = arith.constant 0 : index
    %c0_70 = arith.constant 0 : index
    %c0_71 = arith.constant 0 : index
    %66 = vector.load %arg3[%c0_67, %c0_68, %65, %c0_69, %c0_70, %c0_71] : memref<1x1x9x5x6x6xf32, #tpu.memory_space<vmem>>, vector<1x1x1x5x4x4xf32>
    %67 = vector.shape_cast %66 : vector<1x1x1x5x4x4xf32> to vector<1x5x4x4xf32>
    %68 = vector.shape_cast %67 : vector<1x5x4x4xf32> to vector<5x16xf32>
    %c0_72 = arith.constant 0 : index
    %c31 = arith.constant 31 : index
    %c0_73 = arith.constant 0 : index
    %c0_74 = arith.constant 0 : index
    %69 = vector.load %arg4[%c0_72, %c31, %c0_73, %c0_74] : memref<1x64x7x5xf32, #tpu.memory_space<vmem>>, vector<1x1x7x5xf32>
    %70 = vector.shape_cast %69 : vector<1x1x7x5xf32> to vector<7x5xf32>
    %cst_75 = arith.constant dense<0.000000e+00> : vector<7x16xf32>
    %71 = tpu.matmul %70, %68, %cst_75 {dimension_numbers = #tpu.dot_dimension_numbers<[1], [0], [0], [1], [0, 0, 1, 1], [], []>} : vector<7x5xf32>, vector<5x16xf32>, vector<7x16xf32> -> vector<7x16xf32>
    %72 = arith.addf %63, %71 : vector<7x16xf32>
    %c1_i32 = arith.constant 1 : i32
    %73 = arith.addi %arg2, %c1_i32 : i32
    %c0_76 = arith.constant 0 : index
    %c0_77 = arith.constant 0 : index
    %74 = arith.index_cast %73 : i32 to index
    %c0_78 = arith.constant 0 : index
    %c1_79 = arith.constant 1 : index
    %c1_80 = arith.constant 1 : index
    %75 = vector.load %arg3[%c0_76, %c0_77, %74, %c0_78, %c1_79, %c1_80] : memref<1x1x9x5x6x6xf32, #tpu.memory_space<vmem>>, vector<1x1x1x5x4x4xf32>
    %76 = vector.shape_cast %75 : vector<1x1x1x5x4x4xf32> to vector<1x5x4x4xf32>
    %77 = vector.shape_cast %76 : vector<1x5x4x4xf32> to vector<5x16xf32>
    %c0_81 = arith.constant 0 : index
    %c37 = arith.constant 37 : index
    %c0_82 = arith.constant 0 : index
    %c0_83 = arith.constant 0 : index
    %78 = vector.load %arg4[%c0_81, %c37, %c0_82, %c0_83] : memref<1x64x7x5xf32, #tpu.memory_space<vmem>>, vector<1x1x7x5xf32>
    %79 = vector.shape_cast %78 : vector<1x1x7x5xf32> to vector<7x5xf32>
    %cst_84 = arith.constant dense<0.000000e+00> : vector<7x16xf32>
    %80 = tpu.matmul %79, %77, %cst_84 {dimension_numbers = #tpu.dot_dimension_numbers<[1], [0], [0], [1], [0, 0, 1, 1], [], []>} : vector<7x5xf32>, vector<5x16xf32>, vector<7x16xf32> -> vector<7x16xf32>
    %81 = arith.addf %72, %80 : vector<7x16xf32>
    %c1_i32_85 = arith.constant 1 : i32
    %82 = arith.addi %arg2, %c1_i32_85 : i32
    %c0_86 = arith.constant 0 : index
    %c0_87 = arith.constant 0 : index
    %83 = arith.index_cast %82 : i32 to index
    %c0_88 = arith.constant 0 : index
    %c1_89 = arith.constant 1 : index
    %c0_90 = arith.constant 0 : index
    %84 = vector.load %arg3[%c0_86, %c0_87, %83, %c0_88, %c1_89, %c0_90] : memref<1x1x9x5x6x6xf32, #tpu.memory_space<vmem>>, vector<1x1x1x5x4x4xf32>
    %85 = vector.shape_cast %84 : vector<1x1x1x5x4x4xf32> to vector<1x5x4x4xf32>
    %86 = vector.shape_cast %85 : vector<1x5x4x4xf32> to vector<5x16xf32>
    %c0_91 = arith.constant 0 : index
    %c39 = arith.constant 39 : index
    %c0_92 = arith.constant 0 : index
    %c0_93 = arith.constant 0 : index
    %87 = vector.load %arg4[%c0_91, %c39, %c0_92, %c0_93] : memref<1x64x7x5xf32, #tpu.memory_space<vmem>>, vector<1x1x7x5xf32>
    %88 = vector.shape_cast %87 : vector<1x1x7x5xf32> to vector<7x5xf32>
    %cst_94 = arith.constant dense<0.000000e+00> : vector<7x16xf32>
    %89 = tpu.matmul %88, %86, %cst_94 {dimension_numbers = #tpu.dot_dimension_numbers<[1], [0], [0], [1], [0, 0, 1, 1], [], []>} : vector<7x5xf32>, vector<5x16xf32>, vector<7x16xf32> -> vector<7x16xf32>
    %90 = arith.addf %81, %89 : vector<7x16xf32>
    %c1_i32_95 = arith.constant 1 : i32
    %91 = arith.addi %arg2, %c1_i32_95 : i32
    %c0_96 = arith.constant 0 : index
    %c0_97 = arith.constant 0 : index
    %92 = arith.index_cast %91 : i32 to index
    %c0_98 = arith.constant 0 : index
    %c0_99 = arith.constant 0 : index
    %c1_100 = arith.constant 1 : index
    %93 = vector.load %arg3[%c0_96, %c0_97, %92, %c0_98, %c0_99, %c1_100] : memref<1x1x9x5x6x6xf32, #tpu.memory_space<vmem>>, vector<1x1x1x5x4x4xf32>
    %94 = vector.shape_cast %93 : vector<1x1x1x5x4x4xf32> to vector<1x5x4x4xf32>
    %95 = vector.shape_cast %94 : vector<1x5x4x4xf32> to vector<5x16xf32>
    %c0_101 = arith.constant 0 : index
    %c45 = arith.constant 45 : index
    %c0_102 = arith.constant 0 : index
    %c0_103 = arith.constant 0 : index
    %96 = vector.load %arg4[%c0_101, %c45, %c0_102, %c0_103] : memref<1x64x7x5xf32, #tpu.memory_space<vmem>>, vector<1x1x7x5xf32>
    %97 = vector.shape_cast %96 : vector<1x1x7x5xf32> to vector<7x5xf32>
    %cst_104 = arith.constant dense<0.000000e+00> : vector<7x16xf32>
    %98 = tpu.matmul %97, %95, %cst_104 {dimension_numbers = #tpu.dot_dimension_numbers<[1], [0], [0], [1], [0, 0, 1, 1], [], []>} : vector<7x5xf32>, vector<5x16xf32>, vector<7x16xf32> -> vector<7x16xf32>
    %99 = arith.addf %90, %98 : vector<7x16xf32>
    %c1_i32_105 = arith.constant 1 : i32
    %100 = arith.addi %arg2, %c1_i32_105 : i32
    %c0_106 = arith.constant 0 : index
    %c0_107 = arith.constant 0 : index
    %101 = arith.index_cast %100 : i32 to index
    %c0_108 = arith.constant 0 : index
    %c0_109 = arith.constant 0 : index
    %c0_110 = arith.constant 0 : index
    %102 = vector.load %arg3[%c0_106, %c0_107, %101, %c0_108, %c0_109, %c0_110] : memref<1x1x9x5x6x6xf32, #tpu.memory_space<vmem>>, vector<1x1x1x5x4x4xf32>
    %103 = vector.shape_cast %102 : vector<1x1x1x5x4x4xf32> to vector<1x5x4x4xf32>
    %104 = vector.shape_cast %103 : vector<1x5x4x4xf32> to vector<5x16xf32>
    %c0_111 = arith.constant 0 : index
    %c47 = arith.constant 47 : index
    %c0_112 = arith.constant 0 : index
    %c0_113 = arith.constant 0 : index
    %105 = vector.load %arg4[%c0_111, %c47, %c0_112, %c0_113] : memref<1x64x7x5xf32, #tpu.memory_space<vmem>>, vector<1x1x7x5xf32>
    %106 = vector.shape_cast %105 : vector<1x1x7x5xf32> to vector<7x5xf32>
    %cst_114 = arith.constant dense<0.000000e+00> : vector<7x16xf32>
    %107 = tpu.matmul %106, %104, %cst_114 {dimension_numbers = #tpu.dot_dimension_numbers<[1], [0], [0], [1], [0, 0, 1, 1], [], []>} : vector<7x5xf32>, vector<5x16xf32>, vector<7x16xf32> -> vector<7x16xf32>
    %108 = arith.addf %99, %107 : vector<7x16xf32>
    %c0_i32 = arith.constant 0 : i32
    %109 = arith.addi %arg2, %c0_i32 : i32
    %c0_115 = arith.constant 0 : index
    %c0_116 = arith.constant 0 : index
    %110 = arith.index_cast %109 : i32 to index
    %c0_117 = arith.constant 0 : index
    %c1_118 = arith.constant 1 : index
    %c1_119 = arith.constant 1 : index
    %111 = vector.load %arg3[%c0_115, %c0_116, %110, %c0_117, %c1_118, %c1_119] : memref<1x1x9x5x6x6xf32, #tpu.memory_space<vmem>>, vector<1x1x1x5x4x4xf32>
    %112 = vector.shape_cast %111 : vector<1x1x1x5x4x4xf32> to vector<1x5x4x4xf32>
    %113 = vector.shape_cast %112 : vector<1x5x4x4xf32> to vector<5x16xf32>
    %c0_120 = arith.constant 0 : index
    %c53 = arith.constant 53 : index
    %c0_121 = arith.constant 0 : index
    %c0_122 = arith.constant 0 : index
    %114 = vector.load %arg4[%c0_120, %c53, %c0_121, %c0_122] : memref<1x64x7x5xf32, #tpu.memory_space<vmem>>, vector<1x1x7x5xf32>
    %115 = vector.shape_cast %114 : vector<1x1x7x5xf32> to vector<7x5xf32>
    %cst_123 = arith.constant dense<0.000000e+00> : vector<7x16xf32>
    %116 = tpu.matmul %115, %113, %cst_123 {dimension_numbers = #tpu.dot_dimension_numbers<[1], [0], [0], [1], [0, 0, 1, 1], [], []>} : vector<7x5xf32>, vector<5x16xf32>, vector<7x16xf32> -> vector<7x16xf32>
    %117 = arith.addf %108, %116 : vector<7x16xf32>
    %c0_i32_124 = arith.constant 0 : i32
    %118 = arith.addi %arg2, %c0_i32_124 : i32
    %c0_125 = arith.constant 0 : index
    %c0_126 = arith.constant 0 : index
    %119 = arith.index_cast %118 : i32 to index
    %c0_127 = arith.constant 0 : index
    %c1_128 = arith.constant 1 : index
    %c0_129 = arith.constant 0 : index
    %120 = vector.load %arg3[%c0_125, %c0_126, %119, %c0_127, %c1_128, %c0_129] : memref<1x1x9x5x6x6xf32, #tpu.memory_space<vmem>>, vector<1x1x1x5x4x4xf32>
    %121 = vector.shape_cast %120 : vector<1x1x1x5x4x4xf32> to vector<1x5x4x4xf32>
    %122 = vector.shape_cast %121 : vector<1x5x4x4xf32> to vector<5x16xf32>
    %c0_130 = arith.constant 0 : index
    %c55 = arith.constant 55 : index
    %c0_131 = arith.constant 0 : index
    %c0_132 = arith.constant 0 : index
    %123 = vector.load %arg4[%c0_130, %c55, %c0_131, %c0_132] : memref<1x64x7x5xf32, #tpu.memory_space<vmem>>, vector<1x1x7x5xf32>
    %124 = vector.shape_cast %123 : vector<1x1x7x5xf32> to vector<7x5xf32>
    %cst_133 = arith.constant dense<0.000000e+00> : vector<7x16xf32>
    %125 = tpu.matmul %124, %122, %cst_133 {dimension_numbers = #tpu.dot_dimension_numbers<[1], [0], [0], [1], [0, 0, 1, 1], [], []>} : vector<7x5xf32>, vector<5x16xf32>, vector<7x16xf32> -> vector<7x16xf32>
    %126 = arith.addf %117, %125 : vector<7x16xf32>
    %c0_i32_134 = arith.constant 0 : i32
    %127 = arith.addi %arg2, %c0_i32_134 : i32
    %c0_135 = arith.constant 0 : index
    %c0_136 = arith.constant 0 : index
    %128 = arith.index_cast %127 : i32 to index
    %c0_137 = arith.constant 0 : index
    %c0_138 = arith.constant 0 : index
    %c1_139 = arith.constant 1 : index
    %129 = vector.load %arg3[%c0_135, %c0_136, %128, %c0_137, %c0_138, %c1_139] : memref<1x1x9x5x6x6xf32, #tpu.memory_space<vmem>>, vector<1x1x1x5x4x4xf32>
    %130 = vector.shape_cast %129 : vector<1x1x1x5x4x4xf32> to vector<1x5x4x4xf32>
    %131 = vector.shape_cast %130 : vector<1x5x4x4xf32> to vector<5x16xf32>
    %c0_140 = arith.constant 0 : index
    %c61 = arith.constant 61 : index
    %c0_141 = arith.constant 0 : index
    %c0_142 = arith.constant 0 : index
    %132 = vector.load %arg4[%c0_140, %c61, %c0_141, %c0_142] : memref<1x64x7x5xf32, #tpu.memory_space<vmem>>, vector<1x1x7x5xf32>
    %133 = vector.shape_cast %132 : vector<1x1x7x5xf32> to vector<7x5xf32>
    %cst_143 = arith.constant dense<0.000000e+00> : vector<7x16xf32>
    %134 = tpu.matmul %133, %131, %cst_143 {dimension_numbers = #tpu.dot_dimension_numbers<[1], [0], [0], [1], [0, 0, 1, 1], [], []>} : vector<7x5xf32>, vector<5x16xf32>, vector<7x16xf32> -> vector<7x16xf32>
    %135 = arith.addf %126, %134 : vector<7x16xf32>
    %c0_i32_144 = arith.constant 0 : i32
    %136 = arith.addi %arg2, %c0_i32_144 : i32
    %c0_145 = arith.constant 0 : index
    %c0_146 = arith.constant 0 : index
    %137 = arith.index_cast %136 : i32 to index
    %c0_147 = arith.constant 0 : index
    %c0_148 = arith.constant 0 : index
    %c0_149 = arith.constant 0 : index
    %138 = vector.load %arg3[%c0_145, %c0_146, %137, %c0_147, %c0_148, %c0_149] : memref<1x1x9x5x6x6xf32, #tpu.memory_space<vmem>>, vector<1x1x1x5x4x4xf32>
    %139 = vector.shape_cast %138 : vector<1x1x1x5x4x4xf32> to vector<1x5x4x4xf32>
    %140 = vector.shape_cast %139 : vector<1x5x4x4xf32> to vector<5x16xf32>
    %c0_150 = arith.constant 0 : index
    %c63 = arith.constant 63 : index
    %c0_151 = arith.constant 0 : index
    %c0_152 = arith.constant 0 : index
    %141 = vector.load %arg4[%c0_150, %c63, %c0_151, %c0_152] : memref<1x64x7x5xf32, #tpu.memory_space<vmem>>, vector<1x1x7x5xf32>
    %142 = vector.shape_cast %141 : vector<1x1x7x5xf32> to vector<7x5xf32>
    %cst_153 = arith.constant dense<0.000000e+00> : vector<7x16xf32>
    %143 = tpu.matmul %142, %140, %cst_153 {dimension_numbers = #tpu.dot_dimension_numbers<[1], [0], [0], [1], [0, 0, 1, 1], [], []>} : vector<7x5xf32>, vector<5x16xf32>, vector<7x16xf32> -> vector<7x16xf32>
    %144 = arith.addf %135, %143 : vector<7x16xf32>
    %c0_154 = arith.constant 0 : index
    %c0_155 = arith.constant 0 : index
    %c0_156 = arith.constant 0 : index
    %145 = vector.load %arg5[%c0_154, %c0_155, %c0_156] : memref<1x7x1xf32, #tpu.memory_space<vmem>>, vector<1x7x1xf32>
    %146 = vector.shape_cast %145 : vector<1x7x1xf32> to vector<7x1xf32>
    %147 = vector.broadcast %146 : vector<7x1xf32> to vector<7x16xf32>
    %148 = arith.addf %144, %147 : vector<7x16xf32>
    %c0_157 = arith.constant 0 : index
    %c0_158 = arith.constant 0 : index
    %c0_159 = arith.constant 0 : index
    %c0_160 = arith.constant 0 : index
    %c0_161 = arith.constant 0 : index
    %149 = vector.load %arg6[%c0_157, %c0_158, %c0_159, %c0_160, %c0_161] : memref<1x1x1x7x16xf32, #tpu.memory_space<vmem>>, vector<1x1x1x7x16xf32>
    %150 = vector.shape_cast %149 : vector<1x1x1x7x16xf32> to vector<7x16xf32>
    %151 = vector.shape_cast %148 : vector<7x16xf32> to vector<1x1x1x7x16xf32>
    tpu.vector_store %arg6[%c0_157, %c0_158, %c0_159, %c0_160, %c0_161], %151 {strides = array<i32>} : memref<1x1x1x7x16xf32, #tpu.memory_space<vmem>>, vector<1x1x1x7x16xf32>,
    %cst_162 = arith.constant 0.000000e+00 : f32
    %152 = vector.broadcast %cst_162 : f32 to vector<7x16xf32>
    %c3_i32_163 = arith.constant 3 : i32
    %153 = arith.addi %arg2, %c3_i32_163 : i32
    %c0_164 = arith.constant 0 : index
    %c0_165 = arith.constant 0 : index
    %154 = arith.index_cast %153 : i32 to index
    %c0_166 = arith.constant 0 : index
    %c1_167 = arith.constant 1 : index
    %c2 = arith.constant 2 : index
    %155 = vector.load %arg3[%c0_164, %c0_165, %154, %c0_166, %c1_167, %c2] : memref<1x1x9x5x6x6xf32, #tpu.memory_space<vmem>>, vector<1x1x1x5x4x4xf32>
    %156 = vector.shape_cast %155 : vector<1x1x1x5x4x4xf32> to vector<1x5x4x4xf32>
    %157 = vector.shape_cast %156 : vector<1x5x4x4xf32> to vector<5x16xf32>
    %c0_168 = arith.constant 0 : index
    %c4 = arith.constant 4 : index
    %c0_169 = arith.constant 0 : index
    %c0_170 = arith.constant 0 : index
    %158 = vector.load %arg4[%c0_168, %c4, %c0_169, %c0_170] : memref<1x64x7x5xf32, #tpu.memory_space<vmem>>, vector<1x1x7x5xf32>
    %159 = vector.shape_cast %158 : vector<1x1x7x5xf32> to vector<7x5xf32>
    %cst_171 = arith.constant dense<0.000000e+00> : vector<7x16xf32>
    %160 = tpu.matmul %159, %157, %cst_171 {dimension_numbers = #tpu.dot_dimension_numbers<[1], [0], [0], [1], [0, 0, 1, 1], [], []>} : vector<7x5xf32>, vector<5x16xf32>, vector<7x16xf32> -> vector<7x16xf32>
    %161 = arith.addf %152, %160 : vector<7x16xf32>
    %c3_i32_172 = arith.constant 3 : i32
    %162 = arith.addi %arg2, %c3_i32_172 : i32
    %c0_173 = arith.constant 0 : index
    %c0_174 = arith.constant 0 : index
    %163 = arith.index_cast %162 : i32 to index
    %c0_175 = arith.constant 0 : index
    %c1_176 = arith.constant 1 : index
    %c1_177 = arith.constant 1 : index
    %164 = vector.load %arg3[%c0_173, %c0_174, %163, %c0_175, %c1_176, %c1_177] : memref<1x1x9x5x6x6xf32, #tpu.memory_space<vmem>>, vector<1x1x1x5x4x4xf32>
    %165 = vector.shape_cast %164 : vector<1x1x1x5x4x4xf32> to vector<1x5x4x4xf32>
    %166 = vector.shape_cast %165 : vector<1x5x4x4xf32> to vector<5x16xf32>
    %c0_178 = arith.constant 0 : index
    %c6 = arith.constant 6 : index
    %c0_179 = arith.constant 0 : index
    %c0_180 = arith.constant 0 : index
    %167 = vector.load %arg4[%c0_178, %c6, %c0_179, %c0_180] : memref<1x64x7x5xf32, #tpu.memory_space<vmem>>, vector<1x1x7x5xf32>
    %168 = vector.shape_cast %167 : vector<1x1x7x5xf32> to vector<7x5xf32>
    %cst_181 = arith.constant dense<0.000000e+00> : vector<7x16xf32>
    %169 = tpu.matmul %168, %166, %cst_181 {dimension_numbers = #tpu.dot_dimension_numbers<[1], [0], [0], [1], [0, 0, 1, 1], [], []>} : vector<7x5xf32>, vector<5x16xf32>, vector<7x16xf32> -> vector<7x16xf32>
    %170 = arith.addf %161, %169 : vector<7x16xf32>
    %c3_i32_182 = arith.constant 3 : i32
    %171 = arith.addi %arg2, %c3_i32_182 : i32
    %c0_183 = arith.constant 0 : index
    %c0_184 = arith.constant 0 : index
    %172 = arith.index_cast %171 : i32 to index
    %c0_185 = arith.constant 0 : index
    %c0_186 = arith.constant 0 : index
    %c2_187 = arith.constant 2 : index
    %173 = vector.load %arg3[%c0_183, %c0_184, %172, %c0_185, %c0_186, %c2_187] : memref<1x1x9x5x6x6xf32, #tpu.memory_space<vmem>>, vector<1x1x1x5x4x4xf32>
    %174 = vector.shape_cast %173 : vector<1x1x1x5x4x4xf32> to vector<1x5x4x4xf32>
    %175 = vector.shape_cast %174 : vector<1x5x4x4xf32> to vector<5x16xf32>
    %c0_188 = arith.constant 0 : index
    %c12 = arith.constant 12 : index
    %c0_189 = arith.constant 0 : index
    %c0_190 = arith.constant 0 : index
    %176 = vector.load %arg4[%c0_188, %c12, %c0_189, %c0_190] : memref<1x64x7x5xf32, #tpu.memory_space<vmem>>, vector<1x1x7x5xf32>
    %177 = vector.shape_cast %176 : vector<1x1x7x5xf32> to vector<7x5xf32>
    %cst_191 = arith.constant dense<0.000000e+00> : vector<7x16xf32>
    %178 = tpu.matmul %177, %175, %cst_191 {dimension_numbers = #tpu.dot_dimension_numbers<[1], [0], [0], [1], [0, 0, 1, 1], [], []>} : vector<7x5xf32>, vector<5x16xf32>, vector<7x16xf32> -> vector<7x16xf32>
    %179 = arith.addf %170, %178 : vector<7x16xf32>
    %c3_i32_192 = arith.constant 3 : i32
    %180 = arith.addi %arg2, %c3_i32_192 : i32
    %c0_193 = arith.constant 0 : index
    %c0_194 = arith.constant 0 : index
    %181 = arith.index_cast %180 : i32 to index
    %c0_195 = arith.constant 0 : index
    %c0_196 = arith.constant 0 : index
    %c1_197 = arith.constant 1 : index
    %182 = vector.load %arg3[%c0_193, %c0_194, %181, %c0_195, %c0_196, %c1_197] : memref<1x1x9x5x6x6xf32, #tpu.memory_space<vmem>>, vector<1x1x1x5x4x4xf32>
    %183 = vector.shape_cast %182 : vector<1x1x1x5x4x4xf32> to vector<1x5x4x4xf32>
    %184 = vector.shape_cast %183 : vector<1x5x4x4xf32> to vector<5x16xf32>
    %c0_198 = arith.constant 0 : index
    %c14 = arith.constant 14 : index
    %c0_199 = arith.constant 0 : index
    %c0_200 = arith.constant 0 : index
    %185 = vector.load %arg4[%c0_198, %c14, %c0_199, %c0_200] : memref<1x64x7x5xf32, #tpu.memory_space<vmem>>, vector<1x1x7x5xf32>
    %186 = vector.shape_cast %185 : vector<1x1x7x5xf32> to vector<7x5xf32>
    %cst_201 = arith.constant dense<0.000000e+00> : vector<7x16xf32>
    %187 = tpu.matmul %186, %184, %cst_201 {dimension_numbers = #tpu.dot_dimension_numbers<[1], [0], [0], [1], [0, 0, 1, 1], [], []>} : vector<7x5xf32>, vector<5x16xf32>, vector<7x16xf32> -> vector<7x16xf32>
    %188 = arith.addf %179, %187 : vector<7x16xf32>
    %c2_i32_202 = arith.constant 2 : i32
    %189 = arith.addi %arg2, %c2_i32_202 : i32
    %c0_203 = arith.constant 0 : index
    %c0_204 = arith.constant 0 : index
    %190 = arith.index_cast %189 : i32 to index
    %c0_205 = arith.constant 0 : index
    %c1_206 = arith.constant 1 : index
    %c2_207 = arith.constant 2 : index
    %191 = vector.load %arg3[%c0_203, %c0_204, %190, %c0_205, %c1_206, %c2_207] : memref<1x1x9x5x6x6xf32, #tpu.memory_space<vmem>>, vector<1x1x1x5x4x4xf32>
    %192 = vector.shape_cast %191 : vector<1x1x1x5x4x4xf32> to vector<1x5x4x4xf32>
    %193 = vector.shape_cast %192 : vector<1x5x4x4xf32> to vector<5x16xf32>
    %c0_208 = arith.constant 0 : index
    %c20 = arith.constant 20 : index
    %c0_209 = arith.constant 0 : index
    %c0_210 = arith.constant 0 : index
    %194 = vector.load %arg4[%c0_208, %c20, %c0_209, %c0_210] : memref<1x64x7x5xf32, #tpu.memory_space<vmem>>, vector<1x1x7x5xf32>
    %195 = vector.shape_cast %194 : vector<1x1x7x5xf32> to vector<7x5xf32>
    %cst_211 = arith.constant dense<0.000000e+00> : vector<7x16xf32>
    %196 = tpu.matmul %195, %193, %cst_211 {dimension_numbers = #tpu.dot_dimension_numbers<[1], [0], [0], [1], [0, 0, 1, 1], [], []>} : vector<7x5xf32>, vector<5x16xf32>, vector<7x16xf32> -> vector<7x16xf32>
    %197 = arith.addf %188, %196 : vector<7x16xf32>
    %c2_i32_212 = arith.constant 2 : i32
    %198 = arith.addi %arg2, %c2_i32_212 : i32
    %c0_213 = arith.constant 0 : index
    %c0_214 = arith.constant 0 : index
    %199 = arith.index_cast %198 : i32 to index
    %c0_215 = arith.constant 0 : index
    %c1_216 = arith.constant 1 : index
    %c1_217 = arith.constant 1 : index
    %200 = vector.load %arg3[%c0_213, %c0_214, %199, %c0_215, %c1_216, %c1_217] : memref<1x1x9x5x6x6xf32, #tpu.memory_space<vmem>>, vector<1x1x1x5x4x4xf32>
    %201 = vector.shape_cast %200 : vector<1x1x1x5x4x4xf32> to vector<1x5x4x4xf32>
    %202 = vector.shape_cast %201 : vector<1x5x4x4xf32> to vector<5x16xf32>
    %c0_218 = arith.constant 0 : index
    %c22 = arith.constant 22 : index
    %c0_219 = arith.constant 0 : index
    %c0_220 = arith.constant 0 : index
    %203 = vector.load %arg4[%c0_218, %c22, %c0_219, %c0_220] : memref<1x64x7x5xf32, #tpu.memory_space<vmem>>, vector<1x1x7x5xf32>
    %204 = vector.shape_cast %203 : vector<1x1x7x5xf32> to vector<7x5xf32>
    %cst_221 = arith.constant dense<0.000000e+00> : vector<7x16xf32>
    %205 = tpu.matmul %204, %202, %cst_221 {dimension_numbers = #tpu.dot_dimension_numbers<[1], [0], [0], [1], [0, 0, 1, 1], [], []>} : vector<7x5xf32>, vector<5x16xf32>, vector<7x16xf32> -> vector<7x16xf32>
    %206 = arith.addf %197, %205 : vector<7x16xf32>
    %c2_i32_222 = arith.constant 2 : i32
    %207 = arith.addi %arg2, %c2_i32_222 : i32
    %c0_223 = arith.constant 0 : index
    %c0_224 = arith.constant 0 : index
    %208 = arith.index_cast %207 : i32 to index
    %c0_225 = arith.constant 0 : index
    %c0_226 = arith.constant 0 : index
    %c2_227 = arith.constant 2 : index
    %209 = vector.load %arg3[%c0_223, %c0_224, %208, %c0_225, %c0_226, %c2_227] : memref<1x1x9x5x6x6xf32, #tpu.memory_space<vmem>>, vector<1x1x1x5x4x4xf32>
    %210 = vector.shape_cast %209 : vector<1x1x1x5x4x4xf32> to vector<1x5x4x4xf32>
    %211 = vector.shape_cast %210 : vector<1x5x4x4xf32> to vector<5x16xf32>
    %c0_228 = arith.constant 0 : index
    %c28 = arith.constant 28 : index
    %c0_229 = arith.constant 0 : index
    %c0_230 = arith.constant 0 : index
    %212 = vector.load %arg4[%c0_228, %c28, %c0_229, %c0_230] : memref<1x64x7x5xf32, #tpu.memory_space<vmem>>, vector<1x1x7x5xf32>
    %213 = vector.shape_cast %212 : vector<1x1x7x5xf32> to vector<7x5xf32>
    %cst_231 = arith.constant dense<0.000000e+00> : vector<7x16xf32>
    %214 = tpu.matmul %213, %211, %cst_231 {dimension_numbers = #tpu.dot_dimension_numbers<[1], [0], [0], [1], [0, 0, 1, 1], [], []>} : vector<7x5xf32>, vector<5x16xf32>, vector<7x16xf32> -> vector<7x16xf32>
    %215 = arith.addf %206, %214 : vector<7x16xf32>
    %c2_i32_232 = arith.constant 2 : i32
    %216 = arith.addi %arg2, %c2_i32_232 : i32
    %c0_233 = arith.constant 0 : index
    %c0_234 = arith.constant 0 : index
    %217 = arith.index_cast %216 : i32 to index
    %c0_235 = arith.constant 0 : index
    %c0_236 = arith.constant 0 : index
    %c1_237 = arith.constant 1 : index
    %218 = vector.load %arg3[%c0_233, %c0_234, %217, %c0_235, %c0_236, %c1_237] : memref<1x1x9x5x6x6xf32, #tpu.memory_space<vmem>>, vector<1x1x1x5x4x4xf32>
    %219 = vector.shape_cast %218 : vector<1x1x1x5x4x4xf32> to vector<1x5x4x4xf32>
    %220 = vector.shape_cast %219 : vector<1x5x4x4xf32> to vector<5x16xf32>
    %c0_238 = arith.constant 0 : index
    %c30 = arith.constant 30 : index
    %c0_239 = arith.constant 0 : index
    %c0_240 = arith.constant 0 : index
    %221 = vector.load %arg4[%c0_238, %c30, %c0_239, %c0_240] : memref<1x64x7x5xf32, #tpu.memory_space<vmem>>, vector<1x1x7x5xf32>
    %222 = vector.shape_cast %221 : vector<1x1x7x5xf32> to vector<7x5xf32>
    %cst_241 = arith.constant dense<0.000000e+00> : vector<7x16xf32>
    %223 = tpu.matmul %222, %220, %cst_241 {dimension_numbers = #tpu.dot_dimension_numbers<[1], [0], [0], [1], [0, 0, 1, 1], [], []>} : vector<7x5xf32>, vector<5x16xf32>, vector<7x16xf32> -> vector<7x16xf32>
    %224 = arith.addf %215, %223 : vector<7x16xf32>
    %c1_i32_242 = arith.constant 1 : i32
    %225 = arith.addi %arg2, %c1_i32_242 : i32
    %c0_243 = arith.constant 0 : index
    %c0_244 = arith.constant 0 : index
    %226 = arith.index_cast %225 : i32 to index
    %c0_245 = arith.constant 0 : index
    %c1_246 = arith.constant 1 : index
    %c2_247 = arith.constant 2 : index
    %227 = vector.load %arg3[%c0_243, %c0_244, %226, %c0_245, %c1_246, %c2_247] : memref<1x1x9x5x6x6xf32, #tpu.memory_space<vmem>>, vector<1x1x1x5x4x4xf32>
    %228 = vector.shape_cast %227 : vector<1x1x1x5x4x4xf32> to vector<1x5x4x4xf32>
    %229 = vector.shape_cast %228 : vector<1x5x4x4xf32> to vector<5x16xf32>
    %c0_248 = arith.constant 0 : index
    %c36 = arith.constant 36 : index
    %c0_249 = arith.constant 0 : index
    %c0_250 = arith.constant 0 : index
    %230 = vector.load %arg4[%c0_248, %c36, %c0_249, %c0_250] : memref<1x64x7x5xf32, #tpu.memory_space<vmem>>, vector<1x1x7x5xf32>
    %231 = vector.shape_cast %230 : vector<1x1x7x5xf32> to vector<7x5xf32>
    %cst_251 = arith.constant dense<0.000000e+00> : vector<7x16xf32>
    %232 = tpu.matmul %231, %229, %cst_251 {dimension_numbers = #tpu.dot_dimension_numbers<[1], [0], [0], [1], [0, 0, 1, 1], [], []>} : vector<7x5xf32>, vector<5x16xf32>, vector<7x16xf32> -> vector<7x16xf32>
    %233 = arith.addf %224, %232 : vector<7x16xf32>
    %c1_i32_252 = arith.constant 1 : i32
    %234 = arith.addi %arg2, %c1_i32_252 : i32
    %c0_253 = arith.constant 0 : index
    %c0_254 = arith.constant 0 : index
    %235 = arith.index_cast %234 : i32 to index
    %c0_255 = arith.constant 0 : index
    %c1_256 = arith.constant 1 : index
    %c1_257 = arith.constant 1 : index
    %236 = vector.load %arg3[%c0_253, %c0_254, %235, %c0_255, %c1_256, %c1_257] : memref<1x1x9x5x6x6xf32, #tpu.memory_space<vmem>>, vector<1x1x1x5x4x4xf32>
    %237 = vector.shape_cast %236 : vector<1x1x1x5x4x4xf32> to vector<1x5x4x4xf32>
    %238 = vector.shape_cast %237 : vector<1x5x4x4xf32> to vector<5x16xf32>
    %c0_258 = arith.constant 0 : index
    %c38 = arith.constant 38 : index
    %c0_259 = arith.constant 0 : index
    %c0_260 = arith.constant 0 : index
    %239 = vector.load %arg4[%c0_258, %c38, %c0_259, %c0_260] : memref<1x64x7x5xf32, #tpu.memory_space<vmem>>, vector<1x1x7x5xf32>
    %240 = vector.shape_cast %239 : vector<1x1x7x5xf32> to vector<7x5xf32>
    %cst_261 = arith.constant dense<0.000000e+00> : vector<7x16xf32>
    %241 = tpu.matmul %240, %238, %cst_261 {dimension_numbers = #tpu.dot_dimension_numbers<[1], [0], [0], [1], [0, 0, 1, 1], [], []>} : vector<7x5xf32>, vector<5x16xf32>, vector<7x16xf32> -> vector<7x16xf32>
    %242 = arith.addf %233, %241 : vector<7x16xf32>
    %c1_i32_262 = arith.constant 1 : i32
    %243 = arith.addi %arg2, %c1_i32_262 : i32
    %c0_263 = arith.constant 0 : index
    %c0_264 = arith.constant 0 : index
    %244 = arith.index_cast %243 : i32 to index
    %c0_265 = arith.constant 0 : index
    %c0_266 = arith.constant 0 : index
    %c2_267 = arith.constant 2 : index
    %245 = vector.load %arg3[%c0_263, %c0_264, %244, %c0_265, %c0_266, %c2_267] : memref<1x1x9x5x6x6xf32, #tpu.memory_space<vmem>>, vector<1x1x1x5x4x4xf32>
    %246 = vector.shape_cast %245 : vector<1x1x1x5x4x4xf32> to vector<1x5x4x4xf32>
    %247 = vector.shape_cast %246 : vector<1x5x4x4xf32> to vector<5x16xf32>
    %c0_268 = arith.constant 0 : index
    %c44 = arith.constant 44 : index
    %c0_269 = arith.constant 0 : index
    %c0_270 = arith.constant 0 : index
    %248 = vector.load %arg4[%c0_268, %c44, %c0_269, %c0_270] : memref<1x64x7x5xf32, #tpu.memory_space<vmem>>, vector<1x1x7x5xf32>
    %249 = vector.shape_cast %248 : vector<1x1x7x5xf32> to vector<7x5xf32>
    %cst_271 = arith.constant dense<0.000000e+00> : vector<7x16xf32>
    %250 = tpu.matmul %249, %247, %cst_271 {dimension_numbers = #tpu.dot_dimension_numbers<[1], [0], [0], [1], [0, 0, 1, 1], [], []>} : vector<7x5xf32>, vector<5x16xf32>, vector<7x16xf32> -> vector<7x16xf32>
    %251 = arith.addf %242, %250 : vector<7x16xf32>
    %c1_i32_272 = arith.constant 1 : i32
    %252 = arith.addi %arg2, %c1_i32_272 : i32
    %c0_273 = arith.constant 0 : index
    %c0_274 = arith.constant 0 : index
    %253 = arith.index_cast %252 : i32 to index
    %c0_275 = arith.constant 0 : index
    %c0_276 = arith.constant 0 : index
    %c1_277 = arith.constant 1 : index
    %254 = vector.load %arg3[%c0_273, %c0_274, %253, %c0_275, %c0_276, %c1_277] : memref<1x1x9x5x6x6xf32, #tpu.memory_space<vmem>>, vector<1x1x1x5x4x4xf32>
    %255 = vector.shape_cast %254 : vector<1x1x1x5x4x4xf32> to vector<1x5x4x4xf32>
    %256 = vector.shape_cast %255 : vector<1x5x4x4xf32> to vector<5x16xf32>
    %c0_278 = arith.constant 0 : index
    %c46 = arith.constant 46 : index
    %c0_279 = arith.constant 0 : index
    %c0_280 = arith.constant 0 : index
    %257 = vector.load %arg4[%c0_278, %c46, %c0_279, %c0_280] : memref<1x64x7x5xf32, #tpu.memory_space<vmem>>, vector<1x1x7x5xf32>
    %258 = vector.shape_cast %257 : vector<1x1x7x5xf32> to vector<7x5xf32>
    %cst_281 = arith.constant dense<0.000000e+00> : vector<7x16xf32>
    %259 = tpu.matmul %258, %256, %cst_281 {dimension_numbers = #tpu.dot_dimension_numbers<[1], [0], [0], [1], [0, 0, 1, 1], [], []>} : vector<7x5xf32>, vector<5x16xf32>, vector<7x16xf32> -> vector<7x16xf32>
    %260 = arith.addf %251, %259 : vector<7x16xf32>
    %c0_i32_282 = arith.constant 0 : i32
    %261 = arith.addi %arg2, %c0_i32_282 : i32
    %c0_283 = arith.constant 0 : index
    %c0_284 = arith.constant 0 : index
    %262 = arith.index_cast %261 : i32 to index
    %c0_285 = arith.constant 0 : index
    %c1_286 = arith.constant 1 : index
    %c2_287 = arith.constant 2 : index
    %263 = vector.load %arg3[%c0_283, %c0_284, %262, %c0_285, %c1_286, %c2_287] : memref<1x1x9x5x6x6xf32, #tpu.memory_space<vmem>>, vector<1x1x1x5x4x4xf32>
    %264 = vector.shape_cast %263 : vector<1x1x1x5x4x4xf32> to vector<1x5x4x4xf32>
    %265 = vector.shape_cast %264 : vector<1x5x4x4xf32> to vector<5x16xf32>
    %c0_288 = arith.constant 0 : index
    %c52 = arith.constant 52 : index
    %c0_289 = arith.constant 0 : index
    %c0_290 = arith.constant 0 : index
    %266 = vector.load %arg4[%c0_288, %c52, %c0_289, %c0_290] : memref<1x64x7x5xf32, #tpu.memory_space<vmem>>, vector<1x1x7x5xf32>
    %267 = vector.shape_cast %266 : vector<1x1x7x5xf32> to vector<7x5xf32>
    %cst_291 = arith.constant dense<0.000000e+00> : vector<7x16xf32>
    %268 = tpu.matmul %267, %265, %cst_291 {dimension_numbers = #tpu.dot_dimension_numbers<[1], [0], [0], [1], [0, 0, 1, 1], [], []>} : vector<7x5xf32>, vector<5x16xf32>, vector<7x16xf32> -> vector<7x16xf32>
    %269 = arith.addf %260, %268 : vector<7x16xf32>
    %c0_i32_292 = arith.constant 0 : i32
    %270 = arith.addi %arg2, %c0_i32_292 : i32
    %c0_293 = arith.constant 0 : index
    %c0_294 = arith.constant 0 : index
    %271 = arith.index_cast %270 : i32 to index
    %c0_295 = arith.constant 0 : index
    %c1_296 = arith.constant 1 : index
    %c1_297 = arith.constant 1 : index
    %272 = vector.load %arg3[%c0_293, %c0_294, %271, %c0_295, %c1_296, %c1_297] : memref<1x1x9x5x6x6xf32, #tpu.memory_space<vmem>>, vector<1x1x1x5x4x4xf32>
    %273 = vector.shape_cast %272 : vector<1x1x1x5x4x4xf32> to vector<1x5x4x4xf32>
    %274 = vector.shape_cast %273 : vector<1x5x4x4xf32> to vector<5x16xf32>
    %c0_298 = arith.constant 0 : index
    %c54 = arith.constant 54 : index
    %c0_299 = arith.constant 0 : index
    %c0_300 = arith.constant 0 : index
    %275 = vector.load %arg4[%c0_298, %c54, %c0_299, %c0_300] : memref<1x64x7x5xf32, #tpu.memory_space<vmem>>, vector<1x1x7x5xf32>
    %276 = vector.shape_cast %275 : vector<1x1x7x5xf32> to vector<7x5xf32>
    %cst_301 = arith.constant dense<0.000000e+00> : vector<7x16xf32>
    %277 = tpu.matmul %276, %274, %cst_301 {dimension_numbers = #tpu.dot_dimension_numbers<[1], [0], [0], [1], [0, 0, 1, 1], [], []>} : vector<7x5xf32>, vector<5x16xf32>, vector<7x16xf32> -> vector<7x16xf32>
    %278 = arith.addf %269, %277 : vector<7x16xf32>
    %c0_i32_302 = arith.constant 0 : i32
    %279 = arith.addi %arg2, %c0_i32_302 : i32
    %c0_303 = arith.constant 0 : index
    %c0_304 = arith.constant 0 : index
    %280 = arith.index_cast %279 : i32 to index
    %c0_305 = arith.constant 0 : index
    %c0_306 = arith.constant 0 : index
    %c2_307 = arith.constant 2 : index
    %281 = vector.load %arg3[%c0_303, %c0_304, %280, %c0_305, %c0_306, %c2_307] : memref<1x1x9x5x6x6xf32, #tpu.memory_space<vmem>>, vector<1x1x1x5x4x4xf32>
    %282 = vector.shape_cast %281 : vector<1x1x1x5x4x4xf32> to vector<1x5x4x4xf32>
    %283 = vector.shape_cast %282 : vector<1x5x4x4xf32> to vector<5x16xf32>
    %c0_308 = arith.constant 0 : index
    %c60 = arith.constant 60 : index
    %c0_309 = arith.constant 0 : index
    %c0_310 = arith.constant 0 : index
    %284 = vector.load %arg4[%c0_308, %c60, %c0_309, %c0_310] : memref<1x64x7x5xf32, #tpu.memory_space<vmem>>, vector<1x1x7x5xf32>
    %285 = vector.shape_cast %284 : vector<1x1x7x5xf32> to vector<7x5xf32>
    %cst_311 = arith.constant dense<0.000000e+00> : vector<7x16xf32>
    %286 = tpu.matmul %285, %283, %cst_311 {dimension_numbers = #tpu.dot_dimension_numbers<[1], [0], [0], [1], [0, 0, 1, 1], [], []>} : vector<7x5xf32>, vector<5x16xf32>, vector<7x16xf32> -> vector<7x16xf32>
    %287 = arith.addf %278, %286 : vector<7x16xf32>
    %c0_i32_312 = arith.constant 0 : i32
    %288 = arith.addi %arg2, %c0_i32_312 : i32
    %c0_313 = arith.constant 0 : index
    %c0_314 = arith.constant 0 : index
    %289 = arith.index_cast %288 : i32 to index
    %c0_315 = arith.constant 0 : index
    %c0_316 = arith.constant 0 : index
    %c1_317 = arith.constant 1 : index
    %290 = vector.load %arg3[%c0_313, %c0_314, %289, %c0_315, %c0_316, %c1_317] : memref<1x1x9x5x6x6xf32, #tpu.memory_space<vmem>>, vector<1x1x1x5x4x4xf32>
    %291 = vector.shape_cast %290 : vector<1x1x1x5x4x4xf32> to vector<1x5x4x4xf32>
    %292 = vector.shape_cast %291 : vector<1x5x4x4xf32> to vector<5x16xf32>
    %c0_318 = arith.constant 0 : index
    %c62 = arith.constant 62 : index
    %c0_319 = arith.constant 0 : index
    %c0_320 = arith.constant 0 : index
    %293 = vector.load %arg4[%c0_318, %c62, %c0_319, %c0_320] : memref<1x64x7x5xf32, #tpu.memory_space<vmem>>, vector<1x1x7x5xf32>
    %294 = vector.shape_cast %293 : vector<1x1x7x5xf32> to vector<7x5xf32>
    %cst_321 = arith.constant dense<0.000000e+00> : vector<7x16xf32>
    %295 = tpu.matmul %294, %292, %cst_321 {dimension_numbers = #tpu.dot_dimension_numbers<[1], [0], [0], [1], [0, 0, 1, 1], [], []>} : vector<7x5xf32>, vector<5x16xf32>, vector<7x16xf32> -> vector<7x16xf32>
    %296 = arith.addf %287, %295 : vector<7x16xf32>
    %c0_322 = arith.constant 0 : index
    %c0_323 = arith.constant 0 : index
    %c0_324 = arith.constant 0 : index
    %297 = vector.load %arg5[%c0_322, %c0_323, %c0_324] : memref<1x7x1xf32, #tpu.memory_space<vmem>>, vector<1x7x1xf32>
    %298 = vector.shape_cast %297 : vector<1x7x1xf32> to vector<7x1xf32>
    %299 = vector.broadcast %298 : vector<7x1xf32> to vector<7x16xf32>
    %300 = arith.addf %296, %299 : vector<7x16xf32>
    %c0_325 = arith.constant 0 : index
    %c0_326 = arith.constant 0 : index
    %c0_327 = arith.constant 0 : index
    %c0_328 = arith.constant 0 : index
    %c0_329 = arith.constant 0 : index
    %301 = vector.load %arg7[%c0_325, %c0_326, %c0_327, %c0_328, %c0_329] : memref<1x1x1x7x16xf32, #tpu.memory_space<vmem>>, vector<1x1x1x7x16xf32>
    %302 = vector.shape_cast %301 : vector<1x1x1x7x16xf32> to vector<7x16xf32>
    %303 = vector.shape_cast %300 : vector<7x16xf32> to vector<1x1x1x7x16xf32>
    tpu.vector_store %arg7[%c0_325, %c0_326, %c0_327, %c0_328, %c0_329], %303 {strides = array<i32>} : memref<1x1x1x7x16xf32, #tpu.memory_space<vmem>>, vector<1x1x1x7x16xf32>,
    %cst_330 = arith.constant 0.000000e+00 : f32
    %304 = vector.broadcast %cst_330 : f32 to vector<7x16xf32>
    %c3_i32_331 = arith.constant 3 : i32
    %305 = arith.addi %arg2, %c3_i32_331 : i32
    %c0_332 = arith.constant 0 : index
    %c0_333 = arith.constant 0 : index
    %306 = arith.index_cast %305 : i32 to index
    %c0_334 = arith.constant 0 : index
    %c2_335 = arith.constant 2 : index
    %c1_336 = arith.constant 1 : index
    %307 = vector.load %arg3[%c0_332, %c0_333, %306, %c0_334, %c2_335, %c1_336] : memref<1x1x9x5x6x6xf32, #tpu.memory_space<vmem>>, vector<1x1x1x5x4x4xf32>
    %308 = vector.shape_cast %307 : vector<1x1x1x5x4x4xf32> to vector<1x5x4x4xf32>
    %309 = vector.shape_cast %308 : vector<1x5x4x4xf32> to vector<5x16xf32>
    %c0_337 = arith.constant 0 : index
    %c1_338 = arith.constant 1 : index
    %c0_339 = arith.constant 0 : index
    %c0_340 = arith.constant 0 : index
    %310 = vector.load %arg4[%c0_337, %c1_338, %c0_339, %c0_340] : memref<1x64x7x5xf32, #tpu.memory_space<vmem>>, vector<1x1x7x5xf32>
    %311 = vector.shape_cast %310 : vector<1x1x7x5xf32> to vector<7x5xf32>
    %cst_341 = arith.constant dense<0.000000e+00> : vector<7x16xf32>
    %312 = tpu.matmul %311, %309, %cst_341 {dimension_numbers = #tpu.dot_dimension_numbers<[1], [0], [0], [1], [0, 0, 1, 1], [], []>} : vector<7x5xf32>, vector<5x16xf32>, vector<7x16xf32> -> vector<7x16xf32>
    %313 = arith.addf %304, %312 : vector<7x16xf32>
    %c3_i32_342 = arith.constant 3 : i32
    %314 = arith.addi %arg2, %c3_i32_342 : i32
    %c0_343 = arith.constant 0 : index
    %c0_344 = arith.constant 0 : index
    %315 = arith.index_cast %314 : i32 to index
    %c0_345 = arith.constant 0 : index
    %c2_346 = arith.constant 2 : index
    %c0_347 = arith.constant 0 : index
    %316 = vector.load %arg3[%c0_343, %c0_344, %315, %c0_345, %c2_346, %c0_347] : memref<1x1x9x5x6x6xf32, #tpu.memory_space<vmem>>, vector<1x1x1x5x4x4xf32>
    %317 = vector.shape_cast %316 : vector<1x1x1x5x4x4xf32> to vector<1x5x4x4xf32>
    %318 = vector.shape_cast %317 : vector<1x5x4x4xf32> to vector<5x16xf32>
    %c0_348 = arith.constant 0 : index
    %c3 = arith.constant 3 : index
    %c0_349 = arith.constant 0 : index
    %c0_350 = arith.constant 0 : index
    %319 = vector.load %arg4[%c0_348, %c3, %c0_349, %c0_350] : memref<1x64x7x5xf32, #tpu.memory_space<vmem>>, vector<1x1x7x5xf32>
    %320 = vector.shape_cast %319 : vector<1x1x7x5xf32> to vector<7x5xf32>
    %cst_351 = arith.constant dense<0.000000e+00> : vector<7x16xf32>
    %321 = tpu.matmul %320, %318, %cst_351 {dimension_numbers = #tpu.dot_dimension_numbers<[1], [0], [0], [1], [0, 0, 1, 1], [], []>} : vector<7x5xf32>, vector<5x16xf32>, vector<7x16xf32> -> vector<7x16xf32>
    %322 = arith.addf %313, %321 : vector<7x16xf32>
    %c3_i32_352 = arith.constant 3 : i32
    %323 = arith.addi %arg2, %c3_i32_352 : i32
    %c0_353 = arith.constant 0 : index
    %c0_354 = arith.constant 0 : index
    %324 = arith.index_cast %323 : i32 to index
    %c0_355 = arith.constant 0 : index
    %c1_356 = arith.constant 1 : index
    %c1_357 = arith.constant 1 : index
    %325 = vector.load %arg3[%c0_353, %c0_354, %324, %c0_355, %c1_356, %c1_357] : memref<1x1x9x5x6x6xf32, #tpu.memory_space<vmem>>, vector<1x1x1x5x4x4xf32>
    %326 = vector.shape_cast %325 : vector<1x1x1x5x4x4xf32> to vector<1x5x4x4xf32>
    %327 = vector.shape_cast %326 : vector<1x5x4x4xf32> to vector<5x16xf32>
    %c0_358 = arith.constant 0 : index
    %c9 = arith.constant 9 : index
    %c0_359 = arith.constant 0 : index
    %c0_360 = arith.constant 0 : index
    %328 = vector.load %arg4[%c0_358, %c9, %c0_359, %c0_360] : memref<1x64x7x5xf32, #tpu.memory_space<vmem>>, vector<1x1x7x5xf32>
    %329 = vector.shape_cast %328 : vector<1x1x7x5xf32> to vector<7x5xf32>
    %cst_361 = arith.constant dense<0.000000e+00> : vector<7x16xf32>
    %330 = tpu.matmul %329, %327, %cst_361 {dimension_numbers = #tpu.dot_dimension_numbers<[1], [0], [0], [1], [0, 0, 1, 1], [], []>} : vector<7x5xf32>, vector<5x16xf32>, vector<7x16xf32> -> vector<7x16xf32>
    %331 = arith.addf %322, %330 : vector<7x16xf32>
    %c3_i32_362 = arith.constant 3 : i32
    %332 = arith.addi %arg2, %c3_i32_362 : i32
    %c0_363 = arith.constant 0 : index
    %c0_364 = arith.constant 0 : index
    %333 = arith.index_cast %332 : i32 to index
    %c0_365 = arith.constant 0 : index
    %c1_366 = arith.constant 1 : index
    %c0_367 = arith.constant 0 : index
    %334 = vector.load %arg3[%c0_363, %c0_364, %333, %c0_365, %c1_366, %c0_367] : memref<1x1x9x5x6x6xf32, #tpu.memory_space<vmem>>, vector<1x1x1x5x4x4xf32>
    %335 = vector.shape_cast %334 : vector<1x1x1x5x4x4xf32> to vector<1x5x4x4xf32>
    %336 = vector.shape_cast %335 : vector<1x5x4x4xf32> to vector<5x16xf32>
    %c0_368 = arith.constant 0 : index
    %c11 = arith.constant 11 : index
    %c0_369 = arith.constant 0 : index
    %c0_370 = arith.constant 0 : index
    %337 = vector.load %arg4[%c0_368, %c11, %c0_369, %c0_370] : memref<1x64x7x5xf32, #tpu.memory_space<vmem>>, vector<1x1x7x5xf32>
    %338 = vector.shape_cast %337 : vector<1x1x7x5xf32> to vector<7x5xf32>
    %cst_371 = arith.constant dense<0.000000e+00> : vector<7x16xf32>
    %339 = tpu.matmul %338, %336, %cst_371 {dimension_numbers = #tpu.dot_dimension_numbers<[1], [0], [0], [1], [0, 0, 1, 1], [], []>} : vector<7x5xf32>, vector<5x16xf32>, vector<7x16xf32> -> vector<7x16xf32>
    %340 = arith.addf %331, %339 : vector<7x16xf32>
    %c2_i32_372 = arith.constant 2 : i32
    %341 = arith.addi %arg2, %c2_i32_372 : i32
    %c0_373 = arith.constant 0 : index
    %c0_374 = arith.constant 0 : index
    %342 = arith.index_cast %341 : i32 to index
    %c0_375 = arith.constant 0 : index
    %c2_376 = arith.constant 2 : index
    %c1_377 = arith.constant 1 : index
    %343 = vector.load %arg3[%c0_373, %c0_374, %342, %c0_375, %c2_376, %c1_377] : memref<1x1x9x5x6x6xf32, #tpu.memory_space<vmem>>, vector<1x1x1x5x4x4xf32>
    %344 = vector.shape_cast %343 : vector<1x1x1x5x4x4xf32> to vector<1x5x4x4xf32>
    %345 = vector.shape_cast %344 : vector<1x5x4x4xf32> to vector<5x16xf32>
    %c0_378 = arith.constant 0 : index
    %c17 = arith.constant 17 : index
    %c0_379 = arith.constant 0 : index
    %c0_380 = arith.constant 0 : index
    %346 = vector.load %arg4[%c0_378, %c17, %c0_379, %c0_380] : memref<1x64x7x5xf32, #tpu.memory_space<vmem>>, vector<1x1x7x5xf32>
    %347 = vector.shape_cast %346 : vector<1x1x7x5xf32> to vector<7x5xf32>
    %cst_381 = arith.constant dense<0.000000e+00> : vector<7x16xf32>
    %348 = tpu.matmul %347, %345, %cst_381 {dimension_numbers = #tpu.dot_dimension_numbers<[1], [0], [0], [1], [0, 0, 1, 1], [], []>} : vector<7x5xf32>, vector<5x16xf32>, vector<7x16xf32> -> vector<7x16xf32>
    %349 = arith.addf %340, %348 : vector<7x16xf32>
    %c2_i32_382 = arith.constant 2 : i32
    %350 = arith.addi %arg2, %c2_i32_382 : i32
    %c0_383 = arith.constant 0 : index
    %c0_384 = arith.constant 0 : index
    %351 = arith.index_cast %350 : i32 to index
    %c0_385 = arith.constant 0 : index
    %c2_386 = arith.constant 2 : index
    %c0_387 = arith.constant 0 : index
    %352 = vector.load %arg3[%c0_383, %c0_384, %351, %c0_385, %c2_386, %c0_387] : memref<1x1x9x5x6x6xf32, #tpu.memory_space<vmem>>, vector<1x1x1x5x4x4xf32>
    %353 = vector.shape_cast %352 : vector<1x1x1x5x4x4xf32> to vector<1x5x4x4xf32>
    %354 = vector.shape_cast %353 : vector<1x5x4x4xf32> to vector<5x16xf32>
    %c0_388 = arith.constant 0 : index
    %c19 = arith.constant 19 : index
    %c0_389 = arith.constant 0 : index
    %c0_390 = arith.constant 0 : index
    %355 = vector.load %arg4[%c0_388, %c19, %c0_389, %c0_390] : memref<1x64x7x5xf32, #tpu.memory_space<vmem>>, vector<1x1x7x5xf32>
    %356 = vector.shape_cast %355 : vector<1x1x7x5xf32> to vector<7x5xf32>
    %cst_391 = arith.constant dense<0.000000e+00> : vector<7x16xf32>
    %357 = tpu.matmul %356, %354, %cst_391 {dimension_numbers = #tpu.dot_dimension_numbers<[1], [0], [0], [1], [0, 0, 1, 1], [], []>} : vector<7x5xf32>, vector<5x16xf32>, vector<7x16xf32> -> vector<7x16xf32>
    %358 = arith.addf %349, %357 : vector<7x16xf32>
    %c2_i32_392 = arith.constant 2 : i32
    %359 = arith.addi %arg2, %c2_i32_392 : i32
    %c0_393 = arith.constant 0 : index
    %c0_394 = arith.constant 0 : index
    %360 = arith.index_cast %359 : i32 to index
    %c0_395 = arith.constant 0 : index
    %c1_396 = arith.constant 1 : index
    %c1_397 = arith.constant 1 : index
    %361 = vector.load %arg3[%c0_393, %c0_394, %360, %c0_395, %c1_396, %c1_397] : memref<1x1x9x5x6x6xf32, #tpu.memory_space<vmem>>, vector<1x1x1x5x4x4xf32>
    %362 = vector.shape_cast %361 : vector<1x1x1x5x4x4xf32> to vector<1x5x4x4xf32>
    %363 = vector.shape_cast %362 : vector<1x5x4x4xf32> to vector<5x16xf32>
    %c0_398 = arith.constant 0 : index
    %c25 = arith.constant 25 : index
    %c0_399 = arith.constant 0 : index
    %c0_400 = arith.constant 0 : index
    %364 = vector.load %arg4[%c0_398, %c25, %c0_399, %c0_400] : memref<1x64x7x5xf32, #tpu.memory_space<vmem>>, vector<1x1x7x5xf32>
    %365 = vector.shape_cast %364 : vector<1x1x7x5xf32> to vector<7x5xf32>
    %cst_401 = arith.constant dense<0.000000e+00> : vector<7x16xf32>
    %366 = tpu.matmul %365, %363, %cst_401 {dimension_numbers = #tpu.dot_dimension_numbers<[1], [0], [0], [1], [0, 0, 1, 1], [], []>} : vector<7x5xf32>, vector<5x16xf32>, vector<7x16xf32> -> vector<7x16xf32>
    %367 = arith.addf %358, %366 : vector<7x16xf32>
    %c2_i32_402 = arith.constant 2 : i32
    %368 = arith.addi %arg2, %c2_i32_402 : i32
    %c0_403 = arith.constant 0 : index
    %c0_404 = arith.constant 0 : index
    %369 = arith.index_cast %368 : i32 to index
    %c0_405 = arith.constant 0 : index
    %c1_406 = arith.constant 1 : index
    %c0_407 = arith.constant 0 : index
    %370 = vector.load %arg3[%c0_403, %c0_404, %369, %c0_405, %c1_406, %c0_407] : memref<1x1x9x5x6x6xf32, #tpu.memory_space<vmem>>, vector<1x1x1x5x4x4xf32>
    %371 = vector.shape_cast %370 : vector<1x1x1x5x4x4xf32> to vector<1x5x4x4xf32>
    %372 = vector.shape_cast %371 : vector<1x5x4x4xf32> to vector<5x16xf32>
    %c0_408 = arith.constant 0 : index
    %c27 = arith.constant 27 : index
    %c0_409 = arith.constant 0 : index
    %c0_410 = arith.constant 0 : index
    %373 = vector.load %arg4[%c0_408, %c27, %c0_409, %c0_410] : memref<1x64x7x5xf32, #tpu.memory_space<vmem>>, vector<1x1x7x5xf32>
    %374 = vector.shape_cast %373 : vector<1x1x7x5xf32> to vector<7x5xf32>
    %cst_411 = arith.constant dense<0.000000e+00> : vector<7x16xf32>
    %375 = tpu.matmul %374, %372, %cst_411 {dimension_numbers = #tpu.dot_dimension_numbers<[1], [0], [0], [1], [0, 0, 1, 1], [], []>} : vector<7x5xf32>, vector<5x16xf32>, vector<7x16xf32> -> vector<7x16xf32>
    %376 = arith.addf %367, %375 : vector<7x16xf32>
    %c1_i32_412 = arith.constant 1 : i32
    %377 = arith.addi %arg2, %c1_i32_412 : i32
    %c0_413 = arith.constant 0 : index
    %c0_414 = arith.constant 0 : index
    %378 = arith.index_cast %377 : i32 to index
    %c0_415 = arith.constant 0 : index
    %c2_416 = arith.constant 2 : index
    %c1_417 = arith.constant 1 : index
    %379 = vector.load %arg3[%c0_413, %c0_414, %378, %c0_415, %c2_416, %c1_417] : memref<1x1x9x5x6x6xf32, #tpu.memory_space<vmem>>, vector<1x1x1x5x4x4xf32>
    %380 = vector.shape_cast %379 : vector<1x1x1x5x4x4xf32> to vector<1x5x4x4xf32>
    %381 = vector.shape_cast %380 : vector<1x5x4x4xf32> to vector<5x16xf32>
    %c0_418 = arith.constant 0 : index
    %c33 = arith.constant 33 : index
    %c0_419 = arith.constant 0 : index
    %c0_420 = arith.constant 0 : index
    %382 = vector.load %arg4[%c0_418, %c33, %c0_419, %c0_420] : memref<1x64x7x5xf32, #tpu.memory_space<vmem>>, vector<1x1x7x5xf32>
    %383 = vector.shape_cast %382 : vector<1x1x7x5xf32> to vector<7x5xf32>
    %cst_421 = arith.constant dense<0.000000e+00> : vector<7x16xf32>
    %384 = tpu.matmul %383, %381, %cst_421 {dimension_numbers = #tpu.dot_dimension_numbers<[1], [0], [0], [1], [0, 0, 1, 1], [], []>} : vector<7x5xf32>, vector<5x16xf32>, vector<7x16xf32> -> vector<7x16xf32>
    %385 = arith.addf %376, %384 : vector<7x16xf32>
    %c1_i32_422 = arith.constant 1 : i32
    %386 = arith.addi %arg2, %c1_i32_422 : i32
    %c0_423 = arith.constant 0 : index
    %c0_424 = arith.constant 0 : index
    %387 = arith.index_cast %386 : i32 to index
    %c0_425 = arith.constant 0 : index
    %c2_426 = arith.constant 2 : index
    %c0_427 = arith.constant 0 : index
    %388 = vector.load %arg3[%c0_423, %c0_424, %387, %c0_425, %c2_426, %c0_427] : memref<1x1x9x5x6x6xf32, #tpu.memory_space<vmem>>, vector<1x1x1x5x4x4xf32>
    %389 = vector.shape_cast %388 : vector<1x1x1x5x4x4xf32> to vector<1x5x4x4xf32>
    %390 = vector.shape_cast %389 : vector<1x5x4x4xf32> to vector<5x16xf32>
    %c0_428 = arith.constant 0 : index
    %c35 = arith.constant 35 : index
    %c0_429 = arith.constant 0 : index
    %c0_430 = arith.constant 0 : index
    %391 = vector.load %arg4[%c0_428, %c35, %c0_429, %c0_430] : memref<1x64x7x5xf32, #tpu.memory_space<vmem>>, vector<1x1x7x5xf32>
    %392 = vector.shape_cast %391 : vector<1x1x7x5xf32> to vector<7x5xf32>
    %cst_431 = arith.constant dense<0.000000e+00> : vector<7x16xf32>
    %393 = tpu.matmul %392, %390, %cst_431 {dimension_numbers = #tpu.dot_dimension_numbers<[1], [0], [0], [1], [0, 0, 1, 1], [], []>} : vector<7x5xf32>, vector<5x16xf32>, vector<7x16xf32> -> vector<7x16xf32>
    %394 = arith.addf %385, %393 : vector<7x16xf32>
    %c1_i32_432 = arith.constant 1 : i32
    %395 = arith.addi %arg2, %c1_i32_432 : i32
    %c0_433 = arith.constant 0 : index
    %c0_434 = arith.constant 0 : index
    %396 = arith.index_cast %395 : i32 to index
    %c0_435 = arith.constant 0 : index
    %c1_436 = arith.constant 1 : index
    %c1_437 = arith.constant 1 : index
    %397 = vector.load %arg3[%c0_433, %c0_434, %396, %c0_435, %c1_436, %c1_437] : memref<1x1x9x5x6x6xf32, #tpu.memory_space<vmem>>, vector<1x1x1x5x4x4xf32>
    %398 = vector.shape_cast %397 : vector<1x1x1x5x4x4xf32> to vector<1x5x4x4xf32>
    %399 = vector.shape_cast %398 : vector<1x5x4x4xf32> to vector<5x16xf32>
    %c0_438 = arith.constant 0 : index
    %c41 = arith.constant 41 : index
    %c0_439 = arith.constant 0 : index
    %c0_440 = arith.constant 0 : index
    %400 = vector.load %arg4[%c0_438, %c41, %c0_439, %c0_440] : memref<1x64x7x5xf32, #tpu.memory_space<vmem>>, vector<1x1x7x5xf32>
    %401 = vector.shape_cast %400 : vector<1x1x7x5xf32> to vector<7x5xf32>
    %cst_441 = arith.constant dense<0.000000e+00> : vector<7x16xf32>
    %402 = tpu.matmul %401, %399, %cst_441 {dimension_numbers = #tpu.dot_dimension_numbers<[1], [0], [0], [1], [0, 0, 1, 1], [], []>} : vector<7x5xf32>, vector<5x16xf32>, vector<7x16xf32> -> vector<7x16xf32>
    %403 = arith.addf %394, %402 : vector<7x16xf32>
    %c1_i32_442 = arith.constant 1 : i32
    %404 = arith.addi %arg2, %c1_i32_442 : i32
    %c0_443 = arith.constant 0 : index
    %c0_444 = arith.constant 0 : index
    %405 = arith.index_cast %404 : i32 to index
    %c0_445 = arith.constant 0 : index
    %c1_446 = arith.constant 1 : index
    %c0_447 = arith.constant 0 : index
    %406 = vector.load %arg3[%c0_443, %c0_444, %405, %c0_445, %c1_446, %c0_447] : memref<1x1x9x5x6x6xf32, #tpu.memory_space<vmem>>, vector<1x1x1x5x4x4xf32>
    %407 = vector.shape_cast %406 : vector<1x1x1x5x4x4xf32> to vector<1x5x4x4xf32>
    %408 = vector.shape_cast %407 : vector<1x5x4x4xf32> to vector<5x16xf32>
    %c0_448 = arith.constant 0 : index
    %c43 = arith.constant 43 : index
    %c0_449 = arith.constant 0 : index
    %c0_450 = arith.constant 0 : index
    %409 = vector.load %arg4[%c0_448, %c43, %c0_449, %c0_450] : memref<1x64x7x5xf32, #tpu.memory_space<vmem>>, vector<1x1x7x5xf32>
    %410 = vector.shape_cast %409 : vector<1x1x7x5xf32> to vector<7x5xf32>
    %cst_451 = arith.constant dense<0.000000e+00> : vector<7x16xf32>
    %411 = tpu.matmul %410, %408, %cst_451 {dimension_numbers = #tpu.dot_dimension_numbers<[1], [0], [0], [1], [0, 0, 1, 1], [], []>} : vector<7x5xf32>, vector<5x16xf32>, vector<7x16xf32> -> vector<7x16xf32>
    %412 = arith.addf %403, %411 : vector<7x16xf32>
    %c0_i32_452 = arith.constant 0 : i32
    %413 = arith.addi %arg2, %c0_i32_452 : i32
    %c0_453 = arith.constant 0 : index
    %c0_454 = arith.constant 0 : index
    %414 = arith.index_cast %413 : i32 to index
    %c0_455 = arith.constant 0 : index
    %c2_456 = arith.constant 2 : index
    %c1_457 = arith.constant 1 : index
    %415 = vector.load %arg3[%c0_453, %c0_454, %414, %c0_455, %c2_456, %c1_457] : memref<1x1x9x5x6x6xf32, #tpu.memory_space<vmem>>, vector<1x1x1x5x4x4xf32>
    %416 = vector.shape_cast %415 : vector<1x1x1x5x4x4xf32> to vector<1x5x4x4xf32>
    %417 = vector.shape_cast %416 : vector<1x5x4x4xf32> to vector<5x16xf32>
    %c0_458 = arith.constant 0 : index
    %c49 = arith.constant 49 : index
    %c0_459 = arith.constant 0 : index
    %c0_460 = arith.constant 0 : index
    %418 = vector.load %arg4[%c0_458, %c49, %c0_459, %c0_460] : memref<1x64x7x5xf32, #tpu.memory_space<vmem>>, vector<1x1x7x5xf32>
    %419 = vector.shape_cast %418 : vector<1x1x7x5xf32> to vector<7x5xf32>
    %cst_461 = arith.constant dense<0.000000e+00> : vector<7x16xf32>
    %420 = tpu.matmul %419, %417, %cst_461 {dimension_numbers = #tpu.dot_dimension_numbers<[1], [0], [0], [1], [0, 0, 1, 1], [], []>} : vector<7x5xf32>, vector<5x16xf32>, vector<7x16xf32> -> vector<7x16xf32>
    %421 = arith.addf %412, %420 : vector<7x16xf32>
    %c0_i32_462 = arith.constant 0 : i32
    %422 = arith.addi %arg2, %c0_i32_462 : i32
    %c0_463 = arith.constant 0 : index
    %c0_464 = arith.constant 0 : index
    %423 = arith.index_cast %422 : i32 to index
    %c0_465 = arith.constant 0 : index
    %c2_466 = arith.constant 2 : index
    %c0_467 = arith.constant 0 : index
    %424 = vector.load %arg3[%c0_463, %c0_464, %423, %c0_465, %c2_466, %c0_467] : memref<1x1x9x5x6x6xf32, #tpu.memory_space<vmem>>, vector<1x1x1x5x4x4xf32>
    %425 = vector.shape_cast %424 : vector<1x1x1x5x4x4xf32> to vector<1x5x4x4xf32>
    %426 = vector.shape_cast %425 : vector<1x5x4x4xf32> to vector<5x16xf32>
    %c0_468 = arith.constant 0 : index
    %c51 = arith.constant 51 : index
    %c0_469 = arith.constant 0 : index
    %c0_470 = arith.constant 0 : index
    %427 = vector.load %arg4[%c0_468, %c51, %c0_469, %c0_470] : memref<1x64x7x5xf32, #tpu.memory_space<vmem>>, vector<1x1x7x5xf32>
    %428 = vector.shape_cast %427 : vector<1x1x7x5xf32> to vector<7x5xf32>
    %cst_471 = arith.constant dense<0.000000e+00> : vector<7x16xf32>
    %429 = tpu.matmul %428, %426, %cst_471 {dimension_numbers = #tpu.dot_dimension_numbers<[1], [0], [0], [1], [0, 0, 1, 1], [], []>} : vector<7x5xf32>, vector<5x16xf32>, vector<7x16xf32> -> vector<7x16xf32>
    %430 = arith.addf %421, %429 : vector<7x16xf32>
    %c0_i32_472 = arith.constant 0 : i32
    %431 = arith.addi %arg2, %c0_i32_472 : i32
    %c0_473 = arith.constant 0 : index
    %c0_474 = arith.constant 0 : index
    %432 = arith.index_cast %431 : i32 to index
    %c0_475 = arith.constant 0 : index
    %c1_476 = arith.constant 1 : index
    %c1_477 = arith.constant 1 : index
    %433 = vector.load %arg3[%c0_473, %c0_474, %432, %c0_475, %c1_476, %c1_477] : memref<1x1x9x5x6x6xf32, #tpu.memory_space<vmem>>, vector<1x1x1x5x4x4xf32>
    %434 = vector.shape_cast %433 : vector<1x1x1x5x4x4xf32> to vector<1x5x4x4xf32>
    %435 = vector.shape_cast %434 : vector<1x5x4x4xf32> to vector<5x16xf32>
    %c0_478 = arith.constant 0 : index
    %c57 = arith.constant 57 : index
    %c0_479 = arith.constant 0 : index
    %c0_480 = arith.constant 0 : index
    %436 = vector.load %arg4[%c0_478, %c57, %c0_479, %c0_480] : memref<1x64x7x5xf32, #tpu.memory_space<vmem>>, vector<1x1x7x5xf32>
    %437 = vector.shape_cast %436 : vector<1x1x7x5xf32> to vector<7x5xf32>
    %cst_481 = arith.constant dense<0.000000e+00> : vector<7x16xf32>
    %438 = tpu.matmul %437, %435, %cst_481 {dimension_numbers = #tpu.dot_dimension_numbers<[1], [0], [0], [1], [0, 0, 1, 1], [], []>} : vector<7x5xf32>, vector<5x16xf32>, vector<7x16xf32> -> vector<7x16xf32>
    %439 = arith.addf %430, %438 : vector<7x16xf32>
    %c0_i32_482 = arith.constant 0 : i32
    %440 = arith.addi %arg2, %c0_i32_482 : i32
    %c0_483 = arith.constant 0 : index
    %c0_484 = arith.constant 0 : index
    %441 = arith.index_cast %440 : i32 to index
    %c0_485 = arith.constant 0 : index
    %c1_486 = arith.constant 1 : index
    %c0_487 = arith.constant 0 : index
    %442 = vector.load %arg3[%c0_483, %c0_484, %441, %c0_485, %c1_486, %c0_487] : memref<1x1x9x5x6x6xf32, #tpu.memory_space<vmem>>, vector<1x1x1x5x4x4xf32>
    %443 = vector.shape_cast %442 : vector<1x1x1x5x4x4xf32> to vector<1x5x4x4xf32>
    %444 = vector.shape_cast %443 : vector<1x5x4x4xf32> to vector<5x16xf32>
    %c0_488 = arith.constant 0 : index
    %c59 = arith.constant 59 : index
    %c0_489 = arith.constant 0 : index
    %c0_490 = arith.constant 0 : index
    %445 = vector.load %arg4[%c0_488, %c59, %c0_489, %c0_490] : memref<1x64x7x5xf32, #tpu.memory_space<vmem>>, vector<1x1x7x5xf32>
    %446 = vector.shape_cast %445 : vector<1x1x7x5xf32> to vector<7x5xf32>
    %cst_491 = arith.constant dense<0.000000e+00> : vector<7x16xf32>
    %447 = tpu.matmul %446, %444, %cst_491 {dimension_numbers = #tpu.dot_dimension_numbers<[1], [0], [0], [1], [0, 0, 1, 1], [], []>} : vector<7x5xf32>, vector<5x16xf32>, vector<7x16xf32> -> vector<7x16xf32>
    %448 = arith.addf %439, %447 : vector<7x16xf32>
    %c0_492 = arith.constant 0 : index
    %c0_493 = arith.constant 0 : index
    %c0_494 = arith.constant 0 : index
    %449 = vector.load %arg5[%c0_492, %c0_493, %c0_494] : memref<1x7x1xf32, #tpu.memory_space<vmem>>, vector<1x7x1xf32>
    %450 = vector.shape_cast %449 : vector<1x7x1xf32> to vector<7x1xf32>
    %451 = vector.broadcast %450 : vector<7x1xf32> to vector<7x16xf32>
    %452 = arith.addf %448, %451 : vector<7x16xf32>
    %c0_495 = arith.constant 0 : index
    %c0_496 = arith.constant 0 : index
    %c0_497 = arith.constant 0 : index
    %c0_498 = arith.constant 0 : index
    %c0_499 = arith.constant 0 : index
    %453 = vector.load %arg8[%c0_495, %c0_496, %c0_497, %c0_498, %c0_499] : memref<1x1x1x7x16xf32, #tpu.memory_space<vmem>>, vector<1x1x1x7x16xf32>
    %454 = vector.shape_cast %453 : vector<1x1x1x7x16xf32> to vector<7x16xf32>
    %455 = vector.shape_cast %452 : vector<7x16xf32> to vector<1x1x1x7x16xf32>
    tpu.vector_store %arg8[%c0_495, %c0_496, %c0_497, %c0_498, %c0_499], %455 {strides = array<i32>} : memref<1x1x1x7x16xf32, #tpu.memory_space<vmem>>, vector<1x1x1x7x16xf32>,
    %cst_500 = arith.constant 0.000000e+00 : f32
    %456 = vector.broadcast %cst_500 : f32 to vector<7x16xf32>
    %c3_i32_501 = arith.constant 3 : i32
    %457 = arith.addi %arg2, %c3_i32_501 : i32
    %c0_502 = arith.constant 0 : index
    %c0_503 = arith.constant 0 : index
    %458 = arith.index_cast %457 : i32 to index
    %c0_504 = arith.constant 0 : index
    %c2_505 = arith.constant 2 : index
    %c2_506 = arith.constant 2 : index
    %459 = vector.load %arg3[%c0_502, %c0_503, %458, %c0_504, %c2_505, %c2_506] : memref<1x1x9x5x6x6xf32, #tpu.memory_space<vmem>>, vector<1x1x1x5x4x4xf32>
    %460 = vector.shape_cast %459 : vector<1x1x1x5x4x4xf32> to vector<1x5x4x4xf32>
    %461 = vector.shape_cast %460 : vector<1x5x4x4xf32> to vector<5x16xf32>
    %c0_507 = arith.constant 0 : index
    %c0_508 = arith.constant 0 : index
    %c0_509 = arith.constant 0 : index
    %c0_510 = arith.constant 0 : index
    %462 = vector.load %arg4[%c0_507, %c0_508, %c0_509, %c0_510] : memref<1x64x7x5xf32, #tpu.memory_space<vmem>>, vector<1x1x7x5xf32>
    %463 = vector.shape_cast %462 : vector<1x1x7x5xf32> to vector<7x5xf32>
    %cst_511 = arith.constant dense<0.000000e+00> : vector<7x16xf32>
    %464 = tpu.matmul %463, %461, %cst_511 {dimension_numbers = #tpu.dot_dimension_numbers<[1], [0], [0], [1], [0, 0, 1, 1], [], []>} : vector<7x5xf32>, vector<5x16xf32>, vector<7x16xf32> -> vector<7x16xf32>
    %465 = arith.addf %456, %464 : vector<7x16xf32>
    %c3_i32_512 = arith.constant 3 : i32
    %466 = arith.addi %arg2, %c3_i32_512 : i32
    %c0_513 = arith.constant 0 : index
    %c0_514 = arith.constant 0 : index
    %467 = arith.index_cast %466 : i32 to index
    %c0_515 = arith.constant 0 : index
    %c2_516 = arith.constant 2 : index
    %c1_517 = arith.constant 1 : index
    %468 = vector.load %arg3[%c0_513, %c0_514, %467, %c0_515, %c2_516, %c1_517] : memref<1x1x9x5x6x6xf32, #tpu.memory_space<vmem>>, vector<1x1x1x5x4x4xf32>
    %469 = vector.shape_cast %468 : vector<1x1x1x5x4x4xf32> to vector<1x5x4x4xf32>
    %470 = vector.shape_cast %469 : vector<1x5x4x4xf32> to vector<5x16xf32>
    %c0_518 = arith.constant 0 : index
    %c2_519 = arith.constant 2 : index
    %c0_520 = arith.constant 0 : index
    %c0_521 = arith.constant 0 : index
    %471 = vector.load %arg4[%c0_518, %c2_519, %c0_520, %c0_521] : memref<1x64x7x5xf32, #tpu.memory_space<vmem>>, vector<1x1x7x5xf32>
    %472 = vector.shape_cast %471 : vector<1x1x7x5xf32> to vector<7x5xf32>
    %cst_522 = arith.constant dense<0.000000e+00> : vector<7x16xf32>
    %473 = tpu.matmul %472, %470, %cst_522 {dimension_numbers = #tpu.dot_dimension_numbers<[1], [0], [0], [1], [0, 0, 1, 1], [], []>} : vector<7x5xf32>, vector<5x16xf32>, vector<7x16xf32> -> vector<7x16xf32>
    %474 = arith.addf %465, %473 : vector<7x16xf32>
    %c3_i32_523 = arith.constant 3 : i32
    %475 = arith.addi %arg2, %c3_i32_523 : i32
    %c0_524 = arith.constant 0 : index
    %c0_525 = arith.constant 0 : index
    %476 = arith.index_cast %475 : i32 to index
    %c0_526 = arith.constant 0 : index
    %c1_527 = arith.constant 1 : index
    %c2_528 = arith.constant 2 : index
    %477 = vector.load %arg3[%c0_524, %c0_525, %476, %c0_526, %c1_527, %c2_528] : memref<1x1x9x5x6x6xf32, #tpu.memory_space<vmem>>, vector<1x1x1x5x4x4xf32>
    %478 = vector.shape_cast %477 : vector<1x1x1x5x4x4xf32> to vector<1x5x4x4xf32>
    %479 = vector.shape_cast %478 : vector<1x5x4x4xf32> to vector<5x16xf32>
    %c0_529 = arith.constant 0 : index
    %c8 = arith.constant 8 : index
    %c0_530 = arith.constant 0 : index
    %c0_531 = arith.constant 0 : index
    %480 = vector.load %arg4[%c0_529, %c8, %c0_530, %c0_531] : memref<1x64x7x5xf32, #tpu.memory_space<vmem>>, vector<1x1x7x5xf32>
    %481 = vector.shape_cast %480 : vector<1x1x7x5xf32> to vector<7x5xf32>
    %cst_532 = arith.constant dense<0.000000e+00> : vector<7x16xf32>
    %482 = tpu.matmul %481, %479, %cst_532 {dimension_numbers = #tpu.dot_dimension_numbers<[1], [0], [0], [1], [0, 0, 1, 1], [], []>} : vector<7x5xf32>, vector<5x16xf32>, vector<7x16xf32> -> vector<7x16xf32>
    %483 = arith.addf %474, %482 : vector<7x16xf32>
    %c3_i32_533 = arith.constant 3 : i32
    %484 = arith.addi %arg2, %c3_i32_533 : i32
    %c0_534 = arith.constant 0 : index
    %c0_535 = arith.constant 0 : index
    %485 = arith.index_cast %484 : i32 to index
    %c0_536 = arith.constant 0 : index
    %c1_537 = arith.constant 1 : index
    %c1_538 = arith.constant 1 : index
    %486 = vector.load %arg3[%c0_534, %c0_535, %485, %c0_536, %c1_537, %c1_538] : memref<1x1x9x5x6x6xf32, #tpu.memory_space<vmem>>, vector<1x1x1x5x4x4xf32>
    %487 = vector.shape_cast %486 : vector<1x1x1x5x4x4xf32> to vector<1x5x4x4xf32>
    %488 = vector.shape_cast %487 : vector<1x5x4x4xf32> to vector<5x16xf32>
    %c0_539 = arith.constant 0 : index
    %c10 = arith.constant 10 : index
    %c0_540 = arith.constant 0 : index
    %c0_541 = arith.constant 0 : index
    %489 = vector.load %arg4[%c0_539, %c10, %c0_540, %c0_541] : memref<1x64x7x5xf32, #tpu.memory_space<vmem>>, vector<1x1x7x5xf32>
    %490 = vector.shape_cast %489 : vector<1x1x7x5xf32> to vector<7x5xf32>
    %cst_542 = arith.constant dense<0.000000e+00> : vector<7x16xf32>
    %491 = tpu.matmul %490, %488, %cst_542 {dimension_numbers = #tpu.dot_dimension_numbers<[1], [0], [0], [1], [0, 0, 1, 1], [], []>} : vector<7x5xf32>, vector<5x16xf32>, vector<7x16xf32> -> vector<7x16xf32>
    %492 = arith.addf %483, %491 : vector<7x16xf32>
    %c2_i32_543 = arith.constant 2 : i32
    %493 = arith.addi %arg2, %c2_i32_543 : i32
    %c0_544 = arith.constant 0 : index
    %c0_545 = arith.constant 0 : index
    %494 = arith.index_cast %493 : i32 to index
    %c0_546 = arith.constant 0 : index
    %c2_547 = arith.constant 2 : index
    %c2_548 = arith.constant 2 : index
    %495 = vector.load %arg3[%c0_544, %c0_545, %494, %c0_546, %c2_547, %c2_548] : memref<1x1x9x5x6x6xf32, #tpu.memory_space<vmem>>, vector<1x1x1x5x4x4xf32>
    %496 = vector.shape_cast %495 : vector<1x1x1x5x4x4xf32> to vector<1x5x4x4xf32>
    %497 = vector.shape_cast %496 : vector<1x5x4x4xf32> to vector<5x16xf32>
    %c0_549 = arith.constant 0 : index
    %c16 = arith.constant 16 : index
    %c0_550 = arith.constant 0 : index
    %c0_551 = arith.constant 0 : index
    %498 = vector.load %arg4[%c0_549, %c16, %c0_550, %c0_551] : memref<1x64x7x5xf32, #tpu.memory_space<vmem>>, vector<1x1x7x5xf32>
    %499 = vector.shape_cast %498 : vector<1x1x7x5xf32> to vector<7x5xf32>
    %cst_552 = arith.constant dense<0.000000e+00> : vector<7x16xf32>
    %500 = tpu.matmul %499, %497, %cst_552 {dimension_numbers = #tpu.dot_dimension_numbers<[1], [0], [0], [1], [0, 0, 1, 1], [], []>} : vector<7x5xf32>, vector<5x16xf32>, vector<7x16xf32> -> vector<7x16xf32>
    %501 = arith.addf %492, %500 : vector<7x16xf32>
    %c2_i32_553 = arith.constant 2 : i32
    %502 = arith.addi %arg2, %c2_i32_553 : i32
    %c0_554 = arith.constant 0 : index
    %c0_555 = arith.constant 0 : index
    %503 = arith.index_cast %502 : i32 to index
    %c0_556 = arith.constant 0 : index
    %c2_557 = arith.constant 2 : index
    %c1_558 = arith.constant 1 : index
    %504 = vector.load %arg3[%c0_554, %c0_555, %503, %c0_556, %c2_557, %c1_558] : memref<1x1x9x5x6x6xf32, #tpu.memory_space<vmem>>, vector<1x1x1x5x4x4xf32>
    %505 = vector.shape_cast %504 : vector<1x1x1x5x4x4xf32> to vector<1x5x4x4xf32>
    %506 = vector.shape_cast %505 : vector<1x5x4x4xf32> to vector<5x16xf32>
    %c0_559 = arith.constant 0 : index
    %c18 = arith.constant 18 : index
    %c0_560 = arith.constant 0 : index
    %c0_561 = arith.constant 0 : index
    %507 = vector.load %arg4[%c0_559, %c18, %c0_560, %c0_561] : memref<1x64x7x5xf32, #tpu.memory_space<vmem>>, vector<1x1x7x5xf32>
    %508 = vector.shape_cast %507 : vector<1x1x7x5xf32> to vector<7x5xf32>
    %cst_562 = arith.constant dense<0.000000e+00> : vector<7x16xf32>
    %509 = tpu.matmul %508, %506, %cst_562 {dimension_numbers = #tpu.dot_dimension_numbers<[1], [0], [0], [1], [0, 0, 1, 1], [], []>} : vector<7x5xf32>, vector<5x16xf32>, vector<7x16xf32> -> vector<7x16xf32>
    %510 = arith.addf %501, %509 : vector<7x16xf32>
    %c2_i32_563 = arith.constant 2 : i32
    %511 = arith.addi %arg2, %c2_i32_563 : i32
    %c0_564 = arith.constant 0 : index
    %c0_565 = arith.constant 0 : index
    %512 = arith.index_cast %511 : i32 to index
    %c0_566 = arith.constant 0 : index
    %c1_567 = arith.constant 1 : index
    %c2_568 = arith.constant 2 : index
    %513 = vector.load %arg3[%c0_564, %c0_565, %512, %c0_566, %c1_567, %c2_568] : memref<1x1x9x5x6x6xf32, #tpu.memory_space<vmem>>, vector<1x1x1x5x4x4xf32>
    %514 = vector.shape_cast %513 : vector<1x1x1x5x4x4xf32> to vector<1x5x4x4xf32>
    %515 = vector.shape_cast %514 : vector<1x5x4x4xf32> to vector<5x16xf32>
    %c0_569 = arith.constant 0 : index
    %c24 = arith.constant 24 : index
    %c0_570 = arith.constant 0 : index
    %c0_571 = arith.constant 0 : index
    %516 = vector.load %arg4[%c0_569, %c24, %c0_570, %c0_571] : memref<1x64x7x5xf32, #tpu.memory_space<vmem>>, vector<1x1x7x5xf32>
    %517 = vector.shape_cast %516 : vector<1x1x7x5xf32> to vector<7x5xf32>
    %cst_572 = arith.constant dense<0.000000e+00> : vector<7x16xf32>
    %518 = tpu.matmul %517, %515, %cst_572 {dimension_numbers = #tpu.dot_dimension_numbers<[1], [0], [0], [1], [0, 0, 1, 1], [], []>} : vector<7x5xf32>, vector<5x16xf32>, vector<7x16xf32> -> vector<7x16xf32>
    %519 = arith.addf %510, %518 : vector<7x16xf32>
    %c2_i32_573 = arith.constant 2 : i32
    %520 = arith.addi %arg2, %c2_i32_573 : i32
    %c0_574 = arith.constant 0 : index
    %c0_575 = arith.constant 0 : index
    %521 = arith.index_cast %520 : i32 to index
    %c0_576 = arith.constant 0 : index
    %c1_577 = arith.constant 1 : index
    %c1_578 = arith.constant 1 : index
    %522 = vector.load %arg3[%c0_574, %c0_575, %521, %c0_576, %c1_577, %c1_578] : memref<1x1x9x5x6x6xf32, #tpu.memory_space<vmem>>, vector<1x1x1x5x4x4xf32>
    %523 = vector.shape_cast %522 : vector<1x1x1x5x4x4xf32> to vector<1x5x4x4xf32>
    %524 = vector.shape_cast %523 : vector<1x5x4x4xf32> to vector<5x16xf32>
    %c0_579 = arith.constant 0 : index
    %c26 = arith.constant 26 : index
    %c0_580 = arith.constant 0 : index
    %c0_581 = arith.constant 0 : index
    %525 = vector.load %arg4[%c0_579, %c26, %c0_580, %c0_581] : memref<1x64x7x5xf32, #tpu.memory_space<vmem>>, vector<1x1x7x5xf32>
    %526 = vector.shape_cast %525 : vector<1x1x7x5xf32> to vector<7x5xf32>
    %cst_582 = arith.constant dense<0.000000e+00> : vector<7x16xf32>
    %527 = tpu.matmul %526, %524, %cst_582 {dimension_numbers = #tpu.dot_dimension_numbers<[1], [0], [0], [1], [0, 0, 1, 1], [], []>} : vector<7x5xf32>, vector<5x16xf32>, vector<7x16xf32> -> vector<7x16xf32>
    %528 = arith.addf %519, %527 : vector<7x16xf32>
    %c1_i32_583 = arith.constant 1 : i32
    %529 = arith.addi %arg2, %c1_i32_583 : i32
    %c0_584 = arith.constant 0 : index
    %c0_585 = arith.constant 0 : index
    %530 = arith.index_cast %529 : i32 to index
    %c0_586 = arith.constant 0 : index
    %c2_587 = arith.constant 2 : index
    %c2_588 = arith.constant 2 : index
    %531 = vector.load %arg3[%c0_584, %c0_585, %530, %c0_586, %c2_587, %c2_588] : memref<1x1x9x5x6x6xf32, #tpu.memory_space<vmem>>, vector<1x1x1x5x4x4xf32>
    %532 = vector.shape_cast %531 : vector<1x1x1x5x4x4xf32> to vector<1x5x4x4xf32>
    %533 = vector.shape_cast %532 : vector<1x5x4x4xf32> to vector<5x16xf32>
    %c0_589 = arith.constant 0 : index
    %c32 = arith.constant 32 : index
    %c0_590 = arith.constant 0 : index
    %c0_591 = arith.constant 0 : index
    %534 = vector.load %arg4[%c0_589, %c32, %c0_590, %c0_591] : memref<1x64x7x5xf32, #tpu.memory_space<vmem>>, vector<1x1x7x5xf32>
    %535 = vector.shape_cast %534 : vector<1x1x7x5xf32> to vector<7x5xf32>
    %cst_592 = arith.constant dense<0.000000e+00> : vector<7x16xf32>
    %536 = tpu.matmul %535, %533, %cst_592 {dimension_numbers = #tpu.dot_dimension_numbers<[1], [0], [0], [1], [0, 0, 1, 1], [], []>} : vector<7x5xf32>, vector<5x16xf32>, vector<7x16xf32> -> vector<7x16xf32>
    %537 = arith.addf %528, %536 : vector<7x16xf32>
    %c1_i32_593 = arith.constant 1 : i32
    %538 = arith.addi %arg2, %c1_i32_593 : i32
    %c0_594 = arith.constant 0 : index
    %c0_595 = arith.constant 0 : index
    %539 = arith.index_cast %538 : i32 to index
    %c0_596 = arith.constant 0 : index
    %c2_597 = arith.constant 2 : index
    %c1_598 = arith.constant 1 : index
    %540 = vector.load %arg3[%c0_594, %c0_595, %539, %c0_596, %c2_597, %c1_598] : memref<1x1x9x5x6x6xf32, #tpu.memory_space<vmem>>, vector<1x1x1x5x4x4xf32>
    %541 = vector.shape_cast %540 : vector<1x1x1x5x4x4xf32> to vector<1x5x4x4xf32>
    %542 = vector.shape_cast %541 : vector<1x5x4x4xf32> to vector<5x16xf32>
    %c0_599 = arith.constant 0 : index
    %c34 = arith.constant 34 : index
    %c0_600 = arith.constant 0 : index
    %c0_601 = arith.constant 0 : index
    %543 = vector.load %arg4[%c0_599, %c34, %c0_600, %c0_601] : memref<1x64x7x5xf32, #tpu.memory_space<vmem>>, vector<1x1x7x5xf32>
    %544 = vector.shape_cast %543 : vector<1x1x7x5xf32> to vector<7x5xf32>
    %cst_602 = arith.constant dense<0.000000e+00> : vector<7x16xf32>
    %545 = tpu.matmul %544, %542, %cst_602 {dimension_numbers = #tpu.dot_dimension_numbers<[1], [0], [0], [1], [0, 0, 1, 1], [], []>} : vector<7x5xf32>, vector<5x16xf32>, vector<7x16xf32> -> vector<7x16xf32>
    %546 = arith.addf %537, %545 : vector<7x16xf32>
    %c1_i32_603 = arith.constant 1 : i32
    %547 = arith.addi %arg2, %c1_i32_603 : i32
    %c0_604 = arith.constant 0 : index
    %c0_605 = arith.constant 0 : index
    %548 = arith.index_cast %547 : i32 to index
    %c0_606 = arith.constant 0 : index
    %c1_607 = arith.constant 1 : index
    %c2_608 = arith.constant 2 : index
    %549 = vector.load %arg3[%c0_604, %c0_605, %548, %c0_606, %c1_607, %c2_608] : memref<1x1x9x5x6x6xf32, #tpu.memory_space<vmem>>, vector<1x1x1x5x4x4xf32>
    %550 = vector.shape_cast %549 : vector<1x1x1x5x4x4xf32> to vector<1x5x4x4xf32>
    %551 = vector.shape_cast %550 : vector<1x5x4x4xf32> to vector<5x16xf32>
    %c0_609 = arith.constant 0 : index
    %c40 = arith.constant 40 : index
    %c0_610 = arith.constant 0 : index
    %c0_611 = arith.constant 0 : index
    %552 = vector.load %arg4[%c0_609, %c40, %c0_610, %c0_611] : memref<1x64x7x5xf32, #tpu.memory_space<vmem>>, vector<1x1x7x5xf32>
    %553 = vector.shape_cast %552 : vector<1x1x7x5xf32> to vector<7x5xf32>
    %cst_612 = arith.constant dense<0.000000e+00> : vector<7x16xf32>
    %554 = tpu.matmul %553, %551, %cst_612 {dimension_numbers = #tpu.dot_dimension_numbers<[1], [0], [0], [1], [0, 0, 1, 1], [], []>} : vector<7x5xf32>, vector<5x16xf32>, vector<7x16xf32> -> vector<7x16xf32>
    %555 = arith.addf %546, %554 : vector<7x16xf32>
    %c1_i32_613 = arith.constant 1 : i32
    %556 = arith.addi %arg2, %c1_i32_613 : i32
    %c0_614 = arith.constant 0 : index
    %c0_615 = arith.constant 0 : index
    %557 = arith.index_cast %556 : i32 to index
    %c0_616 = arith.constant 0 : index
    %c1_617 = arith.constant 1 : index
    %c1_618 = arith.constant 1 : index
    %558 = vector.load %arg3[%c0_614, %c0_615, %557, %c0_616, %c1_617, %c1_618] : memref<1x1x9x5x6x6xf32, #tpu.memory_space<vmem>>, vector<1x1x1x5x4x4xf32>
    %559 = vector.shape_cast %558 : vector<1x1x1x5x4x4xf32> to vector<1x5x4x4xf32>
    %560 = vector.shape_cast %559 : vector<1x5x4x4xf32> to vector<5x16xf32>
    %c0_619 = arith.constant 0 : index
    %c42 = arith.constant 42 : index
    %c0_620 = arith.constant 0 : index
    %c0_621 = arith.constant 0 : index
    %561 = vector.load %arg4[%c0_619, %c42, %c0_620, %c0_621] : memref<1x64x7x5xf32, #tpu.memory_space<vmem>>, vector<1x1x7x5xf32>
    %562 = vector.shape_cast %561 : vector<1x1x7x5xf32> to vector<7x5xf32>
    %cst_622 = arith.constant dense<0.000000e+00> : vector<7x16xf32>
    %563 = tpu.matmul %562, %560, %cst_622 {dimension_numbers = #tpu.dot_dimension_numbers<[1], [0], [0], [1], [0, 0, 1, 1], [], []>} : vector<7x5xf32>, vector<5x16xf32>, vector<7x16xf32> -> vector<7x16xf32>
    %564 = arith.addf %555, %563 : vector<7x16xf32>
    %c0_i32_623 = arith.constant 0 : i32
    %565 = arith.addi %arg2, %c0_i32_623 : i32
    %c0_624 = arith.constant 0 : index
    %c0_625 = arith.constant 0 : index
    %566 = arith.index_cast %565 : i32 to index
    %c0_626 = arith.constant 0 : index
    %c2_627 = arith.constant 2 : index
    %c2_628 = arith.constant 2 : index
    %567 = vector.load %arg3[%c0_624, %c0_625, %566, %c0_626, %c2_627, %c2_628] : memref<1x1x9x5x6x6xf32, #tpu.memory_space<vmem>>, vector<1x1x1x5x4x4xf32>
    %568 = vector.shape_cast %567 : vector<1x1x1x5x4x4xf32> to vector<1x5x4x4xf32>
    %569 = vector.shape_cast %568 : vector<1x5x4x4xf32> to vector<5x16xf32>
    %c0_629 = arith.constant 0 : index
    %c48 = arith.constant 48 : index
    %c0_630 = arith.constant 0 : index
    %c0_631 = arith.constant 0 : index
    %570 = vector.load %arg4[%c0_629, %c48, %c0_630, %c0_631] : memref<1x64x7x5xf32, #tpu.memory_space<vmem>>, vector<1x1x7x5xf32>
    %571 = vector.shape_cast %570 : vector<1x1x7x5xf32> to vector<7x5xf32>
    %cst_632 = arith.constant dense<0.000000e+00> : vector<7x16xf32>
    %572 = tpu.matmul %571, %569, %cst_632 {dimension_numbers = #tpu.dot_dimension_numbers<[1], [0], [0], [1], [0, 0, 1, 1], [], []>} : vector<7x5xf32>, vector<5x16xf32>, vector<7x16xf32> -> vector<7x16xf32>
    %573 = arith.addf %564, %572 : vector<7x16xf32>
    %c0_i32_633 = arith.constant 0 : i32
    %574 = arith.addi %arg2, %c0_i32_633 : i32
    %c0_634 = arith.constant 0 : index
    %c0_635 = arith.constant 0 : index
    %575 = arith.index_cast %574 : i32 to index
    %c0_636 = arith.constant 0 : index
    %c2_637 = arith.constant 2 : index
    %c1_638 = arith.constant 1 : index
    %576 = vector.load %arg3[%c0_634, %c0_635, %575, %c0_636, %c2_637, %c1_638] : memref<1x1x9x5x6x6xf32, #tpu.memory_space<vmem>>, vector<1x1x1x5x4x4xf32>
    %577 = vector.shape_cast %576 : vector<1x1x1x5x4x4xf32> to vector<1x5x4x4xf32>
    %578 = vector.shape_cast %577 : vector<1x5x4x4xf32> to vector<5x16xf32>
    %c0_639 = arith.constant 0 : index
    %c50 = arith.constant 50 : index
    %c0_640 = arith.constant 0 : index
    %c0_641 = arith.constant 0 : index
    %579 = vector.load %arg4[%c0_639, %c50, %c0_640, %c0_641] : memref<1x64x7x5xf32, #tpu.memory_space<vmem>>, vector<1x1x7x5xf32>
    %580 = vector.shape_cast %579 : vector<1x1x7x5xf32> to vector<7x5xf32>
    %cst_642 = arith.constant dense<0.000000e+00> : vector<7x16xf32>
    %581 = tpu.matmul %580, %578, %cst_642 {dimension_numbers = #tpu.dot_dimension_numbers<[1], [0], [0], [1], [0, 0, 1, 1], [], []>} : vector<7x5xf32>, vector<5x16xf32>, vector<7x16xf32> -> vector<7x16xf32>
    %582 = arith.addf %573, %581 : vector<7x16xf32>
    %c0_i32_643 = arith.constant 0 : i32
    %583 = arith.addi %arg2, %c0_i32_643 : i32
    %c0_644 = arith.constant 0 : index
    %c0_645 = arith.constant 0 : index
    %584 = arith.index_cast %583 : i32 to index
    %c0_646 = arith.constant 0 : index
    %c1_647 = arith.constant 1 : index
    %c2_648 = arith.constant 2 : index
    %585 = vector.load %arg3[%c0_644, %c0_645, %584, %c0_646, %c1_647, %c2_648] : memref<1x1x9x5x6x6xf32, #tpu.memory_space<vmem>>, vector<1x1x1x5x4x4xf32>
    %586 = vector.shape_cast %585 : vector<1x1x1x5x4x4xf32> to vector<1x5x4x4xf32>
    %587 = vector.shape_cast %586 : vector<1x5x4x4xf32> to vector<5x16xf32>
    %c0_649 = arith.constant 0 : index
    %c56 = arith.constant 56 : index
    %c0_650 = arith.constant 0 : index
    %c0_651 = arith.constant 0 : index
    %588 = vector.load %arg4[%c0_649, %c56, %c0_650, %c0_651] : memref<1x64x7x5xf32, #tpu.memory_space<vmem>>, vector<1x1x7x5xf32>
    %589 = vector.shape_cast %588 : vector<1x1x7x5xf32> to vector<7x5xf32>
    %cst_652 = arith.constant dense<0.000000e+00> : vector<7x16xf32>
    %590 = tpu.matmul %589, %587, %cst_652 {dimension_numbers = #tpu.dot_dimension_numbers<[1], [0], [0], [1], [0, 0, 1, 1], [], []>} : vector<7x5xf32>, vector<5x16xf32>, vector<7x16xf32> -> vector<7x16xf32>
    %591 = arith.addf %582, %590 : vector<7x16xf32>
    %c0_i32_653 = arith.constant 0 : i32
    %592 = arith.addi %arg2, %c0_i32_653 : i32
    %c0_654 = arith.constant 0 : index
    %c0_655 = arith.constant 0 : index
    %593 = arith.index_cast %592 : i32 to index
    %c0_656 = arith.constant 0 : index
    %c1_657 = arith.constant 1 : index
    %c1_658 = arith.constant 1 : index
    %594 = vector.load %arg3[%c0_654, %c0_655, %593, %c0_656, %c1_657, %c1_658] : memref<1x1x9x5x6x6xf32, #tpu.memory_space<vmem>>, vector<1x1x1x5x4x4xf32>
    %595 = vector.shape_cast %594 : vector<1x1x1x5x4x4xf32> to vector<1x5x4x4xf32>
    %596 = vector.shape_cast %595 : vector<1x5x4x4xf32> to vector<5x16xf32>
    %c0_659 = arith.constant 0 : index
    %c58 = arith.constant 58 : index
    %c0_660 = arith.constant 0 : index
    %c0_661 = arith.constant 0 : index
    %597 = vector.load %arg4[%c0_659, %c58, %c0_660, %c0_661] : memref<1x64x7x5xf32, #tpu.memory_space<vmem>>, vector<1x1x7x5xf32>
    %598 = vector.shape_cast %597 : vector<1x1x7x5xf32> to vector<7x5xf32>
    %cst_662 = arith.constant dense<0.000000e+00> : vector<7x16xf32>
    %599 = tpu.matmul %598, %596, %cst_662 {dimension_numbers = #tpu.dot_dimension_numbers<[1], [0], [0], [1], [0, 0, 1, 1], [], []>} : vector<7x5xf32>, vector<5x16xf32>, vector<7x16xf32> -> vector<7x16xf32>
    %600 = arith.addf %591, %599 : vector<7x16xf32>
    %c0_663 = arith.constant 0 : index
    %c0_664 = arith.constant 0 : index
    %c0_665 = arith.constant 0 : index
    %601 = vector.load %arg5[%c0_663, %c0_664, %c0_665] : memref<1x7x1xf32, #tpu.memory_space<vmem>>, vector<1x7x1xf32>
    %602 = vector.shape_cast %601 : vector<1x7x1xf32> to vector<7x1xf32>
    %603 = vector.broadcast %602 : vector<7x1xf32> to vector<7x16xf32>
    %604 = arith.addf %600, %603 : vector<7x16xf32>
    %c0_666 = arith.constant 0 : index
    %c0_667 = arith.constant 0 : index
    %c0_668 = arith.constant 0 : index
    %c0_669 = arith.constant 0 : index
    %c0_670 = arith.constant 0 : index
    %605 = vector.load %arg9[%c0_666, %c0_667, %c0_668, %c0_669, %c0_670] : memref<1x1x1x7x16xf32, #tpu.memory_space<vmem>>, vector<1x1x1x7x16xf32>
    %606 = vector.shape_cast %605 : vector<1x1x1x7x16xf32> to vector<7x16xf32>
    %607 = vector.shape_cast %604 : vector<7x16xf32> to vector<1x1x1x7x16xf32>
    tpu.vector_store %arg9[%c0_666, %c0_667, %c0_668, %c0_669, %c0_670], %607 {strides = array<i32>} : memref<1x1x1x7x16xf32, #tpu.memory_space<vmem>>, vector<1x1x1x7x16xf32>,
    return
  }
  func.func @transform_0(%arg0: i32, %arg1: i32, %arg2: i32) -> (i32, i32, i32, i32, i32, i32) {
    %c0_i32 = arith.constant 0 : i32
    %c0_i32_0 = arith.constant 0 : i32
    %c0_i32_1 = arith.constant 0 : i32
    %c0_i32_2 = arith.constant 0 : i32
    %c0_i32_3 = arith.constant 0 : i32
    return %arg0, %arg1, %c0_i32, %c0_i32_0, %c0_i32_1, %c0_i32_2 : i32, i32, i32, i32, i32, i32
  }
  func.func @transform_1(%arg0: i32, %arg1: i32, %arg2: i32) -> (i32, i32, i32, i32) {
    %c0_i32 = arith.constant 0 : i32
    %c0_i32_0 = arith.constant 0 : i32
    %c0_i32_1 = arith.constant 0 : i32
    %c0_i32_2 = arith.constant 0 : i32
    return %arg0, %c0_i32, %c0_i32_0, %c0_i32_1 : i32, i32, i32, i32
  }
  func.func @transform_2(%arg0: i32, %arg1: i32, %arg2: i32) -> (i32, i32, i32) {
    %c0_i32 = arith.constant 0 : i32
    %c0_i32_0 = arith.constant 0 : i32
    %c0_i32_1 = arith.constant 0 : i32
    return %arg0, %c0_i32, %c0_i32_0 : i32, i32, i32
  }
  func.func @transform_3(%arg0: i32, %arg1: i32, %arg2: i32) -> (i32, i32, i32, i32, i32) {
    %c0_i32 = arith.constant 0 : i32
    %c0_i32_0 = arith.constant 0 : i32
    %c0_i32_1 = arith.constant 0 : i32
    return %arg0, %arg1, %arg2, %c0_i32, %c0_i32_0 : i32, i32, i32, i32, i32
  }
  func.func @transform_4(%arg0: i32, %arg1: i32, %arg2: i32) -> (i32, i32, i32, i32, i32) {
    %c0_i32 = arith.constant 0 : i32
    %c0_i32_0 = arith.constant 0 : i32
    %c0_i32_1 = arith.constant 0 : i32
    return %arg0, %arg1, %arg2, %c0_i32, %c0_i32_0 : i32, i32, i32, i32, i32
  }
  func.func @transform_5(%arg0: i32, %arg1: i32, %arg2: i32) -> (i32, i32, i32, i32, i32) {
    %c0_i32 = arith.constant 0 : i32
    %c0_i32_0 = arith.constant 0 : i32
    %c0_i32_1 = arith.constant 0 : i32
    return %arg0, %arg1, %arg2, %c0_i32, %c0_i32_0 : i32, i32, i32, i32, i32
  }
  func.func @transform_6(%arg0: i32, %arg1: i32, %arg2: i32) -> (i32, i32, i32, i32, i32) {
    %c0_i32 = arith.constant 0 : i32
    %c0_i32_0 = arith.constant 0 : i32
    %c0_i32_1 = arith.constant 0 : i32
    return %arg0, %arg1, %arg2, %c0_i32, %c0_i32_0 : i32, i32, i32, i32, i32
  }
}

</mosaic_0001>

<bundles_post_ra>
// kernel: tpu_custom_call.1
= control target key start
LH: loop header
LB: loop body
LE: loop exit
PB: predicated region body
PF: predicated region fallthrough
CT: control target
= control target key end

     0   :  { %s12846_s21 = smov 0   ;;  %s12848_s22 = smov 0   ;;  %s15616_s0 = inlined_call_operand.vmem [shape: f32[1,2,9,5,6,6], index: 0, kind: input, shape index: {}]   ;;  %s15617_s1 = inlined_call_operand.vmem [shape: f32[1,64,7,5], index: 1, kind: input, shape index: {}]   ;;  %s15618_s2 = inlined_call_operand.vmem [shape: f32[1,7,1], index: 2, kind: input, shape index: {}]   ;;  %s15619_s3 = inlined_call_operand.vmem [shape: f32[1,2,6,7,16], index: 3, kind: output, shape index: {0}]   ;;  %s15620_s4 = inlined_call_operand.vmem [shape: f32[1,2,6,7,16], index: 4, kind: output, shape index: {1}]   ;;  %s15621_s5 = inlined_call_operand.vmem [shape: f32[1,2,6,7,16], index: 5, kind: output, shape index: {2}]   ;;  %s15622_s6 = inlined_call_operand.vmem [shape: f32[1,2,6,7,16], index: 6, kind: output, shape index: {3}]  }
   0x1   :  { %s12850_s23 = smov 0   ;;  %s12852_s24 = smov 0  }
   0x2   :  { %s12854_s25 = smov 0  }
   0x3 LB: > { %s29_s26 = sadd.s32 1, %s12791_s23  ;;  %s32_s27 = sadd.s32 1, %s12795_s24  ;;  %s12799_s25 = sphi %s12854_s25, %s17_s25   ;;  %s12795_s24 = sphi %s12852_s24, %s15742_s24   ;;  %s12791_s23 = sphi %s12850_s23, %s15741_s23   ;;  %s12787_s22 = sphi %s12848_s22, %s15740_s22   ;;  %s12783_s21 = sphi %s12846_s21, %s15739_s21  }
   0x4   : > { %p30_p0 = scmp.ge.s32.totalorder %s29_s26, 6  ;;  %p11794_p1 = scmp.ge.s32.totalorder %s12799_s25, 1 }
   0x5   : > { %p279_p2 = scmp.lt.s32.totalorder %s12799_s25, 13 }
   0x6   : > { %s15744_s26 = smov (%p30_p0, %s29_s26), 0  ;;  %s15746_s27 = smov (!%p30_p0, %s32_s27), %s12795_s24 }
   0x7   : > { %p280_p3 = pnand %p11794_p1, %p279_p2  ;;  %p34_p4 = scmp.ge.s32.totalorder %s15746_s27, 2 }
   0x9   : > { %s15748_s27 = smov (%p34_p4, %s15746_s27), 0  ;;  %283 = sbr.rel (%p280_p3) target bundleno = 3838 (0xefe), region = 32 }
   0xe   : > { %p367_p5 = scmp.lt.s32.totalorder %s12787_s22, 1  ;;  %v462_v0 = vlaneseq  ;;  %v12801_v1 = vmov 1983009808   ;;  %v12802_v3 = vmov 1934713408   ;;  %v15624_v5 = vmov 0.0  }
   0xf   : > { %v460_v2 = vunpack.c.l.s4 %v12801_v1  ;;  %v485_v4 = vunpack.c.l.s4 %v12802_v3  ;;  %12355 = vmatprep.subr.mxu0 %v15624_v5  ;;  %12360 = vmatprep.subr.mxu1 %v15624_v5  ;;  %s11649_s28 = smul.u32 40, %s12783_s21  ;;  %s12804_s10 = smov 127   ;;  %vm12808_vm0 = vmmov 0   ;;  %vm529_vm1 = vcmask 31744  }
  0x10   : > { %s15750_s22 = smov (!%p367_p5, %s12787_s22), 1  ;;  %v463_v7 = vshrl.u32 %v462_v0, 7  ;;  %s12805_s11 = smov 8   ;;  %12362 = vmatprep.mubr.msk.f32.mxu1 %vm12808_vm0, %v15624_v5  ;;  %12357 = vmatprep.mubr.msk.f32.mxu0 %vm12808_vm0, %v15624_v5  ;;  %vm531_vm2 = vcmask 64512   ;;  %vm533_vm3 = vcmask 97280   ;;  %vm616_vm4 = vcmask 1044480  }
  0x11   : > { %v461_v6 = vunpack.c.0.s8 %v460_v2  ;;  %s12675_s29 = smul.u32 360, %s15750_s22  ;;  %v486_v8 = vunpack.c.0.s8 %v485_v4  ;;  %s12806_s12 = smov 4   ;;  %vm612_vm5 = vcmask 39936   ;;  %vm3119_vm6 = vcmask 129024  }
  0x12   : > { %s12807_s13 = smov 12   ;;  %s12810_s20 = smov 126  }
  0x13   : > { %s373_s8 = scalar_lea.vmem %s15616_s0, %s12675_s29  ;;  %v12889_v9 = vsub.s32 %v461_v6, %v463_v7  ;;  %v12898_v17 = vsub.s32 %v486_v8, %v463_v7  ;;  %p387_p6 = scmp.lt.s32.totalorder %s12783_s21, 5 }
  0x14   : > { %s12887_s9 = scalar_lea.vmem %s373_s8, %s11649_s28  ;;  %s12676_s8 = smul.u32 6, %s15750_s22 }
  0x15   : > { %v11802_v10 = vld [vmem:[%s12887_s9 + $0x89] sm:$0xf]  ;;  %v11800_v11 = vld [vmem:[%s12887_s9 + $0x79] sm:$0xf]  ;;  %v11803_v12 = vld [vmem:[%s12887_s9 + $0x91] sm:$0xf] }
  0x16   : > { %448 = vrot.lane.b32.xlu1 %v11802_v10, %s12804_s10  ;;  %444 = vrot.lane.b32.xlu0 %v11800_v11, %s12804_s10  ;;  %v537_v13 = vcombine.low %v11800_v11, %v11802_v10  ;;  %v11801_v14 = vld [vmem:[%s12887_s9 + $0x81] sm:$0xf]  ;;  %v11804_v16 = vld [vmem:[%s12887_s9 + $0x99] sm:$0xf]  ;;  %s15752_s21 = smov (!%p387_p6, %s12783_s21), 5 }
  0x17   : > { %v545_v15 = vcombine.low %v11801_v14, %v11803_v12  ;;  %v559_v19 = vrot.slane %v11804_v16, %v12889_v9  ;;  %v12731_v21 = vld [vmem:[%s12887_s9 + $0x78] ss:$16 sps:$4 sm:$0xff]   ;;  %v12732_v23 = vld [vmem:[%s12887_s9 + $0x80] ss:$16 sps:$4 sm:$0xff]   ;;  %s390_s14 = sadd.s32 %s12676_s8, %s15752_s21 }
  0x18   : > { %v544_v18 = vrot.slane %v537_v13, %v12889_v9  ;;  %v11811_v26 = vld [vmem:[%s12887_s9 + $0x78] sm:$0xf]  ;;  %v954_v28 = vrot.slane %v12731_v21, %v12889_v9  ;;  %v962_v30 = vrot.slane %v12732_v23, %v12889_v9  ;;  %v11813_v41 = vld [vmem:[%s12887_s9 + $0x88] sm:$0xf]  ;;  %v11812_v44 = vld [vmem:[%s12887_s9 + $0x80] sm:$0xf] }
  0x19   : > { %v552_v20 = vrot.slane %v545_v15, %v12889_v9  ;;  %v576_v22 = vcombine.high %v559_v19, %v15624_v5  ;;  %v12910_v27 = vrot.slane %v559_v19, %v12898_v17  ;;  %v11824_v33 = vld.sshfl [vmem:[%s12887_s9 + $0x98] sm:$0x33 pattern:$0x76325410]  ;;  %v12733_v45 = vld [vmem:[%s12887_s9 + $0x51] ss:$16 sps:$4 sm:$0xff]  }
  0x1a   : > { %450 = vrot.lane.b32.xlu1 %v11803_v12, %s12804_s10  ;;  %446 = vrot.lane.b32.xlu0 %v11801_v14, %s12804_s10  ;;  %v971_v34 = vcombine.low %v954_v28, %v962_v30  ;;  %v12930_v39 = vrot.slane %v11824_v33, %v12898_v17  ;;  %v11815_v43 = vld [vmem:[%s12887_s9 + $0x98] sm:$0xf]  ;;  %v972_v46 = vcombine.high %v954_v28, %v962_v30  ;;  %v11814_v52 = vld [vmem:[%s12887_s9 + $0x90] sm:$0xf]  ;;  %s13574_s15 = sshll.u32 %s390_s14, 3 }
  0x1b   : > { %v560_v24 = vcombine.low %v544_v18, %v552_v20  ;;  %v561_v25 = vcombine.high %v544_v18, %v552_v20  ;;  %v590_v29 = vrot.slane %v576_v22, %v12898_v17  ;;  %v987_v47 = vcombine.high %v11824_v33, %v15624_v5  ;;  %v12734_v48 = vld [vmem:[%s12887_s9 + $0x59] ss:$16 sps:$4 sm:$0xff]   ;;  %v11841_v58 = vld.sshfl [vmem:[%s12887_s9 + $0x71] sm:$0x33 pattern:$0x76325410]  ;;  %s394_s18 = scalar_lea.vmem %s15619_s3, %s13574_s15  ;;  %s406_s29 = scalar_lea.vmem %s15620_s4, %s13574_s15 }
  0x1c   : > { %v12927_v38 = vrot.slane %v971_v34, %v12898_v17  ;;  %v986_v50 = vrot.slane %v972_v46, %v12898_v17  ;;  %v1291_v53 = vrot.slane %v12733_v45, %v12889_v9  ;;  %v1299_v54 = vrot.slane %v12734_v48, %v12889_v9  ;;  %v11829_v59 = vld [vmem:[%s12887_s9 + $0x59] sm:$0xf]  ;;  %v11828_v60 = vld [vmem:[%s12887_s9 + $0x51] sm:$0xf]  ;;  %v11831_v4 = vld [vmem:[%s12887_s9 + $0x69] sm:$0xf]  ;;  %s418_s19 = scalar_lea.vmem %s15621_s5, %s13574_s15  ;;  %s430_s30 = scalar_lea.vmem %s15622_s6, %s13574_s15 }
  0x1d   : > { %v575_v31 = vrot.slane %v561_v25, %v12898_v17  ;;  %v12917_v32 = vrot.slane %v560_v24, %v12898_v17  ;;  %v1001_v51 = vrot.slane %v987_v47, %v12898_v17  ;;  %v12962_v62 = vrot.slane %v11841_v58, %v12898_v17  ;;  %v12735_v63 = vld [vmem:[%s12887_s9 + $0x50] ss:$16 sps:$4 sm:$0xff]   ;;  %v12736_v0 = vld [vmem:[%s12887_s9 + $0x58] ss:$16 sps:$4 sm:$0xff]  }
  0x1e   : > { %776 = vrot.lane.b32.xlu1 %v11811_v26, %s12804_s10  ;;  %452 = vrot.lane.b32.xlu0 %v11804_v16, %s12804_s10  ;;  %v1002_v42 = vcombine.low %v12927_v38, %v12930_v39  ;;  %v1003_v49 = vcombine.high %v12927_v38, %v12930_v39  ;;  %v1308_v55 = vcombine.low %v1291_v53, %v1299_v54  ;;  %v11830_v6 = vld [vmem:[%s12887_s9 + $0x61] sm:$0xf]  ;;  %v11832_v12 = vld [vmem:[%s12887_s9 + $0x71] sm:$0xf] }
  0x1f   : > { %v593_v35 = vcombine.low %v575_v31, %v590_v29  ;;  %v592_v36 = vcombine.high %v12917_v32, %v12910_v27  ;;  %v591_v37 = vcombine.low %v12917_v32, %v12910_v27  ;;  %v594_v40 = vcombine.high %v575_v31, %v590_v29  ;;  %v11858_v15 = vld.sshfl [vmem:[%s12887_s9 + $0x70] sm:$0x33 pattern:$0x76325410]  ;;  %v11847_v23 = vld [vmem:[%s12887_s9 + $0x60] sm:$0xf] }
  0x20   : > { %v1005_v56 = vcombine.high %v986_v50, %v1001_v51  ;;  %v1004_v57 = vcombine.low %v986_v50, %v1001_v51  ;;  %v12959_v61 = vrot.slane %v1308_v55, %v12898_v17  ;;  %v1309_v1 = vcombine.high %v1291_v53, %v1299_v54  ;;  %v11845_v18 = vld [vmem:[%s12887_s9 + $0x50] sm:$0xf]  ;;  %v12737_v24 = vld [vmem:[%s12887_s9 + $0x29] ss:$16 sps:$4 sm:$0xff]   ;;  %v11865_v55 = vld [vmem:[%s12887_s9 + $0x41] sm:$0xf] }
  0x21   : > { %v1324_v2 = vcombine.high %v11841_v58, %v15624_v5  ;;  %v1625_v10 = vrot.slane %v12735_v63, %v12889_v9  ;;  %v1633_v11 = vrot.slane %v12736_v0, %v12889_v9  ;;  %v12992_v20 = vrot.slane %v11858_v15, %v12898_v17  ;;  %v12738_v25 = vld [vmem:[%s12887_s9 + $0x31] ss:$16 sps:$4 sm:$0xff]   ;;  %v11846_v30 = vld [vmem:[%s12887_s9 + $0x58] sm:$0xf]  ;;  %v11862_v51 = vld [vmem:[%s12887_s9 + $0x29] sm:$0xf] }
  0x22   : > { %600 = vrot.lane.b32.xlu1 %v593_v35, %s12805_s11  ;;  %596 = vrot.lane.b32.xlu0 %v592_v36, %s12806_s12  ;;  %v1339_v3 = vcombine.low %v12959_v61, %v12962_v62  ;;  %v1323_v7 = vrot.slane %v1309_v1, %v12898_v17  ;;  %v1340_v16 = vcombine.high %v12959_v61, %v12962_v62  ;;  %v11849_v29 = vld [vmem:[%s12887_s9 + $0x70] sm:$0xf]  ;;  %v11875_v45 = vld.sshfl [vmem:[%s12887_s9 + $0x49] sm:$0x33 pattern:$0x76325410] }
  0x23   : > { %v1338_v8 = vrot.slane %v1324_v2, %v12898_v17  ;;  %v1642_v14 = vcombine.low %v1625_v10, %v1633_v11  ;;  %v1643_v26 = vcombine.high %v1625_v10, %v1633_v11  ;;  %v1658_v28 = vcombine.high %v11858_v15, %v15624_v5  ;;  %v11863_v50 = vld [vmem:[%s12887_s9 + $0x31] sm:$0xf]  ;;  %v12739_v58 = vld [vmem:[%s12887_s9 + $0x28] ss:$16 sps:$4 sm:$0xff]  }
  0x24   : > { %v1962_v31 = vrot.slane %v12737_v24, %v12889_v9  ;;  %v1970_v33 = vrot.slane %v12738_v25, %v12889_v9  ;;  %v13022_v47 = vrot.slane %v11875_v45, %v12898_v17  ;;  %v2296_v0 = vrot.slane %v12739_v58, %v12889_v9  ;;  %v11879_v2 = vld [vmem:[%s12887_s9 + $0x28] sm:$0xf] }
  0x25   : > { %v1341_v13 = vcombine.low %v1323_v7, %v1338_v8  ;;  %v12989_v19 = vrot.slane %v1642_v14, %v12898_v17  ;;  %v1342_v22 = vcombine.high %v1323_v7, %v1338_v8  ;;  %v1657_v35 = vrot.slane %v1643_v26, %v12898_v17  ;;  %v11881_v8 = vld [vmem:[%s12887_s9 + $0x38] sm:$0xf]  ;;  %v11880_v14 = vld [vmem:[%s12887_s9 + $0x30] sm:$0xf]  ;;  %v11883_v15 = vld [vmem:[%s12887_s9 + $0x48] sm:$0xf] }
  0x26   : > { %780 = vrot.lane.b32.xlu1 %v11813_v41, %s12804_s10  ;;  %604 = vrot.lane.b32.xlu0 %v594_v40, %s12807_s13  ;;  %v1672_v36 = vrot.slane %v1658_v28, %v12898_v17  ;;  %v11848_v40 = vld [vmem:[%s12887_s9 + $0x68] sm:$0xf]  ;;  %v1979_v41 = vcombine.low %v1962_v31, %v1970_v33  ;;  %v1980_v48 = vcombine.high %v1962_v31, %v1970_v33  ;;  %v2444_v28 = vld [vmem:[%s12887_s9 + $0x1] sm:$0xf] }
  0x27   : > { %v1673_v21 = vcombine.low %v12989_v19, %v12992_v20  ;;  %v1674_v34 = vcombine.high %v12989_v19, %v12992_v20  ;;  %v2445_v26 = vld [vmem:[%s12887_s9 + $0x9] sm:$0xf]  ;;  %v11842_v19 = vld [vmem:[%s15617_s1 + $0xb8] sm:$0x7f] }
  0x28   : > { %v13019_v46 = vrot.slane %v1979_v41, %v12898_v17  ;;  %v1994_v53 = vrot.slane %v1980_v48, %v12898_v17 }
  0x2a   : > { %784 = vrot.lane.b32.xlu1 %v11815_v43, %s12804_s10  ;;  %778 = vrot.lane.b32.xlu0 %v11812_v44, %s12804_s10  ;;  %v1676_v43 = vcombine.high %v1657_v35, %v1672_v36  ;;  %v1675_v44 = vcombine.low %v1657_v35, %v1672_v36  ;;  %v2011_v63 = vcombine.high %v13019_v46, %v13022_v47 }
  0x2e   : > { %1007 = vrot.lane.b32.xlu1 %v1003_v49, %s12806_s12  ;;  %782 = vrot.lane.b32.xlu0 %v11814_v52, %s12804_s10  ;;  %v1995_v49 = vcombine.high %v11875_v45, %v15624_v5  ;;  %v2010_v52 = vcombine.low %v13019_v46, %v13022_v47 }
  0x30   : > { %v2009_v54 = vrot.slane %v1995_v49, %v12898_v17 }
  0x32   : > { %1015 = vrot.lane.b32.xlu1 %v1005_v56, %s12807_s13  ;;  %1011 = vrot.lane.b32.xlu0 %v1004_v57, %s12805_s11  ;;  %v11864_v56 = vld [vmem:[%s12887_s9 + $0x39] sm:$0xf]  ;;  %v2012_v57 = vcombine.low %v1994_v53, %v2009_v54 }
  0x36   : > { %1115 = vrot.lane.b32.xlu1 %v11829_v59, %s12804_s10  ;;  %1113 = vrot.lane.b32.xlu0 %v11828_v60, %s12804_s10  ;;  %v12740_v59 = vld [vmem:[%s12887_s9 + $0x30] ss:$16 sps:$4 sm:$0xff]   ;;  %v11866_v60 = vld [vmem:[%s12887_s9 + $0x49] sm:$0xf] }
  0x37   : > { %v2304_v1 = vrot.slane %v12740_v59, %v12889_v9 }
  0x39   : > { %v2313_v7 = vcombine.low %v2296_v0, %v2304_v1 }
  0x3a   : > { %1119 = vrot.lane.b32.xlu1 %v11831_v4, %s12804_s10  ;;  %1117 = vrot.lane.b32.xlu0 %v11830_v6, %s12804_s10  ;;  %v2013_v4 = vcombine.high %v1994_v53, %v2009_v54  ;;  %v11892_v6 = vld.sshfl [vmem:[%s12887_s9 + $0x48] sm:$0x33 pattern:$0x76325410] }
  0x3b   : > { %v13054_v10 = vrot.slane %v11892_v6, %v12898_v17  ;;  %v13059_v11 = vrot.slane %v2313_v7, %v12898_v17 }
  0x3e   : > { %1348 = vrot.lane.b32.xlu1 %v1341_v13, %s12805_s11  ;;  %1121 = vrot.lane.b32.xlu0 %v11832_v12, %s12804_s10  ;;  %v2314_v12 = vcombine.high %v2296_v0, %v2304_v1  ;;  %v2329_v13 = vcombine.high %v11892_v6, %v15624_v5 }
  0x42   : > { %1447 = vrot.lane.b32.xlu1 %v11845_v18, %s12804_s10  ;;  %1344 = vrot.lane.b32.xlu0 %v1340_v16, %s12806_s12  ;;  %v2345_v16 = vcombine.high %v13059_v11, %v13054_v10  ;;  %v2328_v18 = vrot.slane %v2314_v12, %v12898_v17 }
  0x46   : > { %1451 = vrot.lane.b32.xlu1 %v11847_v23, %s12804_s10  ;;  %1352 = vrot.lane.b32.xlu0 %v1342_v22, %s12807_s13  ;;  %v2343_v22 = vrot.slane %v2329_v13, %v12898_v17  ;;  %v11882_v23 = vld [vmem:[%s12887_s9 + $0x40] sm:$0xf] }
  0x48   : > { %v2347_v24 = vcombine.high %v2328_v18, %v2343_v22  ;;  %v2346_v25 = vcombine.low %v2328_v18, %v2343_v22 }
  0x4a   : > { %1455 = vrot.lane.b32.xlu1 %v11849_v29, %s12804_s10  ;;  %1449 = vrot.lane.b32.xlu0 %v11846_v30, %s12804_s10 }
  0x4e   : > { %1678 = vrot.lane.b32.xlu1 %v1674_v34, %s12806_s12  ;;  %1453 = vrot.lane.b32.xlu0 %v11848_v40, %s12804_s10 }
  0x52   : > { %1686 = vrot.lane.b32.xlu1 %v1676_v43, %s12807_s13  ;;  %1682 = vrot.lane.b32.xlu0 %v1675_v44, %s12805_s11 }
  0x56   : > { %1786 = vrot.lane.b32.xlu1 %v11863_v50, %s12804_s10  ;;  %1784 = vrot.lane.b32.xlu0 %v11862_v51, %s12804_s10 }
  0x5a   : > { %1790 = vrot.lane.b32.xlu1 %v11865_v55, %s12804_s10  ;;  %1788 = vrot.lane.b32.xlu0 %v11864_v56, %s12804_s10 }
  0x5e   : > { %1792 = vrot.lane.b32.xlu0 %v11866_v60, %s12804_s10  ;;  %2019 = vrot.lane.b32.xlu1 %v2012_v57, %s12805_s11 }
  0x62   : > { %2015 = vrot.lane.b32.xlu0 %v2011_v63, %s12806_s12  ;;  %2118 = vrot.lane.b32.xlu1 %v11879_v2, %s12804_s10 }
  0x66   : > { %2023 = vrot.lane.b32.xlu0 %v2013_v4, %s12807_s13  ;;  %2122 = vrot.lane.b32.xlu1 %v11881_v8, %s12804_s10 }
  0x6a   : > { %2120 = vrot.lane.b32.xlu0 %v11880_v14, %s12804_s10  ;;  %2126 = vrot.lane.b32.xlu1 %v11883_v15, %s12804_s10  ;;  %v11806_v14 = vld [vmem:[%s15617_s1 + $0x38] sm:$0x7f] }
  0x6e   : > { %2124 = vrot.lane.b32.xlu0 %v11882_v23, %s12804_s10  ;;  %2349 = vrot.lane.b32.xlu1 %v2345_v16, %s12806_s12 }
  0x72   : > { %2357 = vrot.lane.b32.xlu1 %v2347_v24, %s12807_s13  ;;  %2353 = vrot.lane.b32.xlu0 %v2346_v25, %s12805_s11 }
  0x76   : > { %2456 = vrot.lane.b32.xlu1 %v2445_v26, %s12804_s10  ;;  %2454 = vrot.lane.b32.xlu0 %v2444_v28, %s12804_s10 }
  0x88   : > { %v449_v29 = vpop.permute.xlu1 %448  ;;  %v445_v30 = vpop.permute.xlu0 %444 }
  0x89   : > { %v458_v31 = vcombine.low %v445_v30, %v449_v29 }
  0x8b   : > { %v465_v36 = vrot.slane %v458_v31, %v12889_v9 }
  0x8c   : > { %v451_v33 = vpop.permute.xlu1 %450  ;;  %v447_v34 = vpop.permute.xlu0 %446 }
  0x8d   : > { %v466_v35 = vcombine.low %v447_v34, %v451_v33 }
  0x8f   : > { %v473_v40 = vrot.slane %v466_v35, %v12889_v9 }
  0x90   : > { %v777_v41 = vpop.permute.xlu1 %776  ;;  %v453_v43 = vpop.permute.xlu0 %452 }
  0x91   : > { %v482_v44 = vcombine.low %v465_v36, %v473_v40  ;;  %v483_v45 = vcombine.high %v465_v36, %v473_v40  ;;  %v481_v48 = vrot.slane %v453_v43, %v12889_v9 }
  0x93   : > { %v13087_v49 = vrot.slane %v482_v44, %v12898_v17  ;;  %v498_v50 = vcombine.high %v481_v48, %v15624_v5  ;;  %v13091_v51 = vrot.slane %v481_v48, %v12898_v17  ;;  %v497_v55 = vrot.slane %v483_v45, %v12898_v17 }
  0x94   : > { %v601_v53 = vpop.permute.xlu1 %600  ;;  %v597_v54 = vpop.permute.xlu0 %596 }
  0x95   : > { %v512_v56 = vrot.slane %v498_v50, %v12898_v17  ;;  %v513_v57 = vcombine.low %v13087_v49, %v13091_v51  ;;  %v607_v58 = vsel %vm529_vm1, %v591_v37, %v597_v54  ;;  %v514_v59 = vcombine.high %v13087_v49, %v13091_v51  ;;  %v11825_v49 = vld [vmem:[%s15617_s1 + $0x78] sm:$0x7f] }
  0x96   : > { %v608_v1 = vsel %vm531_vm2, %v607_v58, %v601_v53  ;;  %v2344_v51 = vcombine.low %v13059_v11, %v13054_v10  ;;  %v11859_v11 = vld [vmem:[%s15617_s1 + $0xf8] sm:$0x7f] }
  0x97   : > { %518 = vrot.lane.b32.xlu1 %v514_v59, %s12806_s12  ;;  %v515_v60 = vcombine.low %v497_v55, %v512_v56  ;;  %v516_v4 = vcombine.high %v497_v55, %v512_v56 }
  0x98   : > { %v781_v63 = vpop.permute.xlu1 %780  ;;  %v605_v0 = vpop.permute.xlu0 %604 }
  0x99   : > { %522 = vrot.lane.b32.xlu0 %v515_v60, %s12805_s11  ;;  %v609_v2 = vsel %vm533_vm3, %v608_v1, %v605_v0  ;;  %v790_v6 = vcombine.low %v777_v41, %v781_v63 }
  0x9a   : > { %12356 = vmatpush3.msk.msra.mxu0 %vm616_vm4, %v609_v2 }
  0x9b   : > { %526 = vrot.lane.b32.xlu1 %v516_v4, %s12807_s13  ;;  %12365 = vmatprep.subr.mxu0 %v15624_v5  ;;  %v797_v15 = vrot.slane %v790_v6, %v12889_v9 }
  0x9c   : > { %v785_v27 = vpop.permute.xlu1 %784  ;;  %v779_v32 = vpop.permute.xlu0 %778  ;;  %12358 = vmatmul.mubr.msk.f32.vlgmr.msra.gmra.mxu0 %vm612_vm5, %v11806_v14 }
  0x9d   : > { %v813_v37 = vrot.slane %v785_v27, %v12889_v9  ;;  %12367 = vmatprep.mubr.msk.f32.mxu0 %vm12808_vm0, %v15624_v5 }
  0x9f   : > { %v830_v12 = vcombine.high %v813_v37, %v15624_v5  ;;  %v13127_v23 = vrot.slane %v813_v37, %v12898_v17 }
  0xa0   : > { %v13111_v7 = vpop.permute.xlu1 %1007  ;;  %v783_v8 = vpop.permute.xlu0 %782 }
  0xa1   : > { %v798_v13 = vcombine.low %v779_v32, %v783_v8  ;;  %v844_v24 = vrot.slane %v830_v12, %v12898_v17 }
  0xa3   : > { %v805_v16 = vrot.slane %v798_v13, %v12889_v9 }
  0xa4   : > { %v13120_v18 = vpop.permute.xlu1 %1015  ;;  %v13122_v22 = vpop.permute.xlu0 %1011 }
  0xa5   : > { %v814_v25 = vcombine.low %v797_v15, %v805_v16  ;;  %v815_v26 = vcombine.high %v797_v15, %v805_v16 }
  0xa7   : > { %v829_v28 = vrot.slane %v815_v26, %v12898_v17  ;;  %v13132_v29 = vrot.slane %v814_v25, %v12898_v17 }
  0xa8   : > { %v1116_v30 = vpop.permute.xlu1 %1115  ;;  %v1114_v31 = vpop.permute.xlu0 %1113 }
  0xa9   : > { %v847_v33 = vcombine.low %v829_v28, %v844_v24  ;;  %v846_v34 = vcombine.high %v13132_v29, %v13127_v23  ;;  %v845_v35 = vcombine.low %v13132_v29, %v13127_v23  ;;  %v848_v44 = vcombine.high %v829_v28, %v844_v24 }
  0xab   : > { %854 = vrot.lane.b32.xlu1 %v847_v33, %s12805_s11  ;;  %850 = vrot.lane.b32.xlu0 %v846_v34, %s12806_s12 }
  0xac   : > { %v1120_v36 = vpop.permute.xlu1 %1119  ;;  %v1118_v40 = vpop.permute.xlu0 %1117 }
  0xad   : > { %v1135_v41 = vcombine.low %v1116_v30, %v1120_v36  ;;  %v1127_v43 = vcombine.low %v1114_v31, %v1118_v40 }
  0xaf   : > { %v1142_v45 = vrot.slane %v1135_v41, %v12889_v9  ;;  %v1134_v48 = vrot.slane %v1127_v43, %v12889_v9  ;;  %858 = vrot.lane.b32.xlu0 %v848_v44, %s12807_s13 }
  0xb0   : > { %v13143_v50 = vpop.permute.xlu1 %1348  ;;  %v1122_v53 = vpop.permute.xlu0 %1121 }
  0xb1   : > { %v1151_v54 = vcombine.low %v1134_v48, %v1142_v45  ;;  %v1152_v55 = vcombine.high %v1134_v48, %v1142_v45  ;;  %v1150_v56 = vrot.slane %v1122_v53, %v12889_v9 }
  0xb3   : > { %v13147_v58 = vrot.slane %v1151_v54, %v12898_v17  ;;  %v1167_v59 = vcombine.high %v1150_v56, %v15624_v5  ;;  %v13151_v60 = vrot.slane %v1150_v56, %v12898_v17  ;;  %v1166_v27 = vrot.slane %v1152_v55, %v12898_v17 }
  0xb4   : > { %v1448_v63 = vpop.permute.xlu1 %1447  ;;  %v13153_v0 = vpop.permute.xlu0 %1344 }
  0xb5   : > { %v1181_v1 = vrot.slane %v1167_v59, %v12898_v17  ;;  %v1182_v2 = vcombine.low %v13147_v58, %v13151_v60  ;;  %v1183_v4 = vcombine.high %v13147_v58, %v13151_v60 }
  0xb7   : > { %1187 = vrot.lane.b32.xlu1 %v1183_v4, %s12806_s12  ;;  %v1184_v32 = vcombine.low %v1166_v27, %v1181_v1  ;;  %v1185_v8 = vcombine.high %v1166_v27, %v1181_v1 }
  0xb8   : > { %v1452_v37 = vpop.permute.xlu1 %1451  ;;  %v13162_v6 = vpop.permute.xlu0 %1352 }
  0xb9   : > { %1191 = vrot.lane.b32.xlu0 %v1184_v32, %s12805_s11  ;;  %v1461_v15 = vcombine.low %v1448_v63, %v1452_v37 }
  0xbb   : > { %1195 = vrot.lane.b32.xlu1 %v1185_v8, %s12807_s13  ;;  %v1468_v28 = vrot.slane %v1461_v15, %v12889_v9 }
  0xbc   : > { %v1456_v12 = vpop.permute.xlu1 %1455  ;;  %v1450_v13 = vpop.permute.xlu0 %1449 }
  0xbd   : > { %v1484_v14 = vrot.slane %v1456_v12, %v12889_v9 }
  0xbf   : > { %v1501_v25 = vcombine.high %v1484_v14, %v15624_v5  ;;  %v13177_v34 = vrot.slane %v1484_v14, %v12898_v17 }
  0xc0   : > { %v13167_v16 = vpop.permute.xlu1 %1678  ;;  %v1454_v24 = vpop.permute.xlu0 %1453 }
  0xc1   : > { %v1469_v26 = vcombine.low %v1450_v13, %v1454_v24  ;;  %v1515_v36 = vrot.slane %v1501_v25, %v12898_v17  ;;  %v1689_v61 = vsel %vm529_vm1, %v1673_v21, %v13167_v16 }
  0xc3   : > { %v1476_v30 = vrot.slane %v1469_v26, %v12889_v9 }
  0xc4   : > { %v13172_v31 = vpop.permute.xlu1 %1686  ;;  %v13174_v33 = vpop.permute.xlu0 %1682 }
  0xc5   : > { %v1485_v40 = vcombine.low %v1468_v28, %v1476_v30  ;;  %v1486_v41 = vcombine.high %v1468_v28, %v1476_v30 }
  0xc7   : > { %v1500_v43 = vrot.slane %v1486_v41, %v12898_v17  ;;  %v13182_v44 = vrot.slane %v1485_v40, %v12898_v17 }
  0xc8   : > { %v1787_v45 = vpop.permute.xlu1 %1786  ;;  %v1785_v48 = vpop.permute.xlu0 %1784 }
  0xc9   : > { %v1518_v53 = vcombine.low %v1500_v43, %v1515_v36  ;;  %v1517_v54 = vcombine.high %v13182_v44, %v13177_v34  ;;  %v1516_v55 = vcombine.low %v13182_v44, %v13177_v34  ;;  %v1519_v4 = vcombine.high %v1500_v43, %v1515_v36 }
  0xcb   : > { %1525 = vrot.lane.b32.xlu1 %v1518_v53, %s12805_s11  ;;  %1521 = vrot.lane.b32.xlu0 %v1517_v54, %s12806_s12 }
  0xcc   : > { %v1791_v56 = vpop.permute.xlu1 %1790  ;;  %v1789_v59 = vpop.permute.xlu0 %1788 }
  0xcd   : > { %v1806_v63 = vcombine.low %v1787_v45, %v1791_v56  ;;  %v1798_v1 = vcombine.low %v1785_v48, %v1789_v59 }
  0xcf   : > { %v1813_v27 = vrot.slane %v1806_v63, %v12889_v9  ;;  %v1805_v32 = vrot.slane %v1798_v1, %v12889_v9  ;;  %1529 = vrot.lane.b32.xlu0 %v1519_v4, %s12807_s13 }
  0xd0   : > { %v1793_v37 = vpop.permute.xlu0 %1792  ;;  %v13193_v8 = vpop.permute.xlu1 %2019 }
  0xd1   : > { %v1822_v12 = vcombine.low %v1805_v32, %v1813_v27  ;;  %v1823_v13 = vcombine.high %v1805_v32, %v1813_v27  ;;  %v1821_v14 = vrot.slane %v1793_v37, %v12889_v9 }
  0xd3   : > { %v13197_v15 = vrot.slane %v1822_v12, %v12898_v17  ;;  %v1838_v24 = vcombine.high %v1821_v14, %v15624_v5  ;;  %v13201_v25 = vrot.slane %v1821_v14, %v12898_v17  ;;  %v1837_v41 = vrot.slane %v1823_v13, %v12898_v17 }
  0xd4   : > { %v13203_v26 = vpop.permute.xlu0 %2015  ;;  %v2119_v28 = vpop.permute.xlu1 %2118 }
  0xd5   : > { %v1852_v30 = vrot.slane %v1838_v24, %v12898_v17  ;;  %v1853_v36 = vcombine.low %v13197_v15, %v13201_v25  ;;  %v1854_v40 = vcombine.high %v13197_v15, %v13201_v25  ;;  %v2026_v21 = vsel %vm529_vm1, %v2010_v52, %v13203_v26 }
  0xd6   : > { %v2027_v46 = vsel %vm531_vm2, %v2026_v21, %v13193_v8 }
  0xd7   : > { %1858 = vrot.lane.b32.xlu1 %v1854_v40, %s12806_s12  ;;  %v1855_v43 = vcombine.low %v1837_v41, %v1852_v30  ;;  %v1856_v53 = vcombine.high %v1837_v41, %v1852_v30 }
  0xd8   : > { %v13212_v45 = vpop.permute.xlu0 %2023  ;;  %v2123_v48 = vpop.permute.xlu1 %2122 }
  0xd9   : > { %1862 = vrot.lane.b32.xlu0 %v1855_v43, %s12805_s11  ;;  %v2132_v63 = vcombine.low %v2119_v28, %v2123_v48  ;;  %v2447_v48 = vld [vmem:[%s12887_s9 + $0x19] sm:$0xf]  ;;  %v2028_v52 = vsel %vm533_vm3, %v2027_v46, %v13212_v45  ;;  %v11833_v45 = vld [vmem:[%s15617_s1 + $0xa8] sm:$0x7f] }
  0xdb   : > { %1866 = vrot.lane.b32.xlu1 %v1856_v53, %s12807_s13  ;;  %v2139_v32 = vrot.slane %v2132_v63, %v12889_v9 }
  0xdc   : > { %v2121_v54 = vpop.permute.xlu0 %2120  ;;  %v2127_v56 = vpop.permute.xlu1 %2126 }
  0xdd   : > { %v2155_v59 = vrot.slane %v2127_v56, %v12889_v9  ;;  %v2448_v56 = vld [vmem:[%s12887_s9 + $0x21] sm:$0xf] }
  0xdf   : > { %v2172_v27 = vcombine.high %v2155_v59, %v15624_v5  ;;  %v13221_v14 = vrot.slane %v2155_v59, %v12898_v17 }
  0xe0   : > { %v2125_v1 = vpop.permute.xlu0 %2124  ;;  %v2350_v59 = vpop.permute.xlu1 %2349 }
  0xe1   : > { %v2140_v4 = vcombine.low %v2121_v54, %v2125_v1  ;;  %v2186_v24 = vrot.slane %v2172_v27, %v12898_v17  ;;  %v2446_v54 = vld [vmem:[%s12887_s9 + $0x11] sm:$0xf]  ;;  %v2360_v10 = vsel %vm529_vm1, %v2344_v51, %v2350_v59 }
  0xe3   : > { %v2147_v37 = vrot.slane %v2140_v4, %v12889_v9 }
  0xe4   : > { %v2358_v63 = vpop.permute.xlu1 %2357  ;;  %v2354_v1 = vpop.permute.xlu0 %2353 }
  0xe5   : > { %v2156_v12 = vcombine.low %v2139_v32, %v2147_v37  ;;  %v2157_v13 = vcombine.high %v2139_v32, %v2147_v37  ;;  %v1018_v37 = vsel %vm529_vm1, %v1002_v42, %v13111_v7  ;;  %v1355_v42 = vsel %vm529_vm1, %v1339_v3, %v13153_v0 }
  0xe6   : > { %v1356_v62 = vsel %vm531_vm2, %v1355_v42, %v13143_v50  ;;  %v2361_v47 = vsel %vm531_vm2, %v2360_v10, %v2354_v1 }
  0xe7   : > { %v13225_v28 = vrot.slane %v2156_v12, %v12898_v17  ;;  %v2171_v30 = vrot.slane %v2157_v13, %v12898_v17  ;;  %v1357_v3 = vsel %vm533_vm3, %v1356_v62, %v13162_v6 }
  0xe8   : > { %v13241_v4 = vpop.permute.xlu1 %2456  ;;  %v13243_v27 = vpop.permute.xlu0 %2454 }
  0xe9   : > { %v2187_v40 = vcombine.low %v13225_v28, %v13221_v14  ;;  %v2189_v41 = vcombine.low %v2171_v30, %v2186_v24  ;;  %v2188_v43 = vcombine.high %v13225_v28, %v13221_v14  ;;  %v2190_v53 = vcombine.high %v2171_v30, %v2186_v24 }
  0xea   : > { %v1019_v30 = vsel %vm531_vm2, %v1018_v37, %v13122_v22  ;;  %v2362_v22 = vsel %vm533_vm3, %v2361_v47, %v2358_v63 }
  0xeb   : > { %2196 = vrot.lane.b32.xlu1 %v2189_v41, %s12805_s11  ;;  %2192 = vrot.lane.b32.xlu0 %v2188_v43, %s12806_s12  ;;  %v11805_v43 = vld [vmem:[%s15617_s1 + $0x28] sm:$0x7f]  ;;  %v1020_v39 = vsel %vm533_vm3, %v1019_v30, %v13120_v18  ;;  %v11876_v18 = vld [vmem:[%s15617_s1 + $0x138] sm:$0x7f] }
  0xec   : > { %v12741_v30 = vld [vmem:[%s12887_s9 + $0x1] ss:$16 sps:$4 sm:$0xff]  }
  0xed   : > { %v2632_v14 = vrot.slane %v12741_v30, %v12889_v9 }
  0xef   : > { %2460 = vrot.lane.b32.xlu1 %v2447_v48, %s12804_s10  ;;  %2200 = vrot.lane.b32.xlu0 %v2190_v53, %s12807_s13 }
  0xf3   : > { %2458 = vrot.lane.b32.xlu0 %v2446_v54, %s12804_s10 }
  0xf7   : > { %2462 = vrot.lane.b32.xlu0 %v2448_v56, %s12804_s10  ;;  %v11850_v56 = vld [vmem:[%s15617_s1 + $0xe8] sm:$0x7f] }
 0x109   : > { %v519_v32 = vpop.permute.xlu1 %518 }
 0x10a   : > { %v530_v12 = vsel %vm529_vm1, %v513_v57, %v519_v32  ;;  %v1690_v57 = vsel %vm531_vm2, %v1689_v61, %v13174_v33  ;;  %v11867_v32 = vld [vmem:[%s15617_s1 + $0x128] sm:$0x7f] }
 0x10b   : > { %v523_v13 = vpop.permute.xlu0 %522  ;;  %v1691_v20 = vsel %vm533_vm3, %v1690_v57, %v13172_v31  ;;  %v11816_v31 = vld [vmem:[%s15617_s1 + $0x68] sm:$0x7f] }
 0x10c   : > { %v532_v24 = vsel %vm531_vm2, %v530_v12, %v523_v13  ;;  %v11884_v61 = vld [vmem:[%s15617_s1 + $0x168] sm:$0x7f] }
 0x10d   : > { %v527_v41 = vpop.permute.xlu1 %526 }
 0x10e   : > { %v534_v38 = vsel %vm533_vm3, %v532_v24, %v527_v41  ;;  %v12742_v41 = vld [vmem:[%s12887_s9 + $0x9] ss:$16 sps:$4 sm:$0xff]  }
 0x10f   : > { %12361 = vmatpush3.msk.msra.mxu1 %vm616_vm4, %v534_v38  ;;  %v2640_v28 = vrot.slane %v12742_v41, %v12889_v9 }
 0x110   : > { %12363 = vmatmul.mubr.msk.f32.vlgmr.msra.gmra.mxu1 %vm612_vm5, %v11805_v43  ;;  %12370 = vmatprep.subr.mxu1 %v15624_v5 }
 0x111   : > { %12371 = vmatpush3.msk.msra.mxu1 %vm616_vm4, %v1020_v39  ;;  %12372 = vmatprep.mubr.msk.f32.mxu1 %vm12808_vm0, %v15624_v5 }
 0x112   : > { %12380 = vmatprep.subr.mxu1 %v15624_v5 }
 0x114   : > { %12373 = vmatmul.mubr.msk.f32.vlgmr.msra.gmra.mxu1 %vm612_vm5, %v11825_v49 }
 0x115   : > { %12381 = vmatpush3.msk.msra.mxu1 %vm616_vm4, %v1357_v3  ;;  %12382 = vmatprep.mubr.msk.f32.mxu1 %vm12808_vm0, %v15624_v5  ;;  %v11899_v3 = vld.sshfl [vmem:[%s12887_s9 + $0x21] sm:$0x33 pattern:$0x76325410] }
 0x116   : > { %12390 = vmatprep.subr.mxu1 %v15624_v5  ;;  %v2672_v47 = vrot.slane %v11899_v3, %v12898_v17 }
 0x118   : > { %12383 = vmatmul.mubr.msk.f32.vlgmr.msra.gmra.mxu1 %vm612_vm5, %v11842_v19 }
 0x119   : > { %12391 = vmatpush3.msk.msra.mxu1 %vm616_vm4, %v1691_v20  ;;  %12392 = vmatprep.mubr.msk.f32.mxu1 %vm12808_vm0, %v15624_v5 }
 0x11a   : > { %12400 = vmatprep.subr.mxu1 %v15624_v5 }
 0x11c   : > { %12393 = vmatmul.mubr.msk.f32.vlgmr.msra.gmra.mxu1 %vm612_vm5, %v11859_v11  ;;  %v2665_v11 = vcombine.high %v11899_v3, %v15624_v5 }
 0x11d   : > { %12401 = vmatpush3.msk.msra.mxu1 %vm616_vm4, %v2028_v52  ;;  %v851_v7 = vpop.permute.xlu0 %850  ;;  %12402 = vmatprep.mubr.msk.f32.mxu1 %vm12808_vm0, %v15624_v5  ;;  %v855_v50 = vpop.permute.xlu1 %854  ;;  %v11893_v52 = vld [vmem:[%s15617_s1 + $0x178] sm:$0x7f] }
 0x11e   : > { %v861_v0 = vsel %vm529_vm1, %v845_v35, %v851_v7  ;;  %12410 = vmatprep.subr.mxu1 %v15624_v5 }
 0x11f   : > { %v862_v6 = vsel %vm531_vm2, %v861_v0, %v855_v50 }
 0x120   : > { %12403 = vmatmul.mubr.msk.f32.vlgmr.msra.gmra.mxu1 %vm612_vm5, %v11876_v18 }
 0x121   : > { %v859_v16 = vpop.permute.xlu0 %858  ;;  %12411 = vmatpush3.msk.msra.mxu1 %vm616_vm4, %v2362_v22  ;;  %12412 = vmatprep.mubr.msk.f32.mxu1 %vm12808_vm0, %v15624_v5 }
 0x122   : > { %v863_v23 = vsel %vm533_vm3, %v862_v6, %v859_v16  ;;  %12420 = vmatprep.subr.mxu1 %v15624_v5  ;;  %v2679_v16 = vrot.slane %v2665_v11, %v12898_v17 }
 0x123   : > { %12366 = vmatpush3.msk.msra.mxu0 %vm616_vm4, %v863_v23 }
 0x124   : > { %12375 = vmatprep.subr.mxu0 %v15624_v5  ;;  %12368 = vmatmul.mubr.msk.f32.vlgmr.msra.gmra.mxu0 %vm612_vm5, %v11816_v31 }
 0x125   : > { %12377 = vmatprep.mubr.msk.f32.mxu0 %vm12808_vm0, %v15624_v5  ;;  %12413 = vmatmul.mubr.msk.f32.vlgmr.msra.gmra.mxu1 %vm612_vm5, %v11893_v52 }
 0x126   : > { %12422 = vmatprep.mubr.msk.f32.mxu1 %vm12808_vm0, %v15624_v5 }
 0x129   : > { %v1188_v29 = vpop.permute.xlu1 %1187 }
 0x12a   : > { %v1198_v35 = vsel %vm529_vm1, %v1182_v2, %v1188_v29 }
 0x12b   : > { %v1192_v33 = vpop.permute.xlu0 %1191 }
 0x12c   : > { %v1199_v8 = vsel %vm531_vm2, %v1198_v35, %v1192_v33  ;;  %v2778_v33 = vld [vmem:[%s12887_s9] sm:$0xf] }
 0x12d   : > { %v1196_v26 = vpop.permute.xlu1 %1195 }
 0x12e   : > { %v1200_v48 = vsel %vm533_vm3, %v1199_v8, %v1196_v26  ;;  %v2779_v8 = vld [vmem:[%s12887_s9 + $0x8] sm:$0xf]  ;;  %v2780_v26 = vld [vmem:[%s12887_s9 + $0x10] sm:$0xf] }
 0x12f   : > { %12376 = vmatpush3.msk.msra.mxu0 %vm616_vm4, %v1200_v48  ;;  %v2782_v48 = vld [vmem:[%s12887_s9 + $0x20] sm:$0xf] }
 0x130   : > { %12385 = vmatprep.subr.mxu0 %v15624_v5  ;;  %12378 = vmatmul.mubr.msk.f32.vlgmr.msra.gmra.mxu0 %vm612_vm5, %v11833_v45  ;;  %v2781_v45 = vld [vmem:[%s12887_s9 + $0x18] sm:$0xf] }
 0x131   : > { %12387 = vmatprep.mubr.msk.f32.mxu0 %vm12808_vm0, %v15624_v5 }
 0x13d   : > { %v1522_v58 = vpop.permute.xlu0 %1521  ;;  %v1526_v60 = vpop.permute.xlu1 %1525 }
 0x13e   : > { %v1532_v2 = vsel %vm529_vm1, %v1516_v55, %v1522_v58  ;;  %v12809_v58 = vmov 0  }
 0x13f   : > { %v1533_v53 = vsel %vm531_vm2, %v1532_v2, %v1526_v60  ;;  %12727 = vset.pattern.permute.xlu0 %v12809_v58  ;;  %12728 = vset.pattern.permute.xlu1 %v12809_v58 }
 0x141   : > { %v1530_v54 = vpop.permute.xlu0 %1529 }
 0x142   : > { %v1534_v59 = vsel %vm533_vm3, %v1533_v53, %v1530_v54 }
 0x143   : > { %12386 = vmatpush3.msk.msra.mxu0 %vm616_vm4, %v1534_v59 }
 0x144   : > { %12395 = vmatprep.subr.mxu0 %v15624_v5  ;;  %12388 = vmatmul.mubr.msk.f32.vlgmr.msra.gmra.mxu0 %vm612_vm5, %v11850_v56 }
 0x145   : > { %12397 = vmatprep.mubr.msk.f32.mxu0 %vm12808_vm0, %v15624_v5 }
 0x149   : > { %v1859_v34 = vpop.permute.xlu1 %1858 }
 0x14a   : > { %v1869_v44 = vsel %vm529_vm1, %v1853_v36, %v1859_v34 }
 0x14b   : > { %v1863_v55 = vpop.permute.xlu0 %1862 }
 0x14c   : > { %v1870_v63 = vsel %vm531_vm2, %v1869_v44, %v1863_v55 }
 0x14d   : > { %v1867_v1 = vpop.permute.xlu1 %1866 }
 0x14e   : > { %v1871_v37 = vsel %vm533_vm3, %v1870_v63, %v1867_v1 }
 0x14f   : > { %12396 = vmatpush3.msk.msra.mxu0 %vm616_vm4, %v1871_v37 }
 0x150   : > { %12405 = vmatprep.subr.mxu0 %v15624_v5  ;;  %12398 = vmatmul.mubr.msk.f32.vlgmr.msra.gmra.mxu0 %vm612_vm5, %v11867_v32 }
 0x151   : > { %12407 = vmatprep.mubr.msk.f32.mxu0 %vm12808_vm0, %v15624_v5 }
 0x15d   : > { %v2197_v15 = vpop.permute.xlu1 %2196  ;;  %v2193_v25 = vpop.permute.xlu0 %2192 }
 0x15e   : > { %v2203_v36 = vsel %vm529_vm1, %v2187_v40, %v2193_v25  ;;  %v12743_v25 = vld [vmem:[%s12887_s9] ss:$16 sps:$4 sm:$0xff]  }
 0x15f   : > { %v2204_v13 = vsel %vm531_vm2, %v2203_v36, %v2197_v15  ;;  %v12744_v36 = vld [vmem:[%s12887_s9 + $0x8] ss:$16 sps:$4 sm:$0xff]  }
 0x160   : > { %v2974_v30 = vrot.slane %v12744_v36, %v12889_v9 }
 0x161   : > { %v2461_v12 = vpop.permute.xlu1 %2460  ;;  %v2201_v24 = vpop.permute.xlu0 %2200 }
 0x162   : > { %v2205_v43 = vsel %vm533_vm3, %v2204_v13, %v2201_v24  ;;  %v2476_v38 = vcombine.low %v13241_v4, %v2461_v12  ;;  %v2649_v4 = vcombine.low %v2632_v14, %v2640_v28  ;;  %v2966_v24 = vrot.slane %v12743_v25, %v12889_v9 }
 0x163   : > { %12406 = vmatpush3.msk.msra.mxu0 %vm616_vm4, %v2205_v43 }
 0x164   : > { %12415 = vmatprep.subr.mxu0 %v15624_v5  ;;  %v2483_v42 = vrot.slane %v2476_v38, %v12889_v9  ;;  %12408 = vmatmul.mubr.msk.f32.vlgmr.msra.gmra.mxu0 %vm612_vm5, %v11884_v61  ;;  %v2657_v46 = vrot.slane %v2649_v4, %v12898_v17  ;;  %v11906_v61 = vld.sshfl [vmem:[%s12887_s9 + $0x20] sm:$0x33 pattern:$0x76325410] }
 0x165   : > { %v2459_v39 = vpop.permute.xlu0 %2458  ;;  %12417 = vmatprep.mubr.msk.f32.mxu0 %vm12808_vm0, %v15624_v5 }
 0x166   : > { %v2468_v40 = vcombine.low %v13243_v27, %v2459_v39  ;;  %v2650_v27 = vcombine.high %v2632_v14, %v2640_v28  ;;  %v2681_v23 = vcombine.high %v2657_v46, %v2672_v47  ;;  %v2680_v56 = vcombine.low %v2657_v46, %v2672_v47  ;;  %v11896_v28 = vld [vmem:[%s15617_s1 + $0x1a8] sm:$0x7f] }
 0x167   : > { %v2983_v14 = vcombine.low %v2966_v24, %v2974_v30  ;;  %v2999_v46 = vcombine.high %v11906_v61, %v15624_v5 }
 0x168   : > { %v2475_v49 = vrot.slane %v2468_v40, %v12889_v9  ;;  %v2664_v6 = vrot.slane %v2650_v27, %v12898_v17  ;;  %v3006_v27 = vrot.slane %v11906_v61, %v12898_v17 }
 0x169   : > { %v2463_v62 = vpop.permute.xlu0 %2462 }
 0x16a   : > { %v2492_v51 = vcombine.low %v2475_v49, %v2483_v42  ;;  %v2493_v57 = vcombine.high %v2475_v49, %v2483_v42  ;;  %v2491_v19 = vrot.slane %v2463_v62, %v12889_v9  ;;  %v2682_v29 = vcombine.low %v2664_v6, %v2679_v16  ;;  %v11900_v62 = vld [vmem:[%s15617_s1 + $0x1b8] sm:$0x7f] }
 0x16b   : > { %v2683_v35 = vcombine.high %v2664_v6, %v2679_v16 }
 0x16c   : > { %v2500_v20 = vrot.slane %v2492_v51, %v12898_v17  ;;  %v2508_v21 = vcombine.high %v2491_v19, %v15624_v5  ;;  %v2515_v10 = vrot.slane %v2491_v19, %v12898_v17  ;;  %v2507_v50 = vrot.slane %v2493_v57, %v12898_v17 }
 0x16d   : > { %v2991_v19 = vrot.slane %v2983_v14, %v12898_v17 }
 0x16e   : > { %v2522_v7 = vrot.slane %v2508_v21, %v12898_v17  ;;  %v2523_v18 = vcombine.low %v2500_v20, %v2515_v10  ;;  %v2524_v22 = vcombine.high %v2500_v20, %v2515_v10  ;;  %v2984_v20 = vcombine.high %v2966_v24, %v2974_v30 }
 0x16f   : > { %v3014_v58 = vcombine.low %v2991_v19, %v3006_v27 }
 0x170   : > { %2528 = vrot.lane.b32.xlu1 %v2524_v22, %s12806_s12  ;;  %v2525_v0 = vcombine.low %v2507_v50, %v2522_v7  ;;  %v2526_v31 = vcombine.high %v2507_v50, %v2522_v7  ;;  %v2998_v22 = vrot.slane %v2984_v20, %v12898_v17  ;;  %v3013_v50 = vrot.slane %v2999_v46, %v12898_v17 }
 0x172   : > { %2532 = vrot.lane.b32.xlu0 %v2525_v0, %s12805_s11  ;;  %v3016_v6 = vcombine.low %v2998_v22, %v3013_v50  ;;  %v3017_v16 = vcombine.high %v2998_v22, %v3013_v50 }
 0x174   : > { %2536 = vrot.lane.b32.xlu1 %v2526_v31, %s12807_s13  ;;  %v3112_v31 = vld [vmem:[%s15618_s2] sm:$0x7f] }
 0x176   : > { %2685 = vrot.lane.b32.xlu0 %v2681_v23, %s12806_s12  ;;  %v11910_v23 = vld [vmem:[%s12887_s9 + $0x79] sm:$0xf] }
 0x178   : > { %2689 = vrot.lane.b32.xlu1 %v2682_v29, %s12805_s11  ;;  %v11911_v29 = vld [vmem:[%s12887_s9 + $0x81] sm:$0xf] }
 0x17a   : > { %2693 = vrot.lane.b32.xlu0 %v2683_v35, %s12807_s13  ;;  %v11912_v35 = vld [vmem:[%s12887_s9 + $0x89] sm:$0xf] }
 0x17c   : > { %2788 = vrot.lane.b32.xlu1 %v2778_v33, %s12804_s10  ;;  %v11913_v33 = vld [vmem:[%s12887_s9 + $0x91] sm:$0xf] }
 0x17e   : > { %2790 = vrot.lane.b32.xlu0 %v2779_v8, %s12804_s10  ;;  %v11914_v8 = vld [vmem:[%s12887_s9 + $0x99] sm:$0xf] }
 0x180   : > { %2792 = vrot.lane.b32.xlu1 %v2780_v26, %s12804_s10 }
 0x182   : > { %2794 = vrot.lane.b32.xlu0 %v2781_v45, %s12804_s10 }
 0x184   : > { %2796 = vrot.lane.b32.xlu1 %v2782_v48, %s12804_s10 }
 0x1e2   : > { %v2529_v60 = vpop.permute.xlu1 %2528 }
 0x1e3   : > { %v2539_v2 = vsel %vm529_vm1, %v2523_v18, %v2529_v60  ;;  %v3015_v18 = vcombine.high %v2991_v19, %v3006_v27 }
 0x1e4   : > { %v2533_v53 = vpop.permute.xlu0 %2532 }
 0x1e5   : > { %v2540_v54 = vsel %vm531_vm2, %v2539_v2, %v2533_v53 }
 0x1e6   : > { %v2537_v59 = vpop.permute.xlu1 %2536 }
 0x1e7   : > { %v2541_v34 = vsel %vm533_vm3, %v2540_v54, %v2537_v59  ;;  %v11903_v54 = vld [vmem:[%s15617_s1 + $0x1e8] sm:$0x7f] }
 0x1e8   : > { %v2686_v44 = vpop.permute.xlu0 %2685  ;;  %12416 = vmatpush3.msk.msra.mxu0 %vm616_vm4, %v2541_v34 }
 0x1e9   : > { %v2696_v55 = vsel %vm529_vm1, %v2680_v56, %v2686_v44  ;;  %12425 = vmatprep.subr.mxu0 %v15624_v5  ;;  %12418 = vmatmul.mubr.msk.f32.vlgmr.msra.gmra.mxu0 %vm612_vm5, %v11896_v28 }
 0x1ea   : > { %v2690_v63 = vpop.permute.xlu1 %2689  ;;  %12427 = vmatprep.mubr.msk.f32.mxu0 %vm12808_vm0, %v15624_v5 }
 0x1eb   : > { %v2697_v1 = vsel %vm531_vm2, %v2696_v55, %v2690_v63  ;;  %v11907_v63 = vld [vmem:[%s15617_s1 + $0x1f8] sm:$0x7f] }
 0x1ec   : > { %v2694_v32 = vpop.permute.xlu0 %2693 }
 0x1ed   : > { %v2698_v37 = vsel %vm533_vm3, %v2697_v1, %v2694_v32 }
 0x1ee   : > { %v2789_v15 = vpop.permute.xlu1 %2788  ;;  %12421 = vmatpush3.msk.msra.mxu1 %vm616_vm4, %v2698_v37 }
 0x1ef   : > { %12430 = vmatprep.subr.mxu1 %v15624_v5  ;;  %12423 = vmatmul.mubr.msk.f32.vlgmr.msra.gmra.mxu1 %vm612_vm5, %v11900_v62 }
 0x1f0   : > { %v2791_v12 = vpop.permute.xlu0 %2790  ;;  %12432 = vmatprep.mubr.msk.f32.mxu1 %vm12808_vm0, %v15624_v5 }
 0x1f2   : > { %v2793_v13 = vpop.permute.xlu1 %2792 }
 0x1f3   : > { %v2802_v41 = vcombine.low %v2789_v15, %v2793_v13 }
 0x1f4   : > { %v2795_v43 = vpop.permute.xlu0 %2794 }
 0x1f5   : > { %v2810_v38 = vcombine.low %v2791_v12, %v2795_v43  ;;  %v2809_v40 = vrot.slane %v2802_v41, %v12889_v9 }
 0x1f6   : > { %v2797_v39 = vpop.permute.xlu1 %2796 }
 0x1f7   : > { %v2817_v42 = vrot.slane %v2810_v38, %v12889_v9  ;;  %v2825_v49 = vrot.slane %v2797_v39, %v12889_v9 }
 0x1f9   : > { %v2826_v3 = vcombine.low %v2809_v40, %v2817_v42  ;;  %v2827_v4 = vcombine.high %v2809_v40, %v2817_v42  ;;  %v2842_v51 = vcombine.high %v2825_v49, %v15624_v5  ;;  %v2849_v57 = vrot.slane %v2825_v49, %v12898_v17 }
 0x1fb   : > { %v2834_v21 = vrot.slane %v2826_v3, %v12898_v17  ;;  %v2856_v10 = vrot.slane %v2842_v51, %v12898_v17  ;;  %v2841_v11 = vrot.slane %v2827_v4, %v12898_v17  ;;  %v686_v51 = vpop.f32.mrf.mxu0 }
 0x1fd   : > { %v2857_v47 = vcombine.low %v2834_v21, %v2849_v57  ;;  %v2859_v52 = vcombine.low %v2841_v11, %v2856_v10  ;;  %v2858_v7 = vcombine.high %v2834_v21, %v2849_v57  ;;  %v2860_v0 = vcombine.high %v2841_v11, %v2856_v10  ;;  %v762_v57 = vpop.f32.mrf.mxu1  ;;  %v12359_v27 = vpop.f32.mrf.mxu0 }
 0x1fe   : > { %v763_v19 = vadd.f32 %v762_v57, %v686_v51 }
 0x1ff   : > { %2866 = vrot.lane.b32.xlu1 %v2859_v52, %s12805_s11  ;;  %2862 = vrot.lane.b32.xlu0 %v2858_v7, %s12806_s12  ;;  %v12364_v20 = vpop.f32.mrf.mxu1  ;;  %v938_v21 = vpop.f32.mrf.mxu0 }
 0x200   : > { %v942_v11 = vadd.f32 %v938_v21, %v763_v19 }
 0x201   : > { %v1095_v10 = vpop.f32.mrf.mxu1  ;;  %v12369_v46 = vpop.f32.mrf.mxu0 }
 0x202   : > { %v1099_v52 = vadd.f32 %v1095_v10, %v942_v11  ;;  %v11921_v11 = vld [vmem:[%s12887_s9 + $0x78] sm:$0xf] }
 0x203   : > { %2870 = vrot.lane.b32.xlu0 %v2860_v0, %s12807_s13  ;;  %3019 = vrot.lane.b32.xlu1 %v3015_v18, %s12806_s12  ;;  %v1275_v7 = vpop.f32.mrf.mxu0 }
 0x204   : > { %v1279_v22 = vadd.f32 %v1275_v7, %v1099_v52  ;;  %v11923_v52 = vld [vmem:[%s12887_s9 + $0x88] sm:$0xf]  ;;  %v11924_v7 = vld [vmem:[%s12887_s9 + $0x90] sm:$0xf] }
 0x205   : > { %v12379_v50 = vpop.f32.mrf.mxu0 }
 0x207   : > { %3023 = vrot.lane.b32.xlu0 %v3016_v6, %s12805_s11  ;;  %3027 = vrot.lane.b32.xlu1 %v3017_v16, %s12807_s13  ;;  %v1609_v16 = vpop.f32.mrf.mxu0 }
 0x20b   : > { %3115 = vperm.xlu0 %12727, %v3112_v31   ;;  %3131 = vrot.lane.b32.xlu1 %v11910_v23, %s12810_s20 }
 0x20f   : > { %3133 = vrot.lane.b32.xlu1 %v11911_v29, %s12810_s20  ;;  %3135 = vrot.lane.b32.xlu0 %v11912_v35, %s12810_s20 }
 0x213   : > { %3137 = vrot.lane.b32.xlu1 %v11913_v33, %s12810_s20  ;;  %3139 = vrot.lane.b32.xlu0 %v11914_v8, %s12810_s20 }
 0x271   : > { %v2867_v26 = vpop.permute.xlu1 %2866  ;;  %v2863_v45 = vpop.permute.xlu0 %2862 }
 0x272   : > { %v2873_v48 = vsel %vm529_vm1, %v2857_v47, %v2863_v45  ;;  %v12374_v47 = vpop.f32.mrf.mxu1 }
 0x273   : > { %v2874_v2 = vsel %vm531_vm2, %v2873_v48, %v2867_v26  ;;  %v11922_v47 = vld [vmem:[%s12887_s9 + $0x80] sm:$0xf] }
 0x274   : > { %v1432_v18 = vpop.f32.mrf.mxu1 }
 0x275   : > { %v2871_v60 = vpop.permute.xlu0 %2870  ;;  %v3020_v53 = vpop.permute.xlu1 %3019  ;;  %v1436_v6 = vadd.f32 %v1432_v18, %v1279_v22  ;;  %v11925_v18 = vld [vmem:[%s12887_s9 + $0x98] sm:$0xf] }
 0x276   : > { %v2875_v56 = vsel %vm533_vm3, %v2874_v2, %v2871_v60  ;;  %v3030_v59 = vsel %vm529_vm1, %v3014_v58, %v3020_v53  ;;  %v12384_v0 = vpop.f32.mrf.mxu1 }
 0x277   : > { %12426 = vmatpush3.msk.msra.mxu0 %vm616_vm4, %v2875_v56 }
 0x278   : > { %12428 = vmatmul.mubr.msk.f32.vlgmr.msra.gmra.mxu0 %vm612_vm5, %v11903_v54  ;;  %12435 = vmatprep.subr.mxu0 %v15624_v5  ;;  %v1766_v31 = vpop.f32.mrf.mxu1 }
 0x279   : > { %v3024_v34 = vpop.permute.xlu0 %3023  ;;  %v3028_v44 = vpop.permute.xlu1 %3027  ;;  %12437 = vmatprep.mubr.msk.f32.mxu0 %vm12808_vm0, %v15624_v5 }
 0x27a   : > { %v3031_v55 = vsel %vm531_vm2, %v3030_v59, %v3024_v34 }
 0x27b   : > { %v3032_v1 = vsel %vm533_vm3, %v3031_v55, %v3028_v44 }
 0x27c   : > { %12431 = vmatpush3.msk.msra.mxu1 %vm616_vm4, %v3032_v1 }
 0x27d   : > { %12433 = vmatmul.mubr.msk.f32.vlgmr.msra.gmra.mxu1 %vm612_vm5, %v11907_v63  ;;  %v3132_v32 = vpop.permute.xlu1 %3131  ;;  %12440 = vmatprep.subr.mxu1 %v15624_v5 }
 0x27e   : > { %12442 = vmatprep.mubr.msk.f32.mxu1 %vm12808_vm0, %v15624_v5 }
 0x281   : > { %v3134_v37 = vpop.permute.xlu1 %3133 }
 0x285   : > { %v3138_v15 = vpop.permute.xlu1 %3137 }
 0x286   : > { %v13527_v25 = vpop.permute.xlu0 %3115  ;;  %v3153_v36 = vcombine.low %v3134_v37, %v3138_v15 }
 0x288   : > { %v3160_v24 = vrot.slane %v3153_v36, %v12889_v9 }
 0x28a   : > { %v3136_v12 = vpop.permute.xlu0 %3135 }
 0x28b   : > { %v3145_v13 = vcombine.low %v3132_v32, %v3136_v12 }
 0x28d   : > { %v3152_v30 = vrot.slane %v3145_v13, %v12889_v9 }
 0x28e   : > { %v3140_v41 = vpop.permute.xlu0 %3139 }
 0x28f   : > { %v3169_v43 = vcombine.low %v3152_v30, %v3160_v24  ;;  %v3170_v38 = vcombine.high %v3152_v30, %v3160_v24  ;;  %v3168_v39 = vrot.slane %v3140_v41, %v12889_v9 }
 0x291   : > { %v3177_v14 = vrot.slane %v3169_v43, %v12898_v17  ;;  %v3185_v28 = vcombine.high %v3168_v39, %v15624_v5  ;;  %v3192_v40 = vrot.slane %v3168_v39, %v12898_v17  ;;  %v3184_v62 = vrot.slane %v3170_v38, %v12898_v17 }
 0x293   : > { %v3199_v42 = vrot.slane %v3185_v28, %v12898_v17  ;;  %v3200_v49 = vcombine.low %v3177_v14, %v3192_v40  ;;  %v3201_v61 = vcombine.high %v3177_v14, %v3192_v40 }
 0x295   : > { %3205 = vrot.lane.b32.xlu1 %v3201_v61, %s12806_s12  ;;  %v3202_v3 = vcombine.low %v3184_v62, %v3199_v42  ;;  %v3203_v4 = vcombine.high %v3184_v62, %v3199_v42 }
 0x297   : > { %3209 = vrot.lane.b32.xlu0 %v3202_v3, %s12805_s11 }
 0x299   : > { %3213 = vrot.lane.b32.xlu1 %v3203_v4, %s12807_s13 }
 0x29b   : > { %3221 = vrot.lane.b32.xlu0 %v11910_v23, %s12804_s10  ;;  %v1613_v23 = vadd.f32 %v1609_v16, %v1436_v6 }
 0x29d   : > { %3223 = vrot.lane.b32.xlu1 %v11911_v29, %s12804_s10  ;;  %v12389_v29 = vpop.f32.mrf.mxu0 }
 0x29f   : > { %3225 = vrot.lane.b32.xlu0 %v11912_v35, %s12804_s10  ;;  %v12394_v35 = vpop.f32.mrf.mxu1  ;;  %v1946_v26 = vpop.f32.mrf.mxu0 }
 0x2a1   : > { %3227 = vrot.lane.b32.xlu1 %v11913_v33, %s12804_s10  ;;  %v1770_v33 = vadd.f32 %v1766_v31, %v1613_v23  ;;  %v2103_v45 = vpop.f32.mrf.mxu1 }
 0x2a3   : > { %3229 = vrot.lane.b32.xlu0 %v11914_v8, %s12804_s10  ;;  %v1950_v48 = vadd.f32 %v1946_v26, %v1770_v33  ;;  %v12399_v8 = vpop.f32.mrf.mxu0  ;;  %v12404_v58 = vpop.f32.mrf.mxu1 }
 0x2a5   : > { %v2107_v60 = vadd.f32 %v2103_v45, %v1950_v48  ;;  %v2280_v2 = vpop.f32.mrf.mxu0  ;;  %v2437_v53 = vpop.f32.mrf.mxu1 }
 0x2a7   : > { %v2284_v54 = vadd.f32 %v2280_v2, %v2107_v60  ;;  %v12409_v56 = vpop.f32.mrf.mxu0  ;;  %v12414_v59 = vpop.f32.mrf.mxu1 }
 0x2a8   : > { %v11916_v59 = vld [vmem:[%s15617_s1 + $0x30] sm:$0x7f] }
 0x2a9   : > { %v2441_v34 = vadd.f32 %v2437_v53, %v2284_v54  ;;  %v2616_v44 = vpop.f32.mrf.mxu0 }
 0x2ab   : > { %v2620_v55 = vadd.f32 %v2616_v44, %v2441_v34  ;;  %v12419_v1 = vpop.f32.mrf.mxu0 }
 0x2af   : > { %v2773_v63 = vpop.f32.mrf.mxu1 }
 0x2b0   : > { %v2777_v32 = vadd.f32 %v2773_v63, %v2620_v55 }
 0x2b1   : > { %v12424_v37 = vpop.f32.mrf.mxu1 }
 0x307   : > { %v3206_v15 = vpop.permute.xlu1 %3205 }
 0x308   : > { %v3216_v36 = vsel %vm529_vm1, %v3200_v49, %v3206_v15 }
 0x309   : > { %v3210_v12 = vpop.permute.xlu0 %3209 }
 0x30a   : > { %v3217_v13 = vsel %vm531_vm2, %v3216_v36, %v3210_v12 }
 0x30b   : > { %v3214_v24 = vpop.permute.xlu1 %3213 }
 0x30c   : > { %v3218_v30 = vsel %vm533_vm3, %v3217_v13, %v3214_v24 }
 0x30d   : > { %12441 = vmatpush3.msk.msra.mxu1 %vm616_vm4, %v3218_v30  ;;  %v3222_v41 = vpop.permute.xlu0 %3221  ;;  %v11929_v30 = vld [vmem:[%s12887_s9 + $0x78] sm:$0xf] }
 0x30e   : > { %12450 = vmatprep.subr.mxu1 %v15624_v5 }
 0x30f   : > { %v3224_v43 = vpop.permute.xlu1 %3223 }
 0x311   : > { %v3226_v38 = vpop.permute.xlu0 %3225 }
 0x312   : > { %v3235_v39 = vcombine.low %v3222_v41, %v3226_v38  ;;  %v11931_v38 = vld [vmem:[%s12887_s9 + $0x88] sm:$0xf] }
 0x313   : > { %v3228_v14 = vpop.permute.xlu1 %3227 }
 0x314   : > { %v3243_v28 = vcombine.low %v3224_v43, %v3228_v14  ;;  %v3242_v42 = vrot.slane %v3235_v39, %v12889_v9  ;;  %v11930_v43 = vld [vmem:[%s12887_s9 + $0x80] sm:$0xf]  ;;  %v11932_v39 = vld [vmem:[%s12887_s9 + $0x90] sm:$0xf]  ;;  %v11933_v14 = vld [vmem:[%s12887_s9 + $0x98] sm:$0xf] }
 0x315   : > { %v3230_v40 = vpop.permute.xlu0 %3229 }
 0x316   : > { %v3250_v49 = vrot.slane %v3243_v28, %v12889_v9  ;;  %v3258_v61 = vrot.slane %v3230_v40, %v12889_v9 }
 0x318   : > { %v3259_v62 = vcombine.low %v3242_v42, %v3250_v49  ;;  %v3260_v3 = vcombine.high %v3242_v42, %v3250_v49  ;;  %v3275_v4 = vcombine.high %v3258_v61, %v15624_v5  ;;  %v3282_v51 = vrot.slane %v3258_v61, %v12898_v17 }
 0x31a   : > { %v3274_v57 = vrot.slane %v3260_v3, %v12898_v17  ;;  %v3267_v19 = vrot.slane %v3259_v62, %v12898_v17  ;;  %v3289_v27 = vrot.slane %v3275_v4, %v12898_v17 }
 0x31c   : > { %v3290_v20 = vcombine.low %v3267_v19, %v3282_v51  ;;  %v3291_v21 = vcombine.high %v3267_v19, %v3282_v51  ;;  %v3292_v10 = vcombine.low %v3274_v57, %v3289_v27  ;;  %v3293_v46 = vcombine.high %v3274_v57, %v3289_v27 }
 0x31e   : > { %3295 = vrot.lane.b32.xlu1 %v3291_v21, %s12806_s12  ;;  %3299 = vrot.lane.b32.xlu0 %v3292_v10, %s12805_s11  ;;  %v11915_v10 = vld [vmem:[%s15617_s1 + $0x20] sm:$0x7f] }
 0x31f   : > { %12443 = vmatmul.mubr.msk.f32.vlgmr.msra.gmra.mxu1 %vm612_vm5, %v11915_v10 }
 0x320   : > { %12452 = vmatprep.mubr.msk.f32.mxu1 %vm12808_vm0, %v15624_v5 }
 0x322   : > { %3303 = vrot.lane.b32.xlu1 %v3293_v46, %s12807_s13  ;;  %3473 = vrot.lane.b32.xlu0 %v11921_v11, %s12810_s20 }
 0x326   : > { %3475 = vrot.lane.b32.xlu1 %v11922_v47, %s12810_s20  ;;  %3477 = vrot.lane.b32.xlu0 %v11923_v52, %s12810_s20 }
 0x32a   : > { %3479 = vrot.lane.b32.xlu1 %v11924_v7, %s12810_s20  ;;  %3481 = vrot.lane.b32.xlu0 %v11925_v18, %s12810_s20 }
 0x338   : > { %v2950_v22 = vpop.f32.mrf.mxu0 }
 0x339   : > { %v2954_v50 = vadd.f32 %v2950_v22, %v2777_v32 }
 0x33a   : > { %v12429_v0 = vpop.f32.mrf.mxu0 }
 0x33d   : > { %v3107_v6 = vpop.f32.mrf.mxu1 }
 0x33e   : > { %v3111_v16 = vadd.f32 %v3107_v6, %v2954_v50 }
 0x33f   : > { %v12434_v31 = vpop.f32.mrf.mxu1 }
 0x340   : > { %v3118_v23 = vadd.f32 %v13527_v25, %v3111_v16 }
 0x342   : > { %3120 = vst.msk [vmem:[%s394_s18] sm:$0x7f] %vm3119_vm6, %v3118_v23  ;;  %v11937_v23 = vld [vmem:[%s12887_s9 + $0x51] sm:$0xf] }
 0x390   : > { %v3296_v29 = vpop.permute.xlu1 %3295  ;;  %v3300_v35 = vpop.permute.xlu0 %3299 }
 0x391   : > { %v3306_v33 = vsel %vm529_vm1, %v3290_v20, %v3296_v29 }
 0x392   : > { %v3307_v26 = vsel %vm531_vm2, %v3306_v33, %v3300_v35  ;;  %v11938_v35 = vld [vmem:[%s12887_s9 + $0x59] sm:$0xf]  ;;  %v11939_v33 = vld [vmem:[%s12887_s9 + $0x61] sm:$0xf] }
 0x394   : > { %v3304_v45 = vpop.permute.xlu1 %3303  ;;  %v3474_v48 = vpop.permute.xlu0 %3473 }
 0x395   : > { %v3308_v8 = vsel %vm533_vm3, %v3307_v26, %v3304_v45  ;;  %v11940_v26 = vld [vmem:[%s12887_s9 + $0x69] sm:$0xf]  ;;  %v11941_v45 = vld [vmem:[%s12887_s9 + $0x71] sm:$0xf] }
 0x396   : > { %12436 = vmatpush3.msk.msra.mxu0 %vm616_vm4, %v3308_v8 }
 0x397   : > { %12445 = vmatprep.subr.mxu0 %v15624_v5  ;;  %12438 = vmatmul.mubr.msk.f32.vlgmr.msra.gmra.mxu0 %vm612_vm5, %v11916_v59 }
 0x398   : > { %v3476_v58 = vpop.permute.xlu1 %3475  ;;  %v3478_v60 = vpop.permute.xlu0 %3477  ;;  %12447 = vmatprep.mubr.msk.f32.mxu0 %vm12808_vm0, %v15624_v5 }
 0x399   : > { %v3487_v2 = vcombine.low %v3474_v48, %v3478_v60 }
 0x39b   : > { %v3494_v34 = vrot.slane %v3487_v2, %v12889_v9 }
 0x39c   : > { %v3480_v25 = vpop.permute.xlu1 %3479  ;;  %v3482_v53 = vpop.permute.xlu0 %3481 }
 0x39d   : > { %v3495_v54 = vcombine.low %v3476_v58, %v3480_v25  ;;  %v3510_v56 = vrot.slane %v3482_v53, %v12889_v9 }
 0x39f   : > { %v3502_v44 = vrot.slane %v3495_v54, %v12889_v9  ;;  %v3527_v55 = vcombine.high %v3510_v56, %v15624_v5  ;;  %v3534_v32 = vrot.slane %v3510_v56, %v12898_v17 }
 0x3a1   : > { %v3511_v63 = vcombine.low %v3494_v34, %v3502_v44  ;;  %v3512_v1 = vcombine.high %v3494_v34, %v3502_v44  ;;  %v3541_v37 = vrot.slane %v3527_v55, %v12898_v17 }
 0x3a3   : > { %v3526_v15 = vrot.slane %v3512_v1, %v12898_v17  ;;  %v3519_v36 = vrot.slane %v3511_v63, %v12898_v17  ;;  %v11926_v1 = vld [vmem:[%s15617_s1 + $0x60] sm:$0x7f] }
 0x3a5   : > { %v3542_v12 = vcombine.low %v3519_v36, %v3534_v32  ;;  %v3543_v13 = vcombine.high %v3519_v36, %v3534_v32  ;;  %v3544_v24 = vcombine.low %v3526_v15, %v3541_v37  ;;  %v3545_v41 = vcombine.high %v3526_v15, %v3541_v37 }
 0x3a7   : > { %3547 = vrot.lane.b32.xlu1 %v3543_v13, %s12806_s12  ;;  %3551 = vrot.lane.b32.xlu0 %v3544_v24, %s12805_s11 }
 0x3ab   : > { %3555 = vrot.lane.b32.xlu1 %v3545_v41, %s12807_s13  ;;  %3650 = vrot.lane.b32.xlu0 %v11929_v30, %s12804_s10 }
 0x3af   : > { %3652 = vrot.lane.b32.xlu1 %v11930_v43, %s12804_s10  ;;  %3654 = vrot.lane.b32.xlu0 %v11931_v38, %s12804_s10 }
 0x3b3   : > { %3656 = vrot.lane.b32.xlu1 %v11932_v39, %s12804_s10  ;;  %3658 = vrot.lane.b32.xlu0 %v11933_v14, %s12804_s10  ;;  %v11945_v14 = vld [vmem:[%s12887_s9 + $0x51] sm:$0xf] }
 0x419   : > { %v3548_v28 = vpop.permute.xlu1 %3547  ;;  %v3552_v40 = vpop.permute.xlu0 %3551 }
 0x41a   : > { %v3558_v42 = vsel %vm529_vm1, %v3542_v12, %v3548_v28 }
 0x41b   : > { %v3559_v49 = vsel %vm531_vm2, %v3558_v42, %v3552_v40  ;;  %v11946_v40 = vld [vmem:[%s12887_s9 + $0x59] sm:$0xf]  ;;  %v11947_v42 = vld [vmem:[%s12887_s9 + $0x61] sm:$0xf] }
 0x41d   : > { %v3556_v61 = vpop.permute.xlu1 %3555  ;;  %v3651_v62 = vpop.permute.xlu0 %3650 }
 0x41e   : > { %v3560_v3 = vsel %vm533_vm3, %v3559_v49, %v3556_v61  ;;  %v11948_v49 = vld [vmem:[%s12887_s9 + $0x69] sm:$0xf]  ;;  %v11949_v61 = vld [vmem:[%s12887_s9 + $0x71] sm:$0xf] }
 0x41f   : > { %12446 = vmatpush3.msk.msra.mxu0 %vm616_vm4, %v3560_v3 }
 0x420   : > { %12455 = vmatprep.subr.mxu0 %v15624_v5  ;;  %12448 = vmatmul.mubr.msk.f32.vlgmr.msra.gmra.mxu0 %vm612_vm5, %v11926_v1 }
 0x421   : > { %v3653_v4 = vpop.permute.xlu1 %3652  ;;  %v3655_v51 = vpop.permute.xlu0 %3654  ;;  %12457 = vmatprep.mubr.msk.f32.mxu0 %vm12808_vm0, %v15624_v5 }
 0x422   : > { %v3664_v57 = vcombine.low %v3651_v62, %v3655_v51 }
 0x424   : > { %v3671_v11 = vrot.slane %v3664_v57, %v12889_v9 }
 0x425   : > { %v3657_v19 = vpop.permute.xlu1 %3656  ;;  %v3659_v27 = vpop.permute.xlu0 %3658 }
 0x426   : > { %v3672_v20 = vcombine.low %v3653_v4, %v3657_v19  ;;  %v3687_v21 = vrot.slane %v3659_v27, %v12889_v9 }
 0x428   : > { %v3679_v46 = vrot.slane %v3672_v20, %v12889_v9  ;;  %v3704_v47 = vcombine.high %v3687_v21, %v15624_v5  ;;  %v3711_v18 = vrot.slane %v3687_v21, %v12898_v17 }
 0x42a   : > { %v3688_v52 = vcombine.low %v3671_v11, %v3679_v46  ;;  %v3689_v7 = vcombine.high %v3671_v11, %v3679_v46  ;;  %v3718_v22 = vrot.slane %v3704_v47, %v12898_v17 }
 0x42c   : > { %v3703_v50 = vrot.slane %v3689_v7, %v12898_v17  ;;  %v3696_v0 = vrot.slane %v3688_v52, %v12898_v17  ;;  %v11934_v7 = vld [vmem:[%s15617_s1 + $0x70] sm:$0x7f] }
 0x42e   : > { %v3719_v6 = vcombine.low %v3696_v0, %v3711_v18  ;;  %v3720_v16 = vcombine.high %v3696_v0, %v3711_v18  ;;  %v3721_v31 = vcombine.low %v3703_v50, %v3718_v22  ;;  %v3722_v29 = vcombine.high %v3703_v50, %v3718_v22 }
 0x430   : > { %3724 = vrot.lane.b32.xlu1 %v3720_v16, %s12806_s12  ;;  %3728 = vrot.lane.b32.xlu0 %v3721_v31, %s12805_s11 }
 0x434   : > { %3732 = vrot.lane.b32.xlu1 %v3722_v29, %s12807_s13  ;;  %3827 = vrot.lane.b32.xlu0 %v11937_v23, %s12810_s20 }
 0x438   : > { %3829 = vrot.lane.b32.xlu1 %v11938_v35, %s12810_s20  ;;  %3831 = vrot.lane.b32.xlu0 %v11939_v33, %s12810_s20 }
 0x43c   : > { %3833 = vrot.lane.b32.xlu1 %v11940_v26, %s12810_s20  ;;  %3835 = vrot.lane.b32.xlu0 %v11941_v45, %s12810_s20  ;;  %v11953_v45 = vld [vmem:[%s12887_s9 + $0x50] sm:$0xf] }
 0x4a2   : > { %v3725_v48 = vpop.permute.xlu1 %3724  ;;  %v3729_v8 = vpop.permute.xlu0 %3728 }
 0x4a3   : > { %v3735_v58 = vsel %vm529_vm1, %v3719_v6, %v3725_v48 }
 0x4a4   : > { %v3736_v60 = vsel %vm531_vm2, %v3735_v58, %v3729_v8  ;;  %v11954_v8 = vld [vmem:[%s12887_s9 + $0x58] sm:$0xf]  ;;  %v11955_v58 = vld [vmem:[%s12887_s9 + $0x60] sm:$0xf] }
 0x4a6   : > { %v3733_v2 = vpop.permute.xlu1 %3732  ;;  %v3828_v25 = vpop.permute.xlu0 %3827 }
 0x4a7   : > { %v3737_v53 = vsel %vm533_vm3, %v3736_v60, %v3733_v2  ;;  %v11956_v60 = vld [vmem:[%s12887_s9 + $0x68] sm:$0xf]  ;;  %v11957_v2 = vld [vmem:[%s12887_s9 + $0x70] sm:$0xf] }
 0x4a8   : > { %12451 = vmatpush3.msk.msra.mxu1 %vm616_vm4, %v3737_v53 }
 0x4a9   : > { %12460 = vmatprep.subr.mxu1 %v15624_v5  ;;  %12453 = vmatmul.mubr.msk.f32.vlgmr.msra.gmra.mxu1 %vm612_vm5, %v11934_v7 }
 0x4aa   : > { %v3830_v54 = vpop.permute.xlu1 %3829  ;;  %v3832_v56 = vpop.permute.xlu0 %3831  ;;  %12462 = vmatprep.mubr.msk.f32.mxu1 %vm12808_vm0, %v15624_v5 }
 0x4ab   : > { %v3841_v59 = vcombine.low %v3828_v25, %v3832_v56 }
 0x4ad   : > { %v3848_v32 = vrot.slane %v3841_v59, %v12889_v9 }
 0x4ae   : > { %v3834_v34 = vpop.permute.xlu1 %3833  ;;  %v3836_v44 = vpop.permute.xlu0 %3835 }
 0x4af   : > { %v3849_v55 = vcombine.low %v3830_v54, %v3834_v34  ;;  %v3864_v63 = vrot.slane %v3836_v44, %v12889_v9 }
 0x4b1   : > { %v3856_v37 = vrot.slane %v3849_v55, %v12889_v9  ;;  %v3881_v15 = vcombine.high %v3864_v63, %v15624_v5  ;;  %v3888_v13 = vrot.slane %v3864_v63, %v12898_v17 }
 0x4b3   : > { %v3865_v36 = vcombine.low %v3848_v32, %v3856_v37  ;;  %v3866_v12 = vcombine.high %v3848_v32, %v3856_v37  ;;  %v3895_v24 = vrot.slane %v3881_v15, %v12898_v17 }
 0x4b5   : > { %v3880_v30 = vrot.slane %v3866_v12, %v12898_v17  ;;  %v3873_v41 = vrot.slane %v3865_v36, %v12898_v17  ;;  %v11942_v12 = vld [vmem:[%s15617_s1 + $0xa0] sm:$0x7f] }
 0x4b7   : > { %v3896_v43 = vcombine.low %v3873_v41, %v3888_v13  ;;  %v3897_v38 = vcombine.high %v3873_v41, %v3888_v13  ;;  %v3898_v39 = vcombine.low %v3880_v30, %v3895_v24  ;;  %v3899_v28 = vcombine.high %v3880_v30, %v3895_v24 }
 0x4b9   : > { %3901 = vrot.lane.b32.xlu1 %v3897_v38, %s12806_s12  ;;  %3905 = vrot.lane.b32.xlu0 %v3898_v39, %s12805_s11 }
 0x4bd   : > { %3909 = vrot.lane.b32.xlu1 %v3899_v28, %s12807_s13  ;;  %4004 = vrot.lane.b32.xlu0 %v11945_v14, %s12804_s10 }
 0x4c1   : > { %4006 = vrot.lane.b32.xlu1 %v11946_v40, %s12804_s10  ;;  %4008 = vrot.lane.b32.xlu0 %v11947_v42, %s12804_s10 }
 0x4c5   : > { %4010 = vrot.lane.b32.xlu1 %v11948_v49, %s12804_s10  ;;  %4012 = vrot.lane.b32.xlu0 %v11949_v61, %s12804_s10  ;;  %v11961_v61 = vld [vmem:[%s12887_s9 + $0x50] sm:$0xf] }
 0x52b   : > { %v3902_v62 = vpop.permute.xlu1 %3901  ;;  %v3906_v3 = vpop.permute.xlu0 %3905 }
 0x52c   : > { %v3912_v4 = vsel %vm529_vm1, %v3896_v43, %v3902_v62 }
 0x52d   : > { %v3913_v51 = vsel %vm531_vm2, %v3912_v4, %v3906_v3  ;;  %v11962_v3 = vld [vmem:[%s12887_s9 + $0x58] sm:$0xf]  ;;  %v11963_v4 = vld [vmem:[%s12887_s9 + $0x60] sm:$0xf] }
 0x52f   : > { %v3910_v57 = vpop.permute.xlu1 %3909  ;;  %v4005_v19 = vpop.permute.xlu0 %4004 }
 0x530   : > { %v3914_v27 = vsel %vm533_vm3, %v3913_v51, %v3910_v57  ;;  %v11964_v51 = vld [vmem:[%s12887_s9 + $0x68] sm:$0xf]  ;;  %v11965_v57 = vld [vmem:[%s12887_s9 + $0x70] sm:$0xf] }
 0x531   : > { %12456 = vmatpush3.msk.msra.mxu0 %vm616_vm4, %v3914_v27 }
 0x532   : > { %12465 = vmatprep.subr.mxu0 %v15624_v5  ;;  %12458 = vmatmul.mubr.msk.f32.vlgmr.msra.gmra.mxu0 %vm612_vm5, %v11942_v12 }
 0x533   : > { %v4007_v20 = vpop.permute.xlu1 %4006  ;;  %v4009_v21 = vpop.permute.xlu0 %4008  ;;  %12467 = vmatprep.mubr.msk.f32.mxu0 %vm12808_vm0, %v15624_v5 }
 0x534   : > { %v4018_v10 = vcombine.low %v4005_v19, %v4009_v21 }
 0x536   : > { %v4025_v18 = vrot.slane %v4018_v10, %v12889_v9 }
 0x537   : > { %v4011_v11 = vpop.permute.xlu1 %4010  ;;  %v4013_v46 = vpop.permute.xlu0 %4012 }
 0x538   : > { %v4026_v47 = vcombine.low %v4007_v20, %v4011_v11  ;;  %v4041_v52 = vrot.slane %v4013_v46, %v12889_v9 }
 0x53a   : > { %v4033_v22 = vrot.slane %v4026_v47, %v12889_v9  ;;  %v4058_v50 = vcombine.high %v4041_v52, %v15624_v5  ;;  %v4065_v16 = vrot.slane %v4041_v52, %v12898_v17 }
 0x53c   : > { %v4042_v0 = vcombine.low %v4025_v18, %v4033_v22  ;;  %v4043_v6 = vcombine.high %v4025_v18, %v4033_v22  ;;  %v4072_v31 = vrot.slane %v4058_v50, %v12898_v17 }
 0x53e   : > { %v4057_v23 = vrot.slane %v4043_v6, %v12898_v17  ;;  %v4050_v29 = vrot.slane %v4042_v0, %v12898_v17  ;;  %v11950_v6 = vld [vmem:[%s15617_s1 + $0xb0] sm:$0x7f] }
 0x540   : > { %v4073_v35 = vcombine.low %v4050_v29, %v4065_v16  ;;  %v4074_v33 = vcombine.high %v4050_v29, %v4065_v16  ;;  %v4075_v26 = vcombine.low %v4057_v23, %v4072_v31  ;;  %v4076_v48 = vcombine.high %v4057_v23, %v4072_v31 }
 0x542   : > { %4078 = vrot.lane.b32.xlu1 %v4074_v33, %s12806_s12  ;;  %4082 = vrot.lane.b32.xlu0 %v4075_v26, %s12805_s11 }
 0x546   : > { %4086 = vrot.lane.b32.xlu1 %v4076_v48, %s12807_s13  ;;  %4181 = vrot.lane.b32.xlu0 %v11953_v45, %s12810_s20 }
 0x54a   : > { %4183 = vrot.lane.b32.xlu1 %v11954_v8, %s12810_s20  ;;  %4185 = vrot.lane.b32.xlu0 %v11955_v58, %s12810_s20 }
 0x54e   : > { %4187 = vrot.lane.b32.xlu1 %v11956_v60, %s12810_s20  ;;  %4189 = vrot.lane.b32.xlu0 %v11957_v2, %s12810_s20  ;;  %v11969_v2 = vld [vmem:[%s12887_s9 + $0x29] sm:$0xf] }
 0x5b4   : > { %v4079_v25 = vpop.permute.xlu1 %4078  ;;  %v4083_v53 = vpop.permute.xlu0 %4082 }
 0x5b5   : > { %v4089_v54 = vsel %vm529_vm1, %v4073_v35, %v4079_v25 }
 0x5b6   : > { %v4090_v56 = vsel %vm531_vm2, %v4089_v54, %v4083_v53  ;;  %v11970_v53 = vld [vmem:[%s12887_s9 + $0x31] sm:$0xf]  ;;  %v11971_v54 = vld [vmem:[%s12887_s9 + $0x39] sm:$0xf] }
 0x5b8   : > { %v4087_v59 = vpop.permute.xlu1 %4086  ;;  %v4182_v34 = vpop.permute.xlu0 %4181 }
 0x5b9   : > { %v4091_v44 = vsel %vm533_vm3, %v4090_v56, %v4087_v59  ;;  %v11972_v56 = vld [vmem:[%s12887_s9 + $0x41] sm:$0xf]  ;;  %v11973_v59 = vld [vmem:[%s12887_s9 + $0x49] sm:$0xf] }
 0x5ba   : > { %12461 = vmatpush3.msk.msra.mxu1 %vm616_vm4, %v4091_v44 }
 0x5bb   : > { %12470 = vmatprep.subr.mxu1 %v15624_v5  ;;  %12463 = vmatmul.mubr.msk.f32.vlgmr.msra.gmra.mxu1 %vm612_vm5, %v11950_v6 }
 0x5bc   : > { %v4184_v55 = vpop.permute.xlu1 %4183  ;;  %v4186_v63 = vpop.permute.xlu0 %4185  ;;  %12472 = vmatprep.mubr.msk.f32.mxu1 %vm12808_vm0, %v15624_v5 }
 0x5bd   : > { %v4195_v1 = vcombine.low %v4182_v34, %v4186_v63 }
 0x5bf   : > { %v4202_v13 = vrot.slane %v4195_v1, %v12889_v9 }
 0x5c0   : > { %v4188_v32 = vpop.permute.xlu1 %4187  ;;  %v4190_v37 = vpop.permute.xlu0 %4189 }
 0x5c1   : > { %v4203_v15 = vcombine.low %v4184_v55, %v4188_v32  ;;  %v4218_v36 = vrot.slane %v4190_v37, %v12889_v9 }
 0x5c3   : > { %v4210_v24 = vrot.slane %v4203_v15, %v12889_v9  ;;  %v4235_v30 = vcombine.high %v4218_v36, %v15624_v5  ;;  %v4242_v38 = vrot.slane %v4218_v36, %v12898_v17 }
 0x5c5   : > { %v4219_v41 = vcombine.low %v4202_v13, %v4210_v24  ;;  %v4220_v43 = vcombine.high %v4202_v13, %v4210_v24  ;;  %v4249_v39 = vrot.slane %v4235_v30, %v12898_v17 }
 0x5c7   : > { %v4234_v14 = vrot.slane %v4220_v43, %v12898_v17  ;;  %v4227_v28 = vrot.slane %v4219_v41, %v12898_v17  ;;  %v11958_v43 = vld [vmem:[%s15617_s1 + $0xe0] sm:$0x7f] }
 0x5c9   : > { %v4250_v40 = vcombine.low %v4227_v28, %v4242_v38  ;;  %v4251_v42 = vcombine.high %v4227_v28, %v4242_v38  ;;  %v4252_v49 = vcombine.low %v4234_v14, %v4249_v39  ;;  %v4253_v62 = vcombine.high %v4234_v14, %v4249_v39 }
 0x5cb   : > { %4255 = vrot.lane.b32.xlu1 %v4251_v42, %s12806_s12  ;;  %4259 = vrot.lane.b32.xlu0 %v4252_v49, %s12805_s11 }
 0x5cf   : > { %4263 = vrot.lane.b32.xlu1 %v4253_v62, %s12807_s13  ;;  %4358 = vrot.lane.b32.xlu0 %v11961_v61, %s12804_s10 }
 0x5d3   : > { %4360 = vrot.lane.b32.xlu1 %v11962_v3, %s12804_s10  ;;  %4362 = vrot.lane.b32.xlu0 %v11963_v4, %s12804_s10 }
 0x5d7   : > { %4364 = vrot.lane.b32.xlu1 %v11964_v51, %s12804_s10  ;;  %4366 = vrot.lane.b32.xlu0 %v11965_v57, %s12804_s10  ;;  %v11977_v57 = vld [vmem:[%s12887_s9 + $0x29] sm:$0xf] }
 0x63d   : > { %v4256_v19 = vpop.permute.xlu1 %4255  ;;  %v4260_v27 = vpop.permute.xlu0 %4259 }
 0x63e   : > { %v4266_v20 = vsel %vm529_vm1, %v4250_v40, %v4256_v19 }
 0x63f   : > { %v4267_v21 = vsel %vm531_vm2, %v4266_v20, %v4260_v27  ;;  %v11978_v27 = vld [vmem:[%s12887_s9 + $0x31] sm:$0xf]  ;;  %v11979_v20 = vld [vmem:[%s12887_s9 + $0x39] sm:$0xf] }
 0x641   : > { %v4264_v10 = vpop.permute.xlu1 %4263  ;;  %v4359_v11 = vpop.permute.xlu0 %4358 }
 0x642   : > { %v4268_v46 = vsel %vm533_vm3, %v4267_v21, %v4264_v10  ;;  %v11980_v21 = vld [vmem:[%s12887_s9 + $0x41] sm:$0xf]  ;;  %v11981_v10 = vld [vmem:[%s12887_s9 + $0x49] sm:$0xf] }
 0x643   : > { %12466 = vmatpush3.msk.msra.mxu0 %vm616_vm4, %v4268_v46 }
 0x644   : > { %12475 = vmatprep.subr.mxu0 %v15624_v5  ;;  %12468 = vmatmul.mubr.msk.f32.vlgmr.msra.gmra.mxu0 %vm612_vm5, %v11958_v43 }
 0x645   : > { %v4361_v47 = vpop.permute.xlu1 %4360  ;;  %v4363_v52 = vpop.permute.xlu0 %4362  ;;  %12477 = vmatprep.mubr.msk.f32.mxu0 %vm12808_vm0, %v15624_v5 }
 0x646   : > { %v4372_v7 = vcombine.low %v4359_v11, %v4363_v52 }
 0x648   : > { %v4379_v16 = vrot.slane %v4372_v7, %v12889_v9 }
 0x649   : > { %v4365_v18 = vpop.permute.xlu1 %4364  ;;  %v4367_v22 = vpop.permute.xlu0 %4366 }
 0x64a   : > { %v4380_v50 = vcombine.low %v4361_v47, %v4365_v18  ;;  %v4395_v0 = vrot.slane %v4367_v22, %v12889_v9 }
 0x64c   : > { %v4387_v31 = vrot.slane %v4380_v50, %v12889_v9  ;;  %v4412_v23 = vcombine.high %v4395_v0, %v15624_v5  ;;  %v4419_v33 = vrot.slane %v4395_v0, %v12898_v17 }
 0x64e   : > { %v4396_v29 = vcombine.low %v4379_v16, %v4387_v31  ;;  %v4397_v35 = vcombine.high %v4379_v16, %v4387_v31  ;;  %v4426_v26 = vrot.slane %v4412_v23, %v12898_v17 }
 0x650   : > { %v4411_v45 = vrot.slane %v4397_v35, %v12898_v17  ;;  %v4404_v48 = vrot.slane %v4396_v29, %v12898_v17  ;;  %v11966_v35 = vld [vmem:[%s15617_s1 + $0xf0] sm:$0x7f] }
 0x652   : > { %v4427_v8 = vcombine.low %v4404_v48, %v4419_v33  ;;  %v4428_v58 = vcombine.high %v4404_v48, %v4419_v33  ;;  %v4429_v60 = vcombine.low %v4411_v45, %v4426_v26  ;;  %v4430_v25 = vcombine.high %v4411_v45, %v4426_v26 }
 0x654   : > { %4432 = vrot.lane.b32.xlu1 %v4428_v58, %s12806_s12  ;;  %4436 = vrot.lane.b32.xlu0 %v4429_v60, %s12805_s11 }
 0x658   : > { %4440 = vrot.lane.b32.xlu1 %v4430_v25, %s12807_s13  ;;  %4535 = vrot.lane.b32.xlu0 %v11969_v2, %s12810_s20 }
 0x65c   : > { %4537 = vrot.lane.b32.xlu1 %v11970_v53, %s12810_s20  ;;  %4539 = vrot.lane.b32.xlu0 %v11971_v54, %s12810_s20 }
 0x660   : > { %4541 = vrot.lane.b32.xlu1 %v11972_v56, %s12810_s20  ;;  %4543 = vrot.lane.b32.xlu0 %v11973_v59, %s12810_s20  ;;  %v11985_v59 = vld [vmem:[%s12887_s9 + $0x28] sm:$0xf] }
 0x6c6   : > { %v4433_v34 = vpop.permute.xlu1 %4432  ;;  %v4437_v44 = vpop.permute.xlu0 %4436 }
 0x6c7   : > { %v4443_v55 = vsel %vm529_vm1, %v4427_v8, %v4433_v34 }
 0x6c8   : > { %v4444_v63 = vsel %vm531_vm2, %v4443_v55, %v4437_v44  ;;  %v11986_v44 = vld [vmem:[%s12887_s9 + $0x30] sm:$0xf]  ;;  %v11987_v55 = vld [vmem:[%s12887_s9 + $0x38] sm:$0xf] }
 0x6ca   : > { %v4441_v1 = vpop.permute.xlu1 %4440  ;;  %v4536_v32 = vpop.permute.xlu0 %4535 }
 0x6cb   : > { %v4445_v37 = vsel %vm533_vm3, %v4444_v63, %v4441_v1  ;;  %v11988_v63 = vld [vmem:[%s12887_s9 + $0x40] sm:$0xf]  ;;  %v11989_v1 = vld [vmem:[%s12887_s9 + $0x48] sm:$0xf] }
 0x6cc   : > { %12471 = vmatpush3.msk.msra.mxu1 %vm616_vm4, %v4445_v37 }
 0x6cd   : > { %12480 = vmatprep.subr.mxu1 %v15624_v5  ;;  %12473 = vmatmul.mubr.msk.f32.vlgmr.msra.gmra.mxu1 %vm612_vm5, %v11966_v35 }
 0x6ce   : > { %v4538_v15 = vpop.permute.xlu1 %4537  ;;  %v4540_v36 = vpop.permute.xlu0 %4539  ;;  %12482 = vmatprep.mubr.msk.f32.mxu1 %vm12808_vm0, %v15624_v5 }
 0x6cf   : > { %v4549_v12 = vcombine.low %v4536_v32, %v4540_v36 }
 0x6d1   : > { %v4556_v38 = vrot.slane %v4549_v12, %v12889_v9 }
 0x6d2   : > { %v4542_v13 = vpop.permute.xlu1 %4541  ;;  %v4544_v24 = vpop.permute.xlu0 %4543 }
 0x6d3   : > { %v4557_v30 = vcombine.low %v4538_v15, %v4542_v13  ;;  %v4572_v41 = vrot.slane %v4544_v24, %v12889_v9 }
 0x6d5   : > { %v4564_v39 = vrot.slane %v4557_v30, %v12889_v9  ;;  %v4589_v14 = vcombine.high %v4572_v41, %v15624_v5  ;;  %v4596_v42 = vrot.slane %v4572_v41, %v12898_v17 }
 0x6d7   : > { %v4573_v28 = vcombine.low %v4556_v38, %v4564_v39  ;;  %v4574_v40 = vcombine.high %v4556_v38, %v4564_v39  ;;  %v4603_v49 = vrot.slane %v4589_v14, %v12898_v17 }
 0x6d9   : > { %v4588_v61 = vrot.slane %v4574_v40, %v12898_v17  ;;  %v4581_v62 = vrot.slane %v4573_v28, %v12898_v17  ;;  %v11974_v40 = vld [vmem:[%s15617_s1 + $0x120] sm:$0x7f] }
 0x6db   : > { %v4604_v3 = vcombine.low %v4581_v62, %v4596_v42  ;;  %v4605_v4 = vcombine.high %v4581_v62, %v4596_v42  ;;  %v4606_v51 = vcombine.low %v4588_v61, %v4603_v49  ;;  %v4607_v19 = vcombine.high %v4588_v61, %v4603_v49 }
 0x6dd   : > { %4609 = vrot.lane.b32.xlu1 %v4605_v4, %s12806_s12  ;;  %4613 = vrot.lane.b32.xlu0 %v4606_v51, %s12805_s11 }
 0x6e1   : > { %4617 = vrot.lane.b32.xlu1 %v4607_v19, %s12807_s13  ;;  %4712 = vrot.lane.b32.xlu0 %v11977_v57, %s12804_s10 }
 0x6e5   : > { %4714 = vrot.lane.b32.xlu1 %v11978_v27, %s12804_s10  ;;  %4716 = vrot.lane.b32.xlu0 %v11979_v20, %s12804_s10 }
 0x6e9   : > { %4718 = vrot.lane.b32.xlu1 %v11980_v21, %s12804_s10  ;;  %4720 = vrot.lane.b32.xlu0 %v11981_v10, %s12804_s10  ;;  %v11993_v10 = vld [vmem:[%s12887_s9 + $0x28] sm:$0xf] }
 0x74f   : > { %v4610_v11 = vpop.permute.xlu1 %4609  ;;  %v4614_v46 = vpop.permute.xlu0 %4613 }
 0x750   : > { %v4620_v47 = vsel %vm529_vm1, %v4604_v3, %v4610_v11 }
 0x751   : > { %v4621_v52 = vsel %vm531_vm2, %v4620_v47, %v4614_v46  ;;  %v11994_v46 = vld [vmem:[%s12887_s9 + $0x30] sm:$0xf]  ;;  %v11995_v47 = vld [vmem:[%s12887_s9 + $0x38] sm:$0xf] }
 0x753   : > { %v4618_v7 = vpop.permute.xlu1 %4617  ;;  %v4713_v18 = vpop.permute.xlu0 %4712 }
 0x754   : > { %v4622_v22 = vsel %vm533_vm3, %v4621_v52, %v4618_v7  ;;  %v11996_v52 = vld [vmem:[%s12887_s9 + $0x40] sm:$0xf]  ;;  %v11997_v7 = vld [vmem:[%s12887_s9 + $0x48] sm:$0xf] }
 0x755   : > { %12476 = vmatpush3.msk.msra.mxu0 %vm616_vm4, %v4622_v22 }
 0x756   : > { %12485 = vmatprep.subr.mxu0 %v15624_v5  ;;  %12478 = vmatmul.mubr.msk.f32.vlgmr.msra.gmra.mxu0 %vm612_vm5, %v11974_v40 }
 0x757   : > { %v4715_v50 = vpop.permute.xlu1 %4714  ;;  %v4717_v0 = vpop.permute.xlu0 %4716  ;;  %12487 = vmatprep.mubr.msk.f32.mxu0 %vm12808_vm0, %v15624_v5 }
 0x758   : > { %v4726_v6 = vcombine.low %v4713_v18, %v4717_v0 }
 0x75a   : > { %v4733_v33 = vrot.slane %v4726_v6, %v12889_v9 }
 0x75b   : > { %v4719_v16 = vpop.permute.xlu1 %4718  ;;  %v4721_v31 = vpop.permute.xlu0 %4720 }
 0x75c   : > { %v4734_v23 = vcombine.low %v4715_v50, %v4719_v16  ;;  %v4749_v29 = vrot.slane %v4721_v31, %v12889_v9 }
 0x75e   : > { %v4741_v26 = vrot.slane %v4734_v23, %v12889_v9  ;;  %v4766_v45 = vcombine.high %v4749_v29, %v15624_v5  ;;  %v4773_v58 = vrot.slane %v4749_v29, %v12898_v17 }
 0x760   : > { %v4750_v48 = vcombine.low %v4733_v33, %v4741_v26  ;;  %v4751_v8 = vcombine.high %v4733_v33, %v4741_v26  ;;  %v4780_v60 = vrot.slane %v4766_v45, %v12898_v17 }
 0x762   : > { %v4765_v2 = vrot.slane %v4751_v8, %v12898_v17  ;;  %v4758_v25 = vrot.slane %v4750_v48, %v12898_v17  ;;  %v11982_v8 = vld [vmem:[%s15617_s1 + $0x130] sm:$0x7f] }
 0x764   : > { %v4781_v53 = vcombine.low %v4758_v25, %v4773_v58  ;;  %v4782_v54 = vcombine.high %v4758_v25, %v4773_v58  ;;  %v4783_v56 = vcombine.low %v4765_v2, %v4780_v60  ;;  %v4784_v34 = vcombine.high %v4765_v2, %v4780_v60 }
 0x766   : > { %4786 = vrot.lane.b32.xlu1 %v4782_v54, %s12806_s12  ;;  %4790 = vrot.lane.b32.xlu0 %v4783_v56, %s12805_s11 }
 0x76a   : > { %4794 = vrot.lane.b32.xlu1 %v4784_v34, %s12807_s13  ;;  %4889 = vrot.lane.b32.xlu0 %v11985_v59, %s12810_s20 }
 0x76e   : > { %4891 = vrot.lane.b32.xlu1 %v11986_v44, %s12810_s20  ;;  %4893 = vrot.lane.b32.xlu0 %v11987_v55, %s12810_s20 }
 0x772   : > { %4895 = vrot.lane.b32.xlu1 %v11988_v63, %s12810_s20  ;;  %4897 = vrot.lane.b32.xlu0 %v11989_v1, %s12810_s20  ;;  %v5233_v1 = vld [vmem:[%s12887_s9 + $0x1] sm:$0xf] }
 0x7d8   : > { %v4787_v32 = vpop.permute.xlu1 %4786  ;;  %v4791_v37 = vpop.permute.xlu0 %4790 }
 0x7d9   : > { %v4797_v15 = vsel %vm529_vm1, %v4781_v53, %v4787_v32 }
 0x7da   : > { %v4798_v36 = vsel %vm531_vm2, %v4797_v15, %v4791_v37  ;;  %v5234_v37 = vld [vmem:[%s12887_s9 + $0x9] sm:$0xf]  ;;  %v5235_v15 = vld [vmem:[%s12887_s9 + $0x11] sm:$0xf] }
 0x7dc   : > { %v4795_v12 = vpop.permute.xlu1 %4794  ;;  %v4890_v13 = vpop.permute.xlu0 %4889 }
 0x7dd   : > { %v4799_v24 = vsel %vm533_vm3, %v4798_v36, %v4795_v12  ;;  %v5236_v36 = vld [vmem:[%s12887_s9 + $0x19] sm:$0xf]  ;;  %v5237_v12 = vld [vmem:[%s12887_s9 + $0x21] sm:$0xf] }
 0x7de   : > { %12481 = vmatpush3.msk.msra.mxu1 %vm616_vm4, %v4799_v24 }
 0x7df   : > { %12490 = vmatprep.subr.mxu1 %v15624_v5  ;;  %12483 = vmatmul.mubr.msk.f32.vlgmr.msra.gmra.mxu1 %vm612_vm5, %v11982_v8 }
 0x7e0   : > { %v4892_v30 = vpop.permute.xlu1 %4891  ;;  %v4894_v41 = vpop.permute.xlu0 %4893  ;;  %12492 = vmatprep.mubr.msk.f32.mxu1 %vm12808_vm0, %v15624_v5 }
 0x7e1   : > { %v4903_v43 = vcombine.low %v4890_v13, %v4894_v41 }
 0x7e3   : > { %v4910_v42 = vrot.slane %v4903_v43, %v12889_v9 }
 0x7e4   : > { %v4896_v38 = vpop.permute.xlu1 %4895  ;;  %v4898_v39 = vpop.permute.xlu0 %4897 }
 0x7e5   : > { %v4911_v14 = vcombine.low %v4892_v30, %v4896_v38  ;;  %v4926_v28 = vrot.slane %v4898_v39, %v12889_v9 }
 0x7e7   : > { %v4918_v49 = vrot.slane %v4911_v14, %v12889_v9  ;;  %v4943_v61 = vcombine.high %v4926_v28, %v15624_v5  ;;  %v4950_v4 = vrot.slane %v4926_v28, %v12898_v17 }
 0x7e9   : > { %v4927_v62 = vcombine.low %v4910_v42, %v4918_v49  ;;  %v4928_v3 = vcombine.high %v4910_v42, %v4918_v49  ;;  %v4957_v51 = vrot.slane %v4943_v61, %v12898_v17 }
 0x7eb   : > { %v4942_v57 = vrot.slane %v4928_v3, %v12898_v17  ;;  %v4935_v19 = vrot.slane %v4927_v62, %v12898_v17  ;;  %v11990_v3 = vld [vmem:[%s15617_s1 + $0x160] sm:$0x7f] }
 0x7ed   : > { %v4958_v27 = vcombine.low %v4935_v19, %v4950_v4  ;;  %v4959_v20 = vcombine.high %v4935_v19, %v4950_v4  ;;  %v4960_v21 = vcombine.low %v4942_v57, %v4957_v51  ;;  %v4961_v11 = vcombine.high %v4942_v57, %v4957_v51 }
 0x7ef   : > { %4963 = vrot.lane.b32.xlu1 %v4959_v20, %s12806_s12  ;;  %4967 = vrot.lane.b32.xlu0 %v4960_v21, %s12805_s11 }
 0x7f3   : > { %4971 = vrot.lane.b32.xlu1 %v4961_v11, %s12807_s13  ;;  %5066 = vrot.lane.b32.xlu0 %v11993_v10, %s12804_s10 }
 0x7f7   : > { %5068 = vrot.lane.b32.xlu1 %v11994_v46, %s12804_s10  ;;  %5070 = vrot.lane.b32.xlu0 %v11995_v47, %s12804_s10 }
 0x7fb   : > { %5072 = vrot.lane.b32.xlu1 %v11996_v52, %s12804_s10  ;;  %5074 = vrot.lane.b32.xlu0 %v11997_v7, %s12804_s10  ;;  %v5410_v7 = vld [vmem:[%s12887_s9 + $0x1] sm:$0xf] }
 0x861   : > { %v4964_v18 = vpop.permute.xlu1 %4963  ;;  %v4968_v22 = vpop.permute.xlu0 %4967 }
 0x862   : > { %v4974_v50 = vsel %vm529_vm1, %v4958_v27, %v4964_v18 }
 0x863   : > { %v4975_v0 = vsel %vm531_vm2, %v4974_v50, %v4968_v22  ;;  %v5411_v22 = vld [vmem:[%s12887_s9 + $0x9] sm:$0xf]  ;;  %v5412_v50 = vld [vmem:[%s12887_s9 + $0x11] sm:$0xf] }
 0x865   : > { %v4972_v6 = vpop.permute.xlu1 %4971  ;;  %v5067_v16 = vpop.permute.xlu0 %5066 }
 0x866   : > { %v4976_v31 = vsel %vm533_vm3, %v4975_v0, %v4972_v6  ;;  %v5413_v0 = vld [vmem:[%s12887_s9 + $0x19] sm:$0xf]  ;;  %v5414_v6 = vld [vmem:[%s12887_s9 + $0x21] sm:$0xf] }
 0x867   : > { %12486 = vmatpush3.msk.msra.mxu0 %vm616_vm4, %v4976_v31 }
 0x868   : > { %12495 = vmatprep.subr.mxu0 %v15624_v5  ;;  %12488 = vmatmul.mubr.msk.f32.vlgmr.msra.gmra.mxu0 %vm612_vm5, %v11990_v3 }
 0x869   : > { %v5069_v23 = vpop.permute.xlu1 %5068  ;;  %v5071_v29 = vpop.permute.xlu0 %5070  ;;  %12497 = vmatprep.mubr.msk.f32.mxu0 %vm12808_vm0, %v15624_v5 }
 0x86a   : > { %v5080_v35 = vcombine.low %v5067_v16, %v5071_v29 }
 0x86c   : > { %v5087_v58 = vrot.slane %v5080_v35, %v12889_v9 }
 0x86d   : > { %v5073_v33 = vpop.permute.xlu1 %5072  ;;  %v5075_v26 = vpop.permute.xlu0 %5074 }
 0x86e   : > { %v5088_v45 = vcombine.low %v5069_v23, %v5073_v33  ;;  %v5103_v48 = vrot.slane %v5075_v26, %v12889_v9 }
 0x870   : > { %v5095_v60 = vrot.slane %v5088_v45, %v12889_v9  ;;  %v5120_v2 = vcombine.high %v5103_v48, %v15624_v5  ;;  %v5127_v54 = vrot.slane %v5103_v48, %v12898_v17 }
 0x872   : > { %v5104_v25 = vcombine.low %v5087_v58, %v5095_v60  ;;  %v5105_v53 = vcombine.high %v5087_v58, %v5095_v60  ;;  %v5134_v56 = vrot.slane %v5120_v2, %v12898_v17 }
 0x874   : > { %v5119_v59 = vrot.slane %v5105_v53, %v12898_v17  ;;  %v5112_v34 = vrot.slane %v5104_v25, %v12898_v17  ;;  %v11998_v53 = vld [vmem:[%s15617_s1 + $0x170] sm:$0x7f] }
 0x876   : > { %v5135_v44 = vcombine.low %v5112_v34, %v5127_v54  ;;  %v5136_v55 = vcombine.high %v5112_v34, %v5127_v54  ;;  %v5137_v63 = vcombine.low %v5119_v59, %v5134_v56  ;;  %v5138_v32 = vcombine.high %v5119_v59, %v5134_v56 }
 0x878   : > { %5140 = vrot.lane.b32.xlu1 %v5136_v55, %s12806_s12  ;;  %5144 = vrot.lane.b32.xlu0 %v5137_v63, %s12805_s11 }
 0x87c   : > { %5148 = vrot.lane.b32.xlu1 %v5138_v32, %s12807_s13  ;;  %5243 = vrot.lane.b32.xlu0 %v5233_v1, %s12810_s20 }
 0x880   : > { %5245 = vrot.lane.b32.xlu1 %v5234_v37, %s12810_s20  ;;  %5247 = vrot.lane.b32.xlu0 %v5235_v15, %s12810_s20 }
 0x884   : > { %5249 = vrot.lane.b32.xlu1 %v5236_v36, %s12810_s20  ;;  %5251 = vrot.lane.b32.xlu0 %v5237_v12, %s12810_s20  ;;  %v5587_v12 = vld [vmem:[%s12887_s9] sm:$0xf] }
 0x8ea   : > { %v5141_v13 = vpop.permute.xlu1 %5140  ;;  %v5145_v24 = vpop.permute.xlu0 %5144 }
 0x8eb   : > { %v5151_v30 = vsel %vm529_vm1, %v5135_v44, %v5141_v13 }
 0x8ec   : > { %v5152_v41 = vsel %vm531_vm2, %v5151_v30, %v5145_v24  ;;  %v5588_v24 = vld [vmem:[%s12887_s9 + $0x8] sm:$0xf]  ;;  %v5589_v30 = vld [vmem:[%s12887_s9 + $0x10] sm:$0xf] }
 0x8ee   : > { %v5149_v43 = vpop.permute.xlu1 %5148  ;;  %v5244_v38 = vpop.permute.xlu0 %5243 }
 0x8ef   : > { %v5153_v39 = vsel %vm533_vm3, %v5152_v41, %v5149_v43  ;;  %v5590_v41 = vld [vmem:[%s12887_s9 + $0x18] sm:$0xf]  ;;  %v5591_v43 = vld [vmem:[%s12887_s9 + $0x20] sm:$0xf] }
 0x8f0   : > { %12491 = vmatpush3.msk.msra.mxu1 %vm616_vm4, %v5153_v39 }
 0x8f1   : > { %12500 = vmatprep.subr.mxu1 %v15624_v5  ;;  %12493 = vmatmul.mubr.msk.f32.vlgmr.msra.gmra.mxu1 %vm612_vm5, %v11998_v53 }
 0x8f2   : > { %v5246_v14 = vpop.permute.xlu1 %5245  ;;  %v5248_v28 = vpop.permute.xlu0 %5247  ;;  %12502 = vmatprep.mubr.msk.f32.mxu1 %vm12808_vm0, %v15624_v5 }
 0x8f3   : > { %v5257_v40 = vcombine.low %v5244_v38, %v5248_v28 }
 0x8f5   : > { %v5264_v4 = vrot.slane %v5257_v40, %v12889_v9 }
 0x8f6   : > { %v5250_v42 = vpop.permute.xlu1 %5249  ;;  %v5252_v49 = vpop.permute.xlu0 %5251 }
 0x8f7   : > { %v5265_v61 = vcombine.low %v5246_v14, %v5250_v42  ;;  %v5280_v62 = vrot.slane %v5252_v49, %v12889_v9 }
 0x8f9   : > { %v5272_v51 = vrot.slane %v5265_v61, %v12889_v9  ;;  %v5297_v57 = vcombine.high %v5280_v62, %v15624_v5  ;;  %v5304_v20 = vrot.slane %v5280_v62, %v12898_v17 }
 0x8fb   : > { %v5281_v19 = vcombine.low %v5264_v4, %v5272_v51  ;;  %v5282_v27 = vcombine.high %v5264_v4, %v5272_v51  ;;  %v5311_v21 = vrot.slane %v5297_v57, %v12898_v17 }
 0x8fd   : > { %v5296_v10 = vrot.slane %v5282_v27, %v12898_v17  ;;  %v5289_v11 = vrot.slane %v5281_v19, %v12898_v17  ;;  %v12001_v27 = vld [vmem:[%s15617_s1 + $0x1a0] sm:$0x7f] }
 0x8ff   : > { %v5312_v46 = vcombine.low %v5289_v11, %v5304_v20  ;;  %v5313_v47 = vcombine.high %v5289_v11, %v5304_v20  ;;  %v5314_v52 = vcombine.low %v5296_v10, %v5311_v21  ;;  %v5315_v18 = vcombine.high %v5296_v10, %v5311_v21 }
 0x901   : > { %5317 = vrot.lane.b32.xlu1 %v5313_v47, %s12806_s12  ;;  %5321 = vrot.lane.b32.xlu0 %v5314_v52, %s12805_s11 }
 0x905   : > { %5325 = vrot.lane.b32.xlu1 %v5315_v18, %s12807_s13  ;;  %5420 = vrot.lane.b32.xlu0 %v5410_v7, %s12804_s10 }
 0x909   : > { %5422 = vrot.lane.b32.xlu1 %v5411_v22, %s12804_s10  ;;  %5424 = vrot.lane.b32.xlu0 %v5412_v50, %s12804_s10 }
 0x90d   : > { %5426 = vrot.lane.b32.xlu1 %v5413_v0, %s12804_s10  ;;  %5428 = vrot.lane.b32.xlu0 %v5414_v6, %s12804_s10  ;;  %v5764_v6 = vld [vmem:[%s12887_s9] sm:$0xf] }
 0x973   : > { %v5318_v16 = vpop.permute.xlu1 %5317  ;;  %v5322_v31 = vpop.permute.xlu0 %5321 }
 0x974   : > { %v5328_v23 = vsel %vm529_vm1, %v5312_v46, %v5318_v16 }
 0x975   : > { %v5329_v29 = vsel %vm531_vm2, %v5328_v23, %v5322_v31  ;;  %v5765_v31 = vld [vmem:[%s12887_s9 + $0x8] sm:$0xf]  ;;  %v5766_v23 = vld [vmem:[%s12887_s9 + $0x10] sm:$0xf] }
 0x977   : > { %v5326_v35 = vpop.permute.xlu1 %5325  ;;  %v5421_v33 = vpop.permute.xlu0 %5420 }
 0x978   : > { %v5330_v26 = vsel %vm533_vm3, %v5329_v29, %v5326_v35  ;;  %v5767_v29 = vld [vmem:[%s12887_s9 + $0x18] sm:$0xf]  ;;  %v5768_v35 = vld [vmem:[%s12887_s9 + $0x20] sm:$0xf] }
 0x979   : > { %12496 = vmatpush3.msk.msra.mxu0 %vm616_vm4, %v5330_v26 }
 0x97a   : > { %12505 = vmatprep.subr.mxu0 %v15624_v5  ;;  %12498 = vmatmul.mubr.msk.f32.vlgmr.msra.gmra.mxu0 %vm612_vm5, %v12001_v27 }
 0x97b   : > { %v5423_v45 = vpop.permute.xlu1 %5422  ;;  %v5425_v48 = vpop.permute.xlu0 %5424  ;;  %12507 = vmatprep.mubr.msk.f32.mxu0 %vm12808_vm0, %v15624_v5 }
 0x97c   : > { %v5434_v8 = vcombine.low %v5421_v33, %v5425_v48 }
 0x97e   : > { %v5441_v54 = vrot.slane %v5434_v8, %v12889_v9 }
 0x97f   : > { %v5427_v58 = vpop.permute.xlu1 %5426  ;;  %v5429_v60 = vpop.permute.xlu0 %5428 }
 0x980   : > { %v5442_v2 = vcombine.low %v5423_v45, %v5427_v58  ;;  %v5457_v25 = vrot.slane %v5429_v60, %v12889_v9 }
 0x982   : > { %v5449_v56 = vrot.slane %v5442_v2, %v12889_v9  ;;  %v5474_v59 = vcombine.high %v5457_v25, %v15624_v5  ;;  %v5481_v55 = vrot.slane %v5457_v25, %v12898_v17 }
 0x984   : > { %v5458_v34 = vcombine.low %v5441_v54, %v5449_v56  ;;  %v5459_v44 = vcombine.high %v5441_v54, %v5449_v56  ;;  %v5488_v63 = vrot.slane %v5474_v59, %v12898_v17  ;;  %v12004_v54 = vld [vmem:[%s15617_s1 + $0x1b0] sm:$0x7f] }
 0x986   : > { %v5473_v1 = vrot.slane %v5459_v44, %v12898_v17  ;;  %v5466_v32 = vrot.slane %v5458_v34, %v12898_v17 }
 0x988   : > { %v5489_v37 = vcombine.low %v5466_v32, %v5481_v55  ;;  %v5490_v15 = vcombine.high %v5466_v32, %v5481_v55  ;;  %v5491_v36 = vcombine.low %v5473_v1, %v5488_v63  ;;  %v5492_v13 = vcombine.high %v5473_v1, %v5488_v63  ;;  %v12007_v55 = vld [vmem:[%s15617_s1 + $0x1e0] sm:$0x7f] }
 0x98a   : > { %5494 = vrot.lane.b32.xlu1 %v5490_v15, %s12806_s12  ;;  %5498 = vrot.lane.b32.xlu0 %v5491_v36, %s12805_s11 }
 0x98e   : > { %5502 = vrot.lane.b32.xlu1 %v5492_v13, %s12807_s13  ;;  %5597 = vrot.lane.b32.xlu0 %v5587_v12, %s12810_s20 }
 0x992   : > { %5599 = vrot.lane.b32.xlu1 %v5588_v24, %s12810_s20  ;;  %5601 = vrot.lane.b32.xlu0 %v5589_v30, %s12810_s20 }
 0x996   : > { %5603 = vrot.lane.b32.xlu1 %v5590_v41, %s12810_s20  ;;  %5605 = vrot.lane.b32.xlu0 %v5591_v43, %s12810_s20 }
 0x9fc   : > { %v5495_v38 = vpop.permute.xlu1 %5494  ;;  %v5499_v39 = vpop.permute.xlu0 %5498 }
 0x9fd   : > { %v5505_v14 = vsel %vm529_vm1, %v5489_v37, %v5495_v38  ;;  %v5941_v38 = vld [vmem:[%s15618_s2] sm:$0x7f] }
 0x9fe   : > { %v5506_v28 = vsel %vm531_vm2, %v5505_v14, %v5499_v39  ;;  %v12013_v14 = vld [vmem:[%s12887_s9 + $0x7a] sm:$0xf] }
 0xa00   : > { %v5503_v40 = vpop.permute.xlu1 %5502  ;;  %v5598_v42 = vpop.permute.xlu0 %5597 }
 0xa01   : > { %v5507_v49 = vsel %vm533_vm3, %v5506_v28, %v5503_v40  ;;  %v12014_v28 = vld [vmem:[%s12887_s9 + $0x82] sm:$0xf]  ;;  %v12015_v40 = vld [vmem:[%s12887_s9 + $0x8a] sm:$0xf] }
 0xa02   : > { %12501 = vmatpush3.msk.msra.mxu1 %vm616_vm4, %v5507_v49  ;;  %v12017_v49 = vld [vmem:[%s12887_s9 + $0x9a] sm:$0xf] }
 0xa03   : > { %12510 = vmatprep.subr.mxu1 %v15624_v5  ;;  %12503 = vmatmul.mubr.msk.f32.vlgmr.msra.gmra.mxu1 %vm612_vm5, %v12004_v54 }
 0xa04   : > { %v5600_v61 = vpop.permute.xlu1 %5599  ;;  %v5602_v62 = vpop.permute.xlu0 %5601  ;;  %12512 = vmatprep.mubr.msk.f32.mxu1 %vm12808_vm0, %v15624_v5 }
 0xa05   : > { %v5611_v3 = vcombine.low %v5598_v42, %v5602_v62  ;;  %v12016_v42 = vld [vmem:[%s12887_s9 + $0x92] sm:$0xf] }
 0xa07   : > { %v5618_v20 = vrot.slane %v5611_v3, %v12889_v9 }
 0xa08   : > { %v5604_v4 = vpop.permute.xlu1 %5603  ;;  %v5606_v51 = vpop.permute.xlu0 %5605 }
 0xa09   : > { %v5619_v57 = vcombine.low %v5600_v61, %v5604_v4  ;;  %v5634_v19 = vrot.slane %v5606_v51, %v12889_v9 }
 0xa0b   : > { %v5626_v21 = vrot.slane %v5619_v57, %v12889_v9  ;;  %v5651_v10 = vcombine.high %v5634_v19, %v15624_v5  ;;  %v5658_v47 = vrot.slane %v5634_v19, %v12898_v17  ;;  %v12010_v57 = vld [vmem:[%s15617_s1 + $0x1f0] sm:$0x7f] }
 0xa0d   : > { %v5635_v11 = vcombine.low %v5618_v20, %v5626_v21  ;;  %v5636_v46 = vcombine.high %v5618_v20, %v5626_v21  ;;  %v5665_v52 = vrot.slane %v5651_v10, %v12898_v17  ;;  %v6049_v10 = vcombine.low %v12013_v14, %v12015_v40 }
 0xa0f   : > { %v5650_v7 = vrot.slane %v5636_v46, %v12898_v17  ;;  %v5643_v18 = vrot.slane %v5635_v11, %v12898_v17  ;;  %v6057_v11 = vcombine.low %v12014_v28, %v12016_v42 }
 0xa11   : > { %v5666_v22 = vcombine.low %v5643_v18, %v5658_v47  ;;  %v5667_v50 = vcombine.high %v5643_v18, %v5658_v47  ;;  %v5668_v0 = vcombine.low %v5650_v7, %v5665_v52  ;;  %v5669_v16 = vcombine.high %v5650_v7, %v5665_v52 }
 0xa12   : > { %v6056_v7 = vrot.slane %v6049_v10, %v12889_v9  ;;  %v6064_v18 = vrot.slane %v6057_v11, %v12889_v9 }
 0xa13   : > { %5671 = vrot.lane.b32.xlu1 %v5667_v50, %s12806_s12  ;;  %5675 = vrot.lane.b32.xlu0 %v5668_v0, %s12805_s11 }
 0xa17   : > { %5679 = vrot.lane.b32.xlu1 %v5669_v16, %s12807_s13  ;;  %5774 = vrot.lane.b32.xlu0 %v5764_v6, %s12804_s10  ;;  %v6071_v16 = vrot.slane %v12017_v49, %v12889_v9 }
 0xa1b   : > { %5776 = vrot.lane.b32.xlu1 %v5765_v31, %s12804_s10  ;;  %5778 = vrot.lane.b32.xlu0 %v5766_v23, %s12804_s10  ;;  %v6072_v31 = vcombine.low %v6056_v7, %v6064_v18 }
 0xa1f   : > { %5780 = vrot.lane.b32.xlu1 %v5767_v29, %s12804_s10  ;;  %5782 = vrot.lane.b32.xlu0 %v5768_v35, %s12804_s10 }
 0xa85   : > { %v5672_v33 = vpop.permute.xlu1 %5671  ;;  %v5676_v26 = vpop.permute.xlu0 %5675 }
 0xa86   : > { %v5682_v45 = vsel %vm529_vm1, %v5666_v22, %v5672_v33 }
 0xa87   : > { %v5683_v48 = vsel %vm531_vm2, %v5682_v45, %v5676_v26 }
 0xa89   : > { %v5680_v8 = vpop.permute.xlu1 %5679  ;;  %v5775_v58 = vpop.permute.xlu0 %5774 }
 0xa8a   : > { %v5684_v60 = vsel %vm533_vm3, %v5683_v48, %v5680_v8  ;;  %v6088_v48 = vcombine.high %v6071_v16, %v15624_v5  ;;  %v14065_v8 = vrot.slane %v6071_v16, %v12898_v17 }
 0xa8b   : > { %12506 = vmatpush3.msk.msra.mxu0 %vm616_vm4, %v5684_v60 }
 0xa8c   : > { %12515 = vmatprep.subr.mxu0 %v15624_v5  ;;  %12508 = vmatmul.mubr.msk.f32.vlgmr.msra.gmra.mxu0 %vm612_vm5, %v12007_v55 }
 0xa8d   : > { %v5777_v2 = vpop.permute.xlu1 %5776  ;;  %v5779_v25 = vpop.permute.xlu0 %5778  ;;  %12517 = vmatprep.mubr.msk.f32.mxu0 %vm12808_vm0, %v15624_v5 }
 0xa8e   : > { %v5788_v53 = vcombine.low %v5775_v58, %v5779_v25  ;;  %v6073_v58 = vcombine.high %v6056_v7, %v6064_v18  ;;  %v14072_v25 = vrot.slane %v6072_v31, %v12898_v17 }
 0xa90   : > { %v5795_v63 = vrot.slane %v5788_v53, %v12889_v9 }
 0xa91   : > { %v5781_v56 = vpop.permute.xlu1 %5780  ;;  %v5783_v59 = vpop.permute.xlu0 %5782 }
 0xa92   : > { %v5796_v34 = vcombine.low %v5777_v2, %v5781_v56  ;;  %v5811_v44 = vrot.slane %v5783_v59, %v12889_v9  ;;  %v6102_v59 = vrot.slane %v6088_v48, %v12898_v17 }
 0xa94   : > { %v5803_v1 = vrot.slane %v5796_v34, %v12889_v9  ;;  %v5828_v32 = vcombine.high %v5811_v44, %v15624_v5  ;;  %v5835_v24 = vrot.slane %v5811_v44, %v12898_v17  ;;  %v6104_v34 = vcombine.high %v14072_v25, %v14065_v8 }
 0xa95   : > { %v6087_v44 = vrot.slane %v6073_v58, %v12898_v17 }
 0xa96   : > { %v5812_v37 = vcombine.low %v5795_v63, %v5803_v1  ;;  %v5813_v15 = vcombine.high %v5795_v63, %v5803_v1  ;;  %v5842_v36 = vrot.slane %v5828_v32, %v12898_v17  ;;  %v12025_v32 = vld [vmem:[%s12887_s9 + $0x81] sm:$0xf] }
 0xa97   : > { %v6106_v63 = vcombine.high %v6087_v44, %v6102_v59  ;;  %v6105_v1 = vcombine.low %v6087_v44, %v6102_v59 }
 0xa98   : > { %v5827_v12 = vrot.slane %v5813_v15, %v12898_v17  ;;  %v5820_v13 = vrot.slane %v5812_v37, %v12898_v17  ;;  %v12024_v37 = vld [vmem:[%s12887_s9 + $0x79] sm:$0xf]  ;;  %v3383_v15 = vpop.f32.mrf.mxu0 }
 0xa9a   : > { %v5843_v30 = vcombine.low %v5820_v13, %v5835_v24  ;;  %v5844_v41 = vcombine.high %v5820_v13, %v5835_v24  ;;  %v5845_v43 = vcombine.low %v5827_v12, %v5842_v36  ;;  %v5846_v39 = vcombine.high %v5827_v12, %v5842_v36  ;;  %v3459_v36 = vpop.f32.mrf.mxu1  ;;  %v12439_v12 = vpop.f32.mrf.mxu0  ;;  %v12027_v24 = vld [vmem:[%s12887_s9 + $0x91] sm:$0xf] }
 0xa9b   : > { %v3460_v13 = vadd.f32 %v3459_v36, %v3383_v15  ;;  %v12747_v12 = vld [vmem:[%s12887_s9 + $0x79] ss:$16 sps:$4 sm:$0xff]  }
 0xa9c   : > { %5848 = vrot.lane.b32.xlu1 %v5844_v41, %s12806_s12  ;;  %5852 = vrot.lane.b32.xlu0 %v5845_v43, %s12805_s11  ;;  %v12444_v41 = vpop.f32.mrf.mxu1  ;;  %v3635_v43 = vpop.f32.mrf.mxu0 }
 0xa9d   : > { %v6464_v41 = vrot.slane %v12747_v12, %v12889_v9 }
 0xaa0   : > { %5856 = vrot.lane.b32.xlu1 %v5846_v39, %s12807_s13  ;;  %5944 = vperm.xlu0 %12727, %v5941_v38   ;;  %v3639_v38 = vadd.f32 %v3635_v43, %v3460_v13  ;;  %v3812_v39 = vpop.f32.mrf.mxu1  ;;  %v12748_v13 = vld [vmem:[%s12887_s9 + $0x81] ss:$16 sps:$4 sm:$0xff]  }
 0xaa1   : > { %v6472_v43 = vrot.slane %v12748_v13, %v12889_v9 }
 0xaa4   : > { %5959 = vrot.lane.b32.xlu1 %v12013_v14, %s12804_s10  ;;  %5961 = vrot.lane.b32.xlu0 %v12014_v28, %s12804_s10  ;;  %v12449_v14 = vpop.f32.mrf.mxu0  ;;  %v12028_v28 = vld [vmem:[%s12887_s9 + $0x99] sm:$0xf] }
 0xaa8   : > { %5963 = vrot.lane.b32.xlu1 %v12015_v40, %s12804_s10  ;;  %5965 = vrot.lane.b32.xlu0 %v12016_v42, %s12804_s10  ;;  %v3816_v40 = vadd.f32 %v3812_v39, %v3639_v38  ;;  %v12454_v42 = vpop.f32.mrf.mxu1 }
 0xaac   : > { %5967 = vrot.lane.b32.xlu1 %v12017_v49, %s12804_s10  ;;  %v3989_v49 = vpop.f32.mrf.mxu0 }
 0xb0e   : > { %v5849_v61 = vpop.permute.xlu1 %5848  ;;  %v5853_v3 = vpop.permute.xlu0 %5852 }
 0xb0f   : > { %v5859_v62 = vsel %vm529_vm1, %v5843_v30, %v5849_v61  ;;  %v12026_v30 = vld [vmem:[%s12887_s9 + $0x89] sm:$0xf]  ;;  %v3993_v61 = vadd.f32 %v3989_v49, %v3816_v40  ;;  %v12019_v40 = vld [vmem:[%s15617_s1 + $0x18] sm:$0x7f] }
 0xb10   : > { %v5860_v4 = vsel %vm531_vm2, %v5859_v62, %v5853_v3  ;;  %v4166_v62 = vpop.f32.mrf.mxu1  ;;  %v12459_v3 = vpop.f32.mrf.mxu0  ;;  %v12037_v49 = vld.sshfl [vmem:[%s12887_s9 + $0x99] sm:$0x33 pattern:$0x76325410] }
 0xb12   : > { %v5857_v51 = vpop.permute.xlu1 %5856 }
 0xb13   : > { %v5861_v19 = vsel %vm533_vm3, %v5860_v4, %v5857_v51  ;;  %v4170_v4 = vadd.f32 %v4166_v62, %v3993_v61  ;;  %v12464_v51 = vpop.f32.mrf.mxu1  ;;  %v6481_v61 = vcombine.low %v6464_v41, %v6472_v43 }
 0xb14   : > { %12511 = vmatpush3.msk.msra.mxu1 %vm616_vm4, %v5861_v19  ;;  %v6482_v51 = vcombine.high %v6464_v41, %v6472_v43 }
 0xb15   : > { %12513 = vmatmul.mubr.msk.f32.vlgmr.msra.gmra.mxu1 %vm612_vm5, %v12010_v57  ;;  %12520 = vmatprep.subr.mxu1 %v15624_v5  ;;  %v4343_v57 = vpop.f32.mrf.mxu0 }
 0xb16   : > { %v5960_v27 = vpop.permute.xlu1 %5959  ;;  %12522 = vmatprep.mubr.msk.f32.mxu1 %vm12808_vm0, %v15624_v5  ;;  %v4347_v19 = vadd.f32 %v4343_v57, %v4170_v4 }
 0xb1a   : > { %v5964_v20 = vpop.permute.xlu1 %5963 }
 0xb1b   : > { %v14050_v21 = vpop.permute.xlu0 %5944  ;;  %v5973_v22 = vcombine.low %v5960_v27, %v5964_v20  ;;  %v4520_v27 = vpop.f32.mrf.mxu1 }
 0xb1c   : > { %v12469_v20 = vpop.f32.mrf.mxu0  ;;  %v4524_v10 = vadd.f32 %v4520_v27, %v4347_v19 }
 0xb1d   : > { %v5980_v23 = vrot.slane %v5973_v22, %v12889_v9  ;;  %v12474_v11 = vpop.f32.mrf.mxu1  ;;  %v6497_v20 = vcombine.high %v12037_v49, %v15624_v5 }
 0xb1e   : > { %v5968_v46 = vpop.permute.xlu1 %5967  ;;  %v6504_v11 = vrot.slane %v12037_v49, %v12898_v17  ;;  %v12054_v49 = vld.sshfl [vmem:[%s12887_s9 + $0x72] sm:$0x33 pattern:$0x76325410] }
 0xb1f   : > { %v5962_v47 = vpop.permute.xlu0 %5961  ;;  %v5996_v52 = vrot.slane %v5968_v46, %v12889_v9  ;;  %v4697_v46 = vpop.f32.mrf.mxu0 }
 0xb21   : > { %v6013_v6 = vcombine.high %v5996_v52, %v15624_v5  ;;  %v14060_v26 = vrot.slane %v5996_v52, %v12898_v17  ;;  %v4874_v52 = vpop.f32.mrf.mxu1  ;;  %v12479_v7 = vpop.f32.mrf.mxu0 }
 0xb23   : > { %v5966_v50 = vpop.permute.xlu0 %5965  ;;  %v6027_v45 = vrot.slane %v6013_v6, %v12898_v17  ;;  %v12484_v22 = vpop.f32.mrf.mxu1 }
 0xb24   : > { %v5981_v0 = vcombine.low %v5962_v47, %v5966_v50  ;;  %v4701_v47 = vadd.f32 %v4697_v46, %v4524_v10  ;;  %v5051_v50 = vpop.f32.mrf.mxu0  ;;  %v6489_v10 = vrot.slane %v6481_v61, %v12898_v17  ;;  %v12029_v61 = vld [vmem:[%s15617_s1 + $0x48] sm:$0x7f] }
 0xb25   : > { %v5228_v6 = vpop.f32.mrf.mxu1 }
 0xb26   : > { %v5988_v29 = vrot.slane %v5981_v0, %v12889_v9  ;;  %v4878_v18 = vadd.f32 %v4874_v52, %v4701_v47  ;;  %v12489_v16 = vpop.f32.mrf.mxu0 }
 0xb27   : > { %v6513_v16 = vcombine.high %v6489_v10, %v6504_v11 }
 0xb28   : > { %v5997_v35 = vcombine.low %v5980_v23, %v5988_v29  ;;  %v5998_v33 = vcombine.high %v5980_v23, %v5988_v29  ;;  %v5055_v0 = vadd.f32 %v5051_v50, %v4878_v18  ;;  %v12494_v23 = vpop.f32.mrf.mxu1  ;;  %v5405_v29 = vpop.f32.mrf.mxu0  ;;  %v12018_v18 = vld [vmem:[%s15617_s1 + $0x8] sm:$0x7f]  ;;  %v6496_v50 = vrot.slane %v6482_v51, %v12898_v17 }
 0xb2a   : > { %v6012_v60 = vrot.slane %v5998_v33, %v12898_v17  ;;  %v14069_v2 = vrot.slane %v5997_v35, %v12898_v17  ;;  %v5232_v31 = vadd.f32 %v5228_v6, %v5055_v0  ;;  %v5582_v33 = vpop.f32.mrf.mxu1  ;;  %v6511_v0 = vrot.slane %v6497_v20, %v12898_v17 }
 0xb2c   : > { %v6028_v53 = vcombine.low %v14069_v2, %v14060_v26  ;;  %v6029_v54 = vcombine.high %v14069_v2, %v14060_v26  ;;  %v6030_v56 = vcombine.low %v6012_v60, %v6027_v45  ;;  %v6031_v55 = vcombine.high %v6012_v60, %v6027_v45  ;;  %v12499_v45 = vpop.f32.mrf.mxu0  ;;  %v12504_v58 = vpop.f32.mrf.mxu1 }
 0xb2d   : > { %v5409_v35 = vadd.f32 %v5405_v29, %v5232_v31  ;;  %v6514_v31 = vcombine.low %v6496_v50, %v6511_v0  ;;  %v6515_v23 = vcombine.high %v6496_v50, %v6511_v0  ;;  %v12041_v29 = vld [vmem:[%s12887_s9 + $0x52] sm:$0xf]  ;;  %v12044_v45 = vld [vmem:[%s12887_s9 + $0x6a] sm:$0xf] }
 0xb2e   : > { %6037 = vrot.lane.b32.xlu1 %v6030_v56, %s12805_s11  ;;  %6033 = vrot.lane.b32.xlu0 %v6029_v54, %s12806_s12 }
 0xb2f   : > { %v5586_v48 = vadd.f32 %v5582_v33, %v5409_v35  ;;  %v12042_v35 = vld [vmem:[%s12887_s9 + $0x5a] sm:$0xf]  ;;  %v12043_v33 = vld [vmem:[%s12887_s9 + $0x62] sm:$0xf] }
 0xb32   : > { %6108 = vrot.lane.b32.xlu1 %v6104_v34, %s12806_s12  ;;  %6041 = vrot.lane.b32.xlu0 %v6031_v55, %s12807_s13  ;;  %v6103_v55 = vcombine.low %v14072_v25, %v14065_v8 }
 0xb36   : > { %6116 = vrot.lane.b32.xlu1 %v6106_v63, %s12807_s13  ;;  %6112 = vrot.lane.b32.xlu0 %v6105_v1, %s12805_s11 }
 0xb3a   : > { %6288 = vrot.lane.b32.xlu1 %v12025_v32, %s12804_s10  ;;  %6286 = vrot.lane.b32.xlu0 %v12024_v37, %s12804_s10 }
 0xb3e   : > { %6292 = vrot.lane.b32.xlu1 %v12027_v24, %s12804_s10  ;;  %6290 = vrot.lane.b32.xlu0 %v12026_v30, %s12804_s10 }
 0xb42   : > { %6294 = vrot.lane.b32.xlu0 %v12028_v28, %s12804_s10 }
 0xb4c   : > { %v5759_v60 = vpop.f32.mrf.mxu0 }
 0xb4d   : > { %v14098_v54 = vadd.f32 %v5759_v60, %v5586_v48  ;;  %v12045_v48 = vld [vmem:[%s12887_s9 + $0x72] sm:$0xf] }
 0xb4e   : > { %v12509_v56 = vpop.f32.mrf.mxu0 }
 0xba0   : > { %v6038_v59 = vpop.permute.xlu1 %6037  ;;  %v6034_v34 = vpop.permute.xlu0 %6033 }
 0xba1   : > { %v6044_v44 = vsel %vm529_vm1, %v6028_v53, %v6034_v34 }
 0xba2   : > { %v6045_v32 = vsel %vm531_vm2, %v6044_v44, %v6038_v59 }
 0xba4   : > { %v6109_v63 = vpop.permute.xlu1 %6108  ;;  %v6042_v1 = vpop.permute.xlu0 %6041 }
 0xba5   : > { %v6046_v37 = vsel %vm533_vm3, %v6045_v32, %v6042_v1  ;;  %v6119_v15 = vsel %vm529_vm1, %v6103_v55, %v6109_v63  ;;  %v6512_v1 = vcombine.low %v6489_v10, %v6504_v11 }
 0xba6   : > { %12521 = vmatpush3.msk.msra.mxu1 %vm616_vm4, %v6046_v37 }
 0xba7   : > { %12530 = vmatprep.subr.mxu1 %v15624_v5  ;;  %12523 = vmatmul.mubr.msk.f32.vlgmr.msra.gmra.mxu1 %vm612_vm5, %v12018_v18 }
 0xba8   : > { %v6117_v26 = vpop.permute.xlu1 %6116  ;;  %v6113_v2 = vpop.permute.xlu0 %6112  ;;  %12532 = vmatprep.mubr.msk.f32.mxu1 %vm12808_vm0, %v15624_v5 }
 0xba9   : > { %v6120_v53 = vsel %vm531_vm2, %v6119_v15, %v6113_v2 }
 0xbaa   : > { %v6121_v36 = vsel %vm533_vm3, %v6120_v53, %v6117_v26 }
 0xbab   : > { %12516 = vmatpush3.msk.msra.mxu0 %vm616_vm4, %v6121_v36 }
 0xbac   : > { %v6289_v8 = vpop.permute.xlu1 %6288  ;;  %v6287_v25 = vpop.permute.xlu0 %6286  ;;  %12525 = vmatprep.subr.mxu0 %v15624_v5  ;;  %12518 = vmatmul.mubr.msk.f32.vlgmr.msra.gmra.mxu0 %vm612_vm5, %v12019_v40 }
 0xbad   : > { %12527 = vmatprep.mubr.msk.f32.mxu0 %vm12808_vm0, %v15624_v5 }
 0xbb0   : > { %v6293_v24 = vpop.permute.xlu1 %6292  ;;  %v6291_v30 = vpop.permute.xlu0 %6290 }
 0xbb1   : > { %v6308_v38 = vcombine.low %v6289_v8, %v6293_v24  ;;  %v6300_v39 = vcombine.low %v6287_v25, %v6291_v30  ;;  %v12749_v8 = vld [vmem:[%s12887_s9 + $0x52] ss:$16 sps:$4 sm:$0xff]   ;;  %v12750_v25 = vld [vmem:[%s12887_s9 + $0x5a] ss:$16 sps:$4 sm:$0xff]  }
 0xbb2   : > { %v6798_v24 = vrot.slane %v12749_v8, %v12889_v9  ;;  %v6806_v30 = vrot.slane %v12750_v25, %v12889_v9  ;;  %v12123_v8 = vld [vmem:[%s12887_s9 + $0x7a] sm:$0xf]  ;;  %v12126_v25 = vld [vmem:[%s12887_s9 + $0x92] sm:$0xf] }
 0xbb3   : > { %v6315_v14 = vrot.slane %v6308_v38, %v12889_v9  ;;  %v6307_v28 = vrot.slane %v6300_v39, %v12889_v9 }
 0xbb4   : > { %v6295_v42 = vpop.permute.xlu0 %6294 }
 0xbb5   : > { %v6324_v62 = vcombine.low %v6307_v28, %v6315_v14  ;;  %v6325_v3 = vcombine.high %v6307_v28, %v6315_v14  ;;  %v6323_v4 = vrot.slane %v6295_v42, %v12889_v9  ;;  %v6815_v14 = vcombine.low %v6798_v24, %v6806_v30 }
 0xbb7   : > { %v6332_v57 = vrot.slane %v6324_v62, %v12898_v17  ;;  %v6340_v19 = vcombine.high %v6323_v4, %v15624_v5  ;;  %v6347_v27 = vrot.slane %v6323_v4, %v12898_v17  ;;  %v6339_v46 = vrot.slane %v6325_v3, %v12898_v17 }
 0xbb9   : > { %v6354_v47 = vrot.slane %v6340_v19, %v12898_v17  ;;  %v6355_v52 = vcombine.low %v6332_v57, %v6347_v27  ;;  %v6356_v7 = vcombine.high %v6332_v57, %v6347_v27  ;;  %v14197_v57 = vrot.slane %v6815_v14, %v12898_v17  ;;  %v12144_v14 = vld [vmem:[%s12887_s9 + $0x91] sm:$0xf] }
 0xbba   : > { %v14200_v19 = vrot.slane %v12054_v49, %v12898_v17  ;;  %v6816_v27 = vcombine.high %v6798_v24, %v6806_v30  ;;  %v12127_v24 = vld [vmem:[%s12887_s9 + $0x9a] sm:$0xf]  ;;  %v12135_v30 = vld [vmem:[%s12887_s9 + $0x89] sm:$0xf] }
 0xbbb   : > { %6360 = vrot.lane.b32.xlu1 %v6356_v7, %s12806_s12  ;;  %v6357_v22 = vcombine.low %v6339_v46, %v6354_v47  ;;  %v6358_v6 = vcombine.high %v6339_v46, %v6354_v47  ;;  %15655 = vst [vmem:[#allocation2_spill] sm:$0xff] %v14197_v57  ;;  %v6831_v46 = vcombine.high %v12054_v49, %v15624_v5  ;;  %v12151_v49 = vld [vmem:[%s12887_s9 + $0x62] sm:$0xf] }
 0xbbc   : > { %15656 = vst [vmem:[#allocation3_spill] sm:$0xff] %v14200_v19  ;;  %v6847_v18 = vcombine.high %v14197_v57, %v14200_v19 }
 0xbbd   : > { %6364 = vrot.lane.b32.xlu0 %v6357_v22, %s12805_s11  ;;  %v14217_v22 = vrot.slane %v6816_v27, %v12898_v17  ;;  %v14220_v50 = vrot.slane %v6831_v46, %v12898_v17  ;;  %v12157_v27 = vld [vmem:[%s12887_s9 + $0x52] sm:$0xf] }
 0xbbe   : > { %v12165_v46 = vld [vmem:[%s12887_s9 + $0x51] sm:$0xf] }
 0xbbf   : > { %6368 = vrot.lane.b32.xlu1 %v6358_v6, %s12807_s13  ;;  %v6848_v6 = vcombine.low %v14217_v22, %v14220_v50 }
 0xbc1   : > { %6517 = vrot.lane.b32.xlu0 %v6513_v16, %s12806_s12  ;;  %v12058_v16 = vld [vmem:[%s12887_s9 + $0x51] sm:$0xf] }
 0xbc3   : > { %6521 = vrot.lane.b32.xlu1 %v6514_v31, %s12805_s11  ;;  %v12060_v31 = vld [vmem:[%s12887_s9 + $0x61] sm:$0xf] }
 0xbc5   : > { %6525 = vrot.lane.b32.xlu0 %v6515_v23, %s12807_s13  ;;  %v12059_v23 = vld [vmem:[%s12887_s9 + $0x59] sm:$0xf] }
 0xbc7   : > { %6620 = vrot.lane.b32.xlu1 %v12041_v29, %s12804_s10  ;;  %v12062_v29 = vld [vmem:[%s12887_s9 + $0x71] sm:$0xf] }
 0xbc9   : > { %6622 = vrot.lane.b32.xlu0 %v12042_v35, %s12804_s10  ;;  %v12061_v35 = vld [vmem:[%s12887_s9 + $0x69] sm:$0xf] }
 0xbcb   : > { %6624 = vrot.lane.b32.xlu1 %v12043_v33, %s12804_s10  ;;  %v12076_v33 = vld [vmem:[%s12887_s9 + $0x32] sm:$0xf] }
 0xbcd   : > { %6626 = vrot.lane.b32.xlu0 %v12044_v45, %s12804_s10  ;;  %v12075_v45 = vld [vmem:[%s12887_s9 + $0x2a] sm:$0xf] }
 0xbcf   : > { %6628 = vrot.lane.b32.xlu1 %v12045_v48, %s12804_s10  ;;  %v12078_v48 = vld [vmem:[%s12887_s9 + $0x42] sm:$0xf] }
 0xbd5   : > { %v5936_v58 = vpop.f32.mrf.mxu1 }
 0xbd6   : > { %v5940_v60 = vadd.f32 %v5936_v58, %v14098_v54  ;;  %v12077_v58 = vld [vmem:[%s12887_s9 + $0x3a] sm:$0xf] }
 0xbd7   : > { %v12514_v56 = vpop.f32.mrf.mxu1 }
 0xbd8   : > { %v5947_v59 = vadd.f32 %v14050_v21, %v5940_v60  ;;  %v12092_v60 = vld [vmem:[%s12887_s9 + $0x29] sm:$0xf] }
 0xbd9   : > { %v12079_v56 = vld [vmem:[%s12887_s9 + $0x4a] sm:$0xf] }
 0xbda   : > { %5948 = vst.msk [vmem:[%s406_s29] sm:$0x7f] %vm3119_vm6, %v5947_v59  ;;  %v12094_v59 = vld [vmem:[%s12887_s9 + $0x39] sm:$0xf] }
 0xc2d   : > { %v6361_v34 = vpop.permute.xlu1 %6360 }
 0xc2e   : > { %v6371_v44 = vsel %vm529_vm1, %v6355_v52, %v6361_v34  ;;  %v12093_v34 = vld [vmem:[%s12887_s9 + $0x31] sm:$0xf] }
 0xc2f   : > { %v6365_v55 = vpop.permute.xlu0 %6364 }
 0xc30   : > { %v6372_v63 = vsel %vm531_vm2, %v6371_v44, %v6365_v55  ;;  %v12096_v44 = vld [vmem:[%s12887_s9 + $0x49] sm:$0xf]  ;;  %v12095_v55 = vld [vmem:[%s12887_s9 + $0x41] sm:$0xf] }
 0xc31   : > { %v6369_v32 = vpop.permute.xlu1 %6368 }
 0xc32   : > { %v6373_v54 = vsel %vm533_vm3, %v6372_v63, %v6369_v32  ;;  %v7947_v63 = vld [vmem:[%s12887_s9 + $0xa] sm:$0xf]  ;;  %v7949_v32 = vld [vmem:[%s12887_s9 + $0x1a] sm:$0xf] }
 0xc33   : > { %v6518_v37 = vpop.permute.xlu0 %6517  ;;  %12526 = vmatpush3.msk.msra.mxu0 %vm616_vm4, %v6373_v54  ;;  %v7948_v54 = vld [vmem:[%s12887_s9 + $0x12] sm:$0xf] }
 0xc34   : > { %v6528_v15 = vsel %vm529_vm1, %v6512_v1, %v6518_v37  ;;  %12535 = vmatprep.subr.mxu0 %v15624_v5  ;;  %12528 = vmatmul.mubr.msk.f32.vlgmr.msra.gmra.mxu0 %vm612_vm5, %v12029_v61  ;;  %v7946_v1 = vld [vmem:[%s12887_s9 + $0x2] sm:$0xf]  ;;  %v12150_v61 = vld [vmem:[%s12887_s9 + $0x5a] sm:$0xf] }
 0xc35   : > { %v6522_v21 = vpop.permute.xlu1 %6521  ;;  %12537 = vmatprep.mubr.msk.f32.mxu0 %vm12808_vm0, %v15624_v5  ;;  %v8280_v37 = vld [vmem:[%s12887_s9 + $0x1] sm:$0xf] }
 0xc36   : > { %v6529_v26 = vsel %vm531_vm2, %v6528_v15, %v6522_v21  ;;  %v7950_v15 = vld [vmem:[%s12887_s9 + $0x22] sm:$0xf]  ;;  %v8282_v21 = vld [vmem:[%s12887_s9 + $0x11] sm:$0xf] }
 0xc37   : > { %v6526_v2 = vpop.permute.xlu0 %6525 }
 0xc38   : > { %v6530_v53 = vsel %vm533_vm3, %v6529_v26, %v6526_v2  ;;  %v8281_v26 = vld [vmem:[%s12887_s9 + $0x9] sm:$0xf]  ;;  %v8284_v2 = vld [vmem:[%s12887_s9 + $0x21] sm:$0xf] }
 0xc39   : > { %v6621_v36 = vpop.permute.xlu1 %6620  ;;  %12531 = vmatpush3.msk.msra.mxu1 %vm616_vm4, %v6530_v53  ;;  %v8283_v53 = vld [vmem:[%s12887_s9 + $0x19] sm:$0xf] }
 0xc3a   : > { %12540 = vmatprep.subr.mxu1 %v15624_v5 }
 0xc3b   : > { %v6623_v12 = vpop.permute.xlu0 %6622 }
 0xc3d   : > { %v6625_v13 = vpop.permute.xlu1 %6624 }
 0xc3e   : > { %v6634_v41 = vcombine.low %v6621_v36, %v6625_v13  ;;  %v12124_v36 = vld [vmem:[%s12887_s9 + $0x82] sm:$0xf]  ;;  %v12133_v13 = vld [vmem:[%s12887_s9 + $0x79] sm:$0xf] }
 0xc3f   : > { %v6627_v43 = vpop.permute.xlu0 %6626 }
 0xc40   : > { %v6642_v38 = vcombine.low %v6623_v12, %v6627_v43  ;;  %v6641_v28 = vrot.slane %v6634_v41, %v12889_v9  ;;  %v12125_v12 = vld [vmem:[%s12887_s9 + $0x8a] sm:$0xf]  ;;  %v12134_v41 = vld [vmem:[%s12887_s9 + $0x81] sm:$0xf]  ;;  %v12136_v43 = vld [vmem:[%s12887_s9 + $0x91] sm:$0xf] }
 0xc41   : > { %v6629_v39 = vpop.permute.xlu1 %6628 }
 0xc42   : > { %v6649_v40 = vrot.slane %v6642_v38, %v12889_v9  ;;  %v6657_v42 = vrot.slane %v6629_v39, %v12889_v9  ;;  %v12142_v38 = vld [vmem:[%s12887_s9 + $0x81] sm:$0xf]  ;;  %v12141_v39 = vld [vmem:[%s12887_s9 + $0x79] sm:$0xf] }
 0xc44   : > { %v6658_v62 = vcombine.low %v6641_v28, %v6649_v40  ;;  %v6659_v3 = vcombine.high %v6641_v28, %v6649_v40  ;;  %v6674_v4 = vcombine.high %v6657_v42, %v15624_v5  ;;  %v14192_v51 = vrot.slane %v6657_v42, %v12898_v17  ;;  %v12143_v28 = vld [vmem:[%s12887_s9 + $0x89] sm:$0xf]  ;;  %v12149_v40 = vld [vmem:[%s12887_s9 + $0x52] sm:$0xf]  ;;  %v12137_v42 = vld [vmem:[%s12887_s9 + $0x99] sm:$0xf] }
 0xc46   : > { %v6673_v20 = vrot.slane %v6659_v3, %v12898_v17  ;;  %v14204_v10 = vrot.slane %v6658_v62, %v12898_v17  ;;  %v6688_v11 = vrot.slane %v6674_v4, %v12898_v17  ;;  %v12145_v62 = vld [vmem:[%s12887_s9 + $0x99] sm:$0xf]  ;;  %v12152_v3 = vld [vmem:[%s12887_s9 + $0x6a] sm:$0xf] }
 0xc47   : > { %v12158_v4 = vld [vmem:[%s12887_s9 + $0x5a] sm:$0xf] }
 0xc48   : > { %v6689_v47 = vcombine.low %v14204_v10, %v14192_v51  ;;  %v6690_v52 = vcombine.high %v14204_v10, %v14192_v51  ;;  %v6691_v7 = vcombine.low %v6673_v20, %v6688_v11  ;;  %v6692_v0 = vcombine.high %v6673_v20, %v6688_v11  ;;  %v12160_v20 = vld [vmem:[%s12887_s9 + $0x6a] sm:$0xf]  ;;  %v12159_v11 = vld [vmem:[%s12887_s9 + $0x62] sm:$0xf]  ;;  %v12161_v51 = vld [vmem:[%s12887_s9 + $0x72] sm:$0xf] }
 0xc49   : > { %v12168_v10 = vld [vmem:[%s12887_s9 + $0x69] sm:$0xf] }
 0xc4a   : > { %6698 = vrot.lane.b32.xlu1 %v6691_v7, %s12805_s11  ;;  %6694 = vrot.lane.b32.xlu0 %v6690_v52, %s12806_s12  ;;  %v12153_v52 = vld [vmem:[%s12887_s9 + $0x72] sm:$0xf] }
 0xc4e   : > { %6851 = vrot.lane.b32.xlu1 %v6847_v18, %s12806_s12  ;;  %6702 = vrot.lane.b32.xlu0 %v6692_v0, %s12807_s13 }
 0xc52   : > { %6954 = vrot.lane.b32.xlu1 %v12058_v16, %s12804_s10  ;;  %6855 = vrot.lane.b32.xlu0 %v6848_v6, %s12805_s11  ;;  %v12167_v6 = vld [vmem:[%s12887_s9 + $0x61] sm:$0xf]  ;;  %v12166_v16 = vld [vmem:[%s12887_s9 + $0x59] sm:$0xf] }
 0xc56   : > { %6958 = vrot.lane.b32.xlu1 %v12060_v31, %s12804_s10  ;;  %6956 = vrot.lane.b32.xlu0 %v12059_v23, %s12804_s10 }
 0xc5a   : > { %6962 = vrot.lane.b32.xlu1 %v12062_v29, %s12804_s10  ;;  %6960 = vrot.lane.b32.xlu0 %v12061_v35, %s12804_s10 }
 0xc5e   : > { %7290 = vrot.lane.b32.xlu1 %v12076_v33, %s12804_s10  ;;  %7288 = vrot.lane.b32.xlu0 %v12075_v45, %s12804_s10  ;;  %v12174_v45 = vld [vmem:[%s12887_s9 + $0x59] sm:$0xf] }
 0xc62   : > { %7294 = vrot.lane.b32.xlu1 %v12078_v48, %s12804_s10  ;;  %7292 = vrot.lane.b32.xlu0 %v12077_v58, %s12804_s10  ;;  %v12173_v48 = vld [vmem:[%s12887_s9 + $0x51] sm:$0xf] }
 0xc66   : > { %7622 = vrot.lane.b32.xlu1 %v12092_v60, %s12804_s10  ;;  %7296 = vrot.lane.b32.xlu0 %v12079_v56, %s12804_s10 }
 0xc6a   : > { %7626 = vrot.lane.b32.xlu1 %v12094_v59, %s12804_s10  ;;  %7624 = vrot.lane.b32.xlu0 %v12093_v34, %s12804_s10  ;;  %v12176_v59 = vld [vmem:[%s12887_s9 + $0x69] sm:$0xf]  ;;  %v12175_v34 = vld [vmem:[%s12887_s9 + $0x61] sm:$0xf] }
 0xc6e   : > { %7630 = vrot.lane.b32.xlu1 %v12096_v44, %s12804_s10  ;;  %7628 = vrot.lane.b32.xlu0 %v12095_v55, %s12804_s10 }
 0xc72   : > { %7958 = vrot.lane.b32.xlu1 %v7947_v63, %s12804_s10  ;;  %7956 = vrot.lane.b32.xlu0 %v7946_v1, %s12804_s10 }
 0xc76   : > { %7962 = vrot.lane.b32.xlu1 %v7949_v32, %s12804_s10  ;;  %7960 = vrot.lane.b32.xlu0 %v7948_v54, %s12804_s10 }
 0xc7a   : > { %8290 = vrot.lane.b32.xlu1 %v8280_v37, %s12804_s10  ;;  %7964 = vrot.lane.b32.xlu0 %v7950_v15, %s12804_s10  ;;  %v12181_v37 = vld [vmem:[%s12887_s9 + $0x2a] sm:$0xf]  ;;  %v12169_v15 = vld [vmem:[%s12887_s9 + $0x71] sm:$0xf] }
 0xc7e   : > { %8294 = vrot.lane.b32.xlu1 %v8282_v21, %s12804_s10  ;;  %8292 = vrot.lane.b32.xlu0 %v8281_v26, %s12804_s10 }
 0xc82   : > { %8298 = vrot.lane.b32.xlu1 %v8284_v2, %s12804_s10  ;;  %8296 = vrot.lane.b32.xlu0 %v8283_v53, %s12804_s10 }
 0xc86   : > { %8723 = vrot.lane.b32.xlu1 %v12124_v36, %s12804_s10  ;;  %8721 = vrot.lane.b32.xlu0 %v12123_v8, %s12804_s10 }
 0xc8a   : > { %8727 = vrot.lane.b32.xlu1 %v12126_v25, %s12804_s10  ;;  %8725 = vrot.lane.b32.xlu0 %v12125_v12, %s12804_s10 }
 0xc8e   : > { %8634 = vrot.lane.b32.xlu1 %v12124_v36, %s12810_s20  ;;  %8632 = vrot.lane.b32.xlu0 %v12123_v8, %s12810_s20  ;;  %v12183_v8 = vld [vmem:[%s12887_s9 + $0x3a] sm:$0xf] }
 0xc92   : > { %8638 = vrot.lane.b32.xlu1 %v12126_v25, %s12810_s20  ;;  %8636 = vrot.lane.b32.xlu0 %v12125_v12, %s12810_s20  ;;  %v12182_v25 = vld [vmem:[%s12887_s9 + $0x32] sm:$0xf] }
 0xc96   : > { %8973 = vrot.lane.b32.xlu1 %v12133_v13, %s12810_s20  ;;  %8729 = vrot.lane.b32.xlu0 %v12127_v24, %s12804_s10 }
 0xc9a   : > { %8977 = vrot.lane.b32.xlu1 %v12135_v30, %s12810_s20  ;;  %8975 = vrot.lane.b32.xlu0 %v12134_v41, %s12810_s20 }
 0xc9e   : > { %8640 = vrot.lane.b32.xlu1 %v12127_v24, %s12810_s20  ;;  %8979 = vrot.lane.b32.xlu0 %v12136_v43, %s12810_s20 }
 0xca2   : > { %9152 = vrot.lane.b32.xlu1 %v12142_v38, %s12804_s10  ;;  %9150 = vrot.lane.b32.xlu0 %v12141_v39, %s12804_s10  ;;  %v12177_v39 = vld [vmem:[%s12887_s9 + $0x71] sm:$0xf] }
 0xca6   : > { %9156 = vrot.lane.b32.xlu1 %v12144_v14, %s12804_s10  ;;  %9154 = vrot.lane.b32.xlu0 %v12143_v28, %s12804_s10  ;;  %v12184_v14 = vld [vmem:[%s12887_s9 + $0x42] sm:$0xf] }
 0xcaa   : > { %9327 = vrot.lane.b32.xlu1 %v12149_v40, %s12810_s20  ;;  %8981 = vrot.lane.b32.xlu0 %v12137_v42, %s12810_s20 }
 0xcae   : > { %9331 = vrot.lane.b32.xlu1 %v12151_v49, %s12810_s20  ;;  %9329 = vrot.lane.b32.xlu0 %v12150_v61, %s12810_s20 }
 0xcb2   : > { %9158 = vrot.lane.b32.xlu1 %v12145_v62, %s12804_s10  ;;  %9333 = vrot.lane.b32.xlu0 %v12152_v3, %s12810_s20  ;;  %v12190_v3 = vld [vmem:[%s12887_s9 + $0x32] sm:$0xf] }
 0xcb6   : > { %9506 = vrot.lane.b32.xlu1 %v12158_v4, %s12804_s10  ;;  %9504 = vrot.lane.b32.xlu0 %v12157_v27, %s12804_s10  ;;  %v12189_v4 = vld [vmem:[%s12887_s9 + $0x2a] sm:$0xf] }
 0xcba   : > { %9510 = vrot.lane.b32.xlu1 %v12160_v20, %s12804_s10  ;;  %9508 = vrot.lane.b32.xlu0 %v12159_v11, %s12804_s10 }
 0xcbc   : > { %v6699_v7 = vpop.permute.xlu1 %6698  ;;  %v6695_v18 = vpop.permute.xlu0 %6694 }
 0xcbd   : > { %v6705_v0 = vsel %vm529_vm1, %v6689_v47, %v6695_v18 }
 0xcbe   : > { %9681 = vrot.lane.b32.xlu1 %v12165_v46, %s12810_s20  ;;  %9335 = vrot.lane.b32.xlu0 %v12153_v52, %s12810_s20  ;;  %v6706_v29 = vsel %vm531_vm2, %v6705_v0, %v6699_v7  ;;  %v12192_v52 = vld [vmem:[%s12887_s9 + $0x42] sm:$0xf]  ;;  %v12191_v7 = vld [vmem:[%s12887_s9 + $0x3a] sm:$0xf] }
 0xcc0   : > { %v14338_v31 = vpop.permute.xlu1 %6851  ;;  %v6703_v23 = vpop.permute.xlu0 %6702 }
 0xcc1   : > { %15657 = vst [vmem:[#allocation4_spill] sm:$0xff] %v14338_v31  ;;  %v6707_v35 = vsel %vm533_vm3, %v6706_v29, %v6703_v23 }
 0xcc2   : > { %9685 = vrot.lane.b32.xlu1 %v12167_v6, %s12810_s20  ;;  %9683 = vrot.lane.b32.xlu0 %v12166_v16, %s12810_s20 }
 0xcc3   : > { %12536 = vmatpush3.msk.msra.mxu0 %vm616_vm4, %v6707_v35  ;;  %v12197_v35 = vld [vmem:[%s12887_s9 + $0x29] sm:$0xf] }
 0xcc4   : > { %v6955_v47 = vpop.permute.xlu1 %6954  ;;  %v14347_v33 = vpop.permute.xlu0 %6855  ;;  %12545 = vmatprep.subr.mxu0 %v15624_v5 }
 0xcc5   : > { %15658 = vst [vmem:[#allocation5_spill] sm:$0xff] %v14347_v33 }
 0xcc6   : > { %9512 = vrot.lane.b32.xlu1 %v12161_v51, %s12804_s10  ;;  %9687 = vrot.lane.b32.xlu0 %v12168_v10, %s12810_s20  ;;  %v12185_v51 = vld [vmem:[%s12887_s9 + $0x4a] sm:$0xf] }
 0xcc8   : > { %v6959_v58 = vpop.permute.xlu1 %6958  ;;  %v6957_v60 = vpop.permute.xlu0 %6956 }
 0xcc9   : > { %v6968_v56 = vcombine.low %v6955_v47, %v6959_v58 }
 0xcca   : > { %9860 = vrot.lane.b32.xlu1 %v12174_v45, %s12804_s10  ;;  %9858 = vrot.lane.b32.xlu0 %v12173_v48, %s12804_s10 }
 0xccb   : > { %v14364_v32 = vrot.slane %v6968_v56, %v12889_v9  ;;  %v12198_v56 = vld [vmem:[%s12887_s9 + $0x31] sm:$0xf] }
 0xccc   : > { %v6963_v44 = vpop.permute.xlu1 %6962  ;;  %v6961_v55 = vpop.permute.xlu0 %6960 }
 0xccd   : > { %v6976_v63 = vcombine.low %v6957_v60, %v6961_v55  ;;  %v14359_v1 = vrot.slane %v6963_v44, %v12889_v9  ;;  %v12199_v60 = vld [vmem:[%s12887_s9 + $0x39] sm:$0xf] }
 0xcce   : > { %9864 = vrot.lane.b32.xlu1 %v12176_v59, %s12804_s10  ;;  %9862 = vrot.lane.b32.xlu0 %v12175_v34, %s12804_s10 }
 0xccf   : > { %v14367_v54 = vrot.slane %v6976_v63, %v12889_v9  ;;  %v14375_v53 = vrot.slane %v14359_v1, %v12898_v17 }
 0xcd0   : > { %v7291_v21 = vpop.permute.xlu1 %7290  ;;  %v7289_v26 = vpop.permute.xlu0 %7288 }
 0xcd1   : > { %v6992_v2 = vcombine.low %v14364_v32, %v14367_v54  ;;  %15659 = vst [vmem:[#allocation6_spill] sm:$0xff] %v14375_v53 }
 0xcd2   : > { %10035 = vrot.lane.b32.xlu1 %v12181_v37, %s12810_s20  ;;  %9689 = vrot.lane.b32.xlu0 %v12169_v15, %s12810_s20 }
 0xcd3   : > { %v14380_v36 = vrot.slane %v6992_v2, %v12898_v17 }
 0xcd4   : > { %v7295_v12 = vpop.permute.xlu1 %7294  ;;  %v7293_v13 = vpop.permute.xlu0 %7292 }
 0xcd5   : > { %15660 = vst [vmem:[#allocation7_spill] sm:$0xff] %v14380_v36  ;;  %v7310_v24 = vcombine.low %v7291_v21, %v7295_v12  ;;  %v7302_v30 = vcombine.low %v7289_v26, %v7293_v13  ;;  %v12193_v21 = vld [vmem:[%s12887_s9 + $0x4a] sm:$0xf]  ;;  %v12200_v26 = vld [vmem:[%s12887_s9 + $0x41] sm:$0xf] }
 0xcd6   : > { %10039 = vrot.lane.b32.xlu1 %v12183_v8, %s12810_s20  ;;  %10037 = vrot.lane.b32.xlu0 %v12182_v25, %s12810_s20 }
 0xcd7   : > { %v14389_v43 = vrot.slane %v7310_v24, %v12889_v9  ;;  %v14392_v38 = vrot.slane %v7302_v30, %v12889_v9  ;;  %v12206_v30 = vld [vmem:[%s12887_s9 + $0x31] sm:$0xf] }
 0xcd8   : > { %v7623_v28 = vpop.permute.xlu1 %7622  ;;  %v7297_v40 = vpop.permute.xlu0 %7296 }
 0xcd9   : > { %v7326_v42 = vcombine.low %v14392_v38, %v14389_v43  ;;  %v14399_v49 = vrot.slane %v7297_v40, %v12889_v9 }
 0xcda   : > { %9866 = vrot.lane.b32.xlu1 %v12177_v39, %s12804_s10  ;;  %10041 = vrot.lane.b32.xlu0 %v12184_v14, %s12810_s20  ;;  %v12205_v39 = vld [vmem:[%s12887_s9 + $0x29] sm:$0xf] }
 0xcdb   : > { %v14404_v61 = vrot.slane %v7326_v42, %v12898_v17  ;;  %v14408_v62 = vrot.slane %v14399_v49, %v12898_v17 }
 0xcdc   : > { %v7627_v27 = vpop.permute.xlu1 %7626  ;;  %v7625_v20 = vpop.permute.xlu0 %7624 }
 0xcdd   : > { %15661 = vst [vmem:[#allocation8_spill] sm:$0xff] %v14404_v61  ;;  %15662 = vst [vmem:[#allocation9_spill] sm:$0xff] %v14408_v62  ;;  %v7636_v46 = vcombine.low %v7623_v28, %v7627_v27 }
 0xcde   : > { %10214 = vrot.lane.b32.xlu1 %v12190_v3, %s12804_s10  ;;  %10212 = vrot.lane.b32.xlu0 %v12189_v4, %s12804_s10  ;;  %v12208_v3 = vld [vmem:[%s12887_s9 + $0x41] sm:$0xf]  ;;  %v12207_v4 = vld [vmem:[%s12887_s9 + $0x39] sm:$0xf] }
 0xcdf   : > { %v14424_v23 = vrot.slane %v7636_v46, %v12889_v9 }
 0xce0   : > { %v7631_v18 = vpop.permute.xlu1 %7630  ;;  %v7629_v0 = vpop.permute.xlu0 %7628 }
 0xce1   : > { %v7644_v6 = vcombine.low %v7625_v20, %v7629_v0  ;;  %v14419_v16 = vrot.slane %v7631_v18, %v12889_v9  ;;  %v10733_v0 = vld [vmem:[%s12887_s9 + $0x2] sm:$0xf] }
 0xce2   : > { %10218 = vrot.lane.b32.xlu1 %v12192_v52, %s12804_s10  ;;  %10216 = vrot.lane.b32.xlu0 %v12191_v7, %s12804_s10 }
 0xce3   : > { %v14427_v29 = vrot.slane %v7644_v6, %v12889_v9  ;;  %v14435_v48 = vrot.slane %v14419_v16, %v12898_v17  ;;  %v12201_v6 = vld [vmem:[%s12887_s9 + $0x49] sm:$0xf] }
 0xce4   : > { %v7959_v10 = vpop.permute.xlu1 %7958  ;;  %v7957_v47 = vpop.permute.xlu0 %7956 }
 0xce5   : > { %v7660_v45 = vcombine.low %v14424_v23, %v14427_v29  ;;  %15663 = vst [vmem:[#allocation10_spill] sm:$0xff] %v14435_v48 }
 0xce6   : > { %10389 = vrot.lane.b32.xlu1 %v12197_v35, %s12810_s20  ;;  %10043 = vrot.lane.b32.xlu0 %v12185_v51, %s12810_s20 }
 0xce7   : > { %v14440_v58 = vrot.slane %v7660_v45, %v12898_v17 }
 0xce8   : > { %v7963_v59 = vpop.permute.xlu1 %7962  ;;  %v7961_v34 = vpop.permute.xlu0 %7960 }
 0xce9   : > { %15664 = vst [vmem:[#allocation11_spill] sm:$0xff] %v14440_v58  ;;  %v7978_v44 = vcombine.low %v7959_v10, %v7963_v59  ;;  %v7970_v55 = vcombine.low %v7957_v47, %v7961_v34 }
 0xcea   : > { %10393 = vrot.lane.b32.xlu1 %v12199_v60, %s12810_s20  ;;  %10391 = vrot.lane.b32.xlu0 %v12198_v56, %s12810_s20  ;;  %v10735_v60 = vld [vmem:[%s12887_s9 + $0x12] sm:$0xf]  ;;  %v10734_v56 = vld [vmem:[%s12887_s9 + $0xa] sm:$0xf] }
 0xceb   : > { %v14449_v37 = vrot.slane %v7978_v44, %v12889_v9  ;;  %v14452_v15 = vrot.slane %v7970_v55, %v12889_v9  ;;  %v11267_v44 = vld [vmem:[%s12887_s9 + $0x19] sm:$0xf] }
 0xcec   : > { %v8291_v2 = vpop.permute.xlu1 %8290  ;;  %v7965_v8 = vpop.permute.xlu0 %7964 }
 0xced   : > { %v7994_v25 = vcombine.low %v14452_v15, %v14449_v37  ;;  %v14459_v12 = vrot.slane %v7965_v8, %v12889_v9 }
 0xcee   : > { %10220 = vrot.lane.b32.xlu1 %v12193_v21, %s12804_s10  ;;  %10395 = vrot.lane.b32.xlu0 %v12200_v26, %s12810_s20  ;;  %v12209_v26 = vld [vmem:[%s12887_s9 + $0x49] sm:$0xf] }
 0xcef   : > { %v14464_v13 = vrot.slane %v7994_v25, %v12898_v17  ;;  %v14468_v24 = vrot.slane %v14459_v12, %v12898_v17 }
 0xcf0   : > { %v8295_v14 = vpop.permute.xlu1 %8294  ;;  %v8293_v28 = vpop.permute.xlu0 %8292 }
 0xcf1   : > { %15665 = vst [vmem:[#allocation12_spill] sm:$0xff] %v14464_v13  ;;  %15666 = vst [vmem:[#allocation13_spill] sm:$0xff] %v14468_v24  ;;  %v8304_v42 = vcombine.low %v8291_v2, %v8295_v14  ;;  %v10736_v2 = vld [vmem:[%s12887_s9 + $0x1a] sm:$0xf]  ;;  %v10911_v14 = vld [vmem:[%s12887_s9 + $0xa] sm:$0xf] }
 0xcf2   : > { %10568 = vrot.lane.b32.xlu1 %v12206_v30, %s12804_s10  ;;  %10566 = vrot.lane.b32.xlu0 %v12205_v39, %s12804_s10 }
 0xcf3   : > { %v14484_v7 = vrot.slane %v8304_v42, %v12889_v9 }
 0xcf4   : > { %v8299_v27 = vpop.permute.xlu1 %8298  ;;  %v8297_v20 = vpop.permute.xlu0 %8296 }
 0xcf5   : > { %v8312_v46 = vcombine.low %v8293_v28, %v8297_v20  ;;  %v14479_v52 = vrot.slane %v8299_v27, %v12889_v9  ;;  %v10910_v28 = vld [vmem:[%s12887_s9 + $0x2] sm:$0xf] }
 0xcf6   : > { %10572 = vrot.lane.b32.xlu1 %v12208_v3, %s12804_s10  ;;  %10570 = vrot.lane.b32.xlu0 %v12207_v4, %s12804_s10 }
 0xcf7   : > { %v14487_v18 = vrot.slane %v8312_v46, %v12889_v9  ;;  %v14495_v47 = vrot.slane %v14479_v52, %v12898_v17  ;;  %v10913_v46 = vld [vmem:[%s12887_s9 + $0x1a] sm:$0xf] }
 0xcf8   : > { %v8724_v35 = vpop.permute.xlu1 %8723  ;;  %v8722_v51 = vpop.permute.xlu0 %8721 }
 0xcf9   : > { %v8328_v10 = vcombine.low %v14484_v7, %v14487_v18  ;;  %15667 = vst [vmem:[#allocation14_spill] sm:$0xff] %v14495_v47 }
 0xcfa   : > { %10743 = vrot.lane.b32.xlu1 %v10733_v0, %s12810_s20  ;;  %10397 = vrot.lane.b32.xlu0 %v12201_v6, %s12810_s20  ;;  %v10912_v0 = vld [vmem:[%s12887_s9 + $0x12] sm:$0xf] }
 0xcfb   : > { %v14500_v45 = vrot.slane %v8328_v10, %v12898_v17 }
 0xcfc   : > { %v8728_v59 = vpop.permute.xlu1 %8727  ;;  %v8726_v34 = vpop.permute.xlu0 %8725 }
 0xcfd   : > { %v8743_v55 = vcombine.low %v8724_v35, %v8728_v59  ;;  %v8735_v21 = vcombine.low %v8722_v51, %v8726_v34  ;;  %v11087_v34 = vld [vmem:[%s12887_s9 + $0x1] sm:$0xf] }
 0xcfe   : > { %10747 = vrot.lane.b32.xlu1 %v10735_v60, %s12810_s20  ;;  %10745 = vrot.lane.b32.xlu0 %v10734_v56, %s12810_s20 }
 0xcff   : > { %v14513_v30 = vrot.slane %v8743_v55, %v12889_v9  ;;  %v14516_v39 = vrot.slane %v8735_v21, %v12889_v9  ;;  %v10737_v55 = vld [vmem:[%s12887_s9 + $0x22] sm:$0xf] }
 0xd00   : > { %v8635_v8 = vpop.permute.xlu1 %8634  ;;  %v8633_v25 = vpop.permute.xlu0 %8632 }
 0xd01   : > { %v8759_v4 = vcombine.low %v14516_v39, %v14513_v30 }
 0xd02   : > { %10574 = vrot.lane.b32.xlu1 %v12209_v26, %s12804_s10  ;;  %10749 = vrot.lane.b32.xlu0 %v10736_v2, %s12810_s20 }
 0xd03   : > { %v14538_v56 = vrot.slane %v8759_v4, %v12898_v17 }
 0xd04   : > { %v8639_v42 = vpop.permute.xlu1 %8638  ;;  %v8637_v3 = vpop.permute.xlu0 %8636 }
 0xd05   : > { %v8654_v27 = vcombine.low %v8635_v8, %v8639_v42  ;;  %v8646_v20 = vcombine.low %v8633_v25, %v8637_v3  ;;  %v11089_v25 = vld [vmem:[%s12887_s9 + $0x11] sm:$0xf] }
 0xd06   : > { %10922 = vrot.lane.b32.xlu1 %v10911_v14, %s12804_s10  ;;  %10920 = vrot.lane.b32.xlu0 %v10910_v28, %s12804_s10  ;;  %v11088_v14 = vld [vmem:[%s12887_s9 + $0x9] sm:$0xf] }
 0xd07   : > { %v14532_v10 = vrot.slane %v8654_v27, %v12889_v9  ;;  %v14535_v60 = vrot.slane %v8646_v20, %v12889_v9 }
 0xd08   : > { %v8974_v6 = vpop.permute.xlu1 %8973  ;;  %v8730_v35 = vpop.permute.xlu0 %8729 }
 0xd09   : > { %v14527_v51 = vrot.slane %v8730_v35, %v12889_v9  ;;  %v8670_v8 = vcombine.low %v14535_v60, %v14532_v10 }
 0xd0a   : > { %10926 = vrot.lane.b32.xlu1 %v10913_v46, %s12804_s10  ;;  %10924 = vrot.lane.b32.xlu0 %v10912_v0, %s12804_s10  ;;  %v10914_v46 = vld [vmem:[%s12887_s9 + $0x22] sm:$0xf]  ;;  %v11090_v0 = vld [vmem:[%s12887_s9 + $0x19] sm:$0xf] }
 0xd0b   : > { %v14542_v59 = vrot.slane %v14527_v51, %v12898_v17  ;;  %v14560_v4 = vrot.slane %v8670_v8, %v12898_v17 }
 0xd0c   : > { %v8978_v21 = vpop.permute.xlu1 %8977  ;;  %v8976_v26 = vpop.permute.xlu0 %8975 }
 0xd0d   : > { %15668 = vst [vmem:[#allocation15_spill] sm:$0xff] %v14560_v4 }
 0xd0e   : > { %11097 = vrot.lane.b32.xlu1 %v11087_v34, %s12810_s20  ;;  %10751 = vrot.lane.b32.xlu0 %v10737_v55, %s12810_s20  ;;  %v8987_v55 = vcombine.low %v8974_v6, %v8978_v21  ;;  %v12751_v6 = vld [vmem:[%s12887_s9 + $0x51] ss:$16 sps:$4 sm:$0xff]   ;;  %v12752_v21 = vld [vmem:[%s12887_s9 + $0x59] ss:$16 sps:$4 sm:$0xff]  }
 0xd0f   : > { %v7132_v63 = vrot.slane %v12751_v6, %v12889_v9  ;;  %v7140_v11 = vrot.slane %v12752_v21, %v12889_v9  ;;  %v12071_v21 = vld.sshfl [vmem:[%s12887_s9 + $0x71] sm:$0x33 pattern:$0x76325410] }
 0xd10   : > { %v8641_v28 = vpop.permute.xlu1 %8640  ;;  %v8980_v42 = vpop.permute.xlu0 %8979  ;;  %v14578_v2 = vrot.slane %v8987_v55, %v12889_v9  ;;  %v11266_v55 = vld [vmem:[%s12887_s9 + $0x11] sm:$0xf] }
 0xd11   : > { %v14555_v3 = vrot.slane %v8641_v28, %v12889_v9  ;;  %v8995_v20 = vcombine.low %v8976_v26, %v8980_v42  ;;  %v11264_v26 = vld [vmem:[%s12887_s9 + $0x1] sm:$0xf]  ;;  %v7150_v41 = vcombine.high %v7132_v63, %v7140_v11 }
 0xd12   : > { %11101 = vrot.lane.b32.xlu1 %v11089_v25, %s12810_s20  ;;  %11099 = vrot.lane.b32.xlu0 %v11088_v14, %s12810_s20  ;;  %v11265_v14 = vld [vmem:[%s12887_s9 + $0x9] sm:$0xf] }
 0xd13   : > { %v14564_v27 = vrot.slane %v14555_v3, %v12898_v17  ;;  %v14573_v8 = vrot.slane %v8995_v20, %v12889_v9 }
 0xd14   : > { %v9153_v35 = vpop.permute.xlu1 %9152  ;;  %v9151_v34 = vpop.permute.xlu0 %9150 }
 0xd15   : > { %15669 = vst [vmem:[#allocation16_spill] sm:$0xff] %v14564_v27  ;;  %v9011_v20 = vcombine.low %v14578_v2, %v14573_v8 }
 0xd16   : > { %10928 = vrot.lane.b32.xlu1 %v10914_v46, %s12804_s10  ;;  %11103 = vrot.lane.b32.xlu0 %v11090_v0, %s12810_s20  ;;  %v12038_v46 = vld [vmem:[%s15617_s1 + $0x58] sm:$0x7f] }
 0xd17   : > { %12533 = vmatmul.mubr.msk.f32.vlgmr.msra.gmra.mxu1 %vm612_vm5, %v12038_v46  ;;  %v14612_v46 = vrot.slane %v9011_v20, %v12898_v17 }
 0xd18   : > { %v9157_v28 = vpop.permute.xlu1 %9156  ;;  %v9155_v42 = vpop.permute.xlu0 %9154  ;;  %12542 = vmatprep.mubr.msk.f32.mxu1 %vm12808_vm0, %v15624_v5 }
 0xd19   : > { %v9172_v0 = vcombine.low %v9153_v35, %v9157_v28  ;;  %v9164_v25 = vcombine.low %v9151_v34, %v9155_v42  ;;  %v11268_v35 = vld [vmem:[%s12887_s9 + $0x21] sm:$0xf] }
 0xd1a   : > { %11276 = vrot.lane.b32.xlu1 %v11265_v14, %s12804_s10  ;;  %11274 = vrot.lane.b32.xlu0 %v11264_v26, %s12804_s10  ;;  %v11091_v34 = vld [vmem:[%s12887_s9 + $0x21] sm:$0xf] }
 0xd1b   : > { %v14606_v28 = vrot.slane %v9172_v0, %v12889_v9  ;;  %v14609_v42 = vrot.slane %v9164_v25, %v12889_v9  ;;  %v6993_v0 = vcombine.high %v14364_v32, %v14367_v54  ;;  %v7165_v32 = vcombine.high %v12071_v21, %v15624_v5 }
 0xd1c   : > { %v14592_v40 = vpop.permute.xlu1 %9327  ;;  %v8982_v14 = vpop.permute.xlu0 %8981  ;;  %v7149_v54 = vcombine.low %v7132_v63, %v7140_v11 }
 0xd1d   : > { %v14597_v26 = vrot.slane %v8982_v14, %v12889_v9  ;;  %15670 = vst [vmem:[#allocation17_spill] sm:$0xff] %v14609_v42  ;;  %v7007_v33 = vrot.slane %v6993_v0, %v12898_v17  ;;  %v7179_v11 = vrot.slane %v7165_v32, %v12898_v17 }
 0xd1e   : > { %11280 = vrot.lane.b32.xlu1 %v11267_v44, %s12804_s10  ;;  %11278 = vrot.lane.b32.xlu0 %v11266_v55, %s12804_s10  ;;  %v12046_v44 = vld [vmem:[%s15617_s1 + $0x88] sm:$0x7f]  ;;  %v7008_v55 = vcombine.high %v14359_v1, %v15624_v5  ;;  %v6849_v1 = vcombine.high %v14217_v22, %v14220_v50  ;;  %v7164_v22 = vrot.slane %v7150_v41, %v12898_v17 }
 0xd1f   : > { %v14616_v6 = vrot.slane %v14597_v26, %v12898_v17  ;;  %12538 = vmatmul.mubr.msk.f32.vlgmr.msra.gmra.mxu0 %vm612_vm5, %v12046_v44  ;;  %v9188_v44 = vcombine.low %v14609_v42, %v14606_v28  ;;  %v12753_v50 = vld [vmem:[%s12887_s9 + $0x2a] ss:$16 sps:$4 sm:$0xff]   ;;  %v14652_v63 = vrot.slane %v7149_v54, %v12898_v17 }
 0xd20   : > { %v9332_v25 = vpop.permute.xlu1 %9331  ;;  %v9330_v14 = vpop.permute.xlu0 %9329  ;;  %12547 = vmatprep.mubr.msk.f32.mxu0 %vm12808_vm0, %v15624_v5  ;;  %v7022_v20 = vrot.slane %v7008_v55, %v12898_v17  ;;  %v12754_v5 = vld [vmem:[%s12887_s9 + $0x32] ss:$16 sps:$4 sm:$0xff]   ;;  %v14655_v55 = vrot.slane %v12071_v21, %v12898_v17  ;;  %v7466_v21 = vrot.slane %v12753_v50, %v12889_v9 }
 0xd21   : > { %15671 = vst [vmem:[#allocation18_spill] sm:$0xff] %v14652_v63  ;;  %v9341_v32 = vcombine.low %v14592_v40, %v9332_v25  ;;  %v7474_v19 = vrot.slane %v12754_v5, %v12889_v9  ;;  %v15675_v40 = vmov 0.0  }
 0xd22   : > { %11282 = vrot.lane.b32.xlu1 %v11268_v35, %s12804_s10  ;;  %11105 = vrot.lane.b32.xlu0 %v11091_v34, %s12810_s20  ;;  %v7024_v35 = vcombine.high %v14380_v36, %v14375_v53  ;;  %15672 = vst [vmem:[#allocation19_spill] sm:$0xff] %v14655_v55  ;;  %v7025_v36 = vcombine.low %v7007_v33, %v7022_v20 }
 0xd23   : > { %v7342_v25 = vcombine.high %v14399_v49, %v15675_v40  ;;  %v14680_v50 = vrot.slane %v9341_v32, %v12889_v9  ;;  %v7484_v5 = vcombine.high %v7466_v21, %v7474_v19 }
 0xd24   : > { %v9159_v31 = vpop.permute.xlu1 %9158  ;;  %v9334_v57 = vpop.permute.xlu0 %9333 }
 0xd25   : > { %v14643_v34 = vrot.slane %v9159_v31, %v12889_v9  ;;  %v14658_v31 = vrot.slane %v9188_v44, %v12898_v17  ;;  %v9349_v0 = vcombine.low %v9330_v14, %v9334_v57  ;;  %v7182_v44 = vcombine.low %v7164_v22, %v7179_v11  ;;  %v12088_v14 = vld.sshfl [vmem:[%s12887_s9 + $0x4a] sm:$0x33 pattern:$0x76325410] }
 0xd26   : > { %7028 = vrot.lane.b32.xlu1 %v7024_v35, %s12806_s12  ;;  %6859 = vrot.lane.b32.xlu0 %v6849_v1, %s12807_s13  ;;  %v7026_v1 = vcombine.high %v7007_v33, %v7022_v20  ;;  %v7181_v57 = vcombine.high %v14652_v63, %v14655_v55  ;;  %v7483_v63 = vcombine.low %v7466_v21, %v7474_v19 }
 0xd27   : > { %15673 = vst [vmem:[#allocation20_spill] sm:$0xff] %v14658_v31  ;;  %v14662_v41 = vrot.slane %v14643_v34, %v12898_v17  ;;  %v14675_v33 = vrot.slane %v9349_v0, %v12889_v9  ;;  %v7183_v0 = vcombine.high %v7164_v22, %v7179_v11  ;;  %v7356_v31 = vrot.slane %v7342_v25, %v12898_v17  ;;  %v12755_v22 = vld [vmem:[%s12887_s9 + $0x29] ss:$16 sps:$4 sm:$0xff]   ;;  %v12756_v11 = vld [vmem:[%s12887_s9 + $0x31] ss:$16 sps:$4 sm:$0xff]  }
 0xd28   : > { %v9507_v35 = vpop.permute.xlu1 %9506  ;;  %v9505_v53 = vpop.permute.xlu0 %9504 }
 0xd29   : > { %15674 = vst [vmem:[#allocation21_spill] sm:$0xff] %v14662_v41  ;;  %v9365_v49 = vcombine.low %v14680_v50, %v14675_v33  ;;  %v7358_v41 = vcombine.high %v14404_v61, %v14408_v62 }
 0xd2a   : > { %7036 = vrot.lane.b32.xlu1 %v7026_v1, %s12807_s13  ;;  %7032 = vrot.lane.b32.xlu0 %v7025_v36, %s12805_s11  ;;  %v7499_v1 = vcombine.high %v12088_v14, %v15675_v40  ;;  %v7327_v36 = vcombine.high %v14392_v38, %v14389_v43 }
 0xd2b   : > { %v14717_v25 = vrot.slane %v9365_v49, %v12898_v17 }
 0xd2c   : > { %v9511_v20 = vpop.permute.xlu1 %9510  ;;  %v9509_v54 = vpop.permute.xlu0 %9508  ;;  %v7513_v19 = vrot.slane %v7499_v1, %v12898_v17 }
 0xd2d   : > { %v9526_v55 = vcombine.low %v9507_v35, %v9511_v20  ;;  %v9518_v32 = vcombine.low %v9505_v53, %v9509_v54  ;;  %v7341_v35 = vrot.slane %v7327_v36, %v12898_v17  ;;  %v14705_v53 = vrot.slane %v7483_v63, %v12898_v17 }
 0xd2e   : > { %7189 = vrot.lane.b32.xlu1 %v7182_v44, %s12805_s11  ;;  %7185 = vrot.lane.b32.xlu0 %v7181_v57, %s12806_s12  ;;  %v7498_v44 = vrot.slane %v7484_v5, %v12898_v17  ;;  %v14708_v54 = vrot.slane %v12088_v14, %v12898_v17  ;;  %v7808_v36 = vrot.slane %v12756_v11, %v12889_v9 }
 0xd2f   : > { %15676 = vst [vmem:[#allocation22_spill] sm:$0xff] %v14705_v53  ;;  %v14711_v21 = vrot.slane %v9526_v55, %v12889_v9  ;;  %v14714_v57 = vrot.slane %v9518_v32, %v12889_v9  ;;  %v7360_v5 = vcombine.high %v7341_v35, %v7356_v31  ;;  %v7359_v1 = vcombine.low %v7341_v35, %v7356_v31 }
 0xd30   : > { %v14692_v42 = vpop.permute.xlu1 %9681  ;;  %v9336_v43 = vpop.permute.xlu0 %9335  ;;  %15677 = vst [vmem:[#allocation23_spill] sm:$0xff] %v14708_v54  ;;  %v7800_v55 = vrot.slane %v12755_v22, %v12889_v9  ;;  %v7515_v49 = vcombine.high %v14705_v53, %v14708_v54  ;;  %v7676_v31 = vcombine.high %v14419_v16, %v15675_v40  ;;  %v7661_v22 = vcombine.high %v14424_v23, %v14427_v29 }
 0xd31   : > { %v14695_v38 = vrot.slane %v9336_v43, %v12889_v9  ;;  %v9542_v32 = vcombine.low %v14714_v57, %v14711_v21  ;;  %v12105_v43 = vld.sshfl [vmem:[%s12887_s9 + $0x49] sm:$0x33 pattern:$0x76325410]  ;;  %v7517_v14 = vcombine.high %v7498_v44, %v7513_v19 }
 0xd32   : > { %7362 = vrot.lane.b32.xlu1 %v7358_v41, %s12806_s12  ;;  %7193 = vrot.lane.b32.xlu0 %v7183_v0, %s12807_s13  ;;  %v7516_v0 = vcombine.low %v7498_v44, %v7513_v19  ;;  %v7833_v53 = vcombine.high %v12105_v43, %v15675_v40  ;;  %v7817_v54 = vcombine.low %v7800_v55, %v7808_v36 }
 0xd33   : > { %v14721_v41 = vrot.slane %v14695_v38, %v12898_v17  ;;  %v14745_v16 = vrot.slane %v9542_v32, %v12898_v17  ;;  %v7692_v44 = vcombine.high %v14440_v58, %v14435_v48  ;;  %v12758_v32 = vld [vmem:[%s12887_s9 + $0xa] ss:$16 sps:$4 sm:$0xff]  }
 0xd34   : > { %v9686_v20 = vpop.permute.xlu1 %9685  ;;  %v9684_v63 = vpop.permute.xlu0 %9683 }
 0xd35   : > { %v9695_v19 = vcombine.low %v14692_v42, %v9686_v20 }
 0xd36   : > { %7370 = vrot.lane.b32.xlu1 %v7360_v5, %s12807_s13  ;;  %7366 = vrot.lane.b32.xlu0 %v7359_v1, %s12805_s11  ;;  %v7818_v1 = vcombine.high %v7800_v55, %v7808_v36 }
 0xd38   : > { %v9513_v35 = vpop.permute.xlu1 %9512  ;;  %v9688_v11 = vpop.permute.xlu0 %9687  ;;  %v7832_v36 = vrot.slane %v7818_v1, %v12898_v17 }
 0xd39   : > { %v14739_v5 = vrot.slane %v9513_v35, %v12889_v9  ;;  %v9703_v29 = vcombine.low %v9684_v63, %v9688_v11  ;;  %v7690_v35 = vrot.slane %v7676_v31, %v12898_v17  ;;  %v7847_v63 = vrot.slane %v7833_v53, %v12898_v17 }
 0xd3a   : > { %7523 = vrot.lane.b32.xlu1 %v7516_v0, %s12805_s11  ;;  %7519 = vrot.lane.b32.xlu0 %v7515_v49, %s12806_s12  ;;  %v7675_v0 = vrot.slane %v7661_v22, %v12898_v17  ;;  %v12757_v49 = vld [vmem:[%s12887_s9 + $0x2] ss:$16 sps:$4 sm:$0xff]   ;;  %v14765_v31 = vrot.slane %v7817_v54, %v12898_v17  ;;  %v14768_v22 = vrot.slane %v12105_v43, %v12898_v17 }
 0xd3b   : > { %v14749_v23 = vrot.slane %v14739_v5, %v12898_v17  ;;  %v14771_v42 = vrot.slane %v9703_v29, %v12889_v9  ;;  %v8142_v53 = vrot.slane %v12758_v32, %v12889_v9  ;;  %v7850_v54 = vcombine.low %v7832_v36, %v7847_v63  ;;  %v12112_v29 = vld.sshfl [vmem:[%s12887_s9 + $0x22] sm:$0x33 pattern:$0x76325410] }
 0xd3c   : > { %v9861_v62 = vpop.permute.xlu1 %9860  ;;  %v9859_v61 = vpop.permute.xlu0 %9858  ;;  %15678 = vst [vmem:[#allocation24_spill] sm:$0xff] %v14765_v31  ;;  %15679 = vst [vmem:[#allocation25_spill] sm:$0xff] %v14768_v22  ;;  %v7694_v1 = vcombine.high %v7675_v0, %v7690_v35  ;;  %v7693_v55 = vcombine.low %v7675_v0, %v7690_v35  ;;  %v7849_v43 = vcombine.high %v14765_v31, %v14768_v22 }
 0xd3d   : > { %v8167_v58 = vcombine.high %v12112_v29, %v15675_v40  ;;  %v7995_v31 = vcombine.high %v14452_v15, %v14449_v37 }
 0xd3e   : > { %7696 = vrot.lane.b32.xlu1 %v7692_v44, %s12806_s12  ;;  %7527 = vrot.lane.b32.xlu0 %v7517_v14, %s12807_s13  ;;  %v14774_v44 = vrot.slane %v9695_v19, %v12889_v9  ;;  %v8134_v14 = vrot.slane %v12757_v49, %v12889_v9  ;;  %v8010_v19 = vcombine.high %v14459_v12, %v15675_v40 }
 0xd40   : > { %v9865_v20 = vpop.permute.xlu1 %9864  ;;  %v9863_v11 = vpop.permute.xlu0 %9862  ;;  %v9719_v48 = vcombine.low %v14774_v44, %v14771_v42  ;;  %v8024_v15 = vrot.slane %v8010_v19, %v12898_v17 }
 0xd41   : > { %v9880_v35 = vcombine.low %v9861_v62, %v9865_v20  ;;  %v9872_v0 = vcombine.low %v9859_v61, %v9863_v11  ;;  %v7851_v61 = vcombine.high %v7832_v36, %v7847_v63  ;;  %v8151_v62 = vcombine.low %v8134_v14, %v8142_v53 }
 0xd42   : > { %7704 = vrot.lane.b32.xlu1 %v7694_v1, %s12807_s13  ;;  %7700 = vrot.lane.b32.xlu0 %v7693_v55, %s12805_s11  ;;  %v8152_v55 = vcombine.high %v8134_v14, %v8142_v53  ;;  %v14804_v11 = vrot.slane %v9719_v48, %v12898_v17  ;;  %v12759_v48 = vld [vmem:[%s12887_s9 + $0x1] ss:$16 sps:$4 sm:$0xff]  }
 0xd43   : > { %v14798_v12 = vrot.slane %v9880_v35, %v12889_v9  ;;  %v14801_v20 = vrot.slane %v9872_v0, %v12889_v9  ;;  %v12760_v35 = vld [vmem:[%s12887_s9 + $0x9] ss:$16 sps:$4 sm:$0xff]   ;;  %v8009_v0 = vrot.slane %v7995_v31, %v12898_v17  ;;  %v14823_v19 = vrot.slane %v8151_v62, %v12898_v17 }
 0xd44   : > { %v14787_v49 = vpop.permute.xlu1 %10035  ;;  %v9690_v32 = vpop.permute.xlu0 %9689  ;;  %v8166_v53 = vrot.slane %v8152_v55, %v12898_v17 }
 0xd45   : > { %v14790_v1 = vrot.slane %v9690_v32, %v12889_v9  ;;  %15680 = vst [vmem:[#allocation26_spill] sm:$0xff] %v14801_v20  ;;  %15681 = vst [vmem:[#allocation27_spill] sm:$0xff] %v14823_v19  ;;  %v14826_v32 = vrot.slane %v12112_v29, %v12898_v17  ;;  %v9896_v55 = vcombine.low %v14801_v20, %v14798_v12 }
 0xd46   : > { %7857 = vrot.lane.b32.xlu1 %v7850_v54, %s12805_s11  ;;  %7853 = vrot.lane.b32.xlu0 %v7849_v43, %s12806_s12  ;;  %v8026_v54 = vcombine.high %v14464_v13, %v14468_v24  ;;  %v8181_v43 = vrot.slane %v8167_v58, %v12898_v17  ;;  %v8028_v24 = vcombine.high %v8009_v0, %v8024_v15 }
 0xd47   : > { %v14808_v37 = vrot.slane %v14790_v1, %v12898_v17  ;;  %15682 = vst [vmem:[#allocation28_spill] sm:$0xff] %v14826_v32  ;;  %v8027_v13 = vcombine.low %v8009_v0, %v8024_v15  ;;  %v8183_v62 = vcombine.high %v14823_v19, %v14826_v32  ;;  %v14840_v22 = vrot.slane %v9896_v55, %v12898_v17  ;;  %v12119_v0 = vld.sshfl [vmem:[%s12887_s9 + $0x21] sm:$0x33 pattern:$0x76325410] }
 0xd48   : > { %v10040_v36 = vpop.permute.xlu1 %10039  ;;  %v10038_v63 = vpop.permute.xlu0 %10037  ;;  %v8184_v29 = vcombine.low %v8166_v53, %v8181_v43  ;;  %v8360_v55 = vcombine.high %v14500_v45, %v14495_v47 }
 0xd49   : > { %15683 = vst [vmem:[#allocation29_spill] sm:$0xff] %v14840_v22  ;;  %v10049_v20 = vcombine.low %v14787_v49, %v10040_v36 }
 0xd4a   : > { %8030 = vrot.lane.b32.xlu1 %v8026_v54, %s12806_s12  ;;  %7861 = vrot.lane.b32.xlu0 %v7851_v61, %s12807_s13  ;;  %v8468_v54 = vrot.slane %v12759_v48, %v12889_v9  ;;  %v8476_v61 = vrot.slane %v12760_v35, %v12889_v9  ;;  %v8344_v48 = vcombine.high %v14479_v52, %v15675_v40 }
 0xd4c   : > { %v9867_v14 = vpop.permute.xlu1 %9866  ;;  %v10042_v58 = vpop.permute.xlu0 %10041  ;;  %v8486_v19 = vcombine.high %v8468_v54, %v8476_v61  ;;  %v8485_v32 = vcombine.low %v8468_v54, %v8476_v61  ;;  %v14875_v61 = vrot.slane %v12119_v0, %v12898_v17 }
 0xd4d   : > { %v14831_v31 = vrot.slane %v9867_v14, %v12889_v9  ;;  %v10057_v14 = vcombine.low %v10038_v63, %v10042_v58  ;;  %v8185_v63 = vcombine.high %v8166_v53, %v8181_v43  ;;  %v8501_v58 = vcombine.high %v12119_v0, %v15675_v40 }
 0xd4e   : > { %8038 = vrot.lane.b32.xlu1 %v8028_v24, %s12807_s13  ;;  %8034 = vrot.lane.b32.xlu0 %v8027_v13, %s12805_s11  ;;  %v8329_v24 = vcombine.high %v14484_v7, %v14487_v18  ;;  %v8358_v7 = vrot.slane %v8344_v48, %v12898_v17  ;;  %v8500_v53 = vrot.slane %v8486_v19, %v12898_v17 }
 0xd4f   : > { %v14844_v15 = vrot.slane %v14831_v31, %v12898_v17  ;;  %v14858_v52 = vrot.slane %v10057_v14, %v12889_v9  ;;  %v8515_v43 = vrot.slane %v8501_v58, %v12898_v17  ;;  %v14872_v54 = vrot.slane %v8485_v32, %v12898_v17 }
 0xd50   : > { %v10215_v13 = vpop.permute.xlu1 %10214  ;;  %v10213_v35 = vpop.permute.xlu0 %10212  ;;  %v8343_v18 = vrot.slane %v8329_v24, %v12898_v17 }
 0xd51   : > { %15684 = vst [vmem:[#allocation30_spill] sm:$0xff] %v14844_v15  ;;  %v8518_v32 = vcombine.low %v8500_v53, %v8515_v43  ;;  %v8517_v0 = vcombine.high %v14872_v54, %v14875_v61 }
 0xd52   : > { %8191 = vrot.lane.b32.xlu1 %v8184_v29, %s12805_s11  ;;  %8187 = vrot.lane.b32.xlu0 %v8183_v62, %s12806_s12  ;;  %v14865_v29 = vrot.slane %v10049_v20, %v12889_v9  ;;  %v8362_v19 = vcombine.high %v8343_v18, %v8358_v7  ;;  %v8361_v47 = vcombine.low %v8343_v18, %v8358_v7 }
 0xd54   : > { %v10219_v49 = vpop.permute.xlu1 %10218  ;;  %v10217_v36 = vpop.permute.xlu0 %10216  ;;  %v10073_v62 = vcombine.low %v14865_v29, %v14858_v52 }
 0xd55   : > { %v10234_v14 = vcombine.low %v10215_v13, %v10219_v49  ;;  %v10226_v20 = vcombine.low %v10213_v35, %v10217_v36  ;;  %v8760_v36 = vcombine.high %v14516_v39, %v14513_v30 }
 0xd56   : > { %8364 = vrot.lane.b32.xlu1 %v8360_v55, %s12806_s12  ;;  %8195 = vrot.lane.b32.xlu0 %v8185_v63, %s12807_s13  ;;  %v14893_v35 = vrot.slane %v10073_v62, %v12898_v17  ;;  %v8519_v62 = vcombine.high %v8500_v53, %v8515_v43  ;;  %v8671_v53 = vcombine.high %v14535_v60, %v14532_v10 }
 0xd57   : > { %v14887_v63 = vrot.slane %v10234_v14, %v12889_v9  ;;  %v14890_v13 = vrot.slane %v10226_v20, %v12889_v9  ;;  %v8774_v39 = vrot.slane %v8760_v36, %v12898_v17 }
 0xd58   : > { %v10390_v48 = vpop.permute.xlu1 %10389  ;;  %v10044_v24 = vpop.permute.xlu0 %10043 }
 0xd59   : > { %v14880_v55 = vrot.slane %v10044_v24, %v12889_v9  ;;  %v10250_v14 = vcombine.low %v14890_v13, %v14887_v63  ;;  %v8686_v24 = vcombine.high %v14555_v3, %v15675_v40 }
 0xd5a   : > { %8372 = vrot.lane.b32.xlu1 %v8362_v19, %s12807_s13  ;;  %8368 = vrot.lane.b32.xlu0 %v8361_v47, %s12805_s11  ;;  %v8775_v47 = vcombine.high %v14527_v51, %v15675_v40  ;;  %v8791_v51 = vcombine.high %v14538_v56, %v14542_v59 }
 0xd5b   : > { %v14897_v58 = vrot.slane %v14880_v55, %v12898_v17  ;;  %v14923_v43 = vrot.slane %v10250_v14, %v12898_v17  ;;  %v8685_v14 = vrot.slane %v8671_v53, %v12898_v17 }
 0xd5c   : > { %v10394_v7 = vpop.permute.xlu1 %10393  ;;  %v10392_v18 = vpop.permute.xlu0 %10391  ;;  %v8789_v20 = vrot.slane %v8775_v47, %v12898_v17  ;;  %v8702_v47 = vcombine.high %v14560_v4, %v14564_v27 }
 0xd5d   : > { %v10403_v60 = vcombine.low %v10390_v48, %v10394_v7  ;;  %v9012_v7 = vcombine.high %v14578_v2, %v14573_v8  ;;  %v15685_v8 = vld [vmem:[#allocation17_spill] sm:$0xff] }
 0xd5e   : > { %8525 = vrot.lane.b32.xlu1 %v8518_v32, %s12805_s11  ;;  %8521 = vrot.lane.b32.xlu0 %v8517_v0, %s12806_s12  ;;  %v8700_v0 = vrot.slane %v8686_v24, %v12898_v17  ;;  %v8792_v10 = vcombine.low %v8774_v39, %v8789_v20  ;;  %v8793_v4 = vcombine.high %v8774_v39, %v8789_v20 }
 0xd5f   : > { %v14943_v48 = vrot.slane %v10403_v60, %v12889_v9  ;;  %v9043_v20 = vcombine.high %v14612_v46, %v14616_v6  ;;  %v9204_v39 = vcombine.high %v14643_v34, %v15675_v40 }
 0xd60   : > { %v10221_v19 = vpop.permute.xlu1 %10220  ;;  %v10396_v49 = vpop.permute.xlu0 %10395  ;;  %v8703_v27 = vcombine.low %v8685_v14, %v8700_v0  ;;  %v8704_v2 = vcombine.high %v8685_v14, %v8700_v0 }
 0xd61   : > { %v14915_v30 = vrot.slane %v10221_v19, %v12889_v9  ;;  %v10411_v32 = vcombine.low %v10392_v18, %v10396_v49  ;;  %v9027_v49 = vcombine.high %v14597_v26, %v15675_v40 }
 0xd62   : > { %8795 = vrot.lane.b32.xlu1 %v8791_v51, %s12806_s12  ;;  %8529 = vrot.lane.b32.xlu0 %v8519_v62, %s12807_s13 }
 0xd63   : > { %v14927_v3 = vrot.slane %v14915_v30, %v12898_v17  ;;  %v14938_v18 = vrot.slane %v10411_v32, %v12889_v9  ;;  %v9041_v26 = vrot.slane %v9027_v49, %v12898_v17  ;;  %v9218_v49 = vrot.slane %v9204_v39, %v12898_v17 }
 0xd64   : > { %v10569_v36 = vpop.permute.xlu1 %10568  ;;  %v10567_v19 = vpop.permute.xlu0 %10566  ;;  %v9381_v39 = vcombine.high %v14695_v38, %v15675_v40 }
 0xd65   : > { %v10427_v53 = vcombine.low %v14943_v48, %v14938_v18 }
 0xd66   : > { %8706 = vrot.lane.b32.xlu1 %v8702_v47, %s12806_s12  ;;  %8799 = vrot.lane.b32.xlu0 %v8792_v10, %s12805_s11  ;;  %v9395_v62 = vrot.slane %v9381_v39, %v12898_v17 }
 0xd67   : > { %v14971_v0 = vrot.slane %v10427_v53, %v12898_v17 }
 0xd68   : > { %v10573_v51 = vpop.permute.xlu1 %10572  ;;  %v10571_v24 = vpop.permute.xlu0 %10570 }
 0xd69   : > { %v10588_v32 = vcombine.low %v10569_v36, %v10573_v51  ;;  %v10580_v47 = vcombine.low %v10567_v19, %v10571_v24  ;;  %v9189_v36 = vcombine.high %v15685_v8, %v14606_v28 }
 0xd6a   : > { %8710 = vrot.lane.b32.xlu1 %v8703_v27, %s12805_s11  ;;  %8803 = vrot.lane.b32.xlu0 %v8793_v4, %s12807_s13  ;;  %v9026_v4 = vrot.slane %v9012_v7, %v12898_v17 }
 0xd6b   : > { %v14965_v19 = vrot.slane %v10588_v32, %v12889_v9  ;;  %v14968_v34 = vrot.slane %v10580_v47, %v12889_v9  ;;  %v15687_v47 = vld [vmem:[#allocation21_spill] sm:$0xff] }
 0xd6c   : > { %v10744_v10 = vpop.permute.xlu1 %10743  ;;  %v10398_v60 = vpop.permute.xlu0 %10397  ;;  %v9045_v24 = vcombine.high %v9026_v4, %v9041_v26  ;;  %v9044_v7 = vcombine.low %v9026_v4, %v9041_v26 }
 0xd6d   : > { %v14957_v27 = vrot.slane %v10398_v60, %v12889_v9  ;;  %v10604_v53 = vcombine.low %v14968_v34, %v14965_v19  ;;  %v15688_v60 = vld [vmem:[#allocation20_spill] sm:$0xff] }
 0xd6e   : > { %9047 = vrot.lane.b32.xlu1 %v9043_v20, %s12806_s12  ;;  %8714 = vrot.lane.b32.xlu0 %v8704_v2, %s12807_s13  ;;  %v9203_v20 = vrot.slane %v9189_v36, %v12898_v17  ;;  %v9220_v2 = vcombine.high %v15688_v60, %v15687_v47  ;;  %v9366_v36 = vcombine.high %v14680_v50, %v14675_v33 }
 0xd6f   : > { %v14975_v14 = vrot.slane %v14957_v27, %v12898_v17  ;;  %v9558_v33 = vcombine.high %v14739_v5, %v15675_v40 }
 0xd70   : > { %v10748_v28 = vpop.permute.xlu1 %10747  ;;  %v10746_v51 = vpop.permute.xlu0 %10745  ;;  %v9221_v4 = vcombine.low %v9203_v20, %v9218_v49  ;;  %v9222_v47 = vcombine.high %v9203_v20, %v9218_v49  ;;  %v9380_v60 = vrot.slane %v9366_v36, %v12898_v17 }
 0xd71   : > { %15686 = vst [vmem:[#allocation17_spill] sm:$0xff] %v14975_v14  ;;  %v9572_v5 = vrot.slane %v9558_v33, %v12898_v17 }
 0xd72   : > { %9055 = vrot.lane.b32.xlu1 %v9045_v24, %s12807_s13  ;;  %9051 = vrot.lane.b32.xlu0 %v9044_v7, %s12805_s11  ;;  %v14997_v24 = vrot.slane %v10604_v53, %v12898_v17 }
 0xd74   : > { %v10575_v8 = vpop.permute.xlu1 %10574  ;;  %v10750_v26 = vpop.permute.xlu0 %10749 }
 0xd75   : > { %v14990_v32 = vrot.slane %v10575_v8, %v12889_v9  ;;  %v10765_v38 = vcombine.low %v10746_v51, %v10750_v26  ;;  %v9397_v8 = vcombine.high %v14717_v25, %v14721_v41  ;;  %v9543_v51 = vcombine.high %v14714_v57, %v14711_v21 }
 0xd76   : > { %9228 = vrot.lane.b32.xlu1 %v9221_v4, %s12805_s11  ;;  %9224 = vrot.lane.b32.xlu0 %v9220_v2, %s12806_s12  ;;  %v10757_v2 = vcombine.low %v10744_v10, %v10748_v28  ;;  %v9399_v10 = vcombine.high %v9380_v60, %v9395_v62  ;;  %v9398_v28 = vcombine.low %v9380_v60, %v9395_v62 }
 0xd77   : > { %v15001_v7 = vrot.slane %v14990_v32, %v12898_v17  ;;  %v15016_v39 = vrot.slane %v10765_v38, %v12889_v9  ;;  %v9557_v36 = vrot.slane %v9543_v51, %v12898_v17  ;;  %v9574_v38 = vcombine.high %v14745_v16, %v14749_v23 }
 0xd78   : > { %v10923_v50 = vpop.permute.xlu1 %10922  ;;  %v10921_v4 = vpop.permute.xlu0 %10920  ;;  %v15020_v20 = vrot.slane %v10757_v2, %v12889_v9  ;;  %v9735_v62 = vcombine.high %v14790_v1, %v15675_v40  ;;  %v9720_v51 = vcombine.high %v14774_v44, %v14771_v42  ;;  %v9751_v42 = vcombine.high %v14804_v11, %v14808_v37 }
 0xd79   : > { %v9575_v33 = vcombine.low %v9557_v36, %v9572_v5  ;;  %v9912_v44 = vcombine.high %v14831_v31, %v15675_v40 }
 0xd7a   : > { %9232 = vrot.lane.b32.xlu0 %v9222_v47, %s12807_s13  ;;  %9401 = vrot.lane.b32.xlu1 %v9397_v8, %s12806_s12  ;;  %v10781_v21 = vcombine.low %v15020_v20, %v15016_v39 }
 0xd7b   : > { %v9926_v31 = vrot.slane %v9912_v44, %v12898_v17  ;;  %v9928_v44 = vcombine.high %v14840_v22, %v14844_v15 }
 0xd7c   : > { %v10927_v26 = vpop.permute.xlu1 %10926  ;;  %v10925_v49 = vpop.permute.xlu0 %10924  ;;  %v15045_v1 = vrot.slane %v10781_v21, %v12898_v17  ;;  %v9734_v21 = vrot.slane %v9720_v51, %v12898_v17 }
 0xd7d   : > { %v10942_v57 = vcombine.low %v10923_v50, %v10927_v26  ;;  %v10934_v47 = vcombine.low %v10921_v4, %v10925_v49  ;;  %v9749_v49 = vrot.slane %v9735_v62, %v12898_v17 }
 0xd7e   : > { %9409 = vrot.lane.b32.xlu1 %v9399_v10, %s12807_s13  ;;  %9405 = vrot.lane.b32.xlu0 %v9398_v28, %s12805_s11 }
 0xd7f   : > { %v15039_v50 = vrot.slane %v10942_v57, %v12889_v9  ;;  %v15042_v4 = vrot.slane %v10934_v47, %v12889_v9  ;;  %v9576_v57 = vcombine.high %v9557_v36, %v9572_v5  ;;  %v9753_v5 = vcombine.high %v9734_v21, %v9749_v49 }
 0xd80   : > { %v11098_v60 = vpop.permute.xlu1 %11097  ;;  %v10752_v8 = vpop.permute.xlu0 %10751  ;;  %v9752_v36 = vcombine.low %v9734_v21, %v9749_v49  ;;  %v10089_v49 = vcombine.high %v14880_v55, %v15675_v40  ;;  %v10105_v55 = vcombine.high %v14893_v35, %v14897_v58 }
 0xd81   : > { %v15032_v2 = vrot.slane %v10752_v8, %v12889_v9  ;;  %v10958_v62 = vcombine.low %v15042_v4, %v15039_v50 }
 0xd82   : > { %9582 = vrot.lane.b32.xlu1 %v9575_v33, %s12805_s11  ;;  %9578 = vrot.lane.b32.xlu0 %v9574_v38, %s12806_s12  ;;  %v15689_v38 = vld [vmem:[#allocation26_spill] sm:$0xff]  ;;  %v10103_v15 = vrot.slane %v10089_v49, %v12898_v17 }
 0xd83   : > { %v15049_v26 = vrot.slane %v15032_v2, %v12898_v17  ;;  %v9897_v8 = vcombine.high %v15689_v38, %v14798_v12  ;;  %v15073_v12 = vrot.slane %v10958_v62, %v12898_v17  ;;  %v10074_v62 = vcombine.high %v14865_v29, %v14858_v52  ;;  %v15690_v52 = vld [vmem:[#allocation3_spill] sm:$0xff]  ;;  %v15691_v29 = vld [vmem:[#allocation2_spill] sm:$0xff] }
 0xd84   : > { %v11102_v10 = vpop.permute.xlu1 %11101  ;;  %v11100_v28 = vpop.permute.xlu0 %11099 }
 0xd85   : > { %v9911_v51 = vrot.slane %v9897_v8, %v12898_v17 }
 0xd86   : > { %9586 = vrot.lane.b32.xlu0 %v9576_v57, %s12807_s13  ;;  %9755 = vrot.lane.b32.xlu1 %v9751_v42, %s12806_s12 }
 0xd87   : > { %v9929_v8 = vcombine.low %v9911_v51, %v9926_v31 }
 0xd88   : > { %v10929_v33 = vpop.permute.xlu1 %10928  ;;  %v11104_v53 = vpop.permute.xlu0 %11103 }
 0xd89   : > { %v15067_v47 = vrot.slane %v10929_v33, %v12889_v9  ;;  %v11119_v57 = vcombine.low %v11100_v28, %v11104_v53  ;;  %v10266_v53 = vcombine.high %v14915_v30, %v15675_v40 }
 0xd8a   : > { %9763 = vrot.lane.b32.xlu1 %v9753_v5, %s12807_s13  ;;  %9759 = vrot.lane.b32.xlu0 %v9752_v36, %s12805_s11  ;;  %v11111_v5 = vcombine.low %v11098_v60, %v11102_v10  ;;  %v9930_v36 = vcombine.high %v9911_v51, %v9926_v31  ;;  %v6846_v60 = vcombine.low %v15691_v29, %v15690_v52 }
 0xd8b   : > { %v15077_v42 = vrot.slane %v15067_v47, %v12898_v17  ;;  %v15095_v28 = vrot.slane %v11119_v57, %v12889_v9  ;;  %v10088_v31 = vrot.slane %v10074_v62, %v12898_v17  ;;  %v10251_v51 = vcombine.high %v14890_v13, %v14887_v63 }
 0xd8c   : > { %v11277_v21 = vpop.permute.xlu1 %11276  ;;  %v11275_v38 = vpop.permute.xlu0 %11274 }
 0xd8d   : > { %v10107_v13 = vcombine.high %v10088_v31, %v10103_v15 }
 0xd8e   : > { %9936 = vrot.lane.b32.xlu1 %v9929_v8, %s12805_s11  ;;  %9932 = vrot.lane.b32.xlu0 %v9928_v44, %s12806_s12  ;;  %v15103_v44 = vrot.slane %v11111_v5, %v12889_v9 }
 0xd90   : > { %v11281_v33 = vpop.permute.xlu1 %11280  ;;  %v11279_v22 = vpop.permute.xlu0 %11278  ;;  %v11135_v57 = vcombine.low %v15103_v44, %v15095_v28 }
 0xd91   : > { %v11296_v10 = vcombine.low %v11277_v21, %v11281_v33  ;;  %v11288_v8 = vcombine.low %v11275_v38, %v11279_v22  ;;  %v10280_v22 = vrot.slane %v10266_v53, %v12898_v17  ;;  %v10106_v38 = vcombine.low %v10088_v31, %v10103_v15 }
 0xd92   : > { %9940 = vrot.lane.b32.xlu0 %v9930_v36, %s12807_s13  ;;  %10109 = vrot.lane.b32.xlu1 %v10105_v55, %s12806_s12  ;;  %v15692_v36 = vld [vmem:[#allocation4_spill] sm:$0xff]  ;;  %v10265_v53 = vrot.slane %v10251_v51, %v12898_v17  ;;  %v10443_v15 = vcombine.high %v14957_v27, %v15675_v40  ;;  %v15693_v51 = vld [vmem:[#allocation5_spill] sm:$0xff] }
 0xd93   : > { %v15108_v30 = vrot.slane %v11296_v10, %v12889_v9  ;;  %v15111_v49 = vrot.slane %v11288_v8, %v12889_v9  ;;  %v6862_v55 = vsel %vm529_vm1, %v6846_v60, %v15692_v36 }
 0xd94   : > { %v11283_v21 = vpop.permute.xlu1 %11282  ;;  %v11106_v63 = vpop.permute.xlu0 %11105  ;;  %v10283_v31 = vcombine.low %v10265_v53, %v10280_v22  ;;  %v6863_v27 = vsel %vm531_vm2, %v6862_v55, %v15693_v51  ;;  %v10457_v36 = vrot.slane %v10443_v15, %v12898_v17  ;;  %v10459_v55 = vcombine.high %v14971_v0, %v14975_v14 }
 0xd95   : > { %v11312_v33 = vcombine.low %v15111_v49, %v15108_v30  ;;  %v15119_v62 = vrot.slane %v11283_v21, %v12889_v9  ;;  %v15122_v5 = vrot.slane %v11106_v63, %v12889_v9  ;;  %v15139_v9 = vrot.slane %v11135_v57, %v12898_v17  ;;  %v12055_v57 = vld [vmem:[%s15617_s1 + $0x98] sm:$0x7f] }
 0xd96   : > { %10117 = vrot.lane.b32.xlu1 %v10107_v13, %s12807_s13  ;;  %10113 = vrot.lane.b32.xlu0 %v10106_v38, %s12805_s11  ;;  %v10282_v21 = vcombine.high %v14923_v43, %v14927_v3  ;;  %v10428_v13 = vcombine.high %v14943_v48, %v14938_v18  ;;  %v10620_v51 = vcombine.high %v14990_v32, %v15675_v40  ;;  %v15694_v18 = vld [vmem:[#allocation7_spill] sm:$0xff]  ;;  %v15695_v48 = vld [vmem:[#allocation6_spill] sm:$0xff] }
 0xd97   : > { %v15132_v52 = vrot.slane %v11312_v33, %v12898_v17  ;;  %v15136_v29 = vrot.slane %v15119_v62, %v12898_v17  ;;  %v15143_v60 = vrot.slane %v15122_v5, %v12898_v17  ;;  %v15696_v63 = vcombine.low %v15694_v18, %v15695_v48  ;;  %v12063_v32 = vld [vmem:[%s15617_s1 + $0xc8] sm:$0x7f] }
 0xd98   : > { %v7029_v10 = vpop.permute.xlu1 %7028  ;;  %v6860_v8 = vpop.permute.xlu0 %6859 }
 0xd99   : > { %v6864_v33 = vsel %vm533_vm3, %v6863_v27, %v6860_v8  ;;  %v7039_v38 = vsel %vm529_vm1, %v15696_v63, %v7029_v10  ;;  %v10442_v10 = vrot.slane %v10428_v13, %v12898_v17  ;;  %v10605_v63 = vcombine.high %v14968_v34, %v14965_v19 }
 0xd9a   : > { %10290 = vrot.lane.b32.xlu1 %v10283_v31, %s12805_s11  ;;  %10286 = vrot.lane.b32.xlu0 %v10282_v21, %s12806_s12  ;;  %v10284_v31 = vcombine.high %v10265_v53, %v10280_v22  ;;  %v15697_v21 = vld [vmem:[#allocation19_spill] sm:$0xff]  ;;  %v10634_v22 = vrot.slane %v10620_v51, %v12898_v17  ;;  %v10797_v51 = vcombine.high %v15032_v2, %v15675_v40 }
 0xd9b   : > { %12541 = vmatpush3.msk.msra.mxu1 %vm616_vm4, %v6864_v33  ;;  %v15698_v33 = vld [vmem:[#allocation18_spill] sm:$0xff]  ;;  %v10461_v18 = vcombine.high %v10442_v10, %v10457_v36  ;;  %v10460_v19 = vcombine.low %v10442_v10, %v10457_v36  ;;  %v10619_v34 = vrot.slane %v10605_v63, %v12898_v17  ;;  %v15700_v10 = vld [vmem:[#allocation9_spill] sm:$0xff] }
 0xd9c   : > { %v7037_v8 = vpop.permute.xlu1 %7036  ;;  %v7033_v27 = vpop.permute.xlu0 %7032  ;;  %12550 = vmatprep.subr.mxu1 %v15675_v40  ;;  %12543 = vmatmul.mubr.msk.f32.vlgmr.msra.gmra.mxu1 %vm612_vm5, %v12055_v57  ;;  %v7180_v14 = vcombine.low %v15698_v33, %v15697_v21  ;;  %v10811_v2 = vrot.slane %v10797_v51, %v12898_v17  ;;  %v10813_v21 = vcombine.high %v15045_v1, %v15049_v26 }
 0xd9d   : > { %v7040_v15 = vsel %vm531_vm2, %v7039_v38, %v7033_v27  ;;  %12552 = vmatprep.mubr.msk.f32.mxu1 %vm12808_vm0, %v15675_v40  ;;  %v10974_v33 = vcombine.high %v15067_v47, %v15675_v40  ;;  %v10959_v51 = vcombine.high %v15042_v4, %v15039_v50 }
 0xd9e   : > { %v7041_v57 = vsel %vm533_vm3, %v7040_v15, %v7037_v8  ;;  %10463 = vrot.lane.b32.xlu1 %v10459_v55, %s12806_s12  ;;  %10294 = vrot.lane.b32.xlu0 %v10284_v31, %s12807_s13  ;;  %v10637_v55 = vcombine.low %v10619_v34, %v10634_v22  ;;  %v12072_v15 = vld [vmem:[%s15617_s1 + $0xd8] sm:$0x7f]  ;;  %v10782_v31 = vcombine.high %v15020_v20, %v15016_v39 }
 0xd9f   : > { %12546 = vmatpush3.msk.msra.mxu0 %vm616_vm4, %v7041_v57  ;;  %v10973_v4 = vrot.slane %v10959_v51, %v12898_v17  ;;  %v12097_v51 = vld [vmem:[%s15617_s1 + $0x148] sm:$0x7f] }
 0xda0   : > { %v7190_v53 = vpop.permute.xlu1 %7189  ;;  %v7186_v38 = vpop.permute.xlu0 %7185  ;;  %12555 = vmatprep.subr.mxu0 %v15675_v40  ;;  %12548 = vmatmul.mubr.msk.f32.vlgmr.msra.gmra.mxu0 %vm612_vm5, %v12063_v32  ;;  %v15699_v32 = vld [vmem:[#allocation8_spill] sm:$0xff]  ;;  %v10796_v47 = vrot.slane %v10782_v31, %v12898_v17 }
 0xda1   : > { %v7196_v13 = vsel %vm529_vm1, %v7180_v14, %v7186_v38  ;;  %12557 = vmatprep.mubr.msk.f32.mxu0 %vm12808_vm0, %v15675_v40  ;;  %v10636_v14 = vcombine.high %v14997_v24, %v15001_v7  ;;  %v15701_v63 = vcombine.low %v15699_v32, %v15700_v10  ;;  %v12089_v10 = vld [vmem:[%s15617_s1 + $0x118] sm:$0x7f] }
 0xda2   : > { %10471 = vrot.lane.b32.xlu1 %v10461_v18, %s12807_s13  ;;  %10467 = vrot.lane.b32.xlu0 %v10460_v19, %s12805_s11  ;;  %v7197_v8 = vsel %vm531_vm2, %v7196_v13, %v7190_v53  ;;  %v10638_v53 = vcombine.high %v10619_v34, %v10634_v22  ;;  %v15702_v18 = vld [vmem:[#allocation23_spill] sm:$0xff]  ;;  %v15703_v13 = vld [vmem:[#allocation22_spill] sm:$0xff]  ;;  %v10815_v22 = vcombine.high %v10796_v47, %v10811_v2 }
 0xda3   : > { %v7514_v19 = vcombine.low %v15703_v13, %v15702_v18  ;;  %v10988_v34 = vrot.slane %v10974_v33, %v12898_v17 }
 0xda4   : > { %v7363_v48 = vpop.permute.xlu1 %7362  ;;  %v7194_v27 = vpop.permute.xlu0 %7193 }
 0xda5   : > { %v7198_v36 = vsel %vm533_vm3, %v7197_v8, %v7194_v27  ;;  %v7373_v39 = vsel %vm529_vm1, %v15701_v63, %v7363_v48  ;;  %v11136_v63 = vcombine.high %v15103_v44, %v15095_v28  ;;  %v10992_v13 = vcombine.high %v10973_v4, %v10988_v34 }
 0xda6   : > { %10644 = vrot.lane.b32.xlu1 %v10637_v55, %s12805_s11  ;;  %12551 = vmatpush3.msk.msra.mxu1 %vm616_vm4, %v7198_v36  ;;  %v12080_v55 = vld [vmem:[%s15617_s1 + $0x108] sm:$0x7f]  ;;  %v10991_v36 = vcombine.low %v10973_v4, %v10988_v34 }
 0xda7   : > { %10640 = vrot.lane.b32.xlu0 %v10636_v14, %s12806_s12  ;;  %12560 = vmatprep.subr.mxu1 %v15675_v40  ;;  %v10814_v14 = vcombine.low %v10796_v47, %v10811_v2  ;;  %v10990_v2 = vcombine.high %v15073_v12, %v15077_v42  ;;  %v15708_v47 = vld [vmem:[#allocation24_spill] sm:$0xff] }
 0xda8   : > { %v7371_v20 = vpop.permute.xlu1 %7370  ;;  %v7367_v57 = vpop.permute.xlu0 %7366  ;;  %12553 = vmatmul.mubr.msk.f32.vlgmr.msra.gmra.mxu1 %vm612_vm5, %v12072_v15  ;;  %v11151_v15 = vcombine.high %v15122_v5, %v15675_v40  ;;  %v11328_v5 = vcombine.high %v15119_v62, %v15675_v40 }
 0xda9   : > { %v7374_v38 = vsel %vm531_vm2, %v7373_v39, %v7367_v57  ;;  %12562 = vmatprep.mubr.msk.f32.mxu1 %vm12808_vm0, %v15675_v40  ;;  %v15704_v57 = vld [vmem:[#allocation11_spill] sm:$0xff] }
 0xdaa   : > { %v7375_v48 = vsel %vm533_vm3, %v7374_v38, %v7371_v20  ;;  %10817 = vrot.lane.b32.xlu1 %v10813_v21, %s12806_s12  ;;  %v11165_v39 = vrot.slane %v11151_v15, %v12898_v17  ;;  %v11167_v20 = vcombine.high %v15139_v9, %v15143_v60  ;;  %v11342_v34 = vrot.slane %v11328_v5, %v12898_v17 }
 0xdab   : > { %10648 = vrot.lane.b32.xlu0 %v10638_v53, %s12807_s13  ;;  %12556 = vmatpush3.msk.msra.mxu0 %vm616_vm4, %v7375_v48  ;;  %v15705_v53 = vld [vmem:[#allocation10_spill] sm:$0xff]  ;;  %v11150_v48 = vrot.slane %v11136_v63, %v12898_v17 }
 0xdac   : > { %v7524_v8 = vpop.permute.xlu1 %7523  ;;  %v7520_v27 = vpop.permute.xlu0 %7519  ;;  %12565 = vmatprep.subr.mxu0 %v15675_v40  ;;  %12558 = vmatmul.mubr.msk.f32.vlgmr.msra.gmra.mxu0 %vm612_vm5, %v12080_v55  ;;  %v15706_v38 = vcombine.low %v15704_v57, %v15705_v53  ;;  %v15707_v55 = vld [vmem:[#allocation25_spill] sm:$0xff] }
 0xdad   : > { %v7530_v50 = vsel %vm529_vm1, %v7514_v19, %v7520_v27  ;;  %12567 = vmatprep.mubr.msk.f32.mxu0 %vm12808_vm0, %v15675_v40  ;;  %v7848_v62 = vcombine.low %v15708_v47, %v15707_v55  ;;  %v11169_v27 = vcombine.high %v11150_v48, %v11165_v39  ;;  %v11168_v4 = vcombine.low %v11150_v48, %v11165_v39  ;;  %v6196_v55 = vpop.f32.mrf.mxu0  ;;  %v6272_v47 = vpop.f32.mrf.mxu1 }
 0xdae   : > { %10825 = vrot.lane.b32.xlu1 %v10815_v22, %s12807_s13  ;;  %v7531_v21 = vsel %vm531_vm2, %v7530_v50, %v7524_v8  ;;  %v11313_v22 = vcombine.high %v15111_v49, %v15108_v30 }
 0xdaf   : > { %10821 = vrot.lane.b32.xlu0 %v10814_v14, %s12805_s11 }
 0xdb0   : > { %v7697_v31 = vpop.permute.xlu1 %7696  ;;  %v7528_v33 = vpop.permute.xlu0 %7527  ;;  %v11327_v49 = vrot.slane %v11313_v22, %v12898_v17  ;;  %v15709_v17 = vld [vmem:[#allocation12_spill] sm:$0xff]  ;;  %v11441_v22 = vld [vmem:[%s15618_s2] sm:$0x7f] }
 0xdb1   : > { %v7532_v32 = vsel %vm533_vm3, %v7531_v21, %v7528_v33  ;;  %v7707_v28 = vsel %vm529_vm1, %v15706_v38, %v7697_v31  ;;  %v11344_v33 = vcombine.high %v15132_v52, %v15136_v29  ;;  %v15712_v38 = vld [vmem:[#allocation28_spill] sm:$0xff] }
 0xdb2   : > { %10998 = vrot.lane.b32.xlu1 %v10991_v36, %s12805_s11  ;;  %12561 = vmatpush3.msk.msra.mxu1 %vm616_vm4, %v7532_v32  ;;  %v11345_v36 = vcombine.low %v11327_v49, %v11342_v34  ;;  %v12106_v32 = vld [vmem:[%s15617_s1 + $0x158] sm:$0x7f]  ;;  %v11346_v57 = vcombine.high %v11327_v49, %v11342_v34  ;;  %v12519_v34 = vpop.f32.mrf.mxu0 }
 0xdb3   : > { %10994 = vrot.lane.b32.xlu0 %v10990_v2, %s12806_s12  ;;  %12570 = vmatprep.subr.mxu1 %v15675_v40  ;;  %v12113_v49 = vld [vmem:[%s15617_s1 + $0x198] sm:$0x7f] }
 0xdb4   : > { %v7705_v44 = vpop.permute.xlu1 %7704  ;;  %v7701_v18 = vpop.permute.xlu0 %7700  ;;  %12563 = vmatmul.mubr.msk.f32.vlgmr.msra.gmra.mxu1 %vm612_vm5, %v12089_v10  ;;  %v15710_v10 = vld [vmem:[#allocation13_spill] sm:$0xff] }
 0xdb5   : > { %v7708_v19 = vsel %vm531_vm2, %v7707_v28, %v7701_v18  ;;  %12572 = vmatprep.mubr.msk.f32.mxu1 %vm12808_vm0, %v15675_v40  ;;  %v15711_v63 = vcombine.low %v15709_v17, %v15710_v10  ;;  %v15713_v28 = vld [vmem:[#allocation27_spill] sm:$0xff] }
 0xdb6   : > { %v7709_v8 = vsel %vm533_vm3, %v7708_v19, %v7705_v44  ;;  %11171 = vrot.lane.b32.xlu1 %v11167_v20, %s12806_s12  ;;  %v8182_v44 = vcombine.low %v15713_v28, %v15712_v38  ;;  %v12109_v18 = vld [vmem:[%s15617_s1 + $0x188] sm:$0x7f]  ;;  %v8614_v19 = vld [vmem:[%s15618_s2] sm:$0x7f]  ;;  %v12120_v38 = vld [vmem:[%s15617_s1 + $0x1d8] sm:$0x7f] }
 0xdb7   : > { %11002 = vrot.lane.b32.xlu0 %v10992_v13, %s12807_s13  ;;  %12566 = vmatpush3.msk.msra.mxu0 %vm616_vm4, %v7709_v8 }
 0xdb8   : > { %v7858_v14 = vpop.permute.xlu1 %7857  ;;  %v7854_v50 = vpop.permute.xlu0 %7853  ;;  %12575 = vmatprep.subr.mxu0 %v15675_v40  ;;  %12568 = vmatmul.mubr.msk.f32.vlgmr.msra.gmra.mxu0 %vm612_vm5, %v12097_v51 }
 0xdb9   : > { %v7864_v30 = vsel %vm529_vm1, %v7848_v62, %v7854_v50  ;;  %12577 = vmatprep.mubr.msk.f32.mxu0 %vm12808_vm0, %v15675_v40  ;;  %v6273_v62 = vadd.f32 %v6272_v47, %v6196_v55 }
 0xdba   : > { %11179 = vrot.lane.b32.xlu1 %v11169_v27, %s12807_s13  ;;  %v7865_v31 = vsel %vm531_vm2, %v7864_v30, %v7858_v14  ;;  %v12524_v27 = vpop.f32.mrf.mxu1  ;;  %v6448_v14 = vpop.f32.mrf.mxu0 }
 0xdbb   : > { %11175 = vrot.lane.b32.xlu0 %v11168_v4, %s12805_s11  ;;  %v15717_v27 = vld [vmem:[#allocation15_spill] sm:$0xff] }
 0xdbc   : > { %v8031_v15 = vpop.permute.xlu1 %8030  ;;  %v7862_v21 = vpop.permute.xlu0 %7861 }
 0xdbd   : > { %v7866_v2 = vsel %vm533_vm3, %v7865_v31, %v7862_v21  ;;  %v8041_v5 = vsel %vm529_vm1, %v15711_v63, %v8031_v15  ;;  %v12529_v31 = vpop.f32.mrf.mxu0  ;;  %v15714_v21 = vld [vmem:[#allocation14_spill] sm:$0xff]  ;;  %v8516_v63 = vcombine.low %v14872_v54, %v14875_v61 }
 0xdbe   : > { %11352 = vrot.lane.b32.xlu1 %v11345_v36, %s12805_s11  ;;  %12571 = vmatpush3.msk.msra.mxu1 %vm616_vm4, %v7866_v2  ;;  %v6452_v36 = vadd.f32 %v6448_v14, %v6273_v62  ;;  %v15718_v14 = vld [vmem:[#allocation16_spill] sm:$0xff] }
 0xdbf   : > { %11348 = vrot.lane.b32.xlu0 %v11344_v33, %s12806_s12  ;;  %12580 = vmatprep.subr.mxu1 %v15675_v40  ;;  %v15715_v33 = vcombine.low %v14500_v45, %v15714_v21 }
 0xdc0   : > { %v8039_v39 = vpop.permute.xlu1 %8038  ;;  %v8035_v20 = vpop.permute.xlu0 %8034  ;;  %12573 = vmatmul.mubr.msk.f32.vlgmr.msra.gmra.mxu1 %vm612_vm5, %v12106_v32 }
 0xdc1   : > { %v8042_v53 = vsel %vm531_vm2, %v8041_v5, %v8035_v20  ;;  %12582 = vmatprep.mubr.msk.f32.mxu1 %vm12808_vm0, %v15675_v40  ;;  %v12116_v5 = vld [vmem:[%s15617_s1 + $0x1c8] sm:$0x7f] }
 0xdc2   : > { %v8043_v13 = vsel %vm533_vm3, %v8042_v53, %v8039_v39  ;;  %8617 = vperm.xlu1 %12728, %v8614_v19  }
 0xdc3   : > { %11356 = vrot.lane.b32.xlu0 %v11346_v57, %s12807_s13  ;;  %12576 = vmatpush3.msk.msra.mxu0 %vm616_vm4, %v8043_v13  ;;  %v15716_v13 = vcombine.low %v14538_v56, %v14542_v59  ;;  %v15719_v56 = vcombine.low %v15717_v27, %v15718_v14  ;;  %v12162_v27 = vld [vmem:[%s15617_s1 + $0x90] sm:$0x7f] }
 0xdc4   : > { %v8192_v51 = vpop.permute.xlu1 %8191  ;;  %v8188_v48 = vpop.permute.xlu0 %8187  ;;  %12585 = vmatprep.subr.mxu0 %v15675_v40  ;;  %12578 = vmatmul.mubr.msk.f32.vlgmr.msra.gmra.mxu0 %vm612_vm5, %v12109_v18 }
 0xdc5   : > { %v8198_v8 = vsel %vm529_vm1, %v8182_v44, %v8188_v48  ;;  %12587 = vmatprep.mubr.msk.f32.mxu0 %vm12808_vm0, %v15675_v40  ;;  %v12128_v48 = vld [vmem:[%s15617_s1 + $0x10] sm:$0x7f] }
 0xdc6   : > { %v8199_v4 = vsel %vm531_vm2, %v8198_v8, %v8192_v51 }
 0xdc7   : > { %11444 = vperm.xlu0 %12727, %v11441_v22  }
 0xdc8   : > { %v8365_v50 = vpop.permute.xlu1 %8364  ;;  %v8196_v30 = vpop.permute.xlu0 %8195 }
 0xdc9   : > { %v8200_v15 = vsel %vm533_vm3, %v8199_v4, %v8196_v30  ;;  %v8375_v2 = vsel %vm529_vm1, %v15715_v33, %v8365_v50  ;;  %v15720_v33 = vcombine.low %v14612_v46, %v14616_v6  ;;  %v15721_v46 = vld [vmem:[#allocation20_spill] sm:$0xff]  ;;  %v15722_v6 = vld [vmem:[#allocation21_spill] sm:$0xff] }
 0xdca   : > { %12581 = vmatpush3.msk.msra.mxu1 %vm616_vm4, %v8200_v15 }
 0xdcb   : > { %12590 = vmatprep.subr.mxu1 %v15675_v40  ;;  %12583 = vmatmul.mubr.msk.f32.vlgmr.msra.gmra.mxu1 %vm612_vm5, %v12113_v49  ;;  %v8720_v49 = vld [vmem:[%s15617_s1] sm:$0x7f] }
 0xdcc   : > { %v8373_v32 = vpop.permute.xlu1 %8372  ;;  %v8369_v17 = vpop.permute.xlu0 %8368  ;;  %12592 = vmatprep.mubr.msk.f32.mxu1 %vm12808_vm0, %v15675_v40 }
 0xdcd   : > { %v8376_v10 = vsel %vm531_vm2, %v8375_v2, %v8369_v17 }
 0xdce   : > { %v8377_v39 = vsel %vm533_vm3, %v8376_v10, %v8373_v32 }
 0xdcf   : > { %12586 = vmatpush3.msk.msra.mxu0 %vm616_vm4, %v8377_v39 }
 0xdd0   : > { %v8526_v45 = vpop.permute.xlu1 %8525  ;;  %v8522_v20 = vpop.permute.xlu0 %8521  ;;  %12595 = vmatprep.subr.mxu0 %v15675_v40  ;;  %12588 = vmatmul.mubr.msk.f32.vlgmr.msra.gmra.mxu0 %vm612_vm5, %v12116_v5 }
 0xdd1   : > { %v8532_v57 = vsel %vm529_vm1, %v8516_v63, %v8522_v20  ;;  %12597 = vmatprep.mubr.msk.f32.mxu0 %vm12808_vm0, %v15675_v40  ;;  %v12138_v63 = vld [vmem:[%s15617_s1 + $0x40] sm:$0x7f]  ;;  %v15723_v20 = vcombine.low %v15721_v46, %v15722_v6 }
 0xdd2   : > { %v8533_v61 = vsel %vm531_vm2, %v8532_v57, %v8526_v45  ;;  %v12186_v6 = vld [vmem:[%s15617_s1 + $0x100] sm:$0x7f] }
 0xdd4   : > { %v8796_v54 = vpop.permute.xlu1 %8795  ;;  %v8530_v53 = vpop.permute.xlu0 %8529 }
 0xdd5   : > { %v8534_v28 = vsel %vm533_vm3, %v8533_v61, %v8530_v53  ;;  %v8806_v19 = vsel %vm529_vm1, %v15716_v13, %v8796_v54 }
 0xdd6   : > { %12591 = vmatpush3.msk.msra.mxu1 %vm616_vm4, %v8534_v28 }
 0xdd7   : > { %12600 = vmatprep.subr.mxu1 %v15675_v40  ;;  %12593 = vmatmul.mubr.msk.f32.vlgmr.msra.gmra.mxu1 %vm612_vm5, %v12120_v38  ;;  %v6605_v55 = vpop.f32.mrf.mxu1  ;;  %v12146_v38 = vld [vmem:[%s15617_s1 + $0x50] sm:$0x7f] }
 0xdd8   : > { %v8707_v44 = vpop.permute.xlu1 %8706  ;;  %v8800_v18 = vpop.permute.xlu0 %8799  ;;  %12602 = vmatprep.mubr.msk.f32.mxu1 %vm12808_vm0, %v15675_v40  ;;  %v6609_v22 = vadd.f32 %v6605_v55, %v6452_v36 }
 0xdd9   : > { %v8807_v47 = vsel %vm531_vm2, %v8806_v19, %v8800_v18  ;;  %v12534_v34 = vpop.f32.mrf.mxu1  ;;  %v8717_v59 = vsel %vm529_vm1, %v15719_v56, %v8707_v44  ;;  %v15724_v44 = vcombine.low %v14717_v25, %v14721_v41  ;;  %v15725_v25 = vcombine.low %v14745_v16, %v14749_v23 }
 0xdda   : > { %v15726_v16 = vcombine.low %v14804_v11, %v14808_v37  ;;  %v15727_v11 = vld [vmem:[#allocation29_spill] sm:$0xff]  ;;  %v15728_v37 = vld [vmem:[#allocation30_spill] sm:$0xff] }
 0xddc   : > { %v8711_v62 = vpop.permute.xlu1 %8710  ;;  %v8804_v51 = vpop.permute.xlu0 %8803 }
 0xddd   : > { %v8808_v8 = vsel %vm533_vm3, %v8807_v47, %v8804_v51  ;;  %v8718_v50 = vsel %vm531_vm2, %v8717_v59, %v8711_v62  ;;  %v12154_v47 = vld [vmem:[%s15617_s1 + $0x80] sm:$0x7f] }
 0xdde   : > { %12596 = vmatpush3.msk.msra.mxu0 %vm616_vm4, %v8808_v8 }
 0xddf   : > { %12605 = vmatprep.subr.mxu0 %v15675_v40  ;;  %12598 = vmatmul.mubr.msk.f32.vlgmr.msra.gmra.mxu0 %vm612_vm5, %v12128_v48  ;;  %v6782_v15 = vpop.f32.mrf.mxu0 }
 0xde0   : > { %v9048_v4 = vpop.permute.xlu1 %9047  ;;  %v8715_v30 = vpop.permute.xlu0 %8714  ;;  %12607 = vmatprep.mubr.msk.f32.mxu0 %vm12808_vm0, %v15675_v40  ;;  %v15394_v31 = vadd.f32 %v6782_v15, %v6609_v22  ;;  %v15729_v15 = vcombine.low %v15727_v11, %v15728_v37  ;;  %v12216_v11 = vld [vmem:[%s15617_s1 + $0x190] sm:$0x7f] }
 0xde1   : > { %v8719_v36 = vsel %vm533_vm3, %v8718_v50, %v8715_v30  ;;  %v12539_v21 = vpop.f32.mrf.mxu0  ;;  %v9058_v2 = vsel %vm529_vm1, %v15720_v33, %v9048_v4  ;;  %v12170_v4 = vld [vmem:[%s15617_s1 + $0xc0] sm:$0x7f] }
 0xde2   : > { %12601 = vmatpush3.msk.msra.mxu1 %vm616_vm4, %v8719_v36 }
 0xde3   : > { %12610 = vmatprep.subr.mxu1 %v15675_v40  ;;  %12603 = vmatmul.mubr.msk.f32.vlgmr.msra.gmra.mxu1 %vm612_vm5, %v8720_v49 }
 0xde4   : > { %v9056_v32 = vpop.permute.xlu1 %9055  ;;  %v9052_v17 = vpop.permute.xlu0 %9051  ;;  %12612 = vmatprep.mubr.msk.f32.mxu1 %vm12808_vm0, %v15675_v40 }
 0xde5   : > { %v9059_v10 = vsel %vm531_vm2, %v9058_v2, %v9052_v17  ;;  %v12178_v17 = vld [vmem:[%s15617_s1 + $0xd0] sm:$0x7f] }
 0xde6   : > { %v9060_v5 = vsel %vm533_vm3, %v9059_v10, %v9056_v32 }
 0xde7   : > { %12606 = vmatpush3.msk.msra.mxu0 %vm616_vm4, %v9060_v5 }
 0xde8   : > { %v9229_v39 = vpop.permute.xlu1 %9228  ;;  %v9225_v45 = vpop.permute.xlu0 %9224  ;;  %12615 = vmatprep.subr.mxu0 %v15675_v40  ;;  %12608 = vmatmul.mubr.msk.f32.vlgmr.msra.gmra.mxu0 %vm612_vm5, %v12138_v63  ;;  %v15730_v63 = vcombine.low %v14893_v35, %v14897_v58  ;;  %v15731_v58 = vcombine.low %v14923_v43, %v14927_v3  ;;  %v15732_v43 = vld [vmem:[#allocation17_spill] sm:$0xff] }
 0xde9   : > { %v9235_v57 = vsel %vm529_vm1, %v15723_v20, %v9225_v45  ;;  %12617 = vmatprep.mubr.msk.f32.mxu0 %vm12808_vm0, %v15675_v40  ;;  %v15733_v3 = vcombine.low %v14971_v0, %v15732_v43  ;;  %v15734_v0 = vcombine.low %v14997_v24, %v15001_v7  ;;  %v15735_v24 = vcombine.low %v15045_v1, %v15049_v26 }
 0xdea   : > { %v9236_v61 = vsel %vm531_vm2, %v9235_v57, %v9229_v39  ;;  %v15736_v1 = vcombine.low %v15073_v12, %v15077_v42  ;;  %v15737_v12 = vcombine.low %v15139_v9, %v15143_v60  ;;  %v15738_v60 = vcombine.low %v15132_v52, %v15136_v29 }
 0xdec   : > { %v9402_v54 = vpop.permute.xlu1 %9401  ;;  %v9233_v53 = vpop.permute.xlu0 %9232 }
 0xded   : > { %v9237_v28 = vsel %vm533_vm3, %v9236_v61, %v9233_v53  ;;  %v9412_v18 = vsel %vm529_vm1, %v15724_v44, %v9402_v54 }
 0xdee   : > { %12611 = vmatpush3.msk.msra.mxu1 %vm616_vm4, %v9237_v28  ;;  %v12194_v28 = vld [vmem:[%s15617_s1 + $0x110] sm:$0x7f] }
 0xdef   : > { %12620 = vmatprep.subr.mxu1 %v15675_v40  ;;  %12613 = vmatmul.mubr.msk.f32.vlgmr.msra.gmra.mxu1 %vm612_vm5, %v12146_v38 }
 0xdf0   : > { %v9410_v13 = vpop.permute.xlu1 %9409  ;;  %v9406_v19 = vpop.permute.xlu0 %9405  ;;  %12622 = vmatprep.mubr.msk.f32.mxu1 %vm12808_vm0, %v15675_v40 }
 0xdf1   : > { %v9413_v55 = vsel %vm531_vm2, %v9412_v18, %v9406_v19 }
 0xdf2   : > { %v9414_v62 = vsel %vm533_vm3, %v9413_v55, %v9410_v13 }
 0xdf3   : > { %12616 = vmatpush3.msk.msra.mxu0 %vm616_vm4, %v9414_v62 }
 0xdf4   : > { %v9583_v51 = vpop.permute.xlu1 %9582  ;;  %v9579_v48 = vpop.permute.xlu0 %9578  ;;  %12625 = vmatprep.subr.mxu0 %v15675_v40  ;;  %12618 = vmatmul.mubr.msk.f32.vlgmr.msra.gmra.mxu0 %vm612_vm5, %v12154_v47  ;;  %v12202_v47 = vld [vmem:[%s15617_s1 + $0x140] sm:$0x7f] }
 0xdf5   : > { %v9589_v41 = vsel %vm529_vm1, %v15725_v25, %v9579_v48  ;;  %12627 = vmatprep.mubr.msk.f32.mxu0 %vm12808_vm0, %v15675_v40 }
 0xdf6   : > { %v9590_v8 = vsel %vm531_vm2, %v9589_v41, %v9583_v51 }
 0xdf8   : > { %v9756_v22 = vpop.permute.xlu1 %9755  ;;  %v9587_v34 = vpop.permute.xlu0 %9586 }
 0xdf9   : > { %v9591_v14 = vsel %vm533_vm3, %v9590_v8, %v9587_v34  ;;  %v9766_v23 = vsel %vm529_vm1, %v15726_v16, %v9756_v22  ;;  %v12210_v34 = vld [vmem:[%s15617_s1 + $0x150] sm:$0x7f] }
 0xdfa   : > { %12621 = vmatpush3.msk.msra.mxu1 %vm616_vm4, %v9591_v14 }
 0xdfb   : > { %12630 = vmatprep.subr.mxu1 %v15675_v40  ;;  %12623 = vmatmul.mubr.msk.f32.vlgmr.msra.gmra.mxu1 %vm612_vm5, %v12162_v27 }
 0xdfc   : > { %v9764_v56 = vpop.permute.xlu1 %9763  ;;  %v9760_v59 = vpop.permute.xlu0 %9759  ;;  %12632 = vmatprep.mubr.msk.f32.mxu1 %vm12808_vm0, %v15675_v40 }
 0xdfd   : > { %v9767_v50 = vsel %vm531_vm2, %v9766_v23, %v9760_v59 }
 0xdfe   : > { %v9768_v30 = vsel %vm533_vm3, %v9767_v50, %v9764_v56  ;;  %v12213_v56 = vld [vmem:[%s15617_s1 + $0x180] sm:$0x7f] }
 0xdff   : > { %12626 = vmatpush3.msk.msra.mxu0 %vm616_vm4, %v9768_v30 }
 0xe00   : > { %v9937_v49 = vpop.permute.xlu1 %9936  ;;  %v9933_v36 = vpop.permute.xlu0 %9932  ;;  %12635 = vmatprep.subr.mxu0 %v15675_v40  ;;  %12628 = vmatmul.mubr.msk.f32.vlgmr.msra.gmra.mxu0 %vm612_vm5, %v12170_v4 }
 0xe01   : > { %v9943_v21 = vsel %vm529_vm1, %v15729_v15, %v9933_v36  ;;  %12637 = vmatprep.mubr.msk.f32.mxu0 %vm12808_vm0, %v15675_v40 }
 0xe02   : > { %v9944_v2 = vsel %vm531_vm2, %v9943_v21, %v9937_v49 }
 0xe04   : > { %v10110_v33 = vpop.permute.xlu1 %10109  ;;  %v9941_v32 = vpop.permute.xlu0 %9940 }
 0xe05   : > { %v9945_v10 = vsel %vm533_vm3, %v9944_v2, %v9941_v32  ;;  %v10120_v5 = vsel %vm529_vm1, %v15730_v63, %v10110_v33  ;;  %v12219_v2 = vld [vmem:[%s15617_s1 + $0x1c0] sm:$0x7f] }
 0xe06   : > { %12631 = vmatpush3.msk.msra.mxu1 %vm616_vm4, %v9945_v10 }
 0xe07   : > { %12640 = vmatprep.subr.mxu1 %v15675_v40  ;;  %12633 = vmatmul.mubr.msk.f32.vlgmr.msra.gmra.mxu1 %vm612_vm5, %v12178_v17 }
 0xe08   : > { %v10118_v39 = vpop.permute.xlu1 %10117  ;;  %v10114_v45 = vpop.permute.xlu0 %10113  ;;  %12642 = vmatprep.mubr.msk.f32.mxu1 %vm12808_vm0, %v15675_v40 }
 0xe09   : > { %v10121_v46 = vsel %vm531_vm2, %v10120_v5, %v10114_v45  ;;  %v12222_v5 = vld [vmem:[%s15617_s1 + $0x1d0] sm:$0x7f] }
 0xe0a   : > { %v10122_v20 = vsel %vm533_vm3, %v10121_v46, %v10118_v39 }
 0xe0b   : > { %12636 = vmatpush3.msk.msra.mxu0 %vm616_vm4, %v10122_v20 }
 0xe0c   : > { %v10291_v57 = vpop.permute.xlu1 %10290  ;;  %12645 = vmatprep.subr.mxu0 %v15675_v40  ;;  %12638 = vmatmul.mubr.msk.f32.vlgmr.msra.gmra.mxu0 %vm612_vm5, %v12186_v6  ;;  %v10287_v35 = vpop.permute.xlu0 %10286 }
 0xe0d   : > { %12647 = vmatprep.mubr.msk.f32.mxu0 %vm12808_vm0, %v15675_v40  ;;  %v10297_v54 = vsel %vm529_vm1, %v15731_v58, %v10287_v35 }
 0xe0e   : > { %v10298_v53 = vsel %vm531_vm2, %v10297_v54, %v10291_v57 }
 0xe10   : > { %v10464_v61 = vpop.permute.xlu1 %10463  ;;  %v10295_v38 = vpop.permute.xlu0 %10294 }
 0xe11   : > { %v10299_v44 = vsel %vm533_vm3, %v10298_v53, %v10295_v38  ;;  %v10474_v13 = vsel %vm529_vm1, %v15733_v3, %v10464_v61 }
 0xe12   : > { %12641 = vmatpush3.msk.msra.mxu1 %vm616_vm4, %v10299_v44 }
 0xe13   : > { %12650 = vmatprep.subr.mxu1 %v15675_v40  ;;  %12643 = vmatmul.mubr.msk.f32.vlgmr.msra.gmra.mxu1 %vm612_vm5, %v12194_v28 }
 0xe14   : > { %v10472_v18 = vpop.permute.xlu1 %10471  ;;  %v10468_v19 = vpop.permute.xlu0 %10467  ;;  %12652 = vmatprep.mubr.msk.f32.mxu1 %vm12808_vm0, %v15675_v40 }
 0xe15   : > { %v10475_v55 = vsel %vm531_vm2, %v10474_v13, %v10468_v19 }
 0xe16   : > { %v10476_v62 = vsel %vm533_vm3, %v10475_v55, %v10472_v18 }
 0xe17   : > { %12646 = vmatpush3.msk.msra.mxu0 %vm616_vm4, %v10476_v62 }
 0xe18   : > { %v10645_v51 = vpop.permute.xlu1 %10644  ;;  %12655 = vmatprep.subr.mxu0 %v15675_v40  ;;  %12648 = vmatmul.mubr.msk.f32.vlgmr.msra.gmra.mxu0 %vm612_vm5, %v12202_v47 }
 0xe19   : > { %v10641_v48 = vpop.permute.xlu0 %10640  ;;  %12657 = vmatprep.mubr.msk.f32.mxu0 %vm12808_vm0, %v15675_v40 }
 0xe1a   : > { %v10651_v25 = vsel %vm529_vm1, %v15734_v0, %v10641_v48 }
 0xe1b   : > { %v10652_v22 = vsel %vm531_vm2, %v10651_v25, %v10645_v51 }
 0xe1c   : > { %v10818_v41 = vpop.permute.xlu1 %10817 }
 0xe1d   : > { %v10649_v8 = vpop.permute.xlu0 %10648  ;;  %v10828_v7 = vsel %vm529_vm1, %v15735_v24, %v10818_v41 }
 0xe1e   : > { %v10653_v27 = vsel %vm533_vm3, %v10652_v22, %v10649_v8 }
 0xe1f   : > { %12651 = vmatpush3.msk.msra.mxu1 %vm616_vm4, %v10653_v27 }
 0xe20   : > { %v10826_v14 = vpop.permute.xlu1 %10825  ;;  %12660 = vmatprep.subr.mxu1 %v15675_v40  ;;  %12653 = vmatmul.mubr.msk.f32.vlgmr.msra.gmra.mxu1 %vm612_vm5, %v12210_v34 }
 0xe21   : > { %v10822_v16 = vpop.permute.xlu0 %10821  ;;  %12662 = vmatprep.mubr.msk.f32.mxu1 %vm12808_vm0, %v15675_v40 }
 0xe22   : > { %v10829_v23 = vsel %vm531_vm2, %v10828_v7, %v10822_v16 }
 0xe23   : > { %v10830_v59 = vsel %vm533_vm3, %v10829_v23, %v10826_v14 }
 0xe24   : > { %12656 = vmatpush3.msk.msra.mxu0 %vm616_vm4, %v10830_v59  ;;  %v10999_v50 = vpop.permute.xlu1 %10998 }
 0xe25   : > { %v10995_v4 = vpop.permute.xlu0 %10994  ;;  %12665 = vmatprep.subr.mxu0 %v15675_v40  ;;  %12658 = vmatmul.mubr.msk.f32.vlgmr.msra.gmra.mxu0 %vm612_vm5, %v12213_v56 }
 0xe26   : > { %v11005_v26 = vsel %vm529_vm1, %v15736_v1, %v10995_v4  ;;  %12667 = vmatprep.mubr.msk.f32.mxu0 %vm12808_vm0, %v15675_v40 }
 0xe27   : > { %v11006_v49 = vsel %vm531_vm2, %v11005_v26, %v10999_v50 }
 0xe28   : > { %v11172_v30 = vpop.permute.xlu1 %11171 }
 0xe29   : > { %v11003_v36 = vpop.permute.xlu0 %11002  ;;  %v11182_v42 = vsel %vm529_vm1, %v15737_v12, %v11172_v30 }
 0xe2a   : > { %v11007_v37 = vsel %vm533_vm3, %v11006_v49, %v11003_v36 }
 0xe2b   : > { %12661 = vmatpush3.msk.msra.mxu1 %vm616_vm4, %v11007_v37 }
 0xe2c   : > { %v11180_v15 = vpop.permute.xlu1 %11179  ;;  %12663 = vmatmul.mubr.msk.f32.vlgmr.msra.gmra.mxu1 %vm612_vm5, %v12216_v11  ;;  %12670 = vmatprep.subr.mxu1 %v15675_v40 }
 0xe2d   : > { %v11176_v21 = vpop.permute.xlu0 %11175  ;;  %12672 = vmatprep.mubr.msk.f32.mxu1 %vm12808_vm0, %v15675_v40 }
 0xe2e   : > { %v11183_v33 = vsel %vm531_vm2, %v11182_v42, %v11176_v21 }
 0xe2f   : > { %v11184_v32 = vsel %vm533_vm3, %v11183_v33, %v11180_v15 }
 0xe30   : > { %12666 = vmatpush3.msk.msra.mxu0 %vm616_vm4, %v11184_v32  ;;  %v11353_v9 = vpop.permute.xlu1 %11352 }
 0xe31   : > { %v11349_v17 = vpop.permute.xlu0 %11348  ;;  %12668 = vmatmul.mubr.msk.f32.vlgmr.msra.gmra.mxu0 %vm612_vm5, %v12219_v2 }
 0xe32   : > { %v11359_v10 = vsel %vm529_vm1, %v15738_v60, %v11349_v17 }
 0xe33   : > { %v11360_v40 = vsel %vm531_vm2, %v11359_v10, %v11353_v9 }
 0xe35   : > { %v11357_v63 = vpop.permute.xlu0 %11356 }
 0xe36   : > { %v11361_v39 = vsel %vm533_vm3, %v11360_v40, %v11357_v63 }
 0xe37   : > { %12671 = vmatpush3.msk.msra.mxu1 %vm616_vm4, %v11361_v39 }
 0xe38   : > { %12673 = vmatmul.mubr.msk.f32.vlgmr.msra.gmra.mxu1 %vm612_vm5, %v12222_v5 }
 0xe3d   : > { %v8618_v34 = vpop.permute.xlu1 %8617 }
 0xe5c   : > { %v6939_v45 = vpop.f32.mrf.mxu1 }
 0xe5d   : > { %v6943_v58 = vadd.f32 %v6939_v45, %v15394_v31 }
 0xe5e   : > { %v12544_v46 = vpop.f32.mrf.mxu1 }
 0xe60   : > { %v7116_v6 = vpop.f32.mrf.mxu0 }
 0xe61   : > { %v7120_v54 = vadd.f32 %v7116_v6, %v6943_v58 }
 0xe62   : > { %v12549_v20 = vpop.f32.mrf.mxu0 }
 0xe68   : > { %v7273_v52 = vpop.f32.mrf.mxu1 }
 0xe69   : > { %v7277_v38 = vadd.f32 %v7273_v52, %v7120_v54 }
 0xe6a   : > { %v12554_v29 = vpop.f32.mrf.mxu1 }
 0xe6c   : > { %v7450_v57 = vpop.f32.mrf.mxu0 }
 0xe6d   : > { %v7454_v18 = vadd.f32 %v7450_v57, %v7277_v38 }
 0xe6e   : > { %v12559_v35 = vpop.f32.mrf.mxu0 }
 0xe74   : > { %v7607_v61 = vpop.f32.mrf.mxu1 }
 0xe75   : > { %v7611_v43 = vadd.f32 %v7607_v61, %v7454_v18 }
 0xe76   : > { %v12564_v53 = vpop.f32.mrf.mxu1 }
 0xe78   : > { %v7784_v28 = vpop.f32.mrf.mxu0 }
 0xe79   : > { %v7788_v19 = vadd.f32 %v7784_v28, %v7611_v43 }
 0xe7a   : > { %v12569_v44 = vpop.f32.mrf.mxu0 }
 0xe80   : > { %v7941_v3 = vpop.f32.mrf.mxu1 }
 0xe81   : > { %v7945_v62 = vadd.f32 %v7941_v3, %v7788_v19  ;;  %v11445_v3 = vpop.permute.xlu0 %11444 }
 0xe82   : > { %v12574_v13 = vpop.f32.mrf.mxu1 }
 0xe84   : > { %v8118_v55 = vpop.f32.mrf.mxu0 }
 0xe85   : > { %v8122_v48 = vadd.f32 %v8118_v55, %v7945_v62 }
 0xe86   : > { %v12579_v47 = vpop.f32.mrf.mxu0 }
 0xe8b   : > { %v8275_v51 = vpop.f32.mrf.mxu1 }
 0xe8c   : > { %v8279_v25 = vadd.f32 %v8275_v51, %v8122_v48 }
 0xe8d   : > { %v12584_v0 = vpop.f32.mrf.mxu1 }
 0xe90   : > { %v8452_v31 = vpop.f32.mrf.mxu0 }
 0xe91   : > { %v8456_v22 = vadd.f32 %v8452_v31, %v8279_v25 }
 0xe92   : > { %v12589_v41 = vpop.f32.mrf.mxu0 }
 0xe97   : > { %v8609_v8 = vpop.f32.mrf.mxu1 }
 0xe98   : > { %v8613_v27 = vadd.f32 %v8609_v8, %v8456_v22 }
 0xe99   : > { %v12594_v14 = vpop.f32.mrf.mxu1 }
 0xe9a   : > { %v8620_v24 = vadd.f32 %v8618_v34, %v8613_v27 }
 0xe9c   : > { %8621 = vst.msk [vmem:[%s418_s19] sm:$0x7f] %vm3119_vm6, %v8620_v24 }
 0xe9f   : > { %v8883_v7 = vpop.f32.mrf.mxu0 }
 0xea1   : > { %v12599_v16 = vpop.f32.mrf.mxu0 }
 0xea3   : > { %v8959_v23 = vpop.f32.mrf.mxu1 }
 0xea4   : > { %v8960_v15 = vadd.f32 %v8959_v23, %v8883_v7 }
 0xea5   : > { %v12604_v56 = vpop.f32.mrf.mxu1 }
 0xea8   : > { %v9135_v59 = vpop.f32.mrf.mxu0 }
 0xea9   : > { %v9139_v12 = vadd.f32 %v9135_v59, %v8960_v15 }
 0xeaa   : > { %v12609_v50 = vpop.f32.mrf.mxu0 }
 0xeaf   : > { %v9312_v4 = vpop.f32.mrf.mxu1 }
 0xeb0   : > { %v9316_v33 = vadd.f32 %v9312_v4, %v9139_v12 }
 0xeb1   : > { %v12614_v1 = vpop.f32.mrf.mxu1 }
 0xeb4   : > { %v9489_v26 = vpop.f32.mrf.mxu0 }
 0xeb5   : > { %v9493_v17 = vadd.f32 %v9489_v26, %v9316_v33 }
 0xeb6   : > { %v12619_v30 = vpop.f32.mrf.mxu0 }
 0xebb   : > { %v9666_v49 = vpop.f32.mrf.mxu1 }
 0xebc   : > { %v9670_v9 = vadd.f32 %v9666_v49, %v9493_v17 }
 0xebd   : > { %v12624_v36 = vpop.f32.mrf.mxu1 }
 0xec0   : > { %v9843_v11 = vpop.f32.mrf.mxu0 }
 0xec1   : > { %v9847_v40 = vadd.f32 %v9843_v11, %v9670_v9 }
 0xec2   : > { %v12629_v37 = vpop.f32.mrf.mxu0 }
 0xec7   : > { %v10020_v42 = vpop.f32.mrf.mxu1 }
 0xec8   : > { %v10024_v5 = vadd.f32 %v10020_v42, %v9847_v40 }
 0xec9   : > { %v12634_v21 = vpop.f32.mrf.mxu1 }
 0xecc   : > { %v10197_v2 = vpop.f32.mrf.mxu0 }
 0xecd   : > { %v10201_v45 = vadd.f32 %v10197_v2, %v10024_v5 }
 0xece   : > { %v12639_v32 = vpop.f32.mrf.mxu0 }
 0xed3   : > { %v10374_v60 = vpop.f32.mrf.mxu1 }
 0xed4   : > { %v10378_v20 = vadd.f32 %v10374_v60, %v10201_v45 }
 0xed5   : > { %v12644_v10 = vpop.f32.mrf.mxu1 }
 0xed8   : > { %v10551_v63 = vpop.f32.mrf.mxu0 }
 0xed9   : > { %v10555_v29 = vadd.f32 %v10551_v63, %v10378_v20 }
 0xeda   : > { %v12649_v39 = vpop.f32.mrf.mxu0 }
 0xee0   : > { %v10728_v46 = vpop.f32.mrf.mxu1 }
 0xee1   : > { %v10732_v35 = vadd.f32 %v10728_v46, %v10555_v29 }
 0xee2   : > { %v12654_v6 = vpop.f32.mrf.mxu1 }
 0xee5   : > { %v10905_v52 = vpop.f32.mrf.mxu0 }
 0xee6   : > { %v10909_v61 = vadd.f32 %v10905_v52, %v10732_v35 }
 0xee7   : > { %v12659_v57 = vpop.f32.mrf.mxu0 }
 0xeec   : > { %v11082_v58 = vpop.f32.mrf.mxu1 }
 0xeed   : > { %v11086_v38 = vadd.f32 %v11082_v58, %v10909_v61 }
 0xeee   : > { %v12664_v54 = vpop.f32.mrf.mxu1 }
 0xef1   : > { %v11259_v53 = vpop.f32.mrf.mxu0 }
 0xef2   : > { %v11263_v44 = vadd.f32 %v11259_v53, %v11086_v38 }
 0xef3   : > { %v12669_v28 = vpop.f32.mrf.mxu0 }
 0xef8   : > { %v11436_v18 = vpop.f32.mrf.mxu1 }
 0xef9   : > { %v11440_v43 = vadd.f32 %v11436_v18, %v11263_v44 }
 0xefa   : > { %v12674_v13 = vpop.f32.mrf.mxu1 }
 0xefb   : > { %v11447_v19 = vadd.f32 %v11445_v3, %v11440_v43 }
 0xefd   : > { %11448 = vst.msk [vmem:[%s430_s30] sm:$0x7f] %vm3119_vm6, %v11447_v19 }
 0xefe PF: > { %s17_s25 = sadd.s32 1, %s12799_s25   ;;  %s15739_s21 = smov %s12791_s23 }
 0xeff   : > { %p14_p7 = scmp.ge.s32.totalorder %s17_s25, 14   ;;  %s15740_s22 = smov %s12795_s24 }
 0xf00   : > { %s15741_s23 = smov %s15744_s26  ;;  %s15742_s24 = smov %s15748_s27 }
 0xf01   :  { %16 = sbr.rel (!%p14_p7) target bundleno = 3 (0x3), region = 171 }

</bundles_post_ra>
